<compile_context>
chip_gen: v6e
topology: v6e:2x2x1
jax: 0.10.0
libtpu: 0.0.40
codegen_flags: <defaults>
</compile_context>

<pallas_src>
import functools

import jax
import jax.numpy as jnp
from jax.experimental import pallas as pl
from jax.experimental.pallas import tpu as pltpu


def _round_up(x, m):
    return ((x + m - 1) // m) * m


def _cdiv(a, b):
    return -(-a // b)


# -----------------------------------------------------------------------------
# Fused ResConvBlock kernel (one grid step == one batch image)
# -----------------------------------------------------------------------------
def _res_block_kernel(x_ref, w1_ref, b1_ref, w2_ref, b2_ref, o_ref,
                      hp_ref, st1_ref, st2_ref, *,
                      H, W, Cin_p, Cout, chunk, n_chunks, x_off, hp_off):
    Wp = W + 2                       # "wide" row width (true row + 2 wrap cols)
    HWw = H * Wp                     # real wide rows
    rows_p = n_chunks * chunk        # padded wide rows actually computed
    Cout_p = o_ref.shape[-1]
    Rh = hp_ref.shape[0]
    K1 = 9 * Cin_p
    K1_p = st1_ref.shape[1]
    K2 = 9 * Cout + Cin_p
    K2_p = st2_ref.shape[1]
    h_base = hp_off + Wp             # first body row of the padded hidden map

    # ---- init: zero the staging pad columns and the hp halo rows.  The hp
    # body rows are fully overwritten by conv1 below, so they are NOT cleared.
    if K1_p > K1:
        st1_ref[:, K1:] = jnp.zeros((chunk, K1_p - K1), jnp.bfloat16)
    if K2_p > K2:
        st2_ref[:, K2:] = jnp.zeros((chunk, K2_p - K2), jnp.bfloat16)
    hp_ref[0:h_base, :] = jnp.zeros((h_base, Cout_p), jnp.bfloat16)
    tail = Rh - (h_base + rows_p)
    if tail > 0:
        hp_ref[h_base + rows_p:, :] = jnp.zeros((tail, Cout_p), jnp.bfloat16)

    # ---------------- pass 1: conv1 (3x3, pad=1) + bias + ReLU -> hp --------
    def conv1_chunk(r0):
        for t in range(9):                       # 9 staged slice copies (vst)
            dy, dx = divmod(t, 3)
            s = x_off + dy * Wp + dx - 1
            st1_ref[:, t * Cin_p:(t + 1) * Cin_p] = \
                x_ref[0, pl.ds(s + r0, chunk), :]
        acc = jnp.dot(st1_ref[...], w1_ref[...],      # ONE fused MXU matmul
                      preferred_element_type=jnp.float32)
        h = jnp.maximum(acc + b1_ref[...], 0.0)
        hp_ref[pl.ds(h_base + r0, chunk), :] = h.astype(jnp.bfloat16)

    # ------- pass 2: conv2 (3x3) + fused residual (1x1 / identity) + ReLU ---
    def conv2_chunk(r0):
        for t in range(9):
            dy, dx = divmod(t, 3)
            s = hp_off + dy * Wp + dx - 1
            st2_ref[:, t * Cout:(t + 1) * Cout] = \
                hp_ref[pl.ds(s + r0, chunk), :Cout]
        # residual input (centre tap of x) shares the same matmul K dimension
        st2_ref[:, 9 * Cout:9 * Cout + Cin_p] = \
            x_ref[0, pl.ds(x_off + Wp + r0, chunk), :]
        acc = jnp.dot(st2_ref[...], w2_ref[...],      # ONE fused MXU matmul
                      preferred_element_type=jnp.float32)
        o_ref[0, pl.ds(r0, chunk), :] = jnp.maximum(acc + b2_ref[...], 0.0)

    def run(chunk_fn):
        if n_chunks == 1:                             # fully static fast path
            chunk_fn(0)
        else:                                         # bounded register/code size
            def body(c, carry):
                chunk_fn(pl.multiple_of(c * chunk, 16))
                return carry
            jax.lax.fori_loop(0, n_chunks, body, 0)

    run(conv1_chunk)

    # The wrap columns of the hidden map double as conv2's horizontal zero
    # padding: overwrite them (and any padded rows past HWw) with zeros.
    if rows_p > HWw:
        hp_ref[h_base + HWw:h_base + rows_p, :] = \
            jnp.zeros((rows_p - HWw, Cout_p), jnp.bfloat16)

    def zero_wrap(y, carry):
        hp_ref[pl.ds(h_base - 1 + y * Wp, 2), :] = \
            jnp.zeros((2, Cout_p), jnp.bfloat16)
        return carry
    jax.lax.fori_loop(0, H + 1, zero_wrap, 0, unroll=(H + 1 <= 32))

    run(conv2_chunk)


# -----------------------------------------------------------------------------
# One-time weight packing (torch layouts -> fused, matmul-ready bf16 tiles)
# -----------------------------------------------------------------------------
def pack_params(w1, b1, w2, b2, wa=None, ba=None):
    Cout, Cin = int(w1.shape[0]), int(w1.shape[1])
    Cin_p = _round_up(Cin, 8)
    Cout_p = _round_up(Cout, 128)
    K1 = 9 * Cin_p
    K1_p = _round_up(K1, 128)
    K2 = 9 * Cout + Cin_p
    K2_p = _round_up(K2, 128)

    # conv1: (Cout, Cin, 3, 3) -> rows (tap, cin), cols cout  (padded)
    w1f = jnp.transpose(w1, (2, 3, 1, 0))                       # (3,3,Cin,Cout)
    w1f = jnp.pad(w1f, ((0, 0), (0, 0), (0, Cin_p - Cin), (0, Cout_p - Cout)))
    w1f = w1f.reshape(K1, Cout_p)
    w1f = jnp.pad(w1f, ((0, K1_p - K1), (0, 0)))

    # conv2 taps + residual weight (1x1 adjust, or identity) fused along K.
    w2f = jnp.transpose(w2, (2, 3, 1, 0)).reshape(9 * Cout, Cout)
    if wa is not None:
        wr = jnp.transpose(wa.reshape(Cout, Cin), (1, 0))        # (Cin, Cout)
        br = ba.reshape(Cout)
    else:
        assert Cin == Cout, "identity residual needs in_ch == out_ch"
        wr = jnp.eye(Cout, dtype=jnp.float32)                    # exact in bf16
        br = jnp.zeros((Cout,), jnp.float32)
    wr = jnp.pad(wr, ((0, Cin_p - Cin), (0, 0)))                 # (Cin_p, Cout)
    w2f = jnp.concatenate([w2f, wr], axis=0)                     # (K2, Cout)
    w2f = jnp.pad(w2f, ((0, K2_p - K2), (0, Cout_p - Cout)))

    b1f = jnp.pad(b1.reshape(1, Cout), ((0, 0), (0, Cout_p - Cout)))
    b2f = jnp.pad((b2.reshape(Cout) + br).reshape(1, Cout),
                  ((0, 0), (0, Cout_p - Cout)))

    return {
        "w1": w1f.astype(jnp.bfloat16),
        "b1": b1f.astype(jnp.float32),
        "w2": w2f.astype(jnp.bfloat16),
        "b2": b2f.astype(jnp.float32),
    }


# -----------------------------------------------------------------------------
# Forward pass:  x (N, Cin, H, W) f32  ->  (N, Cout, H, W) f32
# -----------------------------------------------------------------------------
def res_conv_block(x_nchw, packed, *, out_ch):
    N, Cin, H, W = x_nchw.shape
    Cout = out_ch
    Cin_p = _round_up(Cin, 8)
    Cout_p = _round_up(Cout, 128)
    K1_p = _round_up(9 * Cin_p, 128)
    K2_p = _round_up(9 * Cout + Cin_p, 128)
    assert packed["w1"].shape == (K1_p, Cout_p)
    assert packed["w2"].shape == (K2_p, Cout_p)

    Wp = W + 2
    HWw = H * Wp
    # shape-robust chunking: pad the wide row grid to n_chunks * chunk
    n_chunks = _cdiv(_round_up(HWw, 16), 512)
    chunk = _round_up(_cdiv(_round_up(HWw, 16), n_chunks), 16)
    rows_p = n_chunks * chunk

    x_off = 8
    hp_off = ((-Wp) % 16) or 16                     # h_base aligned to 16 rows
    R = _round_up(x_off + 2 * Wp + 1 + rows_p, 8)   # rows of flattened x input
    Rh = _round_up(hp_off + 2 * Wp + 1 + rows_p, 8)  # rows of hidden-map scratch

    # NCHW f32 -> zero-padded NHWC bf16 -> row-flattened (N, R, Cin_p)
    x = jnp.transpose(x_nchw, (0, 2, 3, 1)).astype(jnp.bfloat16)
    xp = jnp.pad(x, ((0, 0), (1, 1), (1, 1), (0, Cin_p - Cin)))
    xp = xp.reshape(N, (H + 2) * Wp, Cin_p)
    xf = jnp.pad(xp, ((0, 0), (x_off, R - x_off - (H + 2) * Wp), (0, 0)))

    kernel = functools.partial(
        _res_block_kernel, H=H, W=W, Cin_p=Cin_p, Cout=Cout,
        chunk=chunk, n_chunks=n_chunks, x_off=x_off, hp_off=hp_off)

    # per-core VMEM footprint (x/out blocks double-buffered + scratch)
    vmem_bytes = (2 * R * Cin_p * 2
                  + 2 * rows_p * Cout_p * 4
                  + 2 * (K1_p + K2_p + 2) * Cout_p * 4
                  + Rh * Cout_p * 2
                  + chunk * (K1_p + K2_p) * 2)
    vmem_limit = int(min(100 * 2**20, max(32 * 2**20, vmem_bytes + (4 << 20))))

    out_wide = pl.pallas_call(
        kernel,
        out_shape=jax.ShapeDtypeStruct((N, rows_p, Cout_p), jnp.float32),
        grid_spec=pltpu.PrefetchScalarGridSpec(
            num_scalar_prefetch=0,
            grid=(N,),
            in_specs=[
                pl.BlockSpec((1, R, Cin_p), lambda b: (b, 0, 0)),
                pl.BlockSpec((K1_p, Cout_p), lambda b: (0, 0)),
                pl.BlockSpec((1, Cout_p), lambda b: (0, 0)),
                pl.BlockSpec((K2_p, Cout_p), lambda b: (0, 0)),
                pl.BlockSpec((1, Cout_p), lambda b: (0, 0)),
            ],
            out_specs=pl.BlockSpec((1, rows_p, Cout_p), lambda b: (b, 0, 0)),
            scratch_shapes=[
                pltpu.VMEM((Rh, Cout_p), jnp.bfloat16),     # padded hidden map
                pltpu.VMEM((chunk, K1_p), jnp.bfloat16),    # conv1 staging
                pltpu.VMEM((chunk, K2_p), jnp.bfloat16),    # conv2 staging
            ],
        ),
        compiler_params=pltpu.CompilerParams(
            dimension_semantics=("parallel",),
            vmem_limit_bytes=vmem_limit,
        ),
    )(xf, packed["w1"], packed["b1"], packed["w2"], packed["b2"])

    # drop channel padding, padded rows and the two wrap columns; back to NCHW
    out = out_wide[:, :HWw, :Cout].reshape(N, H, Wp, Cout)[:, :, 1:1 + W, :]
    return jnp.transpose(out, (0, 3, 1, 2))


# -----------------------------------------------------------------------------
# Pure-JAX reference (loose bf16-tolerance check)
# -----------------------------------------------------------------------------
def res_conv_block_ref(x, w1, b1, w2, b2, wa=None, ba=None):
    dn = ("NCHW", "OIHW", "NCHW")

    def conv(x, w, b, pad):
        y = jax.lax.conv_general_dilated(
            x, w, window_strides=(1, 1), padding=((pad, pad), (pad, pad)),
            dimension_numbers=dn)
        return y + b[None, :, None, None]

    residual = x if wa is None else conv(x, wa, ba, 0)
    h = jax.nn.relu(conv(x, w1, b1, 1))
    return jax.nn.relu(conv(h, w2, b2, 1) + residual)


if __name__ == "__main__":
    key = jax.random.PRNGKey(0)
    k = jax.random.split(key, 8)

    N, Cin, Cout, H, W = 2, 4, 32, 16, 16
    scale = 0.05
    x = jax.random.normal(k[0], (N, Cin, H, W), jnp.float32)
    w1 = jax.random.normal(k[1], (Cout, Cin, 3, 3), jnp.float32) * scale
    b1 = jax.random.normal(k[2], (Cout,), jnp.float32) * scale
    w2 = jax.random.normal(k[3], (Cout, Cout, 3, 3), jnp.float32) * scale
    b2 = jax.random.normal(k[4], (Cout,), jnp.float32) * scale
    wa = jax.random.normal(k[5], (Cout, Cin, 1, 1), jnp.float32) * scale
    ba = jax.random.normal(k[6], (Cout,), jnp.float32) * scale

    packed = pack_params(w1, b1, w2, b2, wa, ba)   # one-time weight packing
    fwd = jax.jit(functools.partial(res_conv_block, out_ch=Cout))

    y = jax.block_until_ready(fwd(x, packed))

    assert y.shape == (N, Cout, H, W), y.shape
    assert bool(jnp.all(jnp.isfinite(y)))

    y_ref = res_conv_block_ref(x, w1, b1, w2, b2, wa, ba)
    err = float(jnp.max(jnp.abs(y - y_ref)))
    assert err < 3e-2, f"max abs error vs reference: {err}"

    print("KERNEL_OK")
</pallas_src>

<mosaic_0001>
module attributes {stable_mosaic.version = 11 : i64} {
  func.func @_res_block_kernel(%arg0: i32, %arg1: memref<1x336x8xbf16, #tpu.memory_space<vmem>>, %arg2: memref<128x128xbf16, #tpu.memory_space<vmem>>, %arg3: memref<1x128xf32, #tpu.memory_space<vmem>>, %arg4: memref<384x128xbf16, #tpu.memory_space<vmem>>, %arg5: memref<1x128xf32, #tpu.memory_space<vmem>>, %arg6: memref<1x288x128xf32, #tpu.memory_space<vmem>>, %arg7: memref<344x128xbf16, #tpu.memory_space<vmem>>, %arg8: memref<288x128xbf16, #tpu.memory_space<vmem>>, %arg9: memref<288x384xbf16, #tpu.memory_space<vmem>>) attributes {dimension_semantics = [#tpu.dimension_semantics<parallel>], iteration_bounds = array<i64: 2>, scalar_prefetch = 0 : i64, scratch_operands = 3 : i64, tpu.core_type = #tpu.core_type<tc>, window_params = [{transform_indices = @transform_0, window_bounds = array<i64: 1, 336, 8>}, {pipeline_mode = #tpu.pipeline_mode<synchronous>, transform_indices = @transform_1, window_bounds = array<i64: 128, 128>}, {pipeline_mode = #tpu.pipeline_mode<synchronous>, transform_indices = @transform_2, window_bounds = array<i64: 1, 128>}, {pipeline_mode = #tpu.pipeline_mode<synchronous>, transform_indices = @transform_3, window_bounds = array<i64: 384, 128>}, {pipeline_mode = #tpu.pipeline_mode<synchronous>, transform_indices = @transform_4, window_bounds = array<i64: 1, 128>}, {transform_indices = @transform_5, window_bounds = array<i64: 1, 288, 128>}]} {
    %cst = arith.constant 0.000000e+00 : bf16
    %0 = vector.broadcast %cst : bf16 to vector<288x56xbf16>
    %c0 = arith.constant 0 : index
    %c72 = arith.constant 72 : index
    %1 = vector.load %arg8[%c0, %c72] : memref<288x128xbf16, #tpu.memory_space<vmem>>, vector<288x56xbf16>
    tpu.vector_store %arg8[%c0, %c72], %0 {strides = array<i32>} : memref<288x128xbf16, #tpu.memory_space<vmem>>, vector<288x56xbf16>,
    %cst_0 = arith.constant 0.000000e+00 : bf16
    %2 = vector.broadcast %cst_0 : bf16 to vector<288x88xbf16>
    %c0_1 = arith.constant 0 : index
    %c296 = arith.constant 296 : index
    %3 = vector.load %arg9[%c0_1, %c296] : memref<288x384xbf16, #tpu.memory_space<vmem>>, vector<288x88xbf16>
    tpu.vector_store %arg9[%c0_1, %c296], %2 {strides = array<i32>} : memref<288x384xbf16, #tpu.memory_space<vmem>>, vector<288x88xbf16>,
    %cst_2 = arith.constant 0.000000e+00 : bf16
    %4 = vector.broadcast %cst_2 : bf16 to vector<32x128xbf16>
    %c0_3 = arith.constant 0 : index
    %c0_4 = arith.constant 0 : index
    %5 = vector.load %arg7[%c0_3, %c0_4] : memref<344x128xbf16, #tpu.memory_space<vmem>>, vector<32x128xbf16>
    tpu.vector_store %arg7[%c0_3, %c0_4], %4 {strides = array<i32>} : memref<344x128xbf16, #tpu.memory_space<vmem>>, vector<32x128xbf16>,
    %cst_5 = arith.constant 0.000000e+00 : bf16
    %6 = vector.broadcast %cst_5 : bf16 to vector<24x128xbf16>
    %c320 = arith.constant 320 : index
    %c0_6 = arith.constant 0 : index
    %7 = vector.load %arg7[%c320, %c0_6] : memref<344x128xbf16, #tpu.memory_space<vmem>>, vector<24x128xbf16>
    tpu.vector_store %arg7[%c320, %c0_6], %6 {strides = array<i32>} : memref<344x128xbf16, #tpu.memory_space<vmem>>, vector<24x128xbf16>,
    %c0_7 = arith.constant 0 : index
    %c7 = arith.constant 7 : index
    %c0_8 = arith.constant 0 : index
    %8 = vector.load %arg1[%c0_7, %c7, %c0_8] : memref<1x336x8xbf16, #tpu.memory_space<vmem>>, vector<1x288x8xbf16>
    %9 = vector.shape_cast %8 : vector<1x288x8xbf16> to vector<288x8xbf16>
    %c0_9 = arith.constant 0 : index
    %c0_10 = arith.constant 0 : index
    %10 = vector.load %arg8[%c0_9, %c0_10] : memref<288x128xbf16, #tpu.memory_space<vmem>>, vector<288x8xbf16>
    tpu.vector_store %arg8[%c0_9, %c0_10], %9 {strides = array<i32>} : memref<288x128xbf16, #tpu.memory_space<vmem>>, vector<288x8xbf16>,
    %c0_11 = arith.constant 0 : index
    %c8 = arith.constant 8 : index
    %c0_12 = arith.constant 0 : index
    %11 = vector.load %arg1[%c0_11, %c8, %c0_12] : memref<1x336x8xbf16, #tpu.memory_space<vmem>>, vector<1x288x8xbf16>
    %12 = vector.shape_cast %11 : vector<1x288x8xbf16> to vector<288x8xbf16>
    %c0_13 = arith.constant 0 : index
    %c8_14 = arith.constant 8 : index
    %13 = vector.load %arg8[%c0_13, %c8_14] : memref<288x128xbf16, #tpu.memory_space<vmem>>, vector<288x8xbf16>
    tpu.vector_store %arg8[%c0_13, %c8_14], %12 {strides = array<i32>} : memref<288x128xbf16, #tpu.memory_space<vmem>>, vector<288x8xbf16>,
    %c0_15 = arith.constant 0 : index
    %c9 = arith.constant 9 : index
    %c0_16 = arith.constant 0 : index
    %14 = vector.load %arg1[%c0_15, %c9, %c0_16] : memref<1x336x8xbf16, #tpu.memory_space<vmem>>, vector<1x288x8xbf16>
    %15 = vector.shape_cast %14 : vector<1x288x8xbf16> to vector<288x8xbf16>
    %c0_17 = arith.constant 0 : index
    %c16 = arith.constant 16 : index
    %16 = vector.load %arg8[%c0_17, %c16] : memref<288x128xbf16, #tpu.memory_space<vmem>>, vector<288x8xbf16>
    tpu.vector_store %arg8[%c0_17, %c16], %15 {strides = array<i32>} : memref<288x128xbf16, #tpu.memory_space<vmem>>, vector<288x8xbf16>,
    %c0_18 = arith.constant 0 : index
    %c25 = arith.constant 25 : index
    %c0_19 = arith.constant 0 : index
    %17 = vector.load %arg1[%c0_18, %c25, %c0_19] : memref<1x336x8xbf16, #tpu.memory_space<vmem>>, vector<1x288x8xbf16>
    %18 = vector.shape_cast %17 : vector<1x288x8xbf16> to vector<288x8xbf16>
    %c0_20 = arith.constant 0 : index
    %c24 = arith.constant 24 : index
    %19 = vector.load %arg8[%c0_20, %c24] : memref<288x128xbf16, #tpu.memory_space<vmem>>, vector<288x8xbf16>
    tpu.vector_store %arg8[%c0_20, %c24], %18 {strides = array<i32>} : memref<288x128xbf16, #tpu.memory_space<vmem>>, vector<288x8xbf16>,
    %c0_21 = arith.constant 0 : index
    %c26 = arith.constant 26 : index
    %c0_22 = arith.constant 0 : index
    %20 = vector.load %arg1[%c0_21, %c26, %c0_22] : memref<1x336x8xbf16, #tpu.memory_space<vmem>>, vector<1x288x8xbf16>
    %21 = vector.shape_cast %20 : vector<1x288x8xbf16> to vector<288x8xbf16>
    %c0_23 = arith.constant 0 : index
    %c32 = arith.constant 32 : index
    %22 = vector.load %arg8[%c0_23, %c32] : memref<288x128xbf16, #tpu.memory_space<vmem>>, vector<288x8xbf16>
    tpu.vector_store %arg8[%c0_23, %c32], %21 {strides = array<i32>} : memref<288x128xbf16, #tpu.memory_space<vmem>>, vector<288x8xbf16>,
    %c0_24 = arith.constant 0 : index
    %c27 = arith.constant 27 : index
    %c0_25 = arith.constant 0 : index
    %23 = vector.load %arg1[%c0_24, %c27, %c0_25] : memref<1x336x8xbf16, #tpu.memory_space<vmem>>, vector<1x288x8xbf16>
    %24 = vector.shape_cast %23 : vector<1x288x8xbf16> to vector<288x8xbf16>
    %c0_26 = arith.constant 0 : index
    %c40 = arith.constant 40 : index
    %25 = vector.load %arg8[%c0_26, %c40] : memref<288x128xbf16, #tpu.memory_space<vmem>>, vector<288x8xbf16>
    tpu.vector_store %arg8[%c0_26, %c40], %24 {strides = array<i32>} : memref<288x128xbf16, #tpu.memory_space<vmem>>, vector<288x8xbf16>,
    %c0_27 = arith.constant 0 : index
    %c43 = arith.constant 43 : index
    %c0_28 = arith.constant 0 : index
    %26 = vector.load %arg1[%c0_27, %c43, %c0_28] : memref<1x336x8xbf16, #tpu.memory_space<vmem>>, vector<1x288x8xbf16>
    %27 = vector.shape_cast %26 : vector<1x288x8xbf16> to vector<288x8xbf16>
    %c0_29 = arith.constant 0 : index
    %c48 = arith.constant 48 : index
    %28 = vector.load %arg8[%c0_29, %c48] : memref<288x128xbf16, #tpu.memory_space<vmem>>, vector<288x8xbf16>
    tpu.vector_store %arg8[%c0_29, %c48], %27 {strides = array<i32>} : memref<288x128xbf16, #tpu.memory_space<vmem>>, vector<288x8xbf16>,
    %c0_30 = arith.constant 0 : index
    %c44 = arith.constant 44 : index
    %c0_31 = arith.constant 0 : index
    %29 = vector.load %arg1[%c0_30, %c44, %c0_31] : memref<1x336x8xbf16, #tpu.memory_space<vmem>>, vector<1x288x8xbf16>
    %30 = vector.shape_cast %29 : vector<1x288x8xbf16> to vector<288x8xbf16>
    %c0_32 = arith.constant 0 : index
    %c56 = arith.constant 56 : index
    %31 = vector.load %arg8[%c0_32, %c56] : memref<288x128xbf16, #tpu.memory_space<vmem>>, vector<288x8xbf16>
    tpu.vector_store %arg8[%c0_32, %c56], %30 {strides = array<i32>} : memref<288x128xbf16, #tpu.memory_space<vmem>>, vector<288x8xbf16>,
    %c0_33 = arith.constant 0 : index
    %c45 = arith.constant 45 : index
    %c0_34 = arith.constant 0 : index
    %32 = vector.load %arg1[%c0_33, %c45, %c0_34] : memref<1x336x8xbf16, #tpu.memory_space<vmem>>, vector<1x288x8xbf16>
    %33 = vector.shape_cast %32 : vector<1x288x8xbf16> to vector<288x8xbf16>
    %c0_35 = arith.constant 0 : index
    %c64 = arith.constant 64 : index
    %34 = vector.load %arg8[%c0_35, %c64] : memref<288x128xbf16, #tpu.memory_space<vmem>>, vector<288x8xbf16>
    tpu.vector_store %arg8[%c0_35, %c64], %33 {strides = array<i32>} : memref<288x128xbf16, #tpu.memory_space<vmem>>, vector<288x8xbf16>,
    %c0_36 = arith.constant 0 : index
    %c0_37 = arith.constant 0 : index
    %35 = vector.load %arg8[%c0_36, %c0_37] : memref<288x128xbf16, #tpu.memory_space<vmem>>, vector<288x128xbf16>
    %c0_38 = arith.constant 0 : index
    %c0_39 = arith.constant 0 : index
    %36 = vector.load %arg2[%c0_38, %c0_39] : memref<128x128xbf16, #tpu.memory_space<vmem>>, vector<128x128xbf16>
    %cst_40 = arith.constant dense<0.000000e+00> : vector<288x128xf32>
    %37 = tpu.matmul %35, %36, %cst_40 {dimension_numbers = #tpu.dot_dimension_numbers<[1], [0], [0], [1], [0, 0, 1, 1], [], []>} : vector<288x128xbf16>, vector<128x128xbf16>, vector<288x128xf32> -> vector<288x128xf32>
    %c0_41 = arith.constant 0 : index
    %c0_42 = arith.constant 0 : index
    %38 = vector.load %arg3[%c0_41, %c0_42] : memref<1x128xf32, #tpu.memory_space<vmem>>, vector<1x128xf32>
    %39 = vector.broadcast %38 : vector<1x128xf32> to vector<288x128xf32>
    %40 = arith.addf %37, %39 : vector<288x128xf32>
    %cst_43 = arith.constant 0.000000e+00 : f32
    %41 = vector.broadcast %cst_43 : f32 to vector<288x128xf32>
    %42 = arith.maximumf %40, %41 : vector<288x128xf32>
    %43 = arith.truncf %42 : vector<288x128xf32> to vector<288x128xbf16>
    %c32_44 = arith.constant 32 : index
    %c0_45 = arith.constant 0 : index
    %44 = vector.load %arg7[%c32_44, %c0_45] : memref<344x128xbf16, #tpu.memory_space<vmem>>, vector<288x128xbf16>
    tpu.vector_store %arg7[%c32_44, %c0_45], %43 {strides = array<i32>} : memref<344x128xbf16, #tpu.memory_space<vmem>>, vector<288x128xbf16>,
    %c0_i32 = arith.constant 0 : i32
    %cst_46 = arith.constant 0.000000e+00 : bf16
    %45 = vector.broadcast %cst_46 : bf16 to vector<2x128xbf16>
    %c18_i32 = arith.constant 18 : i32
    %46 = arith.muli %c0_i32, %c18_i32 : i32
    %c31_i32 = arith.constant 31 : i32
    %47 = arith.addi %c31_i32, %46 : i32
    %48 = arith.index_cast %47 : i32 to index
    %c0_47 = arith.constant 0 : index
    %49 = vector.load %arg7[%48, %c0_47] : memref<344x128xbf16, #tpu.memory_space<vmem>>, vector<2x128xbf16>
    tpu.vector_store %arg7[%48, %c0_47], %45 {strides = array<i32>} : memref<344x128xbf16, #tpu.memory_space<vmem>>, vector<2x128xbf16>,
    %c1_i32 = arith.constant 1 : i32
    %cst_48 = arith.constant 0.000000e+00 : bf16
    %50 = vector.broadcast %cst_48 : bf16 to vector<2x128xbf16>
    %c18_i32_49 = arith.constant 18 : i32
    %51 = arith.muli %c1_i32, %c18_i32_49 : i32
    %c31_i32_50 = arith.constant 31 : i32
    %52 = arith.addi %c31_i32_50, %51 : i32
    %53 = arith.index_cast %52 : i32 to index
    %c0_51 = arith.constant 0 : index
    %54 = vector.load %arg7[%53, %c0_51] : memref<344x128xbf16, #tpu.memory_space<vmem>>, vector<2x128xbf16>
    tpu.vector_store %arg7[%53, %c0_51], %50 {strides = array<i32>} : memref<344x128xbf16, #tpu.memory_space<vmem>>, vector<2x128xbf16>,
    %c2_i32 = arith.constant 2 : i32
    %cst_52 = arith.constant 0.000000e+00 : bf16
    %55 = vector.broadcast %cst_52 : bf16 to vector<2x128xbf16>
    %c18_i32_53 = arith.constant 18 : i32
    %56 = arith.muli %c2_i32, %c18_i32_53 : i32
    %c31_i32_54 = arith.constant 31 : i32
    %57 = arith.addi %c31_i32_54, %56 : i32
    %58 = arith.index_cast %57 : i32 to index
    %c0_55 = arith.constant 0 : index
    %59 = vector.load %arg7[%58, %c0_55] : memref<344x128xbf16, #tpu.memory_space<vmem>>, vector<2x128xbf16>
    tpu.vector_store %arg7[%58, %c0_55], %55 {strides = array<i32>} : memref<344x128xbf16, #tpu.memory_space<vmem>>, vector<2x128xbf16>,
    %c3_i32 = arith.constant 3 : i32
    %cst_56 = arith.constant 0.000000e+00 : bf16
    %60 = vector.broadcast %cst_56 : bf16 to vector<2x128xbf16>
    %c18_i32_57 = arith.constant 18 : i32
    %61 = arith.muli %c3_i32, %c18_i32_57 : i32
    %c31_i32_58 = arith.constant 31 : i32
    %62 = arith.addi %c31_i32_58, %61 : i32
    %63 = arith.index_cast %62 : i32 to index
    %c0_59 = arith.constant 0 : index
    %64 = vector.load %arg7[%63, %c0_59] : memref<344x128xbf16, #tpu.memory_space<vmem>>, vector<2x128xbf16>
    tpu.vector_store %arg7[%63, %c0_59], %60 {strides = array<i32>} : memref<344x128xbf16, #tpu.memory_space<vmem>>, vector<2x128xbf16>,
    %c4_i32 = arith.constant 4 : i32
    %cst_60 = arith.constant 0.000000e+00 : bf16
    %65 = vector.broadcast %cst_60 : bf16 to vector<2x128xbf16>
    %c18_i32_61 = arith.constant 18 : i32
    %66 = arith.muli %c4_i32, %c18_i32_61 : i32
    %c31_i32_62 = arith.constant 31 : i32
    %67 = arith.addi %c31_i32_62, %66 : i32
    %68 = arith.index_cast %67 : i32 to index
    %c0_63 = arith.constant 0 : index
    %69 = vector.load %arg7[%68, %c0_63] : memref<344x128xbf16, #tpu.memory_space<vmem>>, vector<2x128xbf16>
    tpu.vector_store %arg7[%68, %c0_63], %65 {strides = array<i32>} : memref<344x128xbf16, #tpu.memory_space<vmem>>, vector<2x128xbf16>,
    %c5_i32 = arith.constant 5 : i32
    %cst_64 = arith.constant 0.000000e+00 : bf16
    %70 = vector.broadcast %cst_64 : bf16 to vector<2x128xbf16>
    %c18_i32_65 = arith.constant 18 : i32
    %71 = arith.muli %c5_i32, %c18_i32_65 : i32
    %c31_i32_66 = arith.constant 31 : i32
    %72 = arith.addi %c31_i32_66, %71 : i32
    %73 = arith.index_cast %72 : i32 to index
    %c0_67 = arith.constant 0 : index
    %74 = vector.load %arg7[%73, %c0_67] : memref<344x128xbf16, #tpu.memory_space<vmem>>, vector<2x128xbf16>
    tpu.vector_store %arg7[%73, %c0_67], %70 {strides = array<i32>} : memref<344x128xbf16, #tpu.memory_space<vmem>>, vector<2x128xbf16>,
    %c6_i32 = arith.constant 6 : i32
    %cst_68 = arith.constant 0.000000e+00 : bf16
    %75 = vector.broadcast %cst_68 : bf16 to vector<2x128xbf16>
    %c18_i32_69 = arith.constant 18 : i32
    %76 = arith.muli %c6_i32, %c18_i32_69 : i32
    %c31_i32_70 = arith.constant 31 : i32
    %77 = arith.addi %c31_i32_70, %76 : i32
    %78 = arith.index_cast %77 : i32 to index
    %c0_71 = arith.constant 0 : index
    %79 = vector.load %arg7[%78, %c0_71] : memref<344x128xbf16, #tpu.memory_space<vmem>>, vector<2x128xbf16>
    tpu.vector_store %arg7[%78, %c0_71], %75 {strides = array<i32>} : memref<344x128xbf16, #tpu.memory_space<vmem>>, vector<2x128xbf16>,
    %c7_i32 = arith.constant 7 : i32
    %cst_72 = arith.constant 0.000000e+00 : bf16
    %80 = vector.broadcast %cst_72 : bf16 to vector<2x128xbf16>
    %c18_i32_73 = arith.constant 18 : i32
    %81 = arith.muli %c7_i32, %c18_i32_73 : i32
    %c31_i32_74 = arith.constant 31 : i32
    %82 = arith.addi %c31_i32_74, %81 : i32
    %83 = arith.index_cast %82 : i32 to index
    %c0_75 = arith.constant 0 : index
    %84 = vector.load %arg7[%83, %c0_75] : memref<344x128xbf16, #tpu.memory_space<vmem>>, vector<2x128xbf16>
    tpu.vector_store %arg7[%83, %c0_75], %80 {strides = array<i32>} : memref<344x128xbf16, #tpu.memory_space<vmem>>, vector<2x128xbf16>,
    %c8_i32 = arith.constant 8 : i32
    %cst_76 = arith.constant 0.000000e+00 : bf16
    %85 = vector.broadcast %cst_76 : bf16 to vector<2x128xbf16>
    %c18_i32_77 = arith.constant 18 : i32
    %86 = arith.muli %c8_i32, %c18_i32_77 : i32
    %c31_i32_78 = arith.constant 31 : i32
    %87 = arith.addi %c31_i32_78, %86 : i32
    %88 = arith.index_cast %87 : i32 to index
    %c0_79 = arith.constant 0 : index
    %89 = vector.load %arg7[%88, %c0_79] : memref<344x128xbf16, #tpu.memory_space<vmem>>, vector<2x128xbf16>
    tpu.vector_store %arg7[%88, %c0_79], %85 {strides = array<i32>} : memref<344x128xbf16, #tpu.memory_space<vmem>>, vector<2x128xbf16>,
    %c9_i32 = arith.constant 9 : i32
    %cst_80 = arith.constant 0.000000e+00 : bf16
    %90 = vector.broadcast %cst_80 : bf16 to vector<2x128xbf16>
    %c18_i32_81 = arith.constant 18 : i32
    %91 = arith.muli %c9_i32, %c18_i32_81 : i32
    %c31_i32_82 = arith.constant 31 : i32
    %92 = arith.addi %c31_i32_82, %91 : i32
    %93 = arith.index_cast %92 : i32 to index
    %c0_83 = arith.constant 0 : index
    %94 = vector.load %arg7[%93, %c0_83] : memref<344x128xbf16, #tpu.memory_space<vmem>>, vector<2x128xbf16>
    tpu.vector_store %arg7[%93, %c0_83], %90 {strides = array<i32>} : memref<344x128xbf16, #tpu.memory_space<vmem>>, vector<2x128xbf16>,
    %c10_i32 = arith.constant 10 : i32
    %cst_84 = arith.constant 0.000000e+00 : bf16
    %95 = vector.broadcast %cst_84 : bf16 to vector<2x128xbf16>
    %c18_i32_85 = arith.constant 18 : i32
    %96 = arith.muli %c10_i32, %c18_i32_85 : i32
    %c31_i32_86 = arith.constant 31 : i32
    %97 = arith.addi %c31_i32_86, %96 : i32
    %98 = arith.index_cast %97 : i32 to index
    %c0_87 = arith.constant 0 : index
    %99 = vector.load %arg7[%98, %c0_87] : memref<344x128xbf16, #tpu.memory_space<vmem>>, vector<2x128xbf16>
    tpu.vector_store %arg7[%98, %c0_87], %95 {strides = array<i32>} : memref<344x128xbf16, #tpu.memory_space<vmem>>, vector<2x128xbf16>,
    %c11_i32 = arith.constant 11 : i32
    %cst_88 = arith.constant 0.000000e+00 : bf16
    %100 = vector.broadcast %cst_88 : bf16 to vector<2x128xbf16>
    %c18_i32_89 = arith.constant 18 : i32
    %101 = arith.muli %c11_i32, %c18_i32_89 : i32
    %c31_i32_90 = arith.constant 31 : i32
    %102 = arith.addi %c31_i32_90, %101 : i32
    %103 = arith.index_cast %102 : i32 to index
    %c0_91 = arith.constant 0 : index
    %104 = vector.load %arg7[%103, %c0_91] : memref<344x128xbf16, #tpu.memory_space<vmem>>, vector<2x128xbf16>
    tpu.vector_store %arg7[%103, %c0_91], %100 {strides = array<i32>} : memref<344x128xbf16, #tpu.memory_space<vmem>>, vector<2x128xbf16>,
    %c12_i32 = arith.constant 12 : i32
    %cst_92 = arith.constant 0.000000e+00 : bf16
    %105 = vector.broadcast %cst_92 : bf16 to vector<2x128xbf16>
    %c18_i32_93 = arith.constant 18 : i32
    %106 = arith.muli %c12_i32, %c18_i32_93 : i32
    %c31_i32_94 = arith.constant 31 : i32
    %107 = arith.addi %c31_i32_94, %106 : i32
    %108 = arith.index_cast %107 : i32 to index
    %c0_95 = arith.constant 0 : index
    %109 = vector.load %arg7[%108, %c0_95] : memref<344x128xbf16, #tpu.memory_space<vmem>>, vector<2x128xbf16>
    tpu.vector_store %arg7[%108, %c0_95], %105 {strides = array<i32>} : memref<344x128xbf16, #tpu.memory_space<vmem>>, vector<2x128xbf16>,
    %c13_i32 = arith.constant 13 : i32
    %cst_96 = arith.constant 0.000000e+00 : bf16
    %110 = vector.broadcast %cst_96 : bf16 to vector<2x128xbf16>
    %c18_i32_97 = arith.constant 18 : i32
    %111 = arith.muli %c13_i32, %c18_i32_97 : i32
    %c31_i32_98 = arith.constant 31 : i32
    %112 = arith.addi %c31_i32_98, %111 : i32
    %113 = arith.index_cast %112 : i32 to index
    %c0_99 = arith.constant 0 : index
    %114 = vector.load %arg7[%113, %c0_99] : memref<344x128xbf16, #tpu.memory_space<vmem>>, vector<2x128xbf16>
    tpu.vector_store %arg7[%113, %c0_99], %110 {strides = array<i32>} : memref<344x128xbf16, #tpu.memory_space<vmem>>, vector<2x128xbf16>,
    %c14_i32 = arith.constant 14 : i32
    %cst_100 = arith.constant 0.000000e+00 : bf16
    %115 = vector.broadcast %cst_100 : bf16 to vector<2x128xbf16>
    %c18_i32_101 = arith.constant 18 : i32
    %116 = arith.muli %c14_i32, %c18_i32_101 : i32
    %c31_i32_102 = arith.constant 31 : i32
    %117 = arith.addi %c31_i32_102, %116 : i32
    %118 = arith.index_cast %117 : i32 to index
    %c0_103 = arith.constant 0 : index
    %119 = vector.load %arg7[%118, %c0_103] : memref<344x128xbf16, #tpu.memory_space<vmem>>, vector<2x128xbf16>
    tpu.vector_store %arg7[%118, %c0_103], %115 {strides = array<i32>} : memref<344x128xbf16, #tpu.memory_space<vmem>>, vector<2x128xbf16>,
    %c15_i32 = arith.constant 15 : i32
    %cst_104 = arith.constant 0.000000e+00 : bf16
    %120 = vector.broadcast %cst_104 : bf16 to vector<2x128xbf16>
    %c18_i32_105 = arith.constant 18 : i32
    %121 = arith.muli %c15_i32, %c18_i32_105 : i32
    %c31_i32_106 = arith.constant 31 : i32
    %122 = arith.addi %c31_i32_106, %121 : i32
    %123 = arith.index_cast %122 : i32 to index
    %c0_107 = arith.constant 0 : index
    %124 = vector.load %arg7[%123, %c0_107] : memref<344x128xbf16, #tpu.memory_space<vmem>>, vector<2x128xbf16>
    tpu.vector_store %arg7[%123, %c0_107], %120 {strides = array<i32>} : memref<344x128xbf16, #tpu.memory_space<vmem>>, vector<2x128xbf16>,
    %c16_i32 = arith.constant 16 : i32
    %cst_108 = arith.constant 0.000000e+00 : bf16
    %125 = vector.broadcast %cst_108 : bf16 to vector<2x128xbf16>
    %c18_i32_109 = arith.constant 18 : i32
    %126 = arith.muli %c16_i32, %c18_i32_109 : i32
    %c31_i32_110 = arith.constant 31 : i32
    %127 = arith.addi %c31_i32_110, %126 : i32
    %128 = arith.index_cast %127 : i32 to index
    %c0_111 = arith.constant 0 : index
    %129 = vector.load %arg7[%128, %c0_111] : memref<344x128xbf16, #tpu.memory_space<vmem>>, vector<2x128xbf16>
    tpu.vector_store %arg7[%128, %c0_111], %125 {strides = array<i32>} : memref<344x128xbf16, #tpu.memory_space<vmem>>, vector<2x128xbf16>,
    %c17_i32 = arith.constant 17 : i32
    %c13 = arith.constant 13 : index
    %c0_112 = arith.constant 0 : index
    %130 = vector.load %arg7[%c13, %c0_112] : memref<344x128xbf16, #tpu.memory_space<vmem>>, vector<288x32xbf16>
    %c0_113 = arith.constant 0 : index
    %c0_114 = arith.constant 0 : index
    %131 = vector.load %arg9[%c0_113, %c0_114] : memref<288x384xbf16, #tpu.memory_space<vmem>>, vector<288x32xbf16>
    tpu.vector_store %arg9[%c0_113, %c0_114], %130 {strides = array<i32>} : memref<288x384xbf16, #tpu.memory_space<vmem>>, vector<288x32xbf16>,
    %c14 = arith.constant 14 : index
    %c0_115 = arith.constant 0 : index
    %132 = vector.load %arg7[%c14, %c0_115] : memref<344x128xbf16, #tpu.memory_space<vmem>>, vector<288x32xbf16>
    %c0_116 = arith.constant 0 : index
    %c32_117 = arith.constant 32 : index
    %133 = vector.load %arg9[%c0_116, %c32_117] : memref<288x384xbf16, #tpu.memory_space<vmem>>, vector<288x32xbf16>
    tpu.vector_store %arg9[%c0_116, %c32_117], %132 {strides = array<i32>} : memref<288x384xbf16, #tpu.memory_space<vmem>>, vector<288x32xbf16>,
    %c15 = arith.constant 15 : index
    %c0_118 = arith.constant 0 : index
    %134 = vector.load %arg7[%c15, %c0_118] : memref<344x128xbf16, #tpu.memory_space<vmem>>, vector<288x32xbf16>
    %c0_119 = arith.constant 0 : index
    %c64_120 = arith.constant 64 : index
    %135 = vector.load %arg9[%c0_119, %c64_120] : memref<288x384xbf16, #tpu.memory_space<vmem>>, vector<288x32xbf16>
    tpu.vector_store %arg9[%c0_119, %c64_120], %134 {strides = array<i32>} : memref<288x384xbf16, #tpu.memory_space<vmem>>, vector<288x32xbf16>,
    %c31 = arith.constant 31 : index
    %c0_121 = arith.constant 0 : index
    %136 = vector.load %arg7[%c31, %c0_121] : memref<344x128xbf16, #tpu.memory_space<vmem>>, vector<288x32xbf16>
    %c0_122 = arith.constant 0 : index
    %c96 = arith.constant 96 : index
    %137 = vector.load %arg9[%c0_122, %c96] : memref<288x384xbf16, #tpu.memory_space<vmem>>, vector<288x32xbf16>
    tpu.vector_store %arg9[%c0_122, %c96], %136 {strides = array<i32>} : memref<288x384xbf16, #tpu.memory_space<vmem>>, vector<288x32xbf16>,
    %c32_123 = arith.constant 32 : index
    %c0_124 = arith.constant 0 : index
    %138 = vector.load %arg7[%c32_123, %c0_124] : memref<344x128xbf16, #tpu.memory_space<vmem>>, vector<288x32xbf16>
    %c0_125 = arith.constant 0 : index
    %c128 = arith.constant 128 : index
    %139 = vector.load %arg9[%c0_125, %c128] : memref<288x384xbf16, #tpu.memory_space<vmem>>, vector<288x32xbf16>
    tpu.vector_store %arg9[%c0_125, %c128], %138 {strides = array<i32>} : memref<288x384xbf16, #tpu.memory_space<vmem>>, vector<288x32xbf16>,
    %c33 = arith.constant 33 : index
    %c0_126 = arith.constant 0 : index
    %140 = vector.load %arg7[%c33, %c0_126] : memref<344x128xbf16, #tpu.memory_space<vmem>>, vector<288x32xbf16>
    %c0_127 = arith.constant 0 : index
    %c160 = arith.constant 160 : index
    %141 = vector.load %arg9[%c0_127, %c160] : memref<288x384xbf16, #tpu.memory_space<vmem>>, vector<288x32xbf16>
    tpu.vector_store %arg9[%c0_127, %c160], %140 {strides = array<i32>} : memref<288x384xbf16, #tpu.memory_space<vmem>>, vector<288x32xbf16>,
    %c49 = arith.constant 49 : index
    %c0_128 = arith.constant 0 : index
    %142 = vector.load %arg7[%c49, %c0_128] : memref<344x128xbf16, #tpu.memory_space<vmem>>, vector<288x32xbf16>
    %c0_129 = arith.constant 0 : index
    %c192 = arith.constant 192 : index
    %143 = vector.load %arg9[%c0_129, %c192] : memref<288x384xbf16, #tpu.memory_space<vmem>>, vector<288x32xbf16>
    tpu.vector_store %arg9[%c0_129, %c192], %142 {strides = array<i32>} : memref<288x384xbf16, #tpu.memory_space<vmem>>, vector<288x32xbf16>,
    %c50 = arith.constant 50 : index
    %c0_130 = arith.constant 0 : index
    %144 = vector.load %arg7[%c50, %c0_130] : memref<344x128xbf16, #tpu.memory_space<vmem>>, vector<288x32xbf16>
    %c0_131 = arith.constant 0 : index
    %c224 = arith.constant 224 : index
    %145 = vector.load %arg9[%c0_131, %c224] : memref<288x384xbf16, #tpu.memory_space<vmem>>, vector<288x32xbf16>
    tpu.vector_store %arg9[%c0_131, %c224], %144 {strides = array<i32>} : memref<288x384xbf16, #tpu.memory_space<vmem>>, vector<288x32xbf16>,
    %c51 = arith.constant 51 : index
    %c0_132 = arith.constant 0 : index
    %146 = vector.load %arg7[%c51, %c0_132] : memref<344x128xbf16, #tpu.memory_space<vmem>>, vector<288x32xbf16>
    %c0_133 = arith.constant 0 : index
    %c256 = arith.constant 256 : index
    %147 = vector.load %arg9[%c0_133, %c256] : memref<288x384xbf16, #tpu.memory_space<vmem>>, vector<288x32xbf16>
    tpu.vector_store %arg9[%c0_133, %c256], %146 {strides = array<i32>} : memref<288x384xbf16, #tpu.memory_space<vmem>>, vector<288x32xbf16>,
    %c0_134 = arith.constant 0 : index
    %c26_135 = arith.constant 26 : index
    %c0_136 = arith.constant 0 : index
    %148 = vector.load %arg1[%c0_134, %c26_135, %c0_136] : memref<1x336x8xbf16, #tpu.memory_space<vmem>>, vector<1x288x8xbf16>
    %149 = vector.shape_cast %148 : vector<1x288x8xbf16> to vector<288x8xbf16>
    %c0_137 = arith.constant 0 : index
    %c288 = arith.constant 288 : index
    %150 = vector.load %arg9[%c0_137, %c288] : memref<288x384xbf16, #tpu.memory_space<vmem>>, vector<288x8xbf16>
    tpu.vector_store %arg9[%c0_137, %c288], %149 {strides = array<i32>} : memref<288x384xbf16, #tpu.memory_space<vmem>>, vector<288x8xbf16>,
    %c0_138 = arith.constant 0 : index
    %c0_139 = arith.constant 0 : index
    %151 = vector.load %arg9[%c0_138, %c0_139] : memref<288x384xbf16, #tpu.memory_space<vmem>>, vector<288x384xbf16>
    %c0_140 = arith.constant 0 : index
    %c0_141 = arith.constant 0 : index
    %152 = vector.load %arg4[%c0_140, %c0_141] : memref<384x128xbf16, #tpu.memory_space<vmem>>, vector<384x128xbf16>
    %cst_142 = arith.constant dense<0.000000e+00> : vector<288x128xf32>
    %153 = tpu.matmul %151, %152, %cst_142 {dimension_numbers = #tpu.dot_dimension_numbers<[1], [0], [0], [1], [0, 0, 1, 1], [], []>} : vector<288x384xbf16>, vector<384x128xbf16>, vector<288x128xf32> -> vector<288x128xf32>
    %c0_143 = arith.constant 0 : index
    %c0_144 = arith.constant 0 : index
    %154 = vector.load %arg5[%c0_143, %c0_144] : memref<1x128xf32, #tpu.memory_space<vmem>>, vector<1x128xf32>
    %155 = vector.broadcast %154 : vector<1x128xf32> to vector<288x128xf32>
    %156 = arith.addf %153, %155 : vector<288x128xf32>
    %cst_145 = arith.constant 0.000000e+00 : f32
    %157 = vector.broadcast %cst_145 : f32 to vector<288x128xf32>
    %158 = arith.maximumf %156, %157 : vector<288x128xf32>
    %c0_146 = arith.constant 0 : index
    %c0_147 = arith.constant 0 : index
    %c0_148 = arith.constant 0 : index
    %159 = vector.load %arg6[%c0_146, %c0_147, %c0_148] : memref<1x288x128xf32, #tpu.memory_space<vmem>>, vector<1x288x128xf32>
    %160 = vector.shape_cast %159 : vector<1x288x128xf32> to vector<288x128xf32>
    %161 = vector.shape_cast %158 : vector<288x128xf32> to vector<1x288x128xf32>
    tpu.vector_store %arg6[%c0_146, %c0_147, %c0_148], %161 {strides = array<i32>} : memref<1x288x128xf32, #tpu.memory_space<vmem>>, vector<1x288x128xf32>,
    return
  }
  func.func @transform_0(%arg0: i32) -> (i32, i32, i32) {
    %c0_i32 = arith.constant 0 : i32
    %c0_i32_0 = arith.constant 0 : i32
    %c0_i32_1 = arith.constant 0 : i32
    return %arg0, %c0_i32, %c0_i32_0 : i32, i32, i32
  }
  func.func @transform_1(%arg0: i32) -> (i32, i32) {
    %c0_i32 = arith.constant 0 : i32
    %c0_i32_0 = arith.constant 0 : i32
    %c0_i32_1 = arith.constant 0 : i32
    return %c0_i32, %c0_i32_0 : i32, i32
  }
  func.func @transform_2(%arg0: i32) -> (i32, i32) {
    %c0_i32 = arith.constant 0 : i32
    %c0_i32_0 = arith.constant 0 : i32
    %c0_i32_1 = arith.constant 0 : i32
    return %c0_i32, %c0_i32_0 : i32, i32
  }
  func.func @transform_3(%arg0: i32) -> (i32, i32) {
    %c0_i32 = arith.constant 0 : i32
    %c0_i32_0 = arith.constant 0 : i32
    %c0_i32_1 = arith.constant 0 : i32
    return %c0_i32, %c0_i32_0 : i32, i32
  }
  func.func @transform_4(%arg0: i32) -> (i32, i32) {
    %c0_i32 = arith.constant 0 : i32
    %c0_i32_0 = arith.constant 0 : i32
    %c0_i32_1 = arith.constant 0 : i32
    return %c0_i32, %c0_i32_0 : i32, i32
  }
  func.func @transform_5(%arg0: i32) -> (i32, i32, i32) {
    %c0_i32 = arith.constant 0 : i32
    %c0_i32_0 = arith.constant 0 : i32
    %c0_i32_1 = arith.constant 0 : i32
    return %arg0, %c0_i32, %c0_i32_0 : i32, i32, i32
  }
}

</mosaic_0001>

<bundles_post_ra>
// kernel: res_conv_block.1
= control target key start
LH: loop header
LB: loop body
LE: loop exit
PB: predicated region body
PF: predicated region fallthrough
CT: control target
= control target key end

     0   :  { %s10870_s18 = smov 0   ;;  %s16691_s0 = inlined_call_operand.vmem [shape: bf16[2,336,8], index: 0, kind: input, shape index: {}]   ;;  %s16692_s1 = inlined_call_operand.vmem [shape: bf16[128,128], index: 1, kind: input, shape index: {}]   ;;  %s16693_s2 = inlined_call_operand.vmem [shape: f32[1,128], index: 2, kind: input, shape index: {}]   ;;  %s16694_s3 = inlined_call_operand.vmem [shape: bf16[384,128], index: 3, kind: input, shape index: {}]   ;;  %s16695_s4 = inlined_call_operand.vmem [shape: f32[1,128], index: 4, kind: input, shape index: {}]   ;;  %s16696_s5 = inlined_call_operand.vmem [shape: f32[2,288,128], index: 5, kind: output, shape index: {}]  }
   0x1 LB: > { %s10226_s19 = sadd.s32 4294967295, %s10828_s18   ;;  %p10230_p0 = scmp.ge.s32.totalorder %s10828_s18, 1  ;;  %s10828_s18 = sphi %s10870_s18, %s15_s18  }
   0x2   : > { %p187_p1 = scmp.lt.s32.totalorder %s10828_s18, 3 }
   0x4   : > { %p188_p2 = pnand %p10230_p0, %p187_p1 }
   0x6   : > { %191 = sbr.rel (%p188_p2) target bundleno = 1703 (0x6a7), region = 40 }
   0xb   : > { %p215_p3 = scmp.lt.s32.totalorder %s10226_s19, 1  ;;  %vm226_vm0 = vcmask 1044032   ;;  %v16697_v0 = vmov 0   ;;  %s10831_s24 = smov 8   ;;  %vm1002_vm1 = vsmask.f32 3328 }
   0xc   : > { %229 = vst.msk [vmem:[#allocation3 + $0x8] sm:$0xf] %vm226_vm0, %v16697_v0  ;;  %227 = vst.msk [vmem:[#allocation3] sm:$0xf] %vm226_vm0, %v16697_v0  ;;  %9745 = vmatprep.subr.bf16.mxu1 %v16697_v0  ;;  %vm1003_vm2 = vsmask.f32 7440 }
   0xd   : > { %s16831_s19 = smov (!%p215_p3, %s10226_s19), 1  ;;  %228 = vst.msk [vmem:[#allocation3 + $0x4] sm:$0xf] %vm226_vm0, %v16697_v0  ;;  %230 = vst.msk [vmem:[#allocation3 + $0xc] sm:$0xf] %vm226_vm0, %v16697_v0  ;;  %vm711_vm6 = vcmask 60416  }
   0xe   : > { %231 = vst.msk [vmem:[#allocation3 + $0x10] sm:$0xf] %vm226_vm0, %v16697_v0  ;;  %232 = vst.msk [vmem:[#allocation3 + $0x14] sm:$0xf] %vm226_vm0, %v16697_v0  ;;  %s10685_s20 = smul.u32 168, %s16831_s19  ;;  %s10832_s25 = smov 16  }
   0xf   : > { %233 = vst.msk [vmem:[#allocation3 + $0x18] sm:$0xf] %vm226_vm0, %v16697_v0  ;;  %234 = vst.msk [vmem:[#allocation3 + $0x1c] sm:$0xf] %vm226_vm0, %v16697_v0  ;;  %vm344_vm4 = vsmask.f32 256 }
  0x10   : > { %235 = vst.msk [vmem:[#allocation3 + $0x20] sm:$0xf] %vm226_vm0, %v16697_v0  ;;  %236 = vst.msk [vmem:[#allocation3 + $0x24] sm:$0xf] %vm226_vm0, %v16697_v0  ;;  %s10963_s23 = scalar_lea.vmem %s16691_s0, %s10685_s20  ;;  %vm345_vm5 = vsmask.f32 4368 }
  0x11   : > { %237 = vst.msk [vmem:[#allocation3 + $0x28] sm:$0xf] %vm226_vm0, %v16697_v0  ;;  %238 = vst.msk [vmem:[#allocation3 + $0x2c] sm:$0xf] %vm226_vm0, %v16697_v0  ;;  %v750_v1 = vld [vmem:[%s10963_s23 + $0xc] sm:$0xf] }
  0x12   : > { %239 = vst.msk [vmem:[#allocation3 + $0x30] sm:$0xf] %vm226_vm0, %v16697_v0  ;;  %240 = vst.msk [vmem:[#allocation3 + $0x34] sm:$0xf] %vm226_vm0, %v16697_v0  ;;  %v748_v2 = vld [vmem:[%s10963_s23 + $0x4] sm:$0xf]  ;;  %824 = vrot.lane.b32.xlu1 %v750_v1, %s10831_s24 }
  0x13   : > { %241 = vst.msk [vmem:[#allocation3 + $0x38] sm:$0xf] %vm226_vm0, %v16697_v0  ;;  %242 = vst.msk [vmem:[#allocation3 + $0x3c] sm:$0xf] %vm226_vm0, %v16697_v0  ;;  %820 = vrot.lane.b32.xlu0 %v748_v2, %s10831_s24  ;;  %v751_v3 = vld [vmem:[%s10963_s23 + $0x10] sm:$0xf] }
  0x14   : > { %243 = vst.msk [vmem:[#allocation3 + $0x40] sm:$0xf] %vm226_vm0, %v16697_v0  ;;  %244 = vst.msk [vmem:[#allocation3 + $0x44] sm:$0xf] %vm226_vm0, %v16697_v0  ;;  %v749_v4 = vld [vmem:[%s10963_s23 + $0x8] sm:$0xf] }
  0x15   : > { %245 = vst.msk [vmem:[#allocation3 + $0x48] sm:$0xf] %vm226_vm0, %v16697_v0  ;;  %246 = vst.msk [vmem:[#allocation3 + $0x4c] sm:$0xf] %vm226_vm0, %v16697_v0  ;;  %v753_v5 = vld [vmem:[%s10963_s23 + $0x18] sm:$0xf] }
  0x16   : > { %247 = vst.msk [vmem:[#allocation3 + $0x50] sm:$0xf] %vm226_vm0, %v16697_v0  ;;  %248 = vst.msk [vmem:[#allocation3 + $0x54] sm:$0xf] %vm226_vm0, %v16697_v0  ;;  %826 = vrot.lane.b32.xlu1 %v751_v3, %s10831_s24  ;;  %v752_v6 = vld [vmem:[%s10963_s23 + $0x14] sm:$0xf] }
  0x17   : > { %249 = vst.msk [vmem:[#allocation3 + $0x58] sm:$0xf] %vm226_vm0, %v16697_v0  ;;  %250 = vst.msk [vmem:[#allocation3 + $0x5c] sm:$0xf] %vm226_vm0, %v16697_v0  ;;  %822 = vrot.lane.b32.xlu0 %v749_v4, %s10831_s24  ;;  %v755_v7 = vld [vmem:[%s10963_s23 + $0x20] sm:$0xf] }
  0x18   : > { %251 = vst.msk [vmem:[#allocation3 + $0x60] sm:$0xf] %vm226_vm0, %v16697_v0  ;;  %252 = vst.msk [vmem:[#allocation3 + $0x64] sm:$0xf] %vm226_vm0, %v16697_v0  ;;  %v754_v8 = vld [vmem:[%s10963_s23 + $0x1c] sm:$0xf] }
  0x19   : > { %253 = vst.msk [vmem:[#allocation3 + $0x68] sm:$0xf] %vm226_vm0, %v16697_v0  ;;  %254 = vst.msk [vmem:[#allocation3 + $0x6c] sm:$0xf] %vm226_vm0, %v16697_v0  ;;  %v757_v9 = vld [vmem:[%s10963_s23 + $0x28] sm:$0xf] }
  0x1a   : > { %255 = vst.msk [vmem:[#allocation3 + $0x70] sm:$0xf] %vm226_vm0, %v16697_v0  ;;  %256 = vst.msk [vmem:[#allocation3 + $0x74] sm:$0xf] %vm226_vm0, %v16697_v0  ;;  %830 = vrot.lane.b32.xlu1 %v753_v5, %s10831_s24  ;;  %v756_v10 = vld [vmem:[%s10963_s23 + $0x24] sm:$0xf] }
  0x1b   : > { %257 = vst.msk [vmem:[#allocation3 + $0x78] sm:$0xf] %vm226_vm0, %v16697_v0  ;;  %258 = vst.msk [vmem:[#allocation3 + $0x7c] sm:$0xf] %vm226_vm0, %v16697_v0  ;;  %828 = vrot.lane.b32.xlu0 %v752_v6, %s10831_s24  ;;  %v966_v11 = vld [vmem:[%s10963_s23 + $0x8] sm:$0xf] }
  0x1c   : > { %259 = vst.msk [vmem:[#allocation3 + $0x80] sm:$0xf] %vm226_vm0, %v16697_v0  ;;  %260 = vst.msk [vmem:[#allocation3 + $0x84] sm:$0xf] %vm226_vm0, %v16697_v0  ;;  %v967_v12 = vld [vmem:[%s10963_s23 + $0xc] sm:$0xf] }
  0x1d   : > { %261 = vst.msk [vmem:[#allocation3 + $0x88] sm:$0xf] %vm226_vm0, %v16697_v0  ;;  %262 = vst.msk [vmem:[#allocation3 + $0x8c] sm:$0xf] %vm226_vm0, %v16697_v0  ;;  %v1015_v13 = vshll.u32 %v966_v11, 16  ;;  %v1019_v14 = vshrl.u32 %v966_v11, 16 }
  0x1e   : > { %301 = vst [vmem:[#allocation2 + $0x4] sm:$0xf] %v16697_v0  ;;  %302 = vst [vmem:[#allocation2 + $0x8] sm:$0xf] %v16697_v0  ;;  %834 = vrot.lane.b32.xlu1 %v755_v7, %s10831_s24  ;;  %v1025_v15 = vshll.u32 %v967_v12, 16  ;;  %v1029_v16 = vshrl.u32 %v967_v12, 16 }
  0x1f   : > { %303 = vst [vmem:[#allocation2 + $0xc] sm:$0xf] %v16697_v0  ;;  %304 = vst [vmem:[#allocation2 + $0xa0] sm:$0xf] %v16697_v0  ;;  %832 = vrot.lane.b32.xlu0 %v754_v8, %s10831_s24  ;;  %v965_v17 = vld [vmem:[%s10963_s23 + $0x4] sm:$0xf] }
  0x20   : > { %305 = vst [vmem:[#allocation2 + $0xa4] sm:$0xf] %v16697_v0  ;;  %306 = vst [vmem:[#allocation2 + $0xa8] sm:$0xf] %v16697_v0  ;;  %v1006_v18 = vshrl.u32 %v965_v17, 16  ;;  %v1009_v19 = vshll.u32 %v965_v17, 16 }
  0x21   : > { %v968_v20 = vld [vmem:[%s10963_s23 + $0x10] sm:$0xf]  ;;  %v969_v21 = vld [vmem:[%s10963_s23 + $0x14] sm:$0xf]  ;;  %v10988_v22 = vrot.slane %v1015_v13, 5  ;;  %v1021_v23 = vrot.slane %v1019_v14, 4  ;;  %vm11028_vm3 = vmor %vm1002_vm1, %vm1003_vm2 }
  0x22   : > { %v1035_v24 = vshll.u32 %v968_v20, 16  ;;  %v970_v25 = vld [vmem:[%s10963_s23 + $0x18] sm:$0xf]  ;;  %838 = vrot.lane.b32.xlu1 %v757_v9, %s10831_s24  ;;  %v1008_v26 = vrot.slane %v1006_v18, 4  ;;  %v1011_v27 = vrot.slane %v1009_v19, 5  ;;  %v1039_v28 = vshrl.u32 %v968_v20, 16  ;;  %vm11239_vm7 = vmor %vm344_vm4, %vm345_vm5 }
  0x23   : > { %836 = vrot.lane.b32.xlu0 %v756_v10, %s10831_s24  ;;  %v1045_v29 = vshll.u32 %v969_v21, 16  ;;  %v759_v30 = vld [vmem:[%s10963_s23 + $0x30] sm:$0xf]  ;;  %v758_v31 = vld [vmem:[%s10963_s23 + $0x2c] sm:$0xf]  ;;  %v10995_v32 = vrot.slane %v1025_v15, 5  ;;  %v1022_v41 = vor.u32 %v1021_v23, %v10988_v22 }
  0x24   : > { %v1031_v33 = vrot.slane %v1029_v16, 4  ;;  %v1049_v34 = vshrl.u32 %v969_v21, 16  ;;  %v971_v35 = vld [vmem:[%s10963_s23 + $0x1c] sm:$0xf]  ;;  %v1055_v36 = vshll.u32 %v970_v25, 16  ;;  %v10998_v37 = vrot.slane %v1035_v24, 5 }
  0x25   : > { %v1041_v38 = vrot.slane %v1039_v28, 4  ;;  %v1059_v39 = vshrl.u32 %v970_v25, 16  ;;  %v972_v40 = vld [vmem:[%s10963_s23 + $0x20] sm:$0xf]  ;;  %v1012_v42 = vor.u32 %v1011_v27, %v1008_v26  ;;  %v11004_v43 = vrot.slane %v1045_v29, 5  ;;  %s10833_s26 = smov 24  }
  0x26   : > { %842 = vrot.lane.b32.xlu1 %v759_v30, %s10831_s24  ;;  %v11006_v44 = vrot.slane %v1055_v36, 5  ;;  %v761_v45 = vld [vmem:[%s10963_s23 + $0x38] sm:$0xf]  ;;  %v760_v46 = vld [vmem:[%s10963_s23 + $0x34] sm:$0xf]  ;;  %v1032_v47 = vor.u32 %v1031_v33, %v10995_v32  ;;  %v1065_v49 = vshll.u32 %v971_v35, 16 }
  0x27   : > { %840 = vrot.lane.b32.xlu0 %v758_v31, %s10831_s24  ;;  %v1061_v48 = vrot.slane %v1059_v39, 4  ;;  %v1069_v50 = vshrl.u32 %v971_v35, 16  ;;  %v1051_v51 = vrot.slane %v1049_v34, 4  ;;  %v973_v52 = vld [vmem:[%s10963_s23 + $0x24] sm:$0xf]  ;;  %v1075_v53 = vshll.u32 %v972_v40, 16 }
  0x28   : > { %v763_v54 = vld [vmem:[%s10963_s23 + $0x40] sm:$0xf]  ;;  %v1042_v55 = vor.u32 %v1041_v38, %v10998_v37  ;;  %v1079_v57 = vshrl.u32 %v972_v40, 16  ;;  %v974_v58 = vld [vmem:[%s10963_s23 + $0x28] sm:$0xf]  ;;  %v11019_v60 = vrot.slane %v1022_v41, 4 }
  0x29   : > { %v1062_v56 = vor.u32 %v1061_v48, %v11006_v44  ;;  %v762_v59 = vld [vmem:[%s10963_s23 + $0x3c] sm:$0xf]  ;;  %v11021_v61 = vrot.slane %v1012_v42, 4  ;;  %v1052_v62 = vor.u32 %v1051_v51, %v11004_v43  ;;  %v11024_v63 = vrot.slane %v1075_v53, 5  ;;  %v975_v6 = vld [vmem:[%s10963_s23 + $0x2c] sm:$0xf] }
  0x2a   : > { %846 = vrot.lane.b32.xlu1 %v761_v45, %s10831_s24  ;;  %v11032_v2 = vrot.slane %v1032_v47, 4  ;;  %v11034_v3 = vrot.slane %v1065_v49, 5  ;;  %v1081_v4 = vrot.slane %v1079_v57, 4  ;;  %v1085_v5 = vshll.u32 %v973_v52, 16  ;;  %v976_v11 = vld [vmem:[%s10963_s23 + $0x30] sm:$0xf] }
  0x2b   : > { %844 = vrot.lane.b32.xlu0 %v760_v46, %s10831_s24  ;;  %v1089_v7 = vshrl.u32 %v973_v52, 16  ;;  %v1071_v8 = vrot.slane %v1069_v50, 4  ;;  %v1095_v9 = vshll.u32 %v974_v58, 16  ;;  %v1099_v10 = vshrl.u32 %v974_v58, 16  ;;  %v765_v12 = vld [vmem:[%s10963_s23 + $0x48] sm:$0xf] }
  0x2c   : > { %v11039_v13 = vrot.slane %v1042_v55, 4  ;;  %v11041_v14 = vrot.slane %v1062_v56, 4  ;;  %v11043_v15 = vrot.slane %v1052_v62, 4  ;;  %v1082_v16 = vor.u32 %v1081_v4, %v11024_v63  ;;  %v764_v17 = vld [vmem:[%s10963_s23 + $0x44] sm:$0xf]  ;;  %s10834_s27 = smov 32  }
  0x2d   : > { %v11057_v20 = vrot.slane %v1095_v9, 5  ;;  %v1101_v21 = vrot.slane %v1099_v10, 4  ;;  %v977_v23 = vld [vmem:[%s10963_s23 + $0x34] sm:$0xf]  ;;  %v11064_v25 = vrot.slane %v1085_v5, 5  ;;  %v1105_v26 = vshll.u32 %v975_v6, 16 }
  0x2e   : > { %850 = vrot.lane.b32.xlu1 %v763_v54, %s10831_s24  ;;  %v1115_v27 = vshll.u32 %v976_v11, 16  ;;  %v978_v28 = vld [vmem:[%s10963_s23 + $0x38] sm:$0xf]  ;;  %v1072_v29 = vor.u32 %v1071_v8, %v11034_v3  ;;  %v1109_v30 = vshrl.u32 %v975_v6, 16  ;;  %v1091_v31 = vrot.slane %v1089_v7, 4  ;;  %s10835_s28 = smov 40  }
  0x2f   : > { %848 = vrot.lane.b32.xlu0 %v762_v59, %s10831_s24  ;;  %v1119_v33 = vshrl.u32 %v976_v11, 16  ;;  %v979_v34 = vld [vmem:[%s10963_s23 + $0x3c] sm:$0xf]  ;;  %v767_v35 = vld [vmem:[%s10963_s23 + $0x50] sm:$0xf]  ;;  %v11082_v40 = vrot.slane %v1082_v16, 4  ;;  %v1102_v42 = vor.u32 %v1101_v21, %v11057_v20 }
  0x30   : > { %v766_v41 = vld [vmem:[%s10963_s23 + $0x4c] sm:$0xf]  ;;  %v11088_v45 = vrot.slane %v1115_v27, 5  ;;  %v1125_v46 = vshll.u32 %v977_v23, 16  ;;  %v1129_v47 = vshrl.u32 %v977_v23, 16  ;;  %v1135_v49 = vshll.u32 %v978_v28, 16 }
  0x31   : > { %v1121_v48 = vrot.slane %v1119_v33, 4  ;;  %v1139_v50 = vshrl.u32 %v978_v28, 16  ;;  %v1145_v51 = vshll.u32 %v979_v34, 16  ;;  %v980_v52 = vld [vmem:[%s10963_s23 + $0x40] sm:$0xf]  ;;  %v11091_v53 = vrot.slane %v1072_v29, 4 }
  0x32   : > { %854 = vrot.lane.b32.xlu1 %v765_v12, %s10831_s24  ;;  %v11093_v54 = vrot.slane %v1105_v26, 5  ;;  %v1092_v55 = vor.u32 %v1091_v31, %v11064_v25  ;;  %v1111_v56 = vrot.slane %v1109_v30, 4  ;;  %v981_v57 = vld [vmem:[%s10963_s23 + $0x44] sm:$0xf]  ;;  %v769_v58 = vld [vmem:[%s10963_s23 + $0x58] sm:$0xf] }
  0x33   : > { %852 = vrot.lane.b32.xlu0 %v764_v17, %s10831_s24  ;;  %v11102_v62 = vrot.slane %v1135_v49, 5  ;;  %v1141_v4 = vrot.slane %v1139_v50, 4  ;;  %v1149_v5 = vshrl.u32 %v979_v34, 16  ;;  %v768_v6 = vld [vmem:[%s10963_s23 + $0x54] sm:$0xf]  ;;  %v11107_v7 = vrot.slane %v1102_v42, 4 }
  0x34   : > { %v11109_v8 = vrot.slane %v1125_v46, 5  ;;  %v1131_v9 = vrot.slane %v1129_v47, 4  ;;  %v1155_v10 = vshll.u32 %v980_v52, 16  ;;  %v1122_v11 = vor.u32 %v1121_v48, %v11088_v45  ;;  %v982_v21 = vld [vmem:[%s10963_s23 + $0x48] sm:$0xf]  ;;  %s10836_s14 = smov 48  }
  0x35   : > { %16716 = vst [vmem:[#allocation5_spill] sm:$0xff] %v11102_v62  ;;  %v11112_v12 = vrot.slane %v1145_v51, 5  ;;  %v1159_v16 = vshrl.u32 %v980_v52, 16  ;;  %v1165_v17 = vshll.u32 %v981_v57, 16  ;;  %v11119_v26 = vrot.slane %v1092_v55, 4  ;;  %s10837_s21 = smov 56  }
  0x36   : > { %858 = vrot.lane.b32.xlu1 %v767_v35, %s10831_s24  ;;  %v1112_v27 = vor.u32 %v1111_v56, %v11093_v54  ;;  %v11122_v28 = vrot.slane %v1155_v10, 5  ;;  %v1142_v29 = vor.u32 %v1141_v4, %v11102_v62  ;;  %v1169_v31 = vshrl.u32 %v981_v57, 16  ;;  %v983_v34 = vld [vmem:[%s10963_s23 + $0x4c] sm:$0xf]  ;;  %v984_v47 = vld [vmem:[%s10963_s23 + $0x50] sm:$0xf] }
  0x37   : > { %856 = vrot.lane.b32.xlu0 %v766_v41, %s10831_s24  ;;  %v1161_v30 = vrot.slane %v1159_v16, 4  ;;  %v1151_v33 = vrot.slane %v1149_v5, 4  ;;  %v1132_v41 = vor.u32 %v1131_v9, %v11109_v8  ;;  %v1175_v42 = vshll.u32 %v982_v21, 16  ;;  %v771_v48 = vld [vmem:[%s10963_s23 + $0x60] sm:$0xf] }
  0x38   : > { %16717 = vst [vmem:[#allocation6_spill] sm:$0xff] %v11122_v28  ;;  %v1179_v46 = vshrl.u32 %v982_v21, 16  ;;  %v770_v49 = vld [vmem:[%s10963_s23 + $0x5c] sm:$0xf]  ;;  %v11136_v50 = vrot.slane %v1122_v11, 4  ;;  %v11139_v52 = vrot.slane %v1165_v17, 5 }
  0x39   : > { %v1162_v51 = vor.u32 %v1161_v30, %v11122_v28  ;;  %v1152_v55 = vor.u32 %v1151_v33, %v11112_v12  ;;  %v11142_v56 = vrot.slane %v1112_v27, 4  ;;  %v11144_v57 = vrot.slane %v1175_v42, 5  ;;  %v985_v5 = vld [vmem:[%s10963_s23 + $0x54] sm:$0xf]  ;;  %v773_v16 = vld [vmem:[%s10963_s23 + $0x68] sm:$0xf] }
  0x3a   : > { %862 = vrot.lane.b32.xlu1 %v769_v58, %s10831_s24  ;;  %16718 = vst [vmem:[#allocation7_spill] sm:$0xff] %v11139_v52  ;;  %v1181_v58 = vrot.slane %v1179_v46, 4  ;;  %v1185_v4 = vshll.u32 %v983_v34, 16  ;;  %v1189_v9 = vshrl.u32 %v983_v34, 16  ;;  %v1171_v10 = vrot.slane %v1169_v31, 4 }
  0x3b   : > { %860 = vrot.lane.b32.xlu0 %v768_v6, %s10831_s24  ;;  %16719 = vst [vmem:[#allocation8_spill] sm:$0xff] %v11144_v57  ;;  %v11147_v6 = vrot.slane %v1142_v29, 4  ;;  %v1195_v11 = vshll.u32 %v984_v47, 16  ;;  %v772_v17 = vld [vmem:[%s10963_s23 + $0x64] sm:$0xf]  ;;  %v11157_v27 = vrot.slane %v1132_v41, 4 }
  0x3c   : > { %v1182_v29 = vor.u32 %v1181_v58, %v11144_v57  ;;  %v1199_v30 = vshrl.u32 %v984_v47, 16  ;;  %v11160_v31 = vrot.slane %v1162_v51, 4  ;;  %v11162_v33 = vrot.slane %v1152_v55, 4  ;;  %v986_v46 = vld [vmem:[%s10963_s23 + $0x58] sm:$0xf] }
  0x3d   : > { %v1172_v34 = vor.u32 %v1171_v10, %v11139_v52  ;;  %v1205_v42 = vshll.u32 %v985_v5, 16  ;;  %v11170_v0 = vrot.slane %v1195_v11, 5  ;;  %v11173_v47 = vld [vmem:[%s10963_s23 + $0x5c] sm:$0xf]  ;;  %v11188_v10 = vld [vmem:[%s10963_s23 + $0x8] sm:$0xf] }
  0x3e   : > { %866 = vrot.lane.b32.xlu1 %v771_v48, %s10831_s24  ;;  %16720 = vst [vmem:[#allocation9_spill] sm:$0xff] %v11160_v31  ;;  %16721 = vst [vmem:[#allocation10_spill] sm:$0xff] %v11162_v33  ;;  %v11166_v48 = vrot.slane %v1182_v29, 4  ;;  %v1201_v41 = vrot.slane %v1199_v30, 4  ;;  %v310_v11 = vld [vmem:[%s10963_s23 + $0xc] sm:$0xf] }
  0x3f   : > { %864 = vrot.lane.b32.xlu0 %v770_v49, %s10831_s24  ;;  %v11168_v49 = vrot.slane %v1185_v4, 5  ;;  %16724 = vst [vmem:[#allocation13_spill] sm:$0xff] %v11170_v0  ;;  %v1191_v4 = vrot.slane %v1189_v9, 4  ;;  %v1209_v30 = vshrl.u32 %v985_v5, 16  ;;  %v1215_v55 = vshll.u32 %v986_v46, 16 }
  0x40   : > { %16722 = vst [vmem:[#allocation11_spill] sm:$0xff] %v11166_v48  ;;  %v1219_v51 = vshrl.u32 %v986_v46, 16  ;;  %v307_v21 = vld [vmem:[%s10963_s23] sm:$0x8]  ;;  %v775_v9 = vld [vmem:[%s10963_s23 + $0x70] sm:$0xf]  ;;  %v1202_v29 = vor.u32 %v1201_v41, %v11170_v0 }
  0x41   : > { %16723 = vst [vmem:[#allocation12_spill] sm:$0xff] %v11168_v49  ;;  %v774_v58 = vld [vmem:[%s10963_s23 + $0x6c] sm:$0xf]  ;;  %v11208_v35 = vrot.slane %v1172_v34, 4  ;;  %v11210_v5 = vrot.slane %v1205_v42, 5  ;;  %v362_v23 = vshrl.u32 %v11188_v10, 16  ;;  %v1192_v39 = vor.u32 %v1191_v4, %v11168_v49 }
  0x42   : > { %870 = vrot.lane.b32.xlu1 %v773_v16, %s10831_s24  ;;  %v1225_v16 = vshll.u32 %v11173_v47, 16  ;;  %v308_v59 = vld [vmem:[%s10963_s23 + $0x4] sm:$0xf]  ;;  %v374_v34 = vshll.u32 %v310_v11, 16  ;;  %v348_v38 = vshrl.u32 %v307_v21, 16  ;;  %v11225_v24 = vrot.slane %v1215_v55, 5 }
  0x43   : > { %868 = vrot.lane.b32.xlu0 %v772_v17, %s10831_s24  ;;  %16725 = vst [vmem:[#allocation14_spill] sm:$0xff] %v11208_v35  ;;  %16726 = vst [vmem:[#allocation15_spill] sm:$0xff] %v11210_v5  ;;  %v371_v17 = vshrl.u32 %v310_v11, 16  ;;  %v988_v42 = vld [vmem:[%s10963_s23 + $0x60] sm:$0xf]  ;;  %v1221_v41 = vrot.slane %v1219_v51, 4 }
  0x44   : > { %v777_v46 = vld [vmem:[%s10963_s23 + $0x78] sm:$0xf]  ;;  %v1211_v36 = vrot.slane %v1209_v30, 4  ;;  %v364_v19 = vrot.slane %v362_v23, 7  ;;  %v776_v18 = vld [vmem:[%s10963_s23 + $0x74] sm:$0xf] }
  0x45   : > { %v1229_v21 = vshrl.u32 %v11173_v47, 16  ;;  %v11233_v11 = vrot.slane %v371_v17, 7  ;;  %v356_v55 = vshll.u32 %v308_v59, 16  ;;  %v989_v30 = vld [vmem:[%s10963_s23 + $0x64] sm:$0xf]  ;;  %v1235_v49 = vshll.u32 %v988_v42, 16 }
  0x46   : > { %874 = vrot.lane.b32.xlu1 %v775_v9, %s10831_s24  ;;  %v353_v9 = vshrl.u32 %v308_v59, 16  ;;  %v369_v23 = vrot.slane %v364_v19, 4  ;;  %v10233_v47 = vrot.slane %v348_v38, 11  ;;  %v1239_v57 = vshrl.u32 %v988_v42, 16  ;;  %v311_v35 = vld [vmem:[%s10963_s23 + $0x10] sm:$0xf] }
  0x47   : > { %872 = vrot.lane.b32.xlu0 %v774_v58, %s10831_s24  ;;  %v11235_v58 = vrot.slane %v1225_v16, 5  ;;  %v376_v4 = vor.u32 %v374_v34, %v11233_v11  ;;  %v779_v16 = vld [vmem:[%s10963_s23 + $0x80] sm:$0xf]  ;;  %v11249_v48 = vrot.slane %v1202_v29, 4  ;;  %v11251_v28 = vrot.slane %v1192_v39, 4 }
  0x48   : > { %v355_v17 = vrot.slane %v353_v9, 7  ;;  %v1222_v59 = vor.u32 %v1221_v41, %v11225_v24  ;;  %v1212_v33 = vor.u32 %v1211_v36, %v11210_v5  ;;  %v778_v34 = vld [vmem:[%s10963_s23 + $0x7c] sm:$0xf]  ;;  %v11258_v9 = vrot.slane %v1235_v49, 5  ;;  %v781_v62 = vld [vmem:[%s10963_s23 + $0x88] sm:$0xf] }
  0x49   : > { %16729 = vst [vmem:[#allocation16_spill] sm:$0xff] %v11249_v48  ;;  %16730 = vst [vmem:[#allocation17_spill] sm:$0xff] %v11251_v28  ;;  %v377_v38 = vsel %vm11239_vm7, %v369_v23, %v376_v4  ;;  %v1241_v29 = vrot.slane %v1239_v57, 4  ;;  %v1249_v52 = vshrl.u32 %v989_v30, 16  ;;  %v380_v39 = vshrl.u32 %v311_v35, 16 }
  0x4a   : > { %878 = vrot.lane.b32.xlu1 %v777_v46, %s10831_s24  ;;  %v358_v42 = vor.u32 %v356_v55, %v355_v17  ;;  %v1245_v46 = vshll.u32 %v989_v30, 16  ;;  %714 = vst.msk [vmem:[#allocation3 + $0x8] sm:$0xf] %vm711_vm6, %v377_v38  ;;  %v383_v31 = vshll.u32 %v311_v35, 16  ;;  %v1231_v41 = vrot.slane %v1229_v21, 4 }
  0x4b   : > { %876 = vrot.lane.b32.xlu0 %v776_v18, %s10831_s24  ;;  %v990_v18 = vld [vmem:[%s10963_s23 + $0x68] sm:$0xf]  ;;  %v378_v4 = vrot.slane %v11233_v11, 4  ;;  %v360_v23 = vrot.slane %v355_v17, 4  ;;  %v780_v49 = vld [vmem:[%s10963_s23 + $0x84] sm:$0xf]  ;;  %v1242_v21 = vor.u32 %v1241_v29, %v11258_v9 }
  0x4c   : > { %v359_v36 = vsel %vm11239_vm7, %v10233_v47, %v358_v42  ;;  %v382_v57 = vrot.slane %v380_v39, 7  ;;  %v365_v35 = vshll.u32 %v11188_v10, 16  ;;  %v1255_v55 = vshll.u32 %v990_v18, 16  ;;  %v313_v39 = vld [vmem:[%s10963_s23 + $0x18] sm:$0xf] }
  0x4d   : > { %712 = vst.msk [vmem:[#allocation3] sm:$0xf] %vm711_vm6, %v359_v36  ;;  %v1259_v30 = vshrl.u32 %v990_v18, 16  ;;  %v11279_v47 = vrot.slane %v1222_v59, 4  ;;  %v11281_v17 = vrot.slane %v1245_v46, 5  ;;  %v11288_v36 = vrot.slane %v1212_v33, 4 }
  0x4e   : > { %882 = vrot.lane.b32.xlu1 %v779_v16, %s10831_s24  ;;  %v991_v16 = vld [vmem:[%s10963_s23 + $0x6c] sm:$0xf]  ;;  %v385_v10 = vor.u32 %v383_v31, %v382_v57  ;;  %v367_v38 = vor.u32 %v365_v35, %v364_v19  ;;  %v11285_v42 = vrot.slane %v1255_v55, 5  ;;  %v1232_v11 = vor.u32 %v1231_v41, %v11235_v58  ;;  %v992_v0 = vld [vmem:[%s10963_s23 + $0x70] sm:$0xf] }
  0x4f   : > { %880 = vrot.lane.b32.xlu0 %v778_v34, %s10831_s24  ;;  %v312_v34 = vld [vmem:[%s10963_s23 + $0x14] sm:$0xf]  ;;  %v1261_v18 = vrot.slane %v1259_v30, 4  ;;  %v1251_v59 = vrot.slane %v1249_v52, 4  ;;  %v1265_v46 = vshll.u32 %v991_v16, 16  ;;  %v398_v29 = vshrl.u32 %v313_v39, 16 }
  0x50   : > { %v386_v19 = vsel %vm11239_vm7, %v378_v4, %v385_v10  ;;  %v368_v31 = vsel %vm11239_vm7, %v360_v23, %v367_v38  ;;  %v389_v33 = vshrl.u32 %v312_v34, 16  ;;  %v783_v35 = vld [vmem:[%s10963_s23 + $0x90] sm:$0xf]  ;;  %v782_v55 = vld [vmem:[%s10963_s23 + $0x8c] sm:$0xf]  ;;  %v401_v41 = vshll.u32 %v313_v39, 16 }
  0x51   : > { %715 = vst.msk [vmem:[#allocation3 + $0xc] sm:$0xf] %vm711_vm6, %v386_v19  ;;  %713 = vst.msk [vmem:[#allocation3 + $0x4] sm:$0xf] %vm711_vm6, %v368_v31  ;;  %v1252_v52 = vor.u32 %v1251_v59, %v11281_v17  ;;  %v387_v4 = vrot.slane %v382_v57, 4  ;;  %v392_v30 = vshll.u32 %v312_v34, 16 }
  0x52   : > { %886 = vrot.lane.b32.xlu1 %v781_v62, %s10831_s24  ;;  %v1262_v62 = vor.u32 %v1261_v18, %v11285_v42  ;;  %v11306_v23 = vld [vmem:[%s10963_s23 + $0x74] sm:$0xf]  ;;  %v1275_v10 = vshll.u32 %v992_v0, 16  ;;  %v11312_v19 = vrot.slane %v1242_v21, 4  ;;  %v400_v31 = vrot.slane %v398_v29, 7 }
  0x53   : > { %884 = vrot.lane.b32.xlu0 %v780_v49, %s10831_s24  ;;  %v391_v49 = vrot.slane %v389_v33, 7  ;;  %v1279_v18 = vshrl.u32 %v992_v0, 16  ;;  %v314_v28 = vld [vmem:[%s10963_s23 + $0x1c] sm:$0xf]  ;;  %v11317_v57 = vrot.slane %v1232_v11, 4  ;;  %v1269_v34 = vshrl.u32 %v991_v16, 16 }
  0x54   : > { %v315_v33 = vld [vmem:[%s10963_s23 + $0x20] sm:$0xf]  ;;  %v11320_v5 = vrot.slane %v1262_v62, 4  ;;  %v11322_v48 = vrot.slane %v1265_v46, 5  ;;  %v11324_v21 = vrot.slane %v1252_v52, 4  ;;  %v403_v29 = vor.u32 %v401_v41, %v400_v31 }
  0x55   : > { %v396_v39 = vrot.slane %v391_v49, 4  ;;  %v394_v59 = vor.u32 %v392_v30, %v391_v49  ;;  %v11328_v38 = vrot.slane %v1275_v10, 5  ;;  %v407_v11 = vshrl.u32 %v314_v28, 16 }
  0x56   : > { %890 = vrot.lane.b32.xlu1 %v783_v35, %s10831_s24  ;;  %v1285_v35 = vshll.u32 %v11306_v23, 16  ;;  %v1281_v62 = vrot.slane %v1279_v18, 4  ;;  %v416_v46 = vshrl.u32 %v315_v33, 16  ;;  %v419_v49 = vshll.u32 %v315_v33, 16  ;;  %v316_v33 = vld [vmem:[%s10963_s23 + $0x24] sm:$0xf] }
  0x57   : > { %888 = vrot.lane.b32.xlu0 %v782_v55, %s10831_s24  ;;  %v395_v0 = vsel %vm11239_vm7, %v387_v4, %v394_v59  ;;  %v994_v55 = vld [vmem:[%s10963_s23 + $0x78] sm:$0xf]  ;;  %v404_v16 = vsel %vm11239_vm7, %v396_v39, %v403_v29  ;;  %v16731_v52 = vsel %vm11028_vm3, %v11019_v60, %v10995_v32  ;;  %v16732_v41 = vsel %vm11028_vm3, %v11021_v61, %v10988_v22  ;;  %v995_v39 = vld [vmem:[%s10963_s23 + $0x7c] sm:$0xf] }
  0x58   : > { %716 = vst.msk [vmem:[#allocation3 + $0x10] sm:$0xf] %vm711_vm6, %v395_v0  ;;  %717 = vst.msk [vmem:[#allocation3 + $0x14] sm:$0xf] %vm711_vm6, %v404_v16  ;;  %v1271_v4 = vrot.slane %v1269_v34, 4  ;;  %v409_v30 = vrot.slane %v407_v11, 7  ;;  %v1218_v32 = vsel %vm11028_vm3, %v11288_v36, %v11225_v24  ;;  %v1248_v60 = vsel %vm11028_vm3, %v11312_v19, %v11281_v17 }
  0x59   : > { %v405_v10 = vrot.slane %v400_v31, 4  ;;  %v410_v18 = vshll.u32 %v314_v28, 16  ;;  %v418_v22 = vrot.slane %v416_v46, 7  ;;  %v1295_v61 = vshll.u32 %v994_v55, 16  ;;  %v317_v46 = vld [vmem:[%s10963_s23 + $0x28] sm:$0xf] }
  0x5a   : > { %1371 = vrot.lane.b32.xlu1 %v16731_v52, %s10832_s25  ;;  %v414_v31 = vrot.slane %v409_v30, 4  ;;  %v1299_v59 = vshrl.u32 %v994_v55, 16  ;;  %v1289_v11 = vshrl.u32 %v11306_v23, 16  ;;  %v16733_v55 = vsel %vm11028_vm3, %v11039_v13, %v11004_v43  ;;  %v11398_v0 = vld [vmem:[%s10963_s23 + $0x84] sm:$0xf] }
  0x5b   : > { %1369 = vrot.lane.b32.xlu0 %v16732_v41, %s10832_s25  ;;  %v412_v28 = vor.u32 %v410_v18, %v409_v30  ;;  %v421_v16 = vor.u32 %v419_v49, %v418_v22  ;;  %v16734_v52 = vsel %vm11028_vm3, %v11032_v2, %v10998_v37  ;;  %v1282_v41 = vor.u32 %v1281_v62, %v11328_v38  ;;  %v996_v18 = vld [vmem:[%s10963_s23 + $0x80] sm:$0xf]  ;;  %v328_v24 = vld [vmem:[%s10963_s23 + $0x54] sm:$0xf] }
  0x5c   : > { %v11385_v30 = vrot.slane %v1285_v35, 5  ;;  %v1272_v23 = vor.u32 %v1271_v4, %v11322_v48  ;;  %v11394_v13 = vrot.slane %v1295_v61, 5  ;;  %v1305_v37 = vshll.u32 %v995_v39, 16 }
  0x5d   : > { %v413_v49 = vsel %vm11239_vm7, %v405_v10, %v412_v28  ;;  %v422_v43 = vsel %vm11239_vm7, %v414_v31, %v421_v16  ;;  %v425_v2 = vshrl.u32 %v316_v33, 16  ;;  %v1301_v35 = vrot.slane %v1299_v59, 4 }
  0x5e   : > { %1375 = vrot.lane.b32.xlu1 %v16733_v55, %s10832_s25  ;;  %718 = vst.msk [vmem:[#allocation3 + $0x18] sm:$0xf] %vm711_vm6, %v413_v49  ;;  %719 = vst.msk [vmem:[#allocation3 + $0x1c] sm:$0xf] %vm711_vm6, %v422_v43  ;;  %v434_v62 = vshrl.u32 %v317_v46, 16  ;;  %v437_v4 = vshll.u32 %v317_v46, 16  ;;  %v16735_v61 = vsel %vm11028_vm3, %v11041_v14, %v11034_v3  ;;  %v16736_v59 = vsel %vm11028_vm3, %v11043_v15, %v11006_v44 }
  0x5f   : > { %1373 = vrot.lane.b32.xlu0 %v16734_v52, %s10832_s25  ;;  %v428_v55 = vshll.u32 %v316_v33, 16  ;;  %v1291_v52 = vrot.slane %v1289_v11, 4  ;;  %v427_v10 = vrot.slane %v425_v2, 7  ;;  %v423_v28 = vrot.slane %v418_v22, 4  ;;  %v318_v46 = vld [vmem:[%s10963_s23 + $0x2c] sm:$0xf] }
  0x60   : > { %v1315_v31 = vshll.u32 %v996_v18, 16  ;;  %v11412_v33 = vrot.slane %v1282_v41, 4  ;;  %v1309_v22 = vshrl.u32 %v995_v39, 16  ;;  %v436_v11 = vrot.slane %v434_v62, 7  ;;  %v319_v2 = vld [vmem:[%s10963_s23 + $0x30] sm:$0xf] }
  0x61   : > { %v1319_v16 = vshrl.u32 %v996_v18, 16  ;;  %v11415_v49 = vrot.slane %v1272_v23, 4  ;;  %v11417_v43 = vrot.slane %v1305_v37, 5  ;;  %v432_v3 = vrot.slane %v427_v10, 4  ;;  %v998_v18 = vld [vmem:[%s10963_s23 + $0x88] sm:$0xf] }
  0x62   : > { %1379 = vrot.lane.b32.xlu1 %v16735_v61, %s10832_s25  ;;  %v430_v14 = vor.u32 %v428_v55, %v427_v10  ;;  %v1302_v61 = vor.u32 %v1301_v35, %v11394_v13  ;;  %v439_v29 = vor.u32 %v437_v4, %v436_v11  ;;  %v11421_v34 = vrot.slane %v1315_v31, 5  ;;  %v999_v31 = vld [vmem:[%s10963_s23 + $0x8c] sm:$0xf] }
  0x63   : > { %1377 = vrot.lane.b32.xlu0 %v16736_v59, %s10832_s25  ;;  %v1321_v44 = vrot.slane %v1319_v16, 4  ;;  %v1292_v15 = vor.u32 %v1291_v52, %v11385_v30  ;;  %v1325_v41 = vshll.u32 %v11398_v0, 16  ;;  %v443_v23 = vshrl.u32 %v318_v46, 16 }
  0x64   : > { %v431_v39 = vsel %vm11239_vm7, %v423_v28, %v430_v14  ;;  %v16737_v37 = vsel %vm11028_vm3, %v11082_v40, %v11064_v25  ;;  %v16738_v35 = vsel %vm11028_vm3, %v11091_v53, %v11024_v63  ;;  %v440_v62 = vsel %vm11239_vm7, %v432_v3, %v439_v29  ;;  %v1519_v53 = vld [vmem:[%s10963_s23 + $0x20] sm:$0xf] }
  0x65   : > { %720 = vst.msk [vmem:[#allocation3 + $0x20] sm:$0xf] %vm711_vm6, %v431_v39  ;;  %v1311_v4 = vrot.slane %v1309_v22, 4  ;;  %v452_v55 = vshrl.u32 %v319_v2, 16  ;;  %v455_v52 = vshll.u32 %v319_v2, 16  ;;  %v1322_v25 = vor.u32 %v1321_v44, %v11421_v34 }
  0x66   : > { %1383 = vrot.lane.b32.xlu1 %v16737_v37, %s10832_s25  ;;  %721 = vst.msk [vmem:[#allocation3 + $0x24] sm:$0xf] %vm711_vm6, %v440_v62  ;;  %v445_v40 = vrot.slane %v443_v23, 7  ;;  %v441_v10 = vrot.slane %v436_v11, 4  ;;  %v446_v28 = vshll.u32 %v318_v46, 16  ;;  %v1288_v63 = vsel %vm11028_vm3, %v11412_v33, %v11385_v30 }
  0x67   : > { %1381 = vrot.lane.b32.xlu0 %v16738_v35, %s10832_s25  ;;  %v454_v29 = vrot.slane %v452_v55, 7  ;;  %v1335_v59 = vshll.u32 %v998_v18, 16  ;;  %v11454_v22 = vrot.slane %v1302_v61, 4  ;;  %v1339_v11 = vshrl.u32 %v998_v18, 16  ;;  %v320_v46 = vld [vmem:[%s10963_s23 + $0x34] sm:$0xf] }
  0x68   : > { %v450_v16 = vrot.slane %v445_v40, 4  ;;  %v448_v3 = vor.u32 %v446_v28, %v445_v40  ;;  %v16739_v14 = vsel %vm11028_vm3, %v11107_v7, %v11093_v54  ;;  %v16740_v2 = vsel %vm11028_vm3, %v11119_v26, %v11057_v20  ;;  %v321_v18 = vld [vmem:[%s10963_s23 + $0x38] sm:$0xf] }
  0x69   : > { %v11469_v61 = vrot.slane %v1292_v15, 4  ;;  %v11471_v44 = vrot.slane %v1325_v41, 5  ;;  %v1329_v39 = vshrl.u32 %v11398_v0, 16  ;;  %v457_v23 = vor.u32 %v455_v52, %v454_v29  ;;  %v1000_v41 = vld [vmem:[%s10963_s23 + $0x90] sm:$0xf] }
  0x6a   : > { %1387 = vrot.lane.b32.xlu1 %v16739_v14, %s10832_s25  ;;  %v11475_v37 = vrot.slane %v1322_v25, 4  ;;  %v1312_v54 = vor.u32 %v1311_v4, %v11417_v43  ;;  %v449_v7 = vsel %vm11239_vm7, %v441_v10, %v448_v3  ;;  %v1345_v35 = vshll.u32 %v999_v31, 16 }
  0x6b   : > { %1385 = vrot.lane.b32.xlu0 %v16740_v2, %s10832_s25  ;;  %v458_v20 = vsel %vm11239_vm7, %v450_v16, %v457_v23  ;;  %722 = vst.msk [vmem:[#allocation3 + $0x28] sm:$0xf] %vm711_vm6, %v449_v7  ;;  %v11483_v26 = vrot.slane %v1335_v59, 5  ;;  %v1349_v15 = vshrl.u32 %v999_v31, 16  ;;  %v461_v0 = vshrl.u32 %v320_v46, 16 }
  0x6c   : > { %723 = vst.msk [vmem:[#allocation3 + $0x2c] sm:$0xf] %vm711_vm6, %v458_v20  ;;  %v1341_v62 = vrot.slane %v1339_v11, 4  ;;  %v470_v4 = vshrl.u32 %v321_v18, 16  ;;  %v473_v55 = vshll.u32 %v321_v18, 16  ;;  %v464_v52 = vshll.u32 %v320_v46, 16 }
  0x6d   : > { %v16741_v25 = vsel %vm11028_vm3, %v11136_v50, %v11109_v8  ;;  %v16742_v40 = vsel %vm11028_vm3, %v11142_v56, %v11088_v45  ;;  %v1331_v28 = vrot.slane %v1329_v39, 4  ;;  %v463_v31 = vrot.slane %v461_v0, 7  ;;  %v1001_v16 = vld [vmem:[%s10963_s23 + $0x94] sm:$0x1]  ;;  %v322_v56 = vld [vmem:[%s10963_s23 + $0x3c] sm:$0xf] }
  0x6e   : > { %1391 = vrot.lane.b32.xlu1 %v16741_v25, %s10832_s25  ;;  %v459_v59 = vrot.slane %v454_v29, 4  ;;  %v11508_v50 = vrot.slane %v1312_v54, 4  ;;  %v472_v3 = vrot.slane %v470_v4, 7  ;;  %v1355_v45 = vshll.u32 %v1000_v41, 16  ;;  %v323_v39 = vld [vmem:[%s10963_s23 + $0x40] sm:$0xf] }
  0x6f   : > { %1389 = vrot.lane.b32.xlu0 %v16742_v40, %s10832_s25  ;;  %v11511_v11 = vrot.slane %v1345_v35, 5  ;;  %v468_v46 = vrot.slane %v463_v31, 4  ;;  %v466_v14 = vor.u32 %v464_v52, %v463_v31  ;;  %v1351_v2 = vrot.slane %v1349_v15, 4  ;;  %v16744_v35 = vld [vmem:[#allocation5_spill] sm:$0xff] }
  0x70   : > { %v1342_v23 = vor.u32 %v1341_v62, %v11483_v26  ;;  %v475_v18 = vor.u32 %v473_v55, %v472_v3  ;;  %v1359_v54 = vshrl.u32 %v1000_v41, 16  ;;  %v16743_v7 = vsel %vm11028_vm3, %v11147_v6, %v11112_v12  ;;  %v1515_v4 = vld [vmem:[%s10963_s23 + $0x10] sm:$0xf]  ;;  %v1514_v52 = vld [vmem:[%s10963_s23 + $0xc] sm:$0xf] }
  0x71   : > { %v16745_v20 = vsel %vm11028_vm3, %v11157_v27, %v16744_v35  ;;  %v1332_v15 = vor.u32 %v1331_v28, %v11471_v44  ;;  %v467_v0 = vsel %vm11239_vm7, %v459_v59, %v466_v14  ;;  %v1365_v41 = vshll.u32 %v1001_v16, 16  ;;  %v324_v59 = vld [vmem:[%s10963_s23 + $0x44] sm:$0xf]  ;;  %v16747_v35 = vld [vmem:[#allocation7_spill] sm:$0xff] }
  0x72   : > { %1395 = vrot.lane.b32.xlu1 %v16743_v7, %s10832_s25  ;;  %v479_v62 = vshrl.u32 %v322_v56, 16  ;;  %v476_v12 = vsel %vm11239_vm7, %v468_v46, %v475_v18  ;;  %724 = vst.msk [vmem:[#allocation3 + $0x30] sm:$0xf] %vm711_vm6, %v467_v0  ;;  %v11538_v6 = vrot.slane %v1355_v45, 5  ;;  %v488_v27 = vshrl.u32 %v323_v39, 16 }
  0x73   : > { %1393 = vrot.lane.b32.xlu0 %v16745_v20, %s10832_s25  ;;  %v491_v55 = vshll.u32 %v323_v39, 16  ;;  %725 = vst.msk [vmem:[#allocation3 + $0x34] sm:$0xf] %vm711_vm6, %v476_v12  ;;  %v1352_v25 = vor.u32 %v1351_v2, %v11511_v11  ;;  %v477_v28 = vrot.slane %v472_v3, 4  ;;  %v482_v31 = vshll.u32 %v322_v56, 16  ;;  %v16746_v39 = vld [vmem:[#allocation9_spill] sm:$0xff] }
  0x74   : > { %v481_v40 = vrot.slane %v479_v62, 7  ;;  %v1361_v16 = vrot.slane %v1359_v54, 4  ;;  %v490_v14 = vrot.slane %v488_v27, 7  ;;  %v11545_v7 = vld [vmem:[%s10963_s23 + $0x14] sm:$0xf]  ;;  %v1561_v46 = vshll.u32 %v1515_v4, 16 }
  0x75   : > { %v1565_v18 = vshrl.u32 %v1515_v4, 16  ;;  %v325_v45 = vld [vmem:[%s10963_s23 + $0x48] sm:$0xf]  ;;  %v16748_v20 = vsel %vm11028_vm3, %v16746_v39, %v16747_v35  ;;  %v16749_v3 = vld [vmem:[#allocation10_spill] sm:$0xff]  ;;  %v11560_v54 = vrot.slane %v1342_v23, 4  ;;  %v11562_v0 = vrot.slane %v1332_v15, 4 }
  0x76   : > { %1399 = vrot.lane.b32.xlu1 %v16748_v20, %s10832_s25  ;;  %v16750_v56 = vld [vmem:[#allocation6_spill] sm:$0xff]  ;;  %v486_v62 = vrot.slane %v481_v40, 4  ;;  %v484_v4 = vor.u32 %v482_v31, %v481_v40  ;;  %v493_v27 = vor.u32 %v491_v55, %v490_v14  ;;  %v11568_v39 = vrot.slane %v1561_v46, 5  ;;  %v326_v12 = vld [vmem:[%s10963_s23 + $0x4c] sm:$0xf] }
  0x77   : > { %v16751_v2 = vsel %vm11028_vm3, %v16749_v3, %v16750_v56  ;;  %v1567_v35 = vrot.slane %v1565_v18, 4  ;;  %v11570_v20 = vrot.slane %v1365_v41, 5  ;;  %v11572_v29 = vrot.slane %v1352_v25, 4  ;;  %v1517_v3 = vld [vmem:[%s10963_s23 + $0x18] sm:$0xf]  ;;  %v16752_v41 = vld [vmem:[#allocation11_spill] sm:$0xff] }
  0x78   : > { %1397 = vrot.lane.b32.xlu0 %v16751_v2, %s10832_s25  ;;  %v485_v23 = vsel %vm11239_vm7, %v477_v28, %v484_v4  ;;  %v1552_v15 = vshrl.u32 %v1514_v52, 16  ;;  %v1362_v40 = vor.u32 %v1361_v16, %v11538_v6  ;;  %v494_v31 = vsel %vm11239_vm7, %v486_v62, %v493_v27  ;;  %v16753_v25 = vld [vmem:[#allocation12_spill] sm:$0xff]  ;;  %v16755_v28 = vld [vmem:[#allocation14_spill] sm:$0xff] }
  0x79   : > { %726 = vst.msk [vmem:[#allocation3 + $0x38] sm:$0xf] %vm711_vm6, %v485_v23  ;;  %v1555_v55 = vshll.u32 %v1514_v52, 16  ;;  %v497_v46 = vshrl.u32 %v324_v59, 16  ;;  %v16754_v18 = vsel %vm11028_vm3, %v16752_v41, %v16753_v25  ;;  %v16756_v16 = vld [vmem:[#allocation8_spill] sm:$0xff]  ;;  %vm928_vm8 = vcmask 126016  }
  0x7a   : > { %1403 = vrot.lane.b32.xlu1 %v16754_v18, %s10832_s25  ;;  %v16757_v56 = vsel %vm11028_vm3, %v16755_v28, %v16756_v16  ;;  %727 = vst.msk [vmem:[#allocation3 + $0x3c] sm:$0xf] %vm711_vm6, %v494_v31  ;;  %v1571_v52 = vshll.u32 %v11545_v7, 16  ;;  %v1575_v2 = vshrl.u32 %v11545_v7, 16  ;;  %v506_v62 = vshrl.u32 %v325_v45, 16 }
  0x7b   : > { %v509_v4 = vshll.u32 %v325_v45, 16  ;;  %v1568_v27 = vor.u32 %v1567_v35, %v11568_v39  ;;  %v499_v23 = vrot.slane %v497_v46, 7  ;;  %v495_v41 = vrot.slane %v490_v14, 4  ;;  %v11598_v18 = vld [vmem:[%s10963_s23 + $0x1c] sm:$0xf] }
  0x7c   : > { %1401 = vrot.lane.b32.xlu0 %v16757_v56, %s10832_s25  ;;  %v500_v25 = vshll.u32 %v324_v59, 16  ;;  %v1554_v28 = vrot.slane %v1552_v15, 4  ;;  %v508_v16 = vrot.slane %v506_v62, 7  ;;  %v1581_v56 = vshll.u32 %v1517_v3, 16  ;;  %v327_v31 = vld [vmem:[%s10963_s23 + $0x50] sm:$0xf] }
  0x7d   : > { %v1585_v8 = vshrl.u32 %v1517_v3, 16  ;;  %v1557_v45 = vrot.slane %v1555_v55, 5  ;;  %v504_v10 = vrot.slane %v499_v23, 4  ;;  %v16758_v59 = vld [vmem:[#allocation16_spill] sm:$0xff]  ;;  %v16759_v14 = vld [vmem:[#allocation15_spill] sm:$0xff]  ;;  %v16761_v15 = vld [vmem:[#allocation17_spill] sm:$0xff]  ;;  %v1338_v55 = vsel %vm11028_vm3, %v11562_v0, %v11483_v26 }
  0x7e   : > { %v502_v35 = vor.u32 %v500_v25, %v499_v23  ;;  %v16760_v46 = vsel %vm11028_vm3, %v16758_v59, %v16759_v14  ;;  %v16762_v3 = vld [vmem:[#allocation13_spill] sm:$0xff]  ;;  %v11622_v23 = vrot.slane %v1362_v40, 4  ;;  %v11624_v25 = vrot.slane %v1571_v52, 5 }
  0x7f   : > { %1407 = vrot.lane.b32.xlu1 %v16760_v46, %s10832_s25  ;;  %v16763_v62 = vsel %vm11028_vm3, %v16761_v15, %v16762_v3  ;;  %v511_v7 = vor.u32 %v509_v4, %v508_v16  ;;  %v11627_v59 = vrot.slane %v1568_v27, 4  ;;  %v11631_v46 = vrot.slane %v1581_v56, 5 }
  0x80   : > { %1405 = vrot.lane.b32.xlu0 %v16763_v62, %s10832_s25  ;;  %v503_v14 = vsel %vm11239_vm7, %v495_v41, %v502_v35  ;;  %v1587_v15 = vrot.slane %v1585_v8, 4  ;;  %v1591_v40 = vshll.u32 %v11598_v18, 16  ;;  %v515_v52 = vshrl.u32 %v326_v12, 16 }
  0x81   : > { %v512_v3 = vsel %vm11239_vm7, %v504_v10, %v511_v7  ;;  %728 = vst.msk [vmem:[#allocation3 + $0x40] sm:$0xf] %vm711_vm6, %v503_v14  ;;  %v524_v62 = vshrl.u32 %v327_v31, 16  ;;  %v1358_v4 = vsel %vm11028_vm3, %v11572_v29, %v11538_v6  ;;  %v1558_v27 = vor.u32 %v1557_v45, %v1554_v28 }
  0x82   : > { %729 = vst.msk [vmem:[#allocation3 + $0x44] sm:$0xf] %vm711_vm6, %v512_v3  ;;  %v1577_v8 = vrot.slane %v1575_v2, 4  ;;  %v527_v41 = vshll.u32 %v327_v31, 16  ;;  %v16764_v10 = vsel %vm11028_vm3, %v11279_v47, %v11235_v58  ;;  %v517_v56 = vrot.slane %v515_v52, 7 }
  0x83   : > { %1411 = vrot.lane.b32.xlu1 %v16764_v10, %s10832_s25  ;;  %v11654_v28 = vrot.slane %v524_v62, 7  ;;  %v513_v2 = vrot.slane %v508_v16, 4  ;;  %v518_v31 = vshll.u32 %v326_v12, 16  ;;  %v1368_v7 = vsel %vm11028_vm3, %v11622_v23, %v11570_v20  ;;  %v11662_v47 = vld [vmem:[%s10963_s23 + $0x24] sm:$0xf] }
  0x84   : > { %1409 = vrot.lane.b32.xlu0 %v1218_v32, %s10832_s25  ;;  %v1588_v58 = vor.u32 %v1587_v15, %v11631_v46  ;;  %v1601_v45 = vshll.u32 %v1519_v53, 16  ;;  %v1605_v35 = vshrl.u32 %v1519_v53, 16  ;;  %v825_v36 = vpop.permute.xlu1 %824  ;;  %v1595_v14 = vshrl.u32 %v11598_v18, 16  ;;  %v329_v52 = vld [vmem:[%s10963_s23 + $0x58] sm:$0xf] }
  0x85   : > { %v821_v32 = vpop.permute.xlu0 %820  ;;  %v522_v3 = vrot.slane %v517_v56, 4  ;;  %v529_v12 = vor.u32 %v527_v41, %v11654_v28  ;;  %v520_v16 = vor.u32 %v518_v31, %v517_v56  ;;  %931 = vst.msk [vmem:[#allocation3 + $0x8] sm:$0xf] %vm928_vm8, %v825_v36  ;;  %v1574_v15 = vsel %vm11028_vm3, %v11627_v59, %v11624_v25  ;;  %v1521_v10 = vld [vmem:[%s10963_s23 + $0x28] sm:$0xf] }
  0x86   : > { %929 = vst.msk [vmem:[#allocation3] sm:$0xf] %vm928_vm8, %v821_v32  ;;  %v11674_v53 = vrot.slane %v1558_v27, 4  ;;  %v11676_v62 = vrot.slane %v1591_v40, 5  ;;  %v1578_v18 = vor.u32 %v1577_v8, %v11624_v25  ;;  %v16765_v41 = vsel %vm11028_vm3, %v11317_v57, %v11258_v9 }
  0x87   : > { %1415 = vrot.lane.b32.xlu1 %v1248_v60, %s10832_s25  ;;  %v530_v40 = vsel %vm11239_vm7, %v522_v3, %v529_v12  ;;  %v521_v27 = vsel %vm11239_vm7, %v513_v2, %v520_v16  ;;  %v11696_v8 = vrot.slane %v1601_v45, 5  ;;  %v1607_v56 = vrot.slane %v1605_v35, 4 }
  0x88   : > { %1413 = vrot.lane.b32.xlu0 %v16765_v41, %s10832_s25  ;;  %v11698_v31 = vrot.slane %v1588_v58, 4  ;;  %731 = vst.msk [vmem:[#allocation3 + $0x4c] sm:$0xf] %vm711_vm6, %v530_v40  ;;  %730 = vst.msk [vmem:[#allocation3 + $0x48] sm:$0xf] %vm711_vm6, %v521_v27  ;;  %v533_v17 = vshrl.u32 %v328_v24, 16  ;;  %v827_v9 = vpop.permute.xlu1 %826 }
  0x89   : > { %v542_v19 = vshrl.u32 %v329_v52, 16  ;;  %v545_v60 = vshll.u32 %v329_v52, 16  ;;  %v823_v57 = vpop.permute.xlu0 %822  ;;  %v1611_v36 = vshll.u32 %v11662_v47, 16  ;;  %v1597_v32 = vrot.slane %v1595_v14, 4  ;;  %932 = vst.msk [vmem:[#allocation3 + $0xc] sm:$0xf] %vm928_vm8, %v827_v9 }
  0x8a   : > { %v536_v2 = vshll.u32 %v328_v24, 16  ;;  %v1621_v45 = vshll.u32 %v1521_v10, 16  ;;  %930 = vst.msk [vmem:[#allocation3 + $0x4] sm:$0xf] %vm928_vm8, %v823_v57  ;;  %v535_v58 = vrot.slane %v533_v17, 7  ;;  %v531_v3 = vrot.slane %v11654_v28, 4 }
  0x8b   : > { %v11705_v35 = vrot.slane %v542_v19, 7  ;;  %v1625_v12 = vshrl.u32 %v1521_v10, 16  ;;  %v16766_v14 = vsel %vm11028_vm3, %v11320_v5, %v11322_v48  ;;  %v16767_v24 = vsel %vm11028_vm3, %v11324_v21, %v11285_v42  ;;  %v330_v5 = vld [vmem:[%s10963_s23 + $0x5c] sm:$0xf]  ;;  %v331_v10 = vld [vmem:[%s10963_s23 + $0x60] sm:$0xf] }
  0x8c   : > { %1419 = vrot.lane.b32.xlu1 %v16766_v14, %s10832_s25  ;;  %1417 = vrot.lane.b32.xlu0 %v16767_v24, %s10832_s25  ;;  %v1564_v28 = vsel %vm11028_vm3, %v11674_v53, %v11568_v39  ;;  %v11724_v16 = vrot.slane %v1578_v18, 4  ;;  %v1608_v52 = vor.u32 %v1607_v56, %v11696_v8  ;;  %v1615_v48 = vshrl.u32 %v11662_v47, 16  ;;  %v11736_v27 = vld [vmem:[%s10963_s23 + $0x2c] sm:$0xf]  ;;  %v831_v18 = vpop.permute.xlu1 %830  ;;  %v1523_v57 = vld [vmem:[%s10963_s23 + $0x30] sm:$0xf] }
  0x8d   : > { %v1594_v42 = vsel %vm11028_vm3, %v11698_v31, %v11676_v62  ;;  %v540_v21 = vrot.slane %v535_v58, 4  ;;  %v547_v41 = vor.u32 %v545_v60, %v11705_v35  ;;  %v538_v40 = vor.u32 %v536_v2, %v535_v58  ;;  %v829_v17 = vpop.permute.xlu0 %828  ;;  %934 = vst.msk [vmem:[#allocation3 + $0x14] sm:$0xf] %vm928_vm8, %v831_v18  ;;  %v11751_v14 = vld [vmem:[%s10963_s23 + $0x34] sm:$0xf] }
  0x8e   : > { %v11738_v19 = vrot.slane %v1611_v36, 5  ;;  %v1598_v47 = vor.u32 %v1597_v32, %v11676_v62  ;;  %v11741_v56 = vrot.slane %v1621_v45, 5  ;;  %v1627_v9 = vrot.slane %v1625_v12, 4  ;;  %933 = vst.msk [vmem:[#allocation3 + $0x10] sm:$0xf] %vm928_vm8, %v829_v17 }
  0x8f   : > { %v548_v60 = vsel %vm11239_vm7, %v540_v21, %v547_v41  ;;  %v539_v2 = vsel %vm11239_vm7, %v531_v3, %v538_v40  ;;  %v551_v58 = vshrl.u32 %v330_v5, 16  ;;  %v560_v36 = vshrl.u32 %v331_v10, 16  ;;  %v332_v41 = vld [vmem:[%s10963_s23 + $0x64] sm:$0xf] }
  0x90   : > { %1423 = vrot.lane.b32.xlu1 %v1288_v63, %s10832_s25  ;;  %v16768_v32 = vsel %vm11028_vm3, %v11415_v49, %v11328_v38  ;;  %v11765_v45 = vrot.slane %v1608_v52, 4  ;;  %733 = vst.msk [vmem:[#allocation3 + $0x54] sm:$0xf] %vm711_vm6, %v548_v60  ;;  %732 = vst.msk [vmem:[#allocation3 + $0x50] sm:$0xf] %vm711_vm6, %v539_v2  ;;  %v1617_v3 = vrot.slane %v1615_v48, 4  ;;  %v835_v40 = vpop.permute.xlu1 %834  ;;  %v1584_v49 = vsel %vm11028_vm3, %v11724_v16, %v11631_v46 }
  0x91   : > { %1421 = vrot.lane.b32.xlu0 %v16768_v32, %s10832_s25  ;;  %v563_v12 = vshll.u32 %v331_v10, 16  ;;  %v549_v24 = vrot.slane %v11705_v35, 4  ;;  %v553_v30 = vrot.slane %v551_v58, 7  ;;  %v11770_v33 = vrot.slane %v560_v36, 7  ;;  %v833_v38 = vpop.permute.xlu0 %832  ;;  %v333_v35 = vld [vmem:[%s10963_s23 + $0x68] sm:$0xf] }
  0x92   : > { %v554_v63 = vshll.u32 %v330_v5, 16  ;;  %v1641_v21 = vshll.u32 %v1523_v57, 16  ;;  %v11777_v52 = vrot.slane %v1598_v47, 4  ;;  %v1631_v48 = vshll.u32 %v11736_v27, 16  ;;  %936 = vst.msk [vmem:[#allocation3 + $0x1c] sm:$0xf] %vm928_vm8, %v835_v40 }
  0x93   : > { %v1645_v10 = vshrl.u32 %v1523_v57, 16  ;;  %935 = vst.msk [vmem:[#allocation3 + $0x18] sm:$0xf] %vm928_vm8, %v833_v38  ;;  %v1628_v5 = vor.u32 %v1627_v9, %v11741_v56  ;;  %v558_v18 = vrot.slane %v553_v30, 4  ;;  %v565_v17 = vor.u32 %v563_v12, %v11770_v33  ;;  %v11818_v38 = vld [vmem:[%s10963_s23 + $0x3c] sm:$0xf] }
  0x94   : > { %v556_v60 = vor.u32 %v554_v63, %v553_v30  ;;  %v16769_v47 = vsel %vm11028_vm3, %v11454_v22, %v11417_v43  ;;  %v16770_v57 = vsel %vm11028_vm3, %v11469_v61, %v11394_v13  ;;  %v1614_v9 = vsel %vm11028_vm3, %v11765_v45, %v11738_v19  ;;  %v1525_v22 = vld [vmem:[%s10963_s23 + $0x38] sm:$0xf]  ;;  %v839_v12 = vpop.permute.xlu1 %838  ;;  %v12025_v45 = vld [vmem:[%s10963_s23 + $0x54] sm:$0xf] }
  0x95   : > { %1427 = vrot.lane.b32.xlu1 %v16769_v47, %s10832_s25  ;;  %1425 = vrot.lane.b32.xlu0 %v16770_v57, %s10832_s25  ;;  %v1635_v2 = vshrl.u32 %v11736_v27, 16  ;;  %v1618_v58 = vor.u32 %v1617_v3, %v11738_v19  ;;  %v1651_v43 = vshll.u32 %v11751_v14, 16  ;;  %v566_v36 = vsel %vm11239_vm7, %v558_v18, %v565_v17  ;;  %v837_v30 = vpop.permute.xlu0 %836  ;;  %938 = vst.msk [vmem:[#allocation3 + $0x24] sm:$0xf] %vm928_vm8, %v839_v12  ;;  %v334_v18 = vld [vmem:[%s10963_s23 + $0x6c] sm:$0xf] }
  0x96   : > { %v557_v13 = vsel %vm11239_vm7, %v549_v24, %v556_v60  ;;  %v11809_v61 = vrot.slane %v1641_v21, 5  ;;  %v11811_v32 = vrot.slane %v1645_v10, 4  ;;  %v11813_v27 = vrot.slane %v1631_v48, 5  ;;  %735 = vst.msk [vmem:[#allocation3 + $0x5c] sm:$0xf] %vm711_vm6, %v566_v36 }
  0x97   : > { %734 = vst.msk [vmem:[#allocation3 + $0x58] sm:$0xf] %vm711_vm6, %v557_v13  ;;  %v569_v3 = vshrl.u32 %v332_v41, 16  ;;  %v578_v63 = vshrl.u32 %v333_v35, 16  ;;  %v581_v40 = vshll.u32 %v333_v35, 16  ;;  %v11822_v24 = vrot.slane %v1628_v5, 4 }
  0x98   : > { %937 = vst.msk [vmem:[#allocation3 + $0x20] sm:$0xf] %vm928_vm8, %v837_v30  ;;  %v1655_v21 = vshrl.u32 %v11751_v14, 16  ;;  %v572_v48 = vshll.u32 %v332_v41, 16  ;;  %v1661_v10 = vshll.u32 %v1525_v22, 16  ;;  %v16771_v17 = vsel %vm11028_vm3, %v11475_v37, %v11471_v44  ;;  %v843_v13 = vpop.permute.xlu1 %842 }
  0x99   : > { %1431 = vrot.lane.b32.xlu1 %v16771_v17, %s10832_s25  ;;  %v16772_v35 = vsel %vm11028_vm3, %v11508_v50, %v11421_v34  ;;  %v571_v5 = vrot.slane %v569_v3, 7  ;;  %v11838_v14 = vrot.slane %v578_v63, 7  ;;  %v567_v41 = vrot.slane %v11770_v33, 4  ;;  %v335_v47 = vld [vmem:[%s10963_s23 + $0x70] sm:$0xf]  ;;  %v841_v12 = vpop.permute.xlu0 %840 }
  0x9a   : > { %1429 = vrot.lane.b32.xlu0 %v16772_v35, %s10832_s25  ;;  %v1665_v60 = vshrl.u32 %v1525_v22, 16  ;;  %v11842_v57 = vrot.slane %v1618_v58, 4  ;;  %v1648_v44 = vor.u32 %v11811_v32, %v11809_v61  ;;  %v11846_v37 = vrot.slane %v1651_v43, 5  ;;  %v1527_v63 = vld [vmem:[%s10963_s23 + $0x40] sm:$0xf] }
  0x9b   : > { %v1637_v36 = vrot.slane %v1635_v2, 4  ;;  %v576_v34 = vrot.slane %v571_v5, 4  ;;  %v583_v50 = vor.u32 %v581_v40, %v11838_v14  ;;  %v574_v30 = vor.u32 %v572_v48, %v571_v5  ;;  %940 = vst.msk [vmem:[#allocation3 + $0x2c] sm:$0xf] %vm928_vm8, %v843_v13  ;;  %939 = vst.msk [vmem:[#allocation3 + $0x28] sm:$0xf] %vm928_vm8, %v841_v12 }
  0x9c   : > { %v11849_v3 = vrot.slane %v1661_v10, 5  ;;  %v11854_v33 = vrot.slane %v1665_v60, 4  ;;  %v1671_v58 = vshll.u32 %v11818_v38, 16  ;;  %v1675_v43 = vshrl.u32 %v11818_v38, 16  ;;  %v11887_v5 = vld [vmem:[%s10963_s23 + $0x44] sm:$0xf] }
  0x9d   : > { %v11858_v2 = vrot.slane %v1655_v21, 4  ;;  %v16773_v22 = vsel %vm11028_vm3, %v11560_v54, %v11511_v11  ;;  %v584_v32 = vsel %vm11239_vm7, %v576_v34, %v583_v50  ;;  %v575_v40 = vsel %vm11239_vm7, %v567_v41, %v574_v30  ;;  %v845_v48 = vpop.permute.xlu0 %844  ;;  %v336_v60 = vld [vmem:[%s10963_s23 + $0x74] sm:$0xf]  ;;  %v337_v13 = vld [vmem:[%s10963_s23 + $0x78] sm:$0xf] }
  0x9e   : > { %1435 = vrot.lane.b32.xlu1 %v16773_v22, %s10832_s25  ;;  %1433 = vrot.lane.b32.xlu0 %v1338_v55, %s10832_s25  ;;  %v587_v38 = vshrl.u32 %v334_v18, 16  ;;  %v596_v21 = vshrl.u32 %v335_v47, 16  ;;  %v1604_v11 = vsel %vm11028_vm3, %v11777_v52, %v11696_v8  ;;  %v1638_v54 = vor.u32 %v1637_v36, %v11813_v27  ;;  %737 = vst.msk [vmem:[#allocation3 + $0x64] sm:$0xf] %vm711_vm6, %v584_v32  ;;  %v847_v55 = vpop.permute.xlu1 %846  ;;  %v1529_v30 = vld [vmem:[%s10963_s23 + $0x48] sm:$0xf] }
  0x9f   : > { %736 = vst.msk [vmem:[#allocation3 + $0x60] sm:$0xf] %vm711_vm6, %v575_v40  ;;  %v599_v26 = vshll.u32 %v335_v47, 16  ;;  %v585_v0 = vrot.slane %v11838_v14, 4  ;;  %v590_v35 = vshll.u32 %v334_v18, 16  ;;  %v1681_v41 = vshll.u32 %v1527_v63, 16 }
  0xa0   : > { %v589_v10 = vrot.slane %v587_v38, 7  ;;  %v11884_v17 = vrot.slane %v596_v21, 7  ;;  %942 = vst.msk [vmem:[#allocation3 + $0x34] sm:$0xf] %vm928_vm8, %v847_v55  ;;  %941 = vst.msk [vmem:[#allocation3 + $0x30] sm:$0xf] %vm928_vm8, %v845_v48  ;;  %v1634_v14 = vsel %vm11028_vm3, %v11822_v24, %v11813_v27  ;;  %v1624_v20 = vsel %vm11028_vm3, %v11842_v57, %v11741_v56 }
  0xa1   : > { %v11897_v47 = vrot.slane %v1648_v44, 4  ;;  %v11899_v36 = vrot.slane %v1671_v58, 5  ;;  %v1685_v18 = vshrl.u32 %v1527_v63, 16  ;;  %v11914_v50 = vrot.slane %v1681_v41, 5  ;;  %v849_v6 = vpop.permute.xlu0 %848  ;;  %v339_v41 = vld [vmem:[%s10963_s23 + $0x80] sm:$0xf] }
  0xa2   : > { %1439 = vrot.lane.b32.xlu1 %v1368_v7, %s10832_s25  ;;  %1437 = vrot.lane.b32.xlu0 %v1358_v4, %s10832_s25  ;;  %v594_v12 = vrot.slane %v589_v10, 4  ;;  %v601_v44 = vor.u32 %v599_v26, %v11884_v17  ;;  %v592_v34 = vor.u32 %v590_v35, %v589_v10  ;;  %v11921_v23 = vrot.slane %v1638_v54, 4  ;;  %v851_v29 = vpop.permute.xlu1 %850  ;;  %943 = vst.msk [vmem:[#allocation3 + $0x38] sm:$0xf] %vm928_vm8, %v849_v6  ;;  %s10838_s25 = smov 64  }
  0xa3   : > { %v1668_v7 = vor.u32 %v11854_v33, %v11849_v3  ;;  %v1687_v63 = vrot.slane %v1685_v18, 4  ;;  %v1658_v4 = vor.u32 %v11858_v2, %v11846_v37  ;;  %v1677_v32 = vrot.slane %v1675_v43, 4  ;;  %944 = vst.msk [vmem:[#allocation3 + $0x3c] sm:$0xf] %vm928_vm8, %v851_v29 }
  0xa4   : > { %v602_v58 = vsel %vm11239_vm7, %v594_v12, %v601_v44  ;;  %v593_v22 = vsel %vm11239_vm7, %v585_v0, %v592_v34  ;;  %v1691_v33 = vshll.u32 %v11887_v5, 16  ;;  %v605_v40 = vshrl.u32 %v336_v60, 16  ;;  %v338_v0 = vld [vmem:[%s10963_s23 + $0x7c] sm:$0xf]  ;;  %v1530_v12 = vld [vmem:[%s10963_s23 + $0x4c] sm:$0xf] }
  0xa5   : > { %739 = vst.msk [vmem:[#allocation3 + $0x6c] sm:$0xf] %vm711_vm6, %v602_v58  ;;  %738 = vst.msk [vmem:[#allocation3 + $0x68] sm:$0xf] %vm711_vm6, %v593_v22  ;;  %v614_v2 = vshrl.u32 %v337_v13, 16  ;;  %v617_v38 = vshll.u32 %v337_v13, 16  ;;  %v1688_v43 = vor.u32 %v1687_v63, %v11914_v50  ;;  %v1678_v21 = vor.u32 %v1677_v32, %v11899_v36 }
  0xa6   : > { %1917 = vrot.lane.b32.xlu1 %v1574_v15, %s10833_s26  ;;  %1915 = vrot.lane.b32.xlu0 %v1564_v28, %s10833_s26  ;;  %v608_v54 = vshll.u32 %v336_v60, 16  ;;  %v1701_v26 = vshll.u32 %v1529_v30, 16  ;;  %v1654_v25 = vsel %vm11028_vm3, %v11897_v47, %v11846_v37  ;;  %v607_v59 = vrot.slane %v605_v40, 7  ;;  %v855_v53 = vpop.permute.xlu1 %854  ;;  %v853_v28 = vpop.permute.xlu0 %852  ;;  %v1535_v47 = vld [vmem:[%s10963_s23 + $0x60] sm:$0xf] }
  0xa7   : > { %v11955_v15 = vrot.slane %v614_v2, 7  ;;  %v603_v39 = vrot.slane %v11884_v17, 4  ;;  %v1644_v55 = vsel %vm11028_vm3, %v11921_v23, %v11809_v61  ;;  %v11962_v48 = vrot.slane %v1668_v7, 4  ;;  %946 = vst.msk [vmem:[#allocation3 + $0x44] sm:$0xf] %vm928_vm8, %v855_v53 }
  0xa8   : > { %v1695_v10 = vshrl.u32 %v11887_v5, 16  ;;  %v1705_v35 = vshrl.u32 %v1529_v30, 16  ;;  %945 = vst.msk [vmem:[#allocation3 + $0x40] sm:$0xf] %vm928_vm8, %v853_v28  ;;  %v11968_v60 = vrot.slane %v1658_v4, 4  ;;  %v612_v17 = vrot.slane %v607_v59, 4 }
  0xa9   : > { %v619_v13 = vor.u32 %v617_v38, %v11955_v15  ;;  %v610_v18 = vor.u32 %v608_v54, %v607_v59  ;;  %v11984_v5 = vrot.slane %v1688_v43, 4  ;;  %v11986_v44 = vrot.slane %v1691_v33, 5  ;;  %v1531_v7 = vld [vmem:[%s10963_s23 + $0x50] sm:$0xf]  ;;  %v340_v38 = vld [vmem:[%s10963_s23 + $0x84] sm:$0xf] }
  0xaa   : > { %1921 = vrot.lane.b32.xlu1 %v1594_v42, %s10833_s26  ;;  %1919 = vrot.lane.b32.xlu0 %v1584_v49, %s10833_s26  ;;  %v11988_v34 = vrot.slane %v1678_v21, 4  ;;  %v11990_v30 = vrot.slane %v1701_v26, 5  ;;  %v623_v42 = vshrl.u32 %v338_v0, 16  ;;  %v632_v63 = vshrl.u32 %v339_v41, 16  ;;  %v859_v29 = vpop.permute.xlu1 %858  ;;  %v857_v46 = vpop.permute.xlu0 %856  ;;  %v1533_v53 = vld [vmem:[%s10963_s23 + $0x58] sm:$0xf] }
  0xab   : > { %v620_v62 = vsel %vm11239_vm7, %v612_v17, %v619_v13  ;;  %v611_v31 = vsel %vm11239_vm7, %v603_v39, %v610_v18  ;;  %v1707_v16 = vrot.slane %v1705_v35, 4  ;;  %v1697_v49 = vrot.slane %v1695_v10, 4  ;;  %948 = vst.msk [vmem:[#allocation3 + $0x4c] sm:$0xf] %vm928_vm8, %v859_v29  ;;  %947 = vst.msk [vmem:[#allocation3 + $0x48] sm:$0xf] %vm928_vm8, %v857_v46 }
  0xac   : > { %741 = vst.msk [vmem:[#allocation3 + $0x74] sm:$0xf] %vm711_vm6, %v620_v62  ;;  %740 = vst.msk [vmem:[#allocation3 + $0x70] sm:$0xf] %vm711_vm6, %v611_v31  ;;  %v635_v6 = vshll.u32 %v339_v41, 16  ;;  %v621_v4 = vrot.slane %v11955_v15, 4  ;;  %v1674_v40 = vsel %vm11028_vm3, %v11962_v48, %v11899_v36  ;;  %v1664_v2 = vsel %vm11028_vm3, %v11968_v60, %v11849_v3 }
  0xad   : > { %v625_v58 = vrot.slane %v623_v42, 7  ;;  %v12002_v22 = vrot.slane %v632_v63, 7  ;;  %v626_v32 = vshll.u32 %v338_v0, 16  ;;  %v1721_v33 = vshll.u32 %v1531_v7, 16  ;;  %v342_v29 = vld [vmem:[%s10963_s23 + $0x8c] sm:$0xf] }
  0xae   : > { %1925 = vrot.lane.b32.xlu1 %v1614_v9, %s10833_s26  ;;  %1923 = vrot.lane.b32.xlu0 %v1604_v11, %s10833_s26  ;;  %v1711_v19 = vshll.u32 %v1530_v12, 16  ;;  %v1725_v9 = vshrl.u32 %v1531_v7, 16  ;;  %v1715_v43 = vshrl.u32 %v1530_v12, 16  ;;  %v341_v11 = vld [vmem:[%s10963_s23 + $0x88] sm:$0xf]  ;;  %v863_v54 = vpop.permute.xlu1 %862  ;;  %v861_v26 = vpop.permute.xlu0 %860  ;;  %v1694_v0 = vsel %vm11028_vm3, %v11984_v5, %v11986_v44 }
  0xaf   : > { %v630_v21 = vrot.slane %v625_v58, 4  ;;  %v637_v8 = vor.u32 %v635_v6, %v12002_v22  ;;  %v628_v52 = vor.u32 %v626_v32, %v625_v58  ;;  %v1684_v59 = vsel %vm11028_vm3, %v11988_v34, %v11914_v50  ;;  %950 = vst.msk [vmem:[#allocation3 + $0x54] sm:$0xf] %vm928_vm8, %v863_v54  ;;  %949 = vst.msk [vmem:[#allocation3 + $0x50] sm:$0xf] %vm928_vm8, %v861_v26 }
  0xb0   : > { %v1708_v15 = vor.u32 %v1707_v16, %v11990_v30  ;;  %v1698_v39 = vor.u32 %v1697_v49, %v11986_v44  ;;  %v12047_v35 = vrot.slane %v1721_v33, 5  ;;  %v1731_v41 = vshll.u32 %v12025_v45, 16  ;;  %v12065_v7 = vld [vmem:[%s10963_s23 + $0x5c] sm:$0xf]  ;;  %v1538_v44 = vld [vmem:[%s10963_s23 + $0x6c] sm:$0xf] }
  0xb1   : > { %v638_v28 = vsel %vm11239_vm7, %v630_v21, %v637_v8  ;;  %v629_v10 = vsel %vm11239_vm7, %v621_v4, %v628_v52  ;;  %v1727_v17 = vrot.slane %v1725_v9, 4  ;;  %v641_v13 = vshrl.u32 %v340_v38, 16  ;;  %v343_v4 = vld [vmem:[%s10963_s23 + $0x90] sm:$0xf] }
  0xb2   : > { %1929 = vrot.lane.b32.xlu1 %v1634_v14, %s10833_s26  ;;  %1927 = vrot.lane.b32.xlu0 %v1624_v20, %s10833_s26  ;;  %743 = vst.msk [vmem:[#allocation3 + $0x7c] sm:$0xf] %vm711_vm6, %v638_v28  ;;  %742 = vst.msk [vmem:[#allocation3 + $0x78] sm:$0xf] %vm711_vm6, %v629_v10  ;;  %v650_v18 = vshrl.u32 %v341_v11, 16  ;;  %v653_v12 = vshll.u32 %v341_v11, 16  ;;  %v867_v31 = vpop.permute.xlu1 %866  ;;  %v865_v56 = vpop.permute.xlu0 %864 }
  0xb3   : > { %v12067_v27 = vrot.slane %v1711_v19, 5  ;;  %v1717_v24 = vrot.slane %v1715_v43, 4  ;;  %v644_v14 = vshll.u32 %v340_v38, 16  ;;  %v1741_v62 = vshll.u32 %v1533_v53, 16  ;;  %952 = vst.msk [vmem:[#allocation3 + $0x5c] sm:$0xf] %vm928_vm8, %v867_v31 }
  0xb4   : > { %v643_v57 = vrot.slane %v641_v13, 7  ;;  %v12069_v20 = vrot.slane %v650_v18, 7  ;;  %v639_v42 = vrot.slane %v12002_v22, 4  ;;  %v1745_v63 = vshrl.u32 %v1533_v53, 16  ;;  %951 = vst.msk [vmem:[#allocation3 + $0x58] sm:$0xf] %vm928_vm8, %v865_v56 }
  0xb5   : > { %v12075_v46 = vrot.slane %v1708_v15, 4  ;;  %v12077_v16 = vrot.slane %v1698_v39, 4  ;;  %v12079_v49 = vrot.slane %v1731_v41, 5  ;;  %v1735_v6 = vshrl.u32 %v12025_v45, 16  ;;  %v1536_v39 = vld [vmem:[%s10963_s23 + $0x64] sm:$0xf] }
  0xb6   : > { %1933 = vrot.lane.b32.xlu1 %v1654_v25, %s10833_s26  ;;  %1931 = vrot.lane.b32.xlu0 %v1644_v55, %s10833_s26  ;;  %v1728_v58 = vor.u32 %v1727_v17, %v12047_v35  ;;  %v648_v22 = vrot.slane %v643_v57, 4  ;;  %v655_v32 = vor.u32 %v653_v12, %v12069_v20  ;;  %v646_v33 = vor.u32 %v644_v14, %v643_v57  ;;  %v871_v25 = vpop.permute.xlu1 %870  ;;  %v869_v38 = vpop.permute.xlu0 %868 }
  0xb7   : > { %v1718_v19 = vor.u32 %v1717_v24, %v12067_v27  ;;  %v12098_v45 = vrot.slane %v1741_v62, 5  ;;  %v1747_v9 = vrot.slane %v1745_v63, 4  ;;  %v1751_v37 = vshll.u32 %v12065_v7, 16  ;;  %954 = vst.msk [vmem:[#allocation3 + $0x64] sm:$0xf] %vm928_vm8, %v871_v25 }
  0xb8   : > { %v656_v61 = vsel %vm11239_vm7, %v648_v22, %v655_v32  ;;  %v647_v23 = vsel %vm11239_vm7, %v639_v42, %v646_v33  ;;  %v659_v55 = vshrl.u32 %v342_v29, 16  ;;  %v668_v43 = vshrl.u32 %v343_v4, 16  ;;  %953 = vst.msk [vmem:[#allocation3 + $0x60] sm:$0xf] %vm928_vm8, %v869_v38  ;;  %v1539_v42 = vld [vmem:[%s10963_s23 + $0x70] sm:$0xf] }
  0xb9   : > { %745 = vst.msk [vmem:[#allocation3 + $0x84] sm:$0xf] %vm711_vm6, %v656_v61  ;;  %744 = vst.msk [vmem:[#allocation3 + $0x80] sm:$0xf] %vm711_vm6, %v647_v23  ;;  %v1755_v21 = vshrl.u32 %v12065_v7, 16  ;;  %v1737_v8 = vrot.slane %v1735_v6, 4  ;;  %v1748_v17 = vor.u32 %v1747_v9, %v12098_v45  ;;  %v1714_v5 = vsel %vm11028_vm3, %v12075_v46, %v12067_v27 }
  0xba   : > { %v671_v52 = vshll.u32 %v343_v4, 16  ;;  %v657_v11 = vrot.slane %v12069_v20, 4  ;;  %1937 = vrot.lane.b32.xlu1 %v1674_v40, %s10833_s26  ;;  %1935 = vrot.lane.b32.xlu0 %v1664_v2, %s10833_s26  ;;  %v661_v54 = vrot.slane %v659_v55, 7  ;;  %v670_v26 = vrot.slane %v668_v43, 7  ;;  %v875_v48 = vpop.permute.xlu1 %874  ;;  %v873_v40 = vpop.permute.xlu0 %872  ;;  %v1537_v2 = vld [vmem:[%s10963_s23 + $0x68] sm:$0xf] }
  0xbb   : > { %v662_v15 = vshll.u32 %v342_v29, 16  ;;  %v1761_v53 = vshll.u32 %v1535_v47, 16  ;;  %v12125_v28 = vrot.slane %v1728_v58, 4  ;;  %v12127_v10 = vrot.slane %v1718_v19, 4  ;;  %956 = vst.msk [vmem:[#allocation3 + $0x6c] sm:$0xf] %vm928_vm8, %v875_v48 }
  0xbc   : > { %v12129_v41 = vrot.slane %v1751_v37, 5  ;;  %v1765_v36 = vshrl.u32 %v1535_v47, 16  ;;  %v666_v13 = vrot.slane %v661_v54, 4  ;;  %v673_v3 = vor.u32 %v671_v52, %v670_v26  ;;  %955 = vst.msk [vmem:[#allocation3 + $0x68] sm:$0xf] %vm928_vm8, %v873_v40 }
  0xbd   : > { %v664_v60 = vor.u32 %v662_v15, %v661_v54  ;;  %v1738_v18 = vor.u32 %v1737_v8, %v12079_v49  ;;  %v12136_v12 = vrot.slane %v1761_v53, 5  ;;  %v1771_v24 = vshll.u32 %v1536_v39, 16  ;;  %v1540_v63 = vld [vmem:[%s10963_s23 + $0x74] sm:$0xf]  ;;  %v1541_v22 = vld [vmem:[%s10963_s23 + $0x78] sm:$0xf] }
  0xbe   : > { %v1767_v7 = vrot.slane %v1765_v36, 4  ;;  %1941 = vrot.lane.b32.xlu1 %v1694_v0, %s10833_s26  ;;  %1939 = vrot.lane.b32.xlu0 %v1684_v59, %s10833_s26  ;;  %v674_v14 = vsel %vm11239_vm7, %v666_v13, %v673_v3  ;;  %v1775_v31 = vshrl.u32 %v1536_v39, 16  ;;  %v1757_v56 = vrot.slane %v1755_v21, 4  ;;  %v879_v59 = vpop.permute.xlu1 %878  ;;  %v877_v57 = vpop.permute.xlu0 %876  ;;  %v1542_v43 = vld [vmem:[%s10963_s23 + $0x7c] sm:$0xf] }
  0xbf   : > { %v665_v62 = vsel %vm11239_vm7, %v657_v11, %v664_v60  ;;  %v1704_v50 = vsel %vm11028_vm3, %v12077_v16, %v11990_v30  ;;  %747 = vst.msk [vmem:[#allocation3 + $0x8c] sm:$0xf] %vm711_vm6, %v674_v14  ;;  %v1781_v34 = vshll.u32 %v1537_v2, 16  ;;  %v1785_v0 = vshrl.u32 %v1537_v2, 16  ;;  %v1543_v26 = vld [vmem:[%s10963_s23 + $0x80] sm:$0xf] }
  0xc0   : > { %746 = vst.msk [vmem:[#allocation3 + $0x88] sm:$0xf] %vm711_vm6, %v665_v62  ;;  %v1734_v20 = vsel %vm11028_vm3, %v12125_v28, %v12079_v49  ;;  %v1724_v27 = vsel %vm11028_vm3, %v12127_v10, %v12047_v35  ;;  %v1749_v30 = vrot.slane %v1748_v17, 4  ;;  %v1739_v29 = vrot.slane %v1738_v18, 4  ;;  %v1544_v13 = vld [vmem:[%s10963_s23 + $0x84] sm:$0xf] }
  0xc1   : > { %958 = vst.msk [vmem:[#allocation3 + $0x74] sm:$0xf] %vm928_vm8, %v879_v59  ;;  %957 = vst.msk [vmem:[#allocation3 + $0x70] sm:$0xf] %vm928_vm8, %v877_v57  ;;  %v1768_v46 = vor.u32 %v1767_v7, %v12136_v12  ;;  %v12178_v16 = vrot.slane %v1771_v24, 5  ;;  %v1758_v49 = vor.u32 %v1757_v56, %v12129_v41  ;;  %v12183_v35 = vrot.slane %v1781_v34, 5 }
  0xc2   : > { %1945 = vrot.lane.b32.xlu1 %v1714_v5, %s10833_s26  ;;  %1943 = vrot.lane.b32.xlu0 %v1704_v50, %s10833_s26  ;;  %v1787_v6 = vrot.slane %v1785_v0, 4  ;;  %v1791_v4 = vshll.u32 %v1538_v44, 16  ;;  %v1777_v58 = vrot.slane %v1775_v31, 4  ;;  %v1795_v32 = vshrl.u32 %v1538_v44, 16  ;;  %v883_v37 = vpop.permute.xlu1 %882  ;;  %v881_v47 = vpop.permute.xlu0 %880  ;;  %v1545_v31 = vld [vmem:[%s10963_s23 + $0x88] sm:$0xf] }
  0xc3   : > { %v1801_v33 = vshll.u32 %v1539_v42, 16  ;;  %v1805_v19 = vshrl.u32 %v1539_v42, 16  ;;  %v1811_v9 = vshll.u32 %v1540_v63, 16  ;;  %v1754_v25 = vsel %vm11028_vm3, %v1749_v30, %v12129_v41  ;;  %960 = vst.msk [vmem:[#allocation3 + $0x7c] sm:$0xf] %vm928_vm8, %v883_v37 }
  0xc4   : > { %v1815_v38 = vshrl.u32 %v1540_v63, 16  ;;  %959 = vst.msk [vmem:[#allocation3 + $0x78] sm:$0xf] %vm928_vm8, %v881_v47  ;;  %v1744_v61 = vsel %vm11028_vm3, %v1739_v29, %v12098_v45  ;;  %v1769_v23 = vrot.slane %v1768_v46, 4  ;;  %v1759_v55 = vrot.slane %v1758_v49, 4 }
  0xc5   : > { %v1821_v21 = vshll.u32 %v1541_v22, 16  ;;  %v1788_v8 = vor.u32 %v1787_v6, %v12183_v35  ;;  %v12198_v52 = vrot.slane %v1791_v4, 5  ;;  %v1778_v11 = vor.u32 %v1777_v58, %v12178_v16  ;;  %v1547_v49 = vld [vmem:[%s10963_s23 + $0x90] sm:$0xf] }
  0xc6   : > { %1949 = vrot.lane.b32.xlu1 %v1734_v20, %s10833_s26  ;;  %1947 = vrot.lane.b32.xlu0 %v1724_v27, %s10833_s26  ;;  %v1825_v54 = vshrl.u32 %v1541_v22, 16  ;;  %v12202_v15 = vrot.slane %v1801_v33, 5  ;;  %v1807_v45 = vrot.slane %v1805_v19, 4  ;;  %v12204_v39 = vrot.slane %v1811_v9, 5  ;;  %v887_v28 = vpop.permute.xlu1 %886  ;;  %v885_v10 = vpop.permute.xlu0 %884  ;;  %v1546_v27 = vld [vmem:[%s10963_s23 + $0x8c] sm:$0xf] }
  0xc7   : > { %v1797_v53 = vrot.slane %v1795_v32, 4  ;;  %v1817_v41 = vrot.slane %v1815_v38, 4  ;;  %v12206_v36 = vrot.slane %v1821_v21, 5  ;;  %v1831_v40 = vshll.u32 %v1542_v43, 16  ;;  %962 = vst.msk [vmem:[#allocation3 + $0x84] sm:$0xf] %vm928_vm8, %v887_v28 }
  0xc8   : > { %v1827_v48 = vrot.slane %v1825_v54, 4  ;;  %961 = vst.msk [vmem:[#allocation3 + $0x80] sm:$0xf] %vm928_vm8, %v885_v10  ;;  %v1835_v17 = vshrl.u32 %v1542_v43, 16  ;;  %v1841_v3 = vshll.u32 %v1543_v26, 16  ;;  %v1845_v60 = vshrl.u32 %v1543_v26, 16 }
  0xc9   : > { %v1774_v2 = vsel %vm11028_vm3, %v1769_v23, %v12178_v16  ;;  %v1764_v18 = vsel %vm11028_vm3, %v1759_v55, %v12136_v12  ;;  %v1789_v7 = vrot.slane %v1788_v8, 4  ;;  %v1779_v24 = vrot.slane %v1778_v11, 4  ;;  %v1548_v43 = vld [vmem:[%s10963_s23 + $0x94] sm:$0xf]  ;;  %v1549_v54 = vld [vmem:[%s10963_s23 + $0x98] sm:$0xf] }
  0xca   : > { %1953 = vrot.lane.b32.xlu1 %v1754_v25, %s10833_s26  ;;  %1951 = vrot.lane.b32.xlu0 %v1744_v61, %s10833_s26  ;;  %v1808_v14 = vor.u32 %v1807_v45, %v12202_v15  ;;  %v1798_v62 = vor.u32 %v1797_v53, %v12198_v52  ;;  %v891_v56 = vpop.permute.xlu1 %890  ;;  %v889_v5 = vpop.permute.xlu0 %888  ;;  %v1818_v50 = vor.u32 %v1817_v41, %v12204_v39  ;;  %v12224_v34 = vrot.slane %v1831_v40, 5 }
  0xcb   : > { %v1828_v44 = vor.u32 %v1827_v48, %v12206_v36  ;;  %v1851_v0 = vshll.u32 %v1544_v13, 16  ;;  %964 = vst.msk [vmem:[#allocation3 + $0x8c] sm:$0xf] %vm928_vm8, %v891_v56  ;;  %963 = vst.msk [vmem:[#allocation3 + $0x88] sm:$0xf] %vm928_vm8, %v889_v5  ;;  %v12228_v12 = vrot.slane %v1841_v3, 5  ;;  %v1794_v63 = vsel %vm11028_vm3, %v1789_v7, %v12198_v52 }
  0xcc   : > { %v1847_v59 = vrot.slane %v1845_v60, 4  ;;  %v1855_v57 = vshrl.u32 %v1544_v13, 16  ;;  %v1837_v20 = vrot.slane %v1835_v17, 4  ;;  %vm1477_vm9 = vcmask 191616  }
  0xcd   : > { %v1861_v30 = vshll.u32 %v1545_v31, 16  ;;  %v1865_v42 = vshrl.u32 %v1545_v31, 16  ;;  %v1784_v29 = vsel %vm11028_vm3, %v1779_v24, %v12183_v35  ;;  %v1809_v46 = vrot.slane %v1808_v14, 4  ;;  %v1550_v31 = vld [vmem:[%s10963_s23 + $0x9c] sm:$0x1] }
  0xce   : > { %1957 = vrot.lane.b32.xlu1 %v1774_v2, %s10833_s26  ;;  %1955 = vrot.lane.b32.xlu0 %v1764_v18, %s10833_s26  ;;  %v1799_v16 = vrot.slane %v1798_v62, 4  ;;  %v1372_v6 = vpop.permute.xlu1 %1371  ;;  %v1370_v4 = vpop.permute.xlu0 %1369  ;;  %v1829_v58 = vrot.slane %v1828_v44, 4  ;;  %v1819_v22 = vrot.slane %v1818_v50, 4  ;;  %v1853_v32 = vrot.slane %v1851_v0, 5 }
  0xcf   : > { %1479 = vst.msk [vmem:[#allocation3 + $0x4] sm:$0xf] %vm1477_vm9, %v1372_v6  ;;  %1478 = vst.msk [vmem:[#allocation3] sm:$0xf] %vm1477_vm9, %v1370_v4  ;;  %v1848_v33 = vor.u32 %v1847_v59, %v12228_v12  ;;  %v1838_v19 = vor.u32 %v1837_v20, %v12224_v34  ;;  %v1871_v9 = vshll.u32 %v1546_v27, 16  ;;  %v1857_v35 = vrot.slane %v1855_v57, 4 }
  0xd0   : > { %v12246_v37 = vrot.slane %v1861_v30, 5  ;;  %v1867_v47 = vrot.slane %v1865_v42, 4  ;;  %v1881_v25 = vshll.u32 %v1547_v49, 16  ;;  %v1885_v38 = vshrl.u32 %v1547_v49, 16  ;;  %v2061_v42 = vld [vmem:[%s10963_s23 + $0x10] sm:$0xf] }
  0xd1   : > { %v1814_v61 = vsel %vm11028_vm3, %v1809_v46, %v12204_v39  ;;  %v1804_v23 = vsel %vm11028_vm3, %v1799_v16, %v12202_v15  ;;  %v1875_v55 = vshrl.u32 %v1546_v27, 16  ;;  %v1834_v52 = vsel %vm11028_vm3, %v1829_v58, %v12224_v34 }
  0xd2   : > { %1961 = vrot.lane.b32.xlu1 %v1794_v63, %s10833_s26  ;;  %1959 = vrot.lane.b32.xlu0 %v1784_v29, %s10833_s26  ;;  %v1376_v21 = vpop.permute.xlu1 %1375  ;;  %v1374_v8 = vpop.permute.xlu0 %1373  ;;  %v1824_v11 = vsel %vm11028_vm3, %v1819_v22, %v12206_v36  ;;  %v1849_v26 = vrot.slane %v1848_v33, 4  ;;  %v1839_v45 = vrot.slane %v1838_v19, 4  ;;  %v1873_v15 = vrot.slane %v1871_v9, 5  ;;  %v2062_v22 = vld [vmem:[%s10963_s23 + $0x14] sm:$0xf] }
  0xd3   : > { %1481 = vst.msk [vmem:[#allocation3 + $0xc] sm:$0xf] %vm1477_vm9, %v1376_v21  ;;  %1480 = vst.msk [vmem:[#allocation3 + $0x8] sm:$0xf] %vm1477_vm9, %v1374_v8  ;;  %v1858_v39 = vor.u32 %v1857_v35, %v1853_v32  ;;  %v1868_v53 = vor.u32 %v1867_v47, %v12246_v37  ;;  %v1883_v28 = vrot.slane %v1881_v25, 5  ;;  %v1887_v10 = vrot.slane %v1885_v38, 4 }
  0xd4   : > { %v1891_v41 = vshll.u32 %v1548_v43, 16  ;;  %v1895_v48 = vshrl.u32 %v1548_v43, 16  ;;  %v1877_v36 = vrot.slane %v1875_v55, 4  ;;  %v1901_v40 = vshll.u32 %v1549_v54, 16  ;;  %v2063_v9 = vld [vmem:[%s10963_s23 + $0x18] sm:$0xf] }
  0xd5   : > { %v1905_v17 = vshrl.u32 %v1549_v54, 16  ;;  %v1854_v60 = vsel %vm11028_vm3, %v1849_v26, %v1853_v32  ;;  %v1844_v2 = vsel %vm11028_vm3, %v1839_v45, %v12228_v12  ;;  %v1869_v18 = vrot.slane %v1868_v53, 4  ;;  %v2060_v32 = vld [vmem:[%s10963_s23 + $0xc] sm:$0xe]  ;;  %v2064_v21 = vld [vmem:[%s10963_s23 + $0x1c] sm:$0xf] }
  0xd6   : > { %1965 = vrot.lane.b32.xlu1 %v1814_v61, %s10833_s26  ;;  %1963 = vrot.lane.b32.xlu0 %v1804_v23, %s10833_s26  ;;  %v1380_v13 = vpop.permute.xlu1 %1379  ;;  %v1378_v3 = vpop.permute.xlu0 %1377  ;;  %v1859_v7 = vrot.slane %v1858_v39, 4  ;;  %v1888_v24 = vor.u32 %v1887_v10, %v1883_v28  ;;  %v1893_v14 = vrot.slane %v1891_v41, 5  ;;  %v1878_v62 = vor.u32 %v1877_v36, %v1873_v15  ;;  %v2065_v8 = vld [vmem:[%s10963_s23 + $0x20] sm:$0xf]  ;;  %v2067_v10 = vld [vmem:[%s10963_s23 + $0x28] sm:$0xf] }
  0xd7   : > { %1483 = vst.msk [vmem:[#allocation3 + $0x14] sm:$0xf] %vm1477_vm9, %v1380_v13  ;;  %1482 = vst.msk [vmem:[#allocation3 + $0x10] sm:$0xf] %vm1477_vm9, %v1378_v3  ;;  %v1903_v56 = vrot.slane %v1901_v40, 5  ;;  %v1907_v5 = vrot.slane %v1905_v17, 4  ;;  %v1874_v0 = vsel %vm11028_vm3, %v1869_v18, %v1873_v15 }
  0xd8   : > { %v1897_v50 = vrot.slane %v1895_v48, 4  ;;  %v1864_v12 = vsel %vm11028_vm3, %v1859_v7, %v12246_v37  ;;  %v1911_v59 = vshll.u32 %v1550_v31, 16  ;;  %v1889_v57 = vrot.slane %v1888_v24, 4  ;;  %v2068_v13 = vld [vmem:[%s10963_s23 + $0x2c] sm:$0xf] }
  0xd9   : > { %v1879_v20 = vrot.slane %v1878_v62, 4  ;;  %v1908_v27 = vor.u32 %v1907_v5, %v1903_v56  ;;  %v2139_v16 = vrot.slane %v2061_v42, 5  ;;  %vm2134_vm10 = vcmask 1042432   ;;  %v2069_v18 = vld [vmem:[%s10963_s23 + $0x30] sm:$0xf] }
  0xda   : > { %1969 = vrot.lane.b32.xlu1 %v1834_v52, %s10833_s26  ;;  %1967 = vrot.lane.b32.xlu0 %v1824_v11, %s10833_s26  ;;  %v1384_v44 = vpop.permute.xlu1 %1383  ;;  %v1382_v34 = vpop.permute.xlu0 %1381  ;;  %v1898_v30 = vor.u32 %v1897_v50, %v1893_v14  ;;  %v1913_v46 = vrot.slane %v1911_v59, 5  ;;  %v1894_v49 = vsel %vm11028_vm3, %v1889_v57, %v1893_v14  ;;  %vm2135_vm11 = vcmask 1046532  }
  0xdb   : > { %1485 = vst.msk [vmem:[#allocation3 + $0x1c] sm:$0xf] %vm1477_vm9, %v1384_v44  ;;  %1484 = vst.msk [vmem:[#allocation3 + $0x18] sm:$0xf] %vm1477_vm9, %v1382_v34  ;;  %v1884_v6 = vsel %vm11028_vm3, %v1879_v20, %v1883_v28  ;;  %v1909_v4 = vrot.slane %v1908_v27, 4  ;;  %v2142_v35 = vrot.slane %v2062_v22, 5 }
  0xdc   : > { %v1899_v58 = vrot.slane %v1898_v30, 4  ;;  %v10234_v37 = vrot.slane %v2060_v32, 9  ;;  %vm12306_vm12 = vmor %vm2134_vm10, %vm2135_vm11  ;;  %v2141_v61 = vrot.slane %v2139_v16, 4  ;;  %v2145_v23 = vrot.slane %v2063_v9, 5  ;;  %v2066_v28 = vld [vmem:[%s10963_s23 + $0x24] sm:$0xf] }
  0xdd   : > { %v1914_v47 = vsel %vm11028_vm3, %v1909_v4, %v1913_v46  ;;  %v2144_v11 = vrot.slane %v2142_v35, 4  ;;  %v2148_v45 = vrot.slane %v2064_v21, 5  ;;  %v2151_v15 = vrot.slane %v2065_v8, 5  ;;  %v2071_v34 = vld [vmem:[%s10963_s23 + $0x38] sm:$0xf] }
  0xde   : > { %1973 = vrot.lane.b32.xlu1 %v1854_v60, %s10833_s26  ;;  %1971 = vrot.lane.b32.xlu0 %v1844_v2, %s10833_s26  ;;  %v1388_v63 = vpop.permute.xlu1 %1387  ;;  %v1386_v29 = vpop.permute.xlu0 %1385  ;;  %v1904_v25 = vsel %vm11028_vm3, %v1899_v58, %v1903_v56  ;;  %v2140_v52 = vsel %vm12306_vm12, %v10234_v37, %v2139_v16  ;;  %v2143_v54 = vsel %vm12306_vm12, %v2141_v61, %v2142_v35  ;;  %v2147_v26 = vrot.slane %v2145_v23, 4  ;;  %v2070_v56 = vld [vmem:[%s10963_s23 + $0x34] sm:$0xf]  ;;  %v2072_v27 = vld [vmem:[%s10963_s23 + $0x3c] sm:$0xf] }
  0xdf   : > { %1487 = vst.msk [vmem:[#allocation3 + $0x24] sm:$0xf] %vm1477_vm9, %v1388_v63  ;;  %1486 = vst.msk [vmem:[#allocation3 + $0x20] sm:$0xf] %vm1477_vm9, %v1386_v29  ;;  %v2146_v41 = vsel %vm12306_vm12, %v2144_v11, %v2145_v23  ;;  %v2150_v48 = vrot.slane %v2148_v45, 4  ;;  %v2153_v40 = vrot.slane %v2151_v15, 4 }
  0xe0   : > { %v2149_v36 = vsel %vm12306_vm12, %v2147_v26, %v2148_v45  ;;  %v2154_v17 = vrot.slane %v2066_v28, 5  ;;  %v2157_v3 = vrot.slane %v2067_v10, 5  ;;  %v2160_v24 = vrot.slane %v2068_v13, 5  ;;  %v2073_v29 = vld [vmem:[%s10963_s23 + $0x40] sm:$0xf] }
  0xe1   : > { %v2152_v7 = vsel %vm12306_vm12, %v2150_v48, %v2151_v15  ;;  %v2163_v5 = vrot.slane %v2069_v18, 5  ;;  %v2169_v30 = vrot.slane %v2071_v34, 5  ;;  %v2172_v46 = vrot.slane %v2072_v27, 5  ;;  %v2076_v61 = vld [vmem:[%s10963_s23 + $0x4c] sm:$0xf] }
  0xe2   : > { %1977 = vrot.lane.b32.xlu1 %v1874_v0, %s10833_s26  ;;  %1975 = vrot.lane.b32.xlu0 %v1864_v12, %s10833_s26  ;;  %v1392_v33 = vpop.permute.xlu1 %1391  ;;  %v1390_v19 = vpop.permute.xlu0 %1389  ;;  %v2155_v14 = vsel %vm12306_vm12, %v2153_v40, %v2154_v17  ;;  %v2159_v62 = vrot.slane %v2157_v3, 4  ;;  %v2156_v31 = vrot.slane %v2154_v17, 4  ;;  %v2166_v0 = vrot.slane %v2070_v56, 5  ;;  %v2077_v21 = vld [vmem:[%s10963_s23 + $0x50] sm:$0xf] }
  0xe3   : > { %1489 = vst.msk [vmem:[#allocation3 + $0x2c] sm:$0xf] %vm1477_vm9, %v1392_v33  ;;  %1488 = vst.msk [vmem:[#allocation3 + $0x28] sm:$0xf] %vm1477_vm9, %v1390_v19  ;;  %v2162_v12 = vrot.slane %v2160_v24, 4  ;;  %v2165_v20 = vrot.slane %v2163_v5, 4 }
  0xe4   : > { %v2161_v59 = vsel %vm12306_vm12, %v2159_v62, %v2160_v24  ;;  %v2158_v57 = vsel %vm12306_vm12, %v2156_v31, %v2157_v3  ;;  %v2168_v16 = vrot.slane %v2166_v0, 4  ;;  %v2171_v4 = vrot.slane %v2169_v30, 4  ;;  %v2074_v33 = vld [vmem:[%s10963_s23 + $0x44] sm:$0xf]  ;;  %v2075_v19 = vld [vmem:[%s10963_s23 + $0x48] sm:$0xf] }
  0xe5   : > { %v2175_v58 = vrot.slane %v2073_v29, 5  ;;  %v2174_v35 = vrot.slane %v2172_v46, 4  ;;  %v2181_v23 = vrot.slane %v2075_v19, 5  ;;  %v2078_v45 = vld [vmem:[%s10963_s23 + $0x54] sm:$0xf]  ;;  %v2187_v15 = vrot.slane %v2077_v21, 5 }
  0xe6   : > { %1981 = vrot.lane.b32.xlu1 %v1894_v49, %s10833_s26  ;;  %1979 = vrot.lane.b32.xlu0 %v1884_v6, %s10833_s26  ;;  %v1396_v55 = vpop.permute.xlu1 %1395  ;;  %v1394_v43 = vpop.permute.xlu0 %1393  ;;  %v2167_v49 = vsel %vm12306_vm12, %v2165_v20, %v2166_v0  ;;  %v2164_v6 = vsel %vm12306_vm12, %v2162_v12, %v2163_v5  ;;  %v2170_v9 = vsel %vm12306_vm12, %v2168_v16, %v2169_v30  ;;  %v2079_v28 = vld [vmem:[%s10963_s23 + $0x58] sm:$0xf]  ;;  %v2190_v10 = vrot.slane %v2078_v45, 5  ;;  %v2080_v17 = vld [vmem:[%s10963_s23 + $0x5c] sm:$0xf] }
  0xe7   : > { %1491 = vst.msk [vmem:[#allocation3 + $0x34] sm:$0xf] %vm1477_vm9, %v1396_v55  ;;  %1490 = vst.msk [vmem:[#allocation3 + $0x30] sm:$0xf] %vm1477_vm9, %v1394_v43  ;;  %v2173_v37 = vsel %vm12306_vm12, %v2171_v4, %v2172_v46  ;;  %v2176_v8 = vsel %vm12306_vm12, %v2174_v35, %v2175_v58  ;;  %v2189_v40 = vrot.slane %v2187_v15, 4  ;;  %v2193_v13 = vrot.slane %v2079_v28, 5 }
  0xe8   : > { %v2196_v18 = vrot.slane %v2080_v17, 5  ;;  %v2084_v20 = vld [vmem:[%s10963_s23 + $0x6c] sm:$0xf]  ;;  %v2086_v16 = vld [vmem:[%s10963_s23 + $0x74] sm:$0xf]  ;;  %vm2023_vm13 = vcmask 257216  }
  0xe9   : > { %v2191_v24 = vsel %vm12306_vm12, %v2189_v40, %v2190_v10  ;;  %v2195_v62 = vrot.slane %v2193_v13, 4  ;;  %v2208_v46 = vrot.slane %v2084_v20, 5  ;;  %v2214_v19 = vrot.slane %v2086_v16, 5  ;;  %v2090_v45 = vld [vmem:[%s10963_s23 + $0x84] sm:$0xf] }
  0xea   : > { %1985 = vrot.lane.b32.xlu1 %v1914_v47, %s10833_s26  ;;  %1983 = vrot.lane.b32.xlu0 %v1904_v25, %s10833_s26  ;;  %v1400_v39 = vpop.permute.xlu1 %1399  ;;  %v1398_v53 = vpop.permute.xlu0 %1397  ;;  %v2177_v47 = vrot.slane %v2175_v58, 4  ;;  %v2178_v25 = vrot.slane %v2074_v33, 5  ;;  %v2198_v0 = vrot.slane %v2196_v18, 4  ;;  %vm2428_vm14 = vsmask.f32 2304 }
  0xeb   : > { %1493 = vst.msk [vmem:[#allocation3 + $0x3c] sm:$0xf] %vm1477_vm9, %v1400_v39  ;;  %1492 = vst.msk [vmem:[#allocation3 + $0x38] sm:$0xf] %vm1477_vm9, %v1398_v53  ;;  %v2197_v12 = vsel %vm12306_vm12, %v2195_v62, %v2196_v18  ;;  %v2094_v18 = vld [vmem:[%s10963_s23 + $0x94] sm:$0xf] }
  0xec   : > { %v2179_v11 = vsel %vm12306_vm12, %v2177_v47, %v2178_v25  ;;  %v2180_v26 = vrot.slane %v2178_v25, 4  ;;  %v2210_v25 = vrot.slane %v2208_v46, 4  ;;  %vm2429_vm15 = vsmask.f32 6416 }
  0xed   : > { %vm12508_vm0 = vmor %vm2428_vm14, %vm2429_vm15  ;;  %vm16712_vm1 = vcmask 322816   ;;  %vm3568_vm2 = vcmask 1041408   ;;  %vm3569_vm5 = vcmask 1045508   ;;  %vm3862_vm8 = vsmask.f32 1280 }
  0xee   : > { %2248 = vrot.lane.b32.xlu1 %v2143_v54, %s10834_s27  ;;  %2246 = vrot.lane.b32.xlu0 %v2140_v52, %s10834_s27  ;;  %v1404_v60 = vpop.permute.xlu1 %1403  ;;  %v1402_v2 = vpop.permute.xlu0 %1401  ;;  %v2184_v52 = vrot.slane %v2076_v61, 5  ;;  %v2183_v54 = vrot.slane %v2181_v23, 4  ;;  %v2088_v61 = vld [vmem:[%s10963_s23 + $0x7c] sm:$0xf]  ;;  %vm12727_vm6 = vmor %vm3568_vm2, %vm3569_vm5  ;;  %vm2907_vm11 = vcmask 388416   ;;  %vm3788_vm14 = vcmask 519616  }
  0xef   : > { %1495 = vst.msk [vmem:[#allocation3 + $0x44] sm:$0xf] %vm1477_vm9, %v1404_v60  ;;  %1494 = vst.msk [vmem:[#allocation3 + $0x40] sm:$0xf] %vm1477_vm9, %v1402_v2  ;;  %v2081_v2 = vld [vmem:[%s10963_s23 + $0x60] sm:$0xf] }
  0xf0   : > { %v2185_v48 = vsel %vm12306_vm12, %v2183_v54, %v2184_v52  ;;  %v2199_v31 = vrot.slane %v2081_v2, 5  ;;  %vm4341_vm15 = vcmask 585216   ;;  %vm4986_vm5 = vcmask 1043459  }
  0xf2   : > { %2252 = vrot.lane.b32.xlu1 %v2149_v36, %s10834_s27  ;;  %2250 = vrot.lane.b32.xlu0 %v2146_v41, %s10834_s27  ;;  %v1408_v50 = vpop.permute.xlu1 %1407  ;;  %v1406_v44 = vpop.permute.xlu0 %1405  ;;  %v2186_v41 = vrot.slane %v2184_v52, 4  ;;  %v2182_v36 = vsel %vm12306_vm12, %v2180_v26, %v2181_v23  ;;  %v2200_v29 = vsel %vm12306_vm12, %v2198_v0, %v2199_v31  ;;  %v2091_v52 = vld [vmem:[%s10963_s23 + $0x88] sm:$0xf]  ;;  %v2216_v26 = vrot.slane %v2214_v19, 4  ;;  %v2393_v0 = vld [vmem:[%s10963_s23 + $0x14] sm:$0xf] }
  0xf3   : > { %1497 = vst.msk [vmem:[#allocation3 + $0x4c] sm:$0xf] %vm1477_vm9, %v1408_v50  ;;  %1496 = vst.msk [vmem:[#allocation3 + $0x48] sm:$0xf] %vm1477_vm9, %v1406_v44  ;;  %v2082_v50 = vld [vmem:[%s10963_s23 + $0x64] sm:$0xf] }
  0xf4   : > { %v2083_v44 = vld [vmem:[%s10963_s23 + $0x68] sm:$0xf]  ;;  %v2229_v28 = vrot.slane %v2091_v52, 5 }
  0xf5   : > { %v2205_v27 = vrot.slane %v2083_v44, 5 }
  0xf6   : > { %2256 = vrot.lane.b32.xlu1 %v2155_v14, %s10834_s27  ;;  %2254 = vrot.lane.b32.xlu0 %v2152_v7, %s10834_s27  ;;  %v1412_v42 = vpop.permute.xlu1 %1411  ;;  %v1410_v63 = vpop.permute.xlu0 %1409  ;;  %v2192_v7 = vrot.slane %v2190_v10, 4  ;;  %v2188_v14 = vsel %vm12306_vm12, %v2186_v41, %v2187_v15  ;;  %v2226_v10 = vrot.slane %v2090_v45, 5  ;;  %v2092_v41 = vld [vmem:[%s10963_s23 + $0x8c] sm:$0xf] }
  0xf7   : > { %1499 = vst.msk [vmem:[#allocation3 + $0x54] sm:$0xf] %vm1477_vm9, %v1412_v42  ;;  %1498 = vst.msk [vmem:[#allocation3 + $0x50] sm:$0xf] %vm1477_vm9, %v1410_v63  ;;  %v2085_v63 = vld [vmem:[%s10963_s23 + $0x70] sm:$0xf] }
  0xf8   : > { %v2194_v34 = vsel %vm12306_vm12, %v2192_v7, %v2193_v13  ;;  %v2211_v58 = vrot.slane %v2085_v63, 5  ;;  %v2391_v7 = vld [vmem:[%s10963_s23 + $0xc] sm:$0xe]  ;;  %v2228_v62 = vrot.slane %v2226_v10, 4 }
  0xfa   : > { %2260 = vrot.lane.b32.xlu1 %v2161_v59, %s10834_s27  ;;  %2258 = vrot.lane.b32.xlu0 %v2158_v57, %s10834_s27  ;;  %v1416_v22 = vpop.permute.xlu1 %1415  ;;  %v1414_v32 = vpop.permute.xlu0 %1413  ;;  %v2201_v59 = vrot.slane %v2199_v31, 4  ;;  %v2202_v57 = vrot.slane %v2082_v50, 5  ;;  %v2213_v47 = vrot.slane %v2211_v58, 4  ;;  %v2212_v54 = vsel %vm12306_vm12, %v2210_v25, %v2211_v58 }
  0xfb   : > { %1501 = vst.msk [vmem:[#allocation3 + $0x5c] sm:$0xf] %vm1477_vm9, %v1416_v22  ;;  %1500 = vst.msk [vmem:[#allocation3 + $0x58] sm:$0xf] %vm1477_vm9, %v1414_v32  ;;  %v2087_v22 = vld [vmem:[%s10963_s23 + $0x78] sm:$0xf] }
  0xfc   : > { %v2204_v4 = vrot.slane %v2202_v57, 4 }
  0xfe   : > { %2264 = vrot.lane.b32.xlu1 %v2167_v49, %s10834_s27  ;;  %2262 = vrot.lane.b32.xlu0 %v2164_v6, %s10834_s27  ;;  %v1420_v55 = vpop.permute.xlu1 %1419  ;;  %v1418_v43 = vpop.permute.xlu0 %1417  ;;  %v2203_v49 = vsel %vm12306_vm12, %v2201_v59, %v2202_v57  ;;  %v2207_v6 = vrot.slane %v2205_v27, 4  ;;  %v2435_v59 = vshll.u32 %v2391_v7, 16 }
  0xff   : > { %1503 = vst.msk [vmem:[#allocation3 + $0x64] sm:$0xf] %vm1477_vm9, %v1420_v55  ;;  %1502 = vst.msk [vmem:[#allocation3 + $0x60] sm:$0xf] %vm1477_vm9, %v1418_v43  ;;  %v2089_v43 = vld [vmem:[%s10963_s23 + $0x80] sm:$0xf] }
 0x100   : > { %v2209_v35 = vsel %vm12306_vm12, %v2207_v6, %v2208_v46  ;;  %v2223_v15 = vrot.slane %v2089_v43, 5  ;;  %v2396_v6 = vld [vmem:[%s10963_s23 + $0x20] sm:$0xf] }
 0x102   : > { %2268 = vrot.lane.b32.xlu1 %v2173_v37, %s10834_s27  ;;  %2266 = vrot.lane.b32.xlu0 %v2170_v9, %s10834_s27  ;;  %v1424_v39 = vpop.permute.xlu1 %1423  ;;  %v2217_v9 = vrot.slane %v2087_v22, 5  ;;  %v2206_v37 = vsel %vm12306_vm12, %v2204_v4, %v2205_v27  ;;  %v2225_v17 = vrot.slane %v2223_v15, 4  ;;  %v2238_v27 = vrot.slane %v2094_v18, 5 }
 0x103   : > { %v1422_v53 = vpop.permute.xlu0 %1421  ;;  %1505 = vst.msk [vmem:[#allocation3 + $0x6c] sm:$0xf] %vm1477_vm9, %v1424_v39  ;;  %v2451_v22 = vshrl.u32 %v2393_v0, 16 }
 0x104   : > { %1504 = vst.msk [vmem:[#allocation3 + $0x68] sm:$0xf] %vm1477_vm9, %v1422_v53  ;;  %v2219_v21 = vrot.slane %v2217_v9, 4  ;;  %v2218_v40 = vsel %vm12306_vm12, %v2216_v26, %v2217_v9  ;;  %v2227_v44 = vsel %vm12306_vm12, %v2225_v17, %v2226_v10  ;;  %v2437_v9 = vrot.slane %v2435_v59, 6 }
 0x105   : > { %v2453_v45 = vrot.slane %v2451_v22, 5 }
 0x106   : > { %2272 = vrot.lane.b32.xlu1 %v2179_v11, %s10834_s27  ;;  %2270 = vrot.lane.b32.xlu0 %v2176_v8, %s10834_s27  ;;  %v2220_v8 = vrot.slane %v2088_v61, 5  ;;  %v2215_v11 = vsel %vm12306_vm12, %v2213_v47, %v2214_v19 }
 0x107   : > { %v1428_v3 = vpop.permute.xlu1 %1427  ;;  %v1426_v60 = vpop.permute.xlu0 %1425 }
 0x108   : > { %1507 = vst.msk [vmem:[#allocation3 + $0x74] sm:$0xf] %vm1477_vm9, %v1428_v3  ;;  %1506 = vst.msk [vmem:[#allocation3 + $0x70] sm:$0xf] %vm1477_vm9, %v1426_v60  ;;  %v2222_v13 = vrot.slane %v2220_v8, 4 }
 0x109   : > { %v2392_v3 = vld [vmem:[%s10963_s23 + $0x10] sm:$0xf] }
 0x10a   : > { %2276 = vrot.lane.b32.xlu1 %v2185_v48, %s10834_s27  ;;  %2274 = vrot.lane.b32.xlu0 %v2182_v36, %s10834_s27  ;;  %v12448_v48 = vld [vmem:[%s10963_s23 + $0x90] sm:$0xf]  ;;  %v2221_v36 = vsel %vm12306_vm12, %v2219_v21, %v2220_v8  ;;  %v2444_v50 = vshll.u32 %v2392_v3, 16  ;;  %v2240_v21 = vrot.slane %v2238_v27, 4 }
 0x10b   : > { %v1432_v56 = vpop.permute.xlu1 %1431  ;;  %v2235_v31 = vrot.slane %v12448_v48, 5 }
 0x10c   : > { %v1430_v5 = vpop.permute.xlu0 %1429  ;;  %1509 = vst.msk [vmem:[#allocation3 + $0x7c] sm:$0xf] %vm1477_vm9, %v1432_v56  ;;  %v12461_v56 = vld [vmem:[%s10963_s23 + $0x98] sm:$0xf]  ;;  %v2446_v58 = vrot.slane %v2444_v50, 6 }
 0x10d   : > { %1508 = vst.msk [vmem:[#allocation3 + $0x78] sm:$0xf] %vm1477_vm9, %v1430_v5  ;;  %v2441_v5 = vshrl.u32 %v2392_v3, 16  ;;  %v2237_v46 = vrot.slane %v2235_v31, 4 }
 0x10e   : > { %2280 = vrot.lane.b32.xlu1 %v2191_v24, %s10834_s27  ;;  %2278 = vrot.lane.b32.xlu0 %v2188_v14, %s10834_s27  ;;  %v2231_v24 = vrot.slane %v2229_v28, 4  ;;  %v2232_v14 = vrot.slane %v2092_v41, 5  ;;  %v2398_v41 = vld [vmem:[%s10963_s23 + $0x28] sm:$0xf] }
 0x10f   : > { %v2443_v4 = vrot.slane %v2441_v5, 5 }
 0x110   : > { %v1436_v30 = vpop.permute.xlu1 %1435  ;;  %v1434_v42 = vpop.permute.xlu0 %1433  ;;  %v2233_v63 = vsel %vm12306_vm12, %v2231_v24, %v2232_v14  ;;  %v2234_v16 = vrot.slane %v2232_v14, 4  ;;  %v2399_v24 = vld [vmem:[%s10963_s23 + $0x2c] sm:$0xf]  ;;  %v2501_v14 = vshrl.u32 %v2398_v41, 16 }
 0x111   : > { %1511 = vst.msk [vmem:[#allocation3 + $0x84] sm:$0xf] %vm1477_vm9, %v1436_v30  ;;  %1510 = vst.msk [vmem:[#allocation3 + $0x80] sm:$0xf] %vm1477_vm9, %v1434_v42  ;;  %v2241_v30 = vrot.slane %v12461_v56, 5 }
 0x112   : > { %2284 = vrot.lane.b32.xlu1 %v2197_v12, %s10834_s27  ;;  %2282 = vrot.lane.b32.xlu0 %v2194_v34, %s10834_s27  ;;  %v2224_v34 = vsel %vm12306_vm12, %v2222_v13, %v2223_v15  ;;  %v2432_v12 = vshrl.u32 %v2391_v7, 16  ;;  %v2394_v42 = vld [vmem:[%s10963_s23 + $0x18] sm:$0xf]  ;;  %v2236_v26 = vsel %vm12306_vm12, %v2234_v16, %v2235_v31 }
 0x113   : > { %v2243_v43 = vrot.slane %v2241_v30, 4  ;;  %v2242_v7 = vsel %vm12306_vm12, %v2240_v21, %v2241_v30  ;;  %v2511_v30 = vshrl.u32 %v2399_v24, 16 }
 0x114   : > { %v1440_v32 = vpop.permute.xlu1 %1439  ;;  %v1438_v33 = vpop.permute.xlu0 %1437  ;;  %v2434_v19 = vrot.slane %v2432_v12, 5 }
 0x115   : > { %1513 = vst.msk [vmem:[#allocation3 + $0x8c] sm:$0xf] %vm1477_vm9, %v1440_v32  ;;  %1512 = vst.msk [vmem:[#allocation3 + $0x88] sm:$0xf] %vm1477_vm9, %v1438_v33  ;;  %v2454_v32 = vshll.u32 %v2393_v0, 16 }
 0x116   : > { %2288 = vrot.lane.b32.xlu1 %v2203_v49, %s10834_s27  ;;  %2286 = vrot.lane.b32.xlu0 %v2200_v29, %s10834_s27  ;;  %v2230_v29 = vsel %vm12306_vm12, %v2228_v62, %v2229_v28  ;;  %v2096_v49 = vld [vmem:[%s10963_s23 + $0x9c] sm:$0x1]  ;;  %v2504_v62 = vshll.u32 %v2398_v41, 16  ;;  %v2406_v41 = vld [vmem:[%s10963_s23 + $0x48] sm:$0xf] }
 0x117   : > { %v2395_v33 = vld [vmem:[%s10963_s23 + $0x1c] sm:$0xf]  ;;  %v2244_v61 = vrot.slane %v2096_v49, 5  ;;  %v2456_v15 = vrot.slane %v2454_v32, 6  ;;  %v2402_v32 = vld [vmem:[%s10963_s23 + $0x38] sm:$0xf] }
 0x118   : > { %v1918_v23 = vpop.permute.xlu1 %1917  ;;  %v1916_v55 = vpop.permute.xlu0 %1915  ;;  %v2471_v8 = vshrl.u32 %v2395_v33, 16  ;;  %v2474_v52 = vshll.u32 %v2395_v33, 16  ;;  %vm3863_vm9 = vsmask.f32 5392 }
 0x119   : > { %2025 = vst.msk [vmem:[#allocation3 + $0x4] sm:$0xf] %vm2023_vm13, %v1918_v23  ;;  %2024 = vst.msk [vmem:[#allocation3] sm:$0xf] %vm2023_vm13, %v1916_v55  ;;  %v2481_v23 = vshrl.u32 %v2396_v6, 16  ;;  %v2484_v55 = vshll.u32 %v2396_v6, 16  ;;  %v2245_v18 = vsel %vm12306_vm12, %v2243_v43, %v2244_v61  ;;  %v2457_v56 = vor.u32 %v2456_v15, %v2453_v45 }
 0x11a   : > { %2292 = vrot.lane.b32.xlu1 %v2209_v35, %s10834_s27  ;;  %2290 = vrot.lane.b32.xlu0 %v2206_v37, %s10834_s27  ;;  %v2461_v35 = vshrl.u32 %v2394_v42, 16  ;;  %v2464_v37 = vshll.u32 %v2394_v42, 16  ;;  %v2514_v42 = vshll.u32 %v2399_v24, 16  ;;  %vm12775_vm10 = vmor %vm3862_vm8, %vm3863_vm9  ;;  %vm5617_vm9 = vcmask 1044484  }
 0x11b   : > { %v2486_v17 = vrot.slane %v2484_v55, 6  ;;  %v2459_v22 = vrot.slane %v2457_v56, 4 }
 0x11c   : > { %v1922_v39 = vpop.permute.xlu1 %1921  ;;  %v1920_v53 = vpop.permute.xlu0 %1919  ;;  %v2463_v28 = vrot.slane %v2461_v35, 5  ;;  %v2466_v10 = vrot.slane %v2464_v37, 6 }
 0x11d   : > { %2027 = vst.msk [vmem:[#allocation3 + $0xc] sm:$0xf] %vm2023_vm13, %v1922_v39  ;;  %2026 = vst.msk [vmem:[#allocation3 + $0x8] sm:$0xf] %vm2023_vm13, %v1920_v53  ;;  %v12492_v39 = vor.u32 %v2446_v58, %v2443_v4  ;;  %v2438_v53 = vor.u32 %v2437_v9, %v2434_v19 }
 0x11e   : > { %2296 = vrot.lane.b32.xlu1 %v2215_v11, %s10834_s27  ;;  %2294 = vrot.lane.b32.xlu0 %v2212_v54, %s10834_s27  ;;  %v2397_v11 = vld [vmem:[%s10963_s23 + $0x24] sm:$0xf]  ;;  %v2239_v54 = vsel %vm12306_vm12, %v2237_v46, %v2238_v27  ;;  %v2467_v50 = vor.u32 %v2466_v10, %v2463_v28  ;;  %v2401_v46 = vld [vmem:[%s10963_s23 + $0x34] sm:$0xf] }
 0x11f   : > { %v2491_v13 = vshrl.u32 %v2397_v11, 16  ;;  %v2494_v3 = vshll.u32 %v2397_v11, 16  ;;  %v2449_v31 = vrot.slane %v12492_v39, 4  ;;  %v2439_v5 = vrot.slane %v2438_v53, 4  ;;  %v2404_v10 = vld [vmem:[%s10963_s23 + $0x40] sm:$0xf] }
 0x120   : > { %v1926_v60 = vpop.permute.xlu1 %1925  ;;  %v1924_v2 = vpop.permute.xlu0 %1923  ;;  %v2469_v58 = vrot.slane %v2467_v50, 4  ;;  %v2531_v61 = vshrl.u32 %v2401_v46, 16  ;;  %v2561_v24 = vshrl.u32 %v2404_v10, 16 }
 0x121   : > { %2029 = vst.msk [vmem:[#allocation3 + $0x14] sm:$0xf] %vm2023_vm13, %v1926_v60  ;;  %2028 = vst.msk [vmem:[#allocation3 + $0x10] sm:$0xf] %vm2023_vm13, %v1924_v2  ;;  %v2473_v60 = vrot.slane %v2471_v8, 5  ;;  %v2476_v2 = vrot.slane %v2474_v52, 6  ;;  %v2458_v6 = vsel %vm12508_vm0, %v2449_v31, %v2457_v56  ;;  %v2448_v4 = vsel %vm12508_vm0, %v2439_v5, %v12492_v39 }
 0x122   : > { %2300 = vrot.lane.b32.xlu1 %v2221_v36, %s10834_s27  ;;  %2298 = vrot.lane.b32.xlu0 %v2218_v40, %s10834_s27  ;;  %v2483_v40 = vrot.slane %v2481_v23, 5  ;;  %v2534_v23 = vshll.u32 %v2401_v46, 16  ;;  %v2403_v8 = vld [vmem:[%s10963_s23 + $0x3c] sm:$0xf]  ;;  %v2541_v52 = vshrl.u32 %v2402_v32, 16  ;;  %v2563_v46 = vrot.slane %v2561_v24, 5 }
 0x123   : > { %v2477_v27 = vor.u32 %v2476_v2, %v2473_v60 }
 0x124   : > { %v1930_v57 = vpop.permute.xlu1 %1929  ;;  %v1928_v20 = vpop.permute.xlu0 %1927  ;;  %v2487_v59 = vor.u32 %v2486_v17, %v2483_v40  ;;  %v2551_v40 = vshrl.u32 %v2403_v8, 16  ;;  %v2554_v17 = vshll.u32 %v2403_v8, 16  ;;  %v2543_v2 = vrot.slane %v2541_v52, 5 }
 0x125   : > { %2031 = vst.msk [vmem:[#allocation3 + $0x1c] sm:$0xf] %vm2023_vm13, %v1930_v57  ;;  %2030 = vst.msk [vmem:[#allocation3 + $0x18] sm:$0xf] %vm2023_vm13, %v1928_v20  ;;  %v2493_v57 = vrot.slane %v2491_v13, 5  ;;  %v2496_v20 = vrot.slane %v2494_v3, 6  ;;  %v2478_v11 = vsel %vm12508_vm0, %v2469_v58, %v2477_v27 }
 0x126   : > { %2304 = vrot.lane.b32.xlu1 %v2227_v44, %s10834_s27  ;;  %2302 = vrot.lane.b32.xlu0 %v2224_v34, %s10834_s27  ;;  %v2400_v44 = vld [vmem:[%s10963_s23 + $0x30] sm:$0xf]  ;;  %v2489_v9 = vrot.slane %v2487_v59, 4  ;;  %v2479_v37 = vrot.slane %v2477_v27, 4 }
 0x127   : > { %v2521_v16 = vshrl.u32 %v2400_v44, 16  ;;  %v2524_v49 = vshll.u32 %v2400_v44, 16  ;;  %v2497_v35 = vor.u32 %v2496_v20, %v2493_v57  ;;  %v2584_v44 = vshll.u32 %v2406_v41, 16  ;;  %v2408_v20 = vld [vmem:[%s10963_s23 + $0x50] sm:$0xf] }
 0x128   : > { %v1934_v47 = vpop.permute.xlu1 %1933  ;;  %v1932_v25 = vpop.permute.xlu0 %1931  ;;  %v2488_v53 = vsel %vm12508_vm0, %v2479_v37, %v2487_v59  ;;  %v2553_v59 = vrot.slane %v2551_v40, 5  ;;  %v2556_v57 = vrot.slane %v2554_v17, 6 }
 0x129   : > { %2033 = vst.msk [vmem:[#allocation3 + $0x24] sm:$0xf] %vm2023_vm13, %v1934_v47  ;;  %2032 = vst.msk [vmem:[#allocation3 + $0x20] sm:$0xf] %vm2023_vm13, %v1932_v25  ;;  %v2513_v47 = vrot.slane %v2511_v30, 5  ;;  %v2516_v25 = vrot.slane %v2514_v42, 6  ;;  %v2498_v39 = vsel %vm12508_vm0, %v2489_v9, %v2497_v35 }
 0x12a   : > { %2308 = vrot.lane.b32.xlu1 %v2233_v63, %s10834_s27  ;;  %2306 = vrot.lane.b32.xlu0 %v2230_v29, %s10834_s27  ;;  %v2503_v63 = vrot.slane %v2501_v14, 5  ;;  %v2506_v29 = vrot.slane %v2504_v62, 6  ;;  %v2523_v43 = vrot.slane %v2521_v16, 5  ;;  %v2526_v21 = vrot.slane %v2524_v49, 6  ;;  %v2409_v9 = vld [vmem:[%s10963_s23 + $0x54] sm:$0xf] }
 0x12b   : > { %v2499_v28 = vrot.slane %v2497_v35, 4  ;;  %v2517_v3 = vor.u32 %v2516_v25, %v2513_v47  ;;  %v2564_v14 = vshll.u32 %v2404_v10, 16  ;;  %v2581_v62 = vshrl.u32 %v2406_v41, 16 }
 0x12c   : > { %v1938_v48 = vpop.permute.xlu1 %1937  ;;  %v1936_v36 = vpop.permute.xlu0 %1935  ;;  %v2507_v55 = vor.u32 %v2506_v29, %v2503_v63  ;;  %v2527_v60 = vor.u32 %v2526_v21, %v2523_v43  ;;  %v2586_v58 = vrot.slane %v2584_v44, 6  ;;  %v2604_v35 = vshll.u32 %v2408_v20, 16  ;;  %v2414_v44 = vld [vmem:[%s10963_s23 + $0x68] sm:$0xf] }
 0x12d   : > { %2035 = vst.msk [vmem:[#allocation3 + $0x2c] sm:$0xf] %vm2023_vm13, %v1938_v48  ;;  %2034 = vst.msk [vmem:[#allocation3 + $0x28] sm:$0xf] %vm2023_vm13, %v1936_v36  ;;  %v2533_v48 = vrot.slane %v2531_v61, 5  ;;  %v2536_v36 = vrot.slane %v2534_v23, 6 }
 0x12e   : > { %2312 = vrot.lane.b32.xlu1 %v2239_v54, %s10834_s27  ;;  %2310 = vrot.lane.b32.xlu0 %v2236_v26, %s10834_s27  ;;  %v2468_v54 = vsel %vm12508_vm0, %v2459_v22, %v2467_v50  ;;  %v2544_v26 = vshll.u32 %v2402_v32, 16  ;;  %v2509_v13 = vrot.slane %v2507_v55, 4  ;;  %v2508_v5 = vsel %vm12508_vm0, %v2499_v28, %v2507_v55  ;;  %v2407_v50 = vld [vmem:[%s10963_s23 + $0x4c] sm:$0xf]  ;;  %v2410_v23 = vld [vmem:[%s10963_s23 + $0x58] sm:$0xf] }
 0x12f   : > { %v2529_v30 = vrot.slane %v2527_v60, 4  ;;  %v2566_v16 = vrot.slane %v2564_v14, 6  ;;  %v2583_v49 = vrot.slane %v2581_v62, 5  ;;  %v2591_v22 = vshrl.u32 %v2407_v50, 16  ;;  %v2413_v62 = vld [vmem:[%s10963_s23 + $0x64] sm:$0xf] }
 0x130   : > { %v1942_v34 = vpop.permute.xlu1 %1941  ;;  %v1940_v0 = vpop.permute.xlu0 %1939  ;;  %v2518_v27 = vsel %vm12508_vm0, %v2509_v13, %v2517_v3  ;;  %v2594_v32 = vshll.u32 %v2407_v50, 16  ;;  %v2614_v28 = vshll.u32 %v2409_v9, 16  ;;  %v2621_v10 = vshrl.u32 %v2410_v23, 16  ;;  %v2411_v13 = vld [vmem:[%s10963_s23 + $0x5c] sm:$0xf] }
 0x131   : > { %2037 = vst.msk [vmem:[#allocation3 + $0x34] sm:$0xf] %vm2023_vm13, %v1942_v34  ;;  %2036 = vst.msk [vmem:[#allocation3 + $0x30] sm:$0xf] %vm2023_vm13, %v1940_v0  ;;  %v2537_v34 = vor.u32 %v2536_v36, %v2533_v48  ;;  %v2519_v0 = vrot.slane %v2517_v3, 4  ;;  %v2567_v21 = vor.u32 %v2566_v16, %v2563_v46  ;;  %v2624_v48 = vshll.u32 %v2410_v23, 16 }
 0x132   : > { %2316 = vrot.lane.b32.xlu1 %v2245_v18, %s10834_s27  ;;  %2314 = vrot.lane.b32.xlu0 %v2242_v7, %s10834_s27  ;;  %v2546_v18 = vrot.slane %v2544_v26, 6  ;;  %v2405_v7 = vld [vmem:[%s10963_s23 + $0x44] sm:$0xf]  ;;  %v2593_v26 = vrot.slane %v2591_v22, 5  ;;  %v2412_v3 = vld [vmem:[%s10963_s23 + $0x60] sm:$0xf] }
 0x133   : > { %v2571_v42 = vshrl.u32 %v2405_v7, 16  ;;  %v2574_v63 = vshll.u32 %v2405_v7, 16  ;;  %v2528_v37 = vsel %vm12508_vm0, %v2519_v0, %v2527_v60  ;;  %v2539_v47 = vrot.slane %v2537_v34, 4  ;;  %v2415_v16 = vld [vmem:[%s10963_s23 + $0x6c] sm:$0xf] }
 0x134   : > { %v1946_v33 = vpop.permute.xlu1 %1945  ;;  %v1944_v19 = vpop.permute.xlu0 %1943  ;;  %v2547_v29 = vor.u32 %v2546_v18, %v2543_v2  ;;  %v2538_v55 = vsel %vm12508_vm0, %v2529_v30, %v2537_v34  ;;  %v2569_v17 = vrot.slane %v2567_v21, 4  ;;  %v2623_v50 = vrot.slane %v2621_v10, 5 }
 0x135   : > { %2039 = vst.msk [vmem:[#allocation3 + $0x3c] sm:$0xf] %vm2023_vm13, %v1946_v33  ;;  %2038 = vst.msk [vmem:[#allocation3 + $0x38] sm:$0xf] %vm2023_vm13, %v1944_v19  ;;  %v2601_v33 = vshrl.u32 %v2408_v20, 16  ;;  %v2557_v19 = vor.u32 %v2556_v57, %v2553_v59  ;;  %v2573_v25 = vrot.slane %v2571_v42, 5 }
 0x136   : > { %2801 = vrot.lane.b32.xlu1 %v2458_v6, %s10835_s28  ;;  %2799 = vrot.lane.b32.xlu0 %v2448_v4, %s10835_s28  ;;  %v2576_v61 = vrot.slane %v2574_v63, 6  ;;  %v2549_v43 = vrot.slane %v2547_v29, 4  ;;  %v2548_v40 = vsel %vm12508_vm0, %v2539_v47, %v2547_v29  ;;  %v2626_v34 = vrot.slane %v2624_v48, 6 }
 0x137   : > { %v2559_v8 = vrot.slane %v2557_v19, 4  ;;  %v2631_v0 = vshrl.u32 %v2411_v13, 16  ;;  %v2634_v59 = vshll.u32 %v2411_v13, 16  ;;  %v2641_v57 = vshrl.u32 %v2412_v3, 16 }
 0x138   : > { %v1950_v45 = vpop.permute.xlu1 %1949  ;;  %v1948_v15 = vpop.permute.xlu0 %1947  ;;  %v2577_v41 = vor.u32 %v2576_v61, %v2573_v25  ;;  %v2558_v36 = vsel %vm12508_vm0, %v2549_v43, %v2557_v19  ;;  %v2651_v30 = vshrl.u32 %v2413_v62, 16  ;;  %v2654_v42 = vshll.u32 %v2413_v62, 16 }
 0x139   : > { %2041 = vst.msk [vmem:[#allocation3 + $0x44] sm:$0xf] %vm2023_vm13, %v1950_v45  ;;  %2040 = vst.msk [vmem:[#allocation3 + $0x40] sm:$0xf] %vm2023_vm13, %v1948_v15  ;;  %v2596_v45 = vrot.slane %v2594_v32, 6  ;;  %v2603_v15 = vrot.slane %v2601_v33, 5  ;;  %v2568_v18 = vsel %vm12508_vm0, %v2559_v8, %v2567_v21  ;;  %v2627_v33 = vor.u32 %v2626_v34, %v2623_v50 }
 0x13a   : > { %2805 = vrot.lane.b32.xlu1 %v2478_v11, %s10835_s28  ;;  %2803 = vrot.lane.b32.xlu0 %v2468_v54, %s10835_s28  ;;  %v2587_v54 = vor.u32 %v2586_v58, %v2583_v49  ;;  %v2579_v14 = vrot.slane %v2577_v41, 4  ;;  %v2578_v20 = vsel %vm12508_vm0, %v2569_v17, %v2577_v41  ;;  %v2661_v49 = vshrl.u32 %v2414_v44, 16  ;;  %v2420_v34 = vld [vmem:[%s10963_s23 + $0x80] sm:$0xf] }
 0x13b   : > { %v2597_v24 = vor.u32 %v2596_v45, %v2593_v26  ;;  %v2633_v19 = vrot.slane %v2631_v0, 5  ;;  %v2653_v25 = vrot.slane %v2651_v30, 5  ;;  %v2656_v61 = vrot.slane %v2654_v42, 6  ;;  %v2422_v42 = vld [vmem:[%s10963_s23 + $0x88] sm:$0xf] }
 0x13c   : > { %v1954_v31 = vpop.permute.xlu1 %1953  ;;  %v1952_v56 = vpop.permute.xlu0 %1951  ;;  %v2589_v7 = vrot.slane %v2587_v54, 4  ;;  %v2588_v46 = vsel %vm12508_vm0, %v2579_v14, %v2587_v54  ;;  %v2671_v23 = vshrl.u32 %v2415_v16, 16  ;;  %v2663_v21 = vrot.slane %v2661_v49, 5 }
 0x13d   : > { %2043 = vst.msk [vmem:[#allocation3 + $0x4c] sm:$0xf] %vm2023_vm13, %v1954_v31  ;;  %2042 = vst.msk [vmem:[#allocation3 + $0x48] sm:$0xf] %vm2023_vm13, %v1952_v56  ;;  %v2599_v32 = vrot.slane %v2597_v24, 4  ;;  %v2657_v48 = vor.u32 %v2656_v61, %v2653_v25 }
 0x13e   : > { %2809 = vrot.lane.b32.xlu1 %v2498_v39, %s10835_s28  ;;  %2807 = vrot.lane.b32.xlu0 %v2488_v53, %s10835_s28  ;;  %v2606_v39 = vrot.slane %v2604_v35, 6  ;;  %v2611_v53 = vshrl.u32 %v2409_v9, 16  ;;  %v2636_v9 = vrot.slane %v2634_v59, 6  ;;  %v2643_v35 = vrot.slane %v2641_v57, 5 }
 0x140   : > { %v1958_v6 = vpop.permute.xlu1 %1957  ;;  %v1956_v4 = vpop.permute.xlu0 %1955  ;;  %v2607_v31 = vor.u32 %v2606_v39, %v2603_v15  ;;  %v2613_v56 = vrot.slane %v2611_v53, 5  ;;  %v2629_v39 = vrot.slane %v2627_v33, 4  ;;  %v2637_v10 = vor.u32 %v2636_v9, %v2633_v19 }
 0x141   : > { %2045 = vst.msk [vmem:[#allocation3 + $0x54] sm:$0xf] %vm2023_vm13, %v1958_v6  ;;  %2044 = vst.msk [vmem:[#allocation3 + $0x50] sm:$0xf] %vm2023_vm13, %v1956_v4  ;;  %v2664_v6 = vshll.u32 %v2414_v44, 16  ;;  %v2598_v4 = vsel %vm12508_vm0, %v2589_v7, %v2597_v24  ;;  %v2659_v44 = vrot.slane %v2657_v48, 4 }
 0x142   : > { %2813 = vrot.lane.b32.xlu1 %v2518_v27, %s10835_s28  ;;  %2811 = vrot.lane.b32.xlu0 %v2508_v5, %s10835_s28  ;;  %v2616_v5 = vrot.slane %v2614_v28, 6  ;;  %v2644_v27 = vshll.u32 %v2412_v3, 16  ;;  %v2609_v58 = vrot.slane %v2607_v31, 4  ;;  %v2608_v15 = vsel %vm12508_vm0, %v2599_v32, %v2607_v31  ;;  %v2418_v28 = vld [vmem:[%s10963_s23 + $0x78] sm:$0xf] }
 0x143   : > { %v2666_v8 = vrot.slane %v2664_v6, 6  ;;  %v2701_v24 = vshrl.u32 %v2418_v28, 16  ;;  %v2704_v14 = vshll.u32 %v2418_v28, 16  ;;  %v2419_v31 = vld [vmem:[%s10963_s23 + $0x7c] sm:$0xf]  ;;  %v2639_v50 = vrot.slane %v2637_v10, 4 }
 0x144   : > { %v1962_v52 = vpop.permute.xlu1 %1961  ;;  %v1960_v11 = vpop.permute.xlu0 %1959  ;;  %v2617_v22 = vor.u32 %v2616_v5, %v2613_v56  ;;  %v2646_v47 = vrot.slane %v2644_v27, 6  ;;  %v2638_v56 = vsel %vm12508_vm0, %v2629_v39, %v2637_v10  ;;  %v2714_v49 = vshll.u32 %v2419_v31, 16  ;;  %v2421_v6 = vld [vmem:[%s10963_s23 + $0x84] sm:$0xf] }
 0x145   : > { %2047 = vst.msk [vmem:[#allocation3 + $0x5c] sm:$0xf] %vm2023_vm13, %v1962_v52  ;;  %2046 = vst.msk [vmem:[#allocation3 + $0x58] sm:$0xf] %vm2023_vm13, %v1960_v11  ;;  %v2674_v52 = vshll.u32 %v2415_v16, 16  ;;  %v2667_v13 = vor.u32 %v2666_v8, %v2663_v21  ;;  %v2711_v16 = vshrl.u32 %v2419_v31, 16 }
 0x146   : > { %2817 = vrot.lane.b32.xlu1 %v2538_v55, %s10835_s28  ;;  %2815 = vrot.lane.b32.xlu0 %v2528_v37, %s10835_s28  ;;  %v2416_v37 = vld [vmem:[%s10963_s23 + $0x70] sm:$0xf]  ;;  %v2417_v11 = vld [vmem:[%s10963_s23 + $0x74] sm:$0xf]  ;;  %v2618_v45 = vsel %vm12508_vm0, %v2609_v58, %v2617_v22  ;;  %v2619_v53 = vrot.slane %v2617_v22, 4  ;;  %v2647_v41 = vor.u32 %v2646_v47, %v2643_v35  ;;  %v2724_v58 = vshll.u32 %v2420_v34, 16 }
 0x147   : > { %v2681_v54 = vshrl.u32 %v2416_v37, 16  ;;  %v2684_v26 = vshll.u32 %v2416_v37, 16  ;;  %v2676_v3 = vrot.slane %v2674_v52, 6  ;;  %v2669_v57 = vrot.slane %v2667_v13, 4  ;;  %v2424_v52 = vld [vmem:[%s10963_s23 + $0x90] sm:$0xf] }
 0x148   : > { %v1966_v60 = vpop.permute.xlu1 %1965  ;;  %v1964_v2 = vpop.permute.xlu0 %1963  ;;  %v2628_v62 = vsel %vm12508_vm0, %v2619_v53, %v2627_v33  ;;  %v2649_v5 = vrot.slane %v2647_v41, 4  ;;  %v2648_v32 = vsel %vm12508_vm0, %v2639_v50, %v2647_v41  ;;  %v2741_v33 = vshrl.u32 %v2422_v42, 16 }
 0x149   : > { %2049 = vst.msk [vmem:[#allocation3 + $0x64] sm:$0xf] %vm2023_vm13, %v1966_v60  ;;  %2048 = vst.msk [vmem:[#allocation3 + $0x60] sm:$0xf] %vm2023_vm13, %v1964_v2  ;;  %v2691_v60 = vshrl.u32 %v2417_v11, 16  ;;  %v2694_v2 = vshll.u32 %v2417_v11, 16  ;;  %v2668_v47 = vsel %vm12508_vm0, %v2659_v44, %v2667_v13 }
 0x14a   : > { %2821 = vrot.lane.b32.xlu1 %v2558_v36, %s10835_s28  ;;  %2819 = vrot.lane.b32.xlu0 %v2548_v40, %s10835_s28  ;;  %v2673_v36 = vrot.slane %v2671_v23, 5  ;;  %v2686_v7 = vrot.slane %v2684_v26, 6  ;;  %v2658_v22 = vsel %vm12508_vm0, %v2649_v5, %v2657_v48  ;;  %v2744_v19 = vshll.u32 %v2422_v42, 16  ;;  %v2423_v23 = vld [vmem:[%s10963_s23 + $0x8c] sm:$0xf] }
 0x14b   : > { %v2693_v27 = vrot.slane %v2691_v60, 5  ;;  %v2696_v30 = vrot.slane %v2694_v2, 6  ;;  %v2731_v21 = vshrl.u32 %v2421_v6, 16  ;;  %v2734_v8 = vshll.u32 %v2421_v6, 16  ;;  %v2945_v6 = vld [vmem:[%s10963_s23 + $0x18] sm:$0xf] }
 0x14c   : > { %v1970_v63 = vpop.permute.xlu1 %1969  ;;  %v1968_v29 = vpop.permute.xlu0 %1967  ;;  %v2713_v11 = vrot.slane %v2711_v16, 5  ;;  %v2746_v39 = vrot.slane %v2744_v19, 6  ;;  %v2751_v53 = vshrl.u32 %v2423_v23, 16  ;;  %v2754_v28 = vshll.u32 %v2423_v23, 16 }
 0x14d   : > { %2051 = vst.msk [vmem:[#allocation3 + $0x6c] sm:$0xf] %vm2023_vm13, %v1970_v63  ;;  %2050 = vst.msk [vmem:[#allocation3 + $0x68] sm:$0xf] %vm2023_vm13, %v1968_v29  ;;  %v2703_v29 = vrot.slane %v2701_v24, 5  ;;  %v2697_v25 = vor.u32 %v2696_v30, %v2693_v27  ;;  %v2761_v48 = vshrl.u32 %v2424_v52, 16 }
 0x14e   : > { %2825 = vrot.lane.b32.xlu1 %v2578_v20, %s10835_s28  ;;  %2823 = vrot.lane.b32.xlu0 %v2568_v18, %s10835_s28  ;;  %v2683_v18 = vrot.slane %v2681_v54, 5  ;;  %v2677_v20 = vor.u32 %v2676_v3, %v2673_v36  ;;  %v2716_v54 = vrot.slane %v2714_v49, 6  ;;  %v2764_v36 = vshll.u32 %v2424_v52, 16  ;;  %v2425_v3 = vld [vmem:[%s10963_s23 + $0x94] sm:$0xf] }
 0x14f   : > { %v2736_v13 = vrot.slane %v2734_v8, 6  ;;  %v2426_v24 = vld [vmem:[%s10963_s23 + $0x98] sm:$0xf]  ;;  %v2753_v31 = vrot.slane %v2751_v53, 5  ;;  %v2763_v44 = vrot.slane %v2761_v48, 5  ;;  %v2994_v23 = vshll.u32 %v2945_v6, 16 }
 0x150   : > { %v1974_v55 = vpop.permute.xlu1 %1973  ;;  %v1972_v43 = vpop.permute.xlu0 %1971  ;;  %v2687_v63 = vor.u32 %v2686_v7, %v2683_v18  ;;  %v2678_v37 = vsel %vm12508_vm0, %v2669_v57, %v2677_v20  ;;  %v2679_v61 = vrot.slane %v2677_v20, 4  ;;  %v2717_v18 = vor.u32 %v2716_v54, %v2713_v11  ;;  %v2947_v53 = vld [vmem:[%s10963_s23 + $0x20] sm:$0xf] }
 0x151   : > { %2053 = vst.msk [vmem:[#allocation3 + $0x74] sm:$0xf] %vm2023_vm13, %v1974_v55  ;;  %2052 = vst.msk [vmem:[#allocation3 + $0x70] sm:$0xf] %vm2023_vm13, %v1972_v43  ;;  %v2699_v7 = vrot.slane %v2697_v25, 4  ;;  %v2781_v20 = vshrl.u32 %v2426_v24, 16 }
 0x152   : > { %2829 = vrot.lane.b32.xlu1 %v2598_v4, %s10835_s28  ;;  %2827 = vrot.lane.b32.xlu0 %v2588_v46, %s10835_s28  ;;  %v2706_v46 = vrot.slane %v2704_v14, 6  ;;  %v2721_v4 = vshrl.u32 %v2420_v34, 16  ;;  %v2689_v55 = vrot.slane %v2687_v63, 4  ;;  %v2766_v34 = vrot.slane %v2764_v36, 6 }
 0x153   : > { %v2784_v27 = vshll.u32 %v2426_v24, 16  ;;  %v3014_v24 = vshll.u32 %v2947_v53, 16 }
 0x154   : > { %v1978_v40 = vpop.permute.xlu1 %1977  ;;  %v1976_v17 = vpop.permute.xlu0 %1975  ;;  %v2707_v43 = vor.u32 %v2706_v46, %v2703_v29  ;;  %v2723_v26 = vrot.slane %v2721_v4, 5  ;;  %v2698_v60 = vsel %vm12508_vm0, %v2689_v55, %v2697_v25  ;;  %v2719_v46 = vrot.slane %v2717_v18, 4 }
 0x155   : > { %2055 = vst.msk [vmem:[#allocation3 + $0x7c] sm:$0xf] %vm2023_vm13, %v1978_v40  ;;  %2054 = vst.msk [vmem:[#allocation3 + $0x78] sm:$0xf] %vm2023_vm13, %v1976_v17  ;;  %v2688_v40 = vsel %vm12508_vm0, %v2679_v61, %v2687_v63  ;;  %v2733_v17 = vrot.slane %v2731_v21, 5  ;;  %v2991_v61 = vshrl.u32 %v2945_v6, 16 }
 0x156   : > { %2833 = vrot.lane.b32.xlu1 %v2618_v45, %s10835_s28  ;;  %2831 = vrot.lane.b32.xlu0 %v2608_v15, %s10835_s28  ;;  %v2726_v45 = vrot.slane %v2724_v58, 6  ;;  %v2743_v15 = vrot.slane %v2741_v33, 5  ;;  %v2709_v2 = vrot.slane %v2707_v43, 4  ;;  %v2708_v42 = vsel %vm12508_vm0, %v2699_v7, %v2707_v43  ;;  %v2427_v63 = vld [vmem:[%s10963_s23 + $0x9c] sm:$0x3] }
 0x157   : > { %v2737_v57 = vor.u32 %v2736_v13, %v2733_v17  ;;  %v2794_v25 = vshll.u32 %v2427_v63, 16  ;;  %v2946_v21 = vld [vmem:[%s10963_s23 + $0x1c] sm:$0xf]  ;;  %v2996_v17 = vrot.slane %v2994_v23, 6  ;;  %v3011_v7 = vshrl.u32 %v2947_v53, 16 }
 0x158   : > { %v1982_v0 = vpop.permute.xlu1 %1981  ;;  %v1980_v59 = vpop.permute.xlu0 %1979  ;;  %v2727_v14 = vor.u32 %v2726_v45, %v2723_v26  ;;  %v2718_v30 = vsel %vm12508_vm0, %v2709_v2, %v2717_v18  ;;  %v3001_v13 = vshrl.u32 %v2946_v21, 16  ;;  %v2948_v18 = vld [vmem:[%s10963_s23 + $0x24] sm:$0xf] }
 0x159   : > { %2057 = vst.msk [vmem:[#allocation3 + $0x84] sm:$0xf] %vm2023_vm13, %v1982_v0  ;;  %2056 = vst.msk [vmem:[#allocation3 + $0x80] sm:$0xf] %vm2023_vm13, %v1980_v59  ;;  %v2771_v0 = vshrl.u32 %v2425_v3, 16  ;;  %v2774_v59 = vshll.u32 %v2425_v3, 16 }
 0x15a   : > { %2837 = vrot.lane.b32.xlu1 %v2638_v56, %s10835_s28  ;;  %2835 = vrot.lane.b32.xlu0 %v2628_v62, %s10835_s28  ;;  %v2747_v62 = vor.u32 %v2746_v39, %v2743_v15  ;;  %v2756_v56 = vrot.slane %v2754_v28, 6  ;;  %v2729_v29 = vrot.slane %v2727_v14, 4  ;;  %v2739_v49 = vrot.slane %v2737_v57, 4  ;;  %v10715_v28 = vld [vmem:[%s16692_s1 + $0x38] sm:$0xff]  }
 0x15b   : > { %v2773_v33 = vrot.slane %v2771_v0, 5  ;;  %v2776_v19 = vrot.slane %v2774_v59, 6  ;;  %v2728_v43 = vsel %vm12508_vm0, %v2719_v46, %v2727_v14  ;;  %v2796_v36 = vrot.slane %v2794_v25, 6  ;;  %10581 = vmatprep.subr.bf16.mxu0 %v10715_v28 }
 0x15c   : > { %v1986_v9 = vpop.permute.xlu1 %1985  ;;  %v1984_v35 = vpop.permute.xlu0 %1983  ;;  %v2749_v16 = vrot.slane %v2747_v62, 4  ;;  %v2738_v55 = vsel %vm12508_vm0, %v2729_v29, %v2737_v57  ;;  %v2748_v45 = vsel %vm12508_vm0, %v2739_v49, %v2747_v62  ;;  %v3004_v3 = vshll.u32 %v2946_v21, 16  ;;  %10582 = vmatpush3.bf16.msra.mxu0 %v10715_v28  ;;  %v3826_v49 = vld [vmem:[%s10963_s23 + $0x18] sm:$0xf]  ;;  %v3827_v21 = vld [vmem:[%s10963_s23 + $0x1c] sm:$0xf] }
 0x15d   : > { %2059 = vst.msk [vmem:[#allocation3 + $0x8c] sm:$0xf] %vm2023_vm13, %v1986_v9  ;;  %2058 = vst.msk [vmem:[#allocation3 + $0x88] sm:$0xf] %vm2023_vm13, %v1984_v35  ;;  %v2944_v9 = vld [vmem:[%s10963_s23 + $0x14] sm:$0xe]  ;;  %v2777_v15 = vor.u32 %v2776_v19, %v2773_v33 }
 0x15e   : > { %2841 = vrot.lane.b32.xlu1 %v2658_v22, %s10835_s28  ;;  %2839 = vrot.lane.b32.xlu0 %v2648_v32, %s10835_s28  ;;  %v2757_v22 = vor.u32 %v2756_v56, %v2753_v31  ;;  %v2767_v32 = vor.u32 %v2766_v34, %v2763_v44  ;;  %v2783_v35 = vrot.slane %v2781_v20, 5  ;;  %v2982_v8 = vshrl.u32 %v2944_v9, 16  ;;  %v10716_v56 = vld [vmem:[%s16692_s1 + $0x30] sm:$0xff]   ;;  %v3496_v28 = vld [vmem:[%s10963_s23 + $0x1c] sm:$0xf] }
 0x15f   : > { %v2985_v52 = vshll.u32 %v2944_v9, 16  ;;  %v2779_v34 = vrot.slane %v2777_v15, 4  ;;  %v3003_v59 = vrot.slane %v3001_v13, 5  ;;  %v3006_v57 = vrot.slane %v3004_v3, 6  ;;  %10583 = vmatprep.subr.bf16.mxu0 %v10716_v56 }
 0x160   : > { %v2249_v10 = vpop.permute.xlu1 %2248  ;;  %v2247_v41 = vpop.permute.xlu0 %2246  ;;  %v2758_v26 = vsel %vm12508_vm0, %v2749_v16, %v2757_v22  ;;  %v2759_v39 = vrot.slane %v2757_v22, 4  ;;  %v3021_v20 = vshrl.u32 %v2948_v18, 16  ;;  %10584 = vmatpush3.bf16.msra.mxu0 %v10716_v56  ;;  %v10717_v16 = vld [vmem:[%s16692_s1 + $0x28] sm:$0xff]   ;;  %v3875_v23 = vshrl.u32 %v3826_v49, 16 }
 0x161   : > { %2356 = vst.msk [vmem:[#allocation3 + $0x4] sm:$0xf] %vm16712_vm1, %v2249_v10  ;;  %2355 = vst.msk [vmem:[#allocation3] sm:$0xf] %vm16712_vm1, %v2247_v41  ;;  %v2769_v10 = vrot.slane %v2767_v32, 4  ;;  %v2987_v2 = vrot.slane %v2985_v52, 6  ;;  %v3007_v22 = vor.u32 %v3006_v57, %v3003_v59  ;;  %10585 = vmatprep.subr.bf16.mxu0 %v10717_v16 }
 0x162   : > { %2845 = vrot.lane.b32.xlu1 %v2678_v37, %s10835_s28  ;;  %2843 = vrot.lane.b32.xlu0 %v2668_v47, %s10835_s28  ;;  %v2786_v37 = vrot.slane %v2784_v27, 6  ;;  %v2791_v47 = vshrl.u32 %v2427_v63, 16  ;;  %v2768_v31 = vsel %vm12508_vm0, %v2759_v39, %v2767_v32  ;;  %v3024_v63 = vshll.u32 %v2948_v18, 16  ;;  %v3825_v32 = vld [vmem:[%s10963_s23 + $0x14] sm:$0xc] }
 0x163   : > { %v3023_v9 = vrot.slane %v3021_v20, 5  ;;  %v3869_v52 = vshll.u32 %v3825_v32, 16  ;;  %v3885_v3 = vshrl.u32 %v3827_v21, 16  ;;  %v2949_v59 = vld [vmem:[%s10963_s23 + $0x28] sm:$0xf]  ;;  %vm3457_vm13 = vcmask 454016  }
 0x164   : > { %v2253_v5 = vpop.permute.xlu1 %2252  ;;  %v2251_v50 = vpop.permute.xlu0 %2250  ;;  %v2787_v41 = vor.u32 %v2786_v37, %v2783_v35  ;;  %v2793_v48 = vrot.slane %v2791_v47, 5  ;;  %v3026_v35 = vrot.slane %v3024_v63, 6  ;;  %v3495_v37 = vld [vmem:[%s10963_s23 + $0x18] sm:$0xf]  ;;  %10586 = vmatpush3.bf16.msra.mxu0 %v10717_v16 }
 0x165   : > { %2358 = vst.msk [vmem:[#allocation3 + $0xc] sm:$0xf] %vm16712_vm1, %v2253_v5  ;;  %2357 = vst.msk [vmem:[#allocation3 + $0x8] sm:$0xf] %vm16712_vm1, %v2251_v50  ;;  %v2778_v5 = vsel %vm12508_vm0, %v2769_v10, %v2777_v15 }
 0x166   : > { %2849 = vrot.lane.b32.xlu1 %v2698_v60, %s10835_s28  ;;  %2847 = vrot.lane.b32.xlu0 %v2688_v40, %s10835_s28  ;;  %v2993_v40 = vrot.slane %v2991_v61, 5  ;;  %v2984_v60 = vrot.slane %v2982_v8, 5  ;;  %v2789_v50 = vrot.slane %v2787_v41, 4  ;;  %v2797_v44 = vor.u32 %v2796_v36, %v2793_v48  ;;  %v3494_v61 = vld [vmem:[%s10963_s23 + $0x14] sm:$0xc] }
 0x167   : > { %v3866_v8 = vshrl.u32 %v3825_v32, 16  ;;  %v12719_v53 = vor.u32 %v3026_v35, %v3023_v9  ;;  %v10235_v10 = vrot.slane %v3494_v61, 10  ;;  %v3031_v32 = vshrl.u32 %v2949_v59, 16  ;;  %v2951_v61 = vld [vmem:[%s10963_s23 + $0x30] sm:$0xf] }
 0x168   : > { %v2257_v4 = vpop.permute.xlu1 %2256  ;;  %v2255_v58 = vpop.permute.xlu0 %2254  ;;  %v12687_v0 = vor.u32 %v2996_v17, %v2993_v40  ;;  %v2988_v27 = vor.u32 %v2987_v2, %v2984_v60  ;;  %v2798_v6 = vsel %vm12508_vm0, %v2789_v50, %v2797_v44  ;;  %v3877_v17 = vrot.slane %v3875_v23, 6  ;;  %v10719_v2 = vld [vmem:[%s16692_s1 + $0x18] sm:$0xff]   ;;  %v10721_v23 = vld [vmem:[%s16692_s1 + $0x8] sm:$0xff]  }
 0x169   : > { %2360 = vst.msk [vmem:[#allocation3 + $0x14] sm:$0xf] %vm16712_vm1, %v2257_v4  ;;  %2359 = vst.msk [vmem:[#allocation3 + $0x10] sm:$0xf] %vm16712_vm1, %v2255_v58  ;;  %v2788_v4 = vsel %vm12508_vm0, %v2779_v34, %v2787_v41  ;;  %v12723_v41 = vld [vmem:[%s10963_s23 + $0x20] sm:$0xf] }
 0x16a   : > { %2853 = vrot.lane.b32.xlu1 %v2718_v30, %s10835_s28  ;;  %2851 = vrot.lane.b32.xlu0 %v2708_v42, %s10835_s28  ;;  %v3013_v30 = vrot.slane %v3011_v7, 5  ;;  %v3016_v42 = vrot.slane %v3014_v24, 6  ;;  %v2999_v58 = vrot.slane %v12687_v0, 4  ;;  %v2989_v33 = vrot.slane %v2988_v27, 4  ;;  %v3829_v24 = vld [vmem:[%s10963_s23 + $0x24] sm:$0xf] }
 0x16b   : > { %v3888_v60 = vshll.u32 %v3827_v21, 16  ;;  %v3868_v18 = vrot.slane %v3866_v8, 6  ;;  %v3871_v7 = vrot.slane %v3869_v52, 7  ;;  %v3579_v56 = vrot.slane %v12723_v41, 6 }
 0x16c   : > { %v2261_v11 = vpop.permute.xlu1 %2260  ;;  %v2259_v54 = vpop.permute.xlu0 %2258  ;;  %v3017_v19 = vor.u32 %v3016_v42, %v3013_v30  ;;  %v2998_v15 = vsel %vm12508_vm0, %v2989_v33, %v12687_v0  ;;  %v12748_v0 = vld [vmem:[%s10963_s23 + $0x24] sm:$0xf]  ;;  %v3887_v30 = vrot.slane %v3885_v3, 6  ;;  %v3905_v63 = vshrl.u32 %v3829_v24, 16 }
 0x16d   : > { %2362 = vst.msk [vmem:[#allocation3 + $0x1c] sm:$0xf] %vm16712_vm1, %v2261_v11  ;;  %2361 = vst.msk [vmem:[#allocation3 + $0x18] sm:$0xf] %vm16712_vm1, %v2259_v54  ;;  %v3008_v11 = vsel %vm12508_vm0, %v2999_v58, %v3007_v22  ;;  %v3009_v54 = vrot.slane %v3007_v22, 4  ;;  %v3890_v42 = vrot.slane %v3888_v60, 7 }
 0x16e   : > { %2857 = vrot.lane.b32.xlu1 %v2738_v55, %s10835_s28  ;;  %2855 = vrot.lane.b32.xlu0 %v2728_v43, %s10835_s28  ;;  %v3878_v55 = vshll.u32 %v3826_v49, 16  ;;  %v10718_v43 = vld [vmem:[%s16692_s1 + $0x20] sm:$0xff]   ;;  %v3019_v39 = vrot.slane %v3017_v19, 4  ;;  %v3582_v58 = vrot.slane %v12748_v0, 6  ;;  %v2950_v22 = vld [vmem:[%s10963_s23 + $0x2c] sm:$0xf] }
 0x16f   : > { %10587 = vmatprep.subr.bf16.mxu0 %v10718_v43  ;;  %v3018_v50 = vsel %vm12508_vm0, %v3009_v54, %v3017_v19  ;;  %v3034_v33 = vshll.u32 %v2949_v59, 16  ;;  %v3907_v21 = vrot.slane %v3905_v63, 6 }
 0x170   : > { %v2265_v14 = vpop.permute.xlu1 %2264  ;;  %v2263_v62 = vpop.permute.xlu0 %2262  ;;  %v3880_v13 = vrot.slane %v3878_v55, 7  ;;  %10588 = vmatpush3.bf16.msra.mxu0 %v10718_v43 }
 0x171   : > { %2364 = vst.msk [vmem:[#allocation3 + $0x24] sm:$0xf] %vm16712_vm1, %v2265_v14  ;;  %2363 = vst.msk [vmem:[#allocation3 + $0x20] sm:$0xf] %vm16712_vm1, %v2263_v62  ;;  %10589 = vmatprep.subr.bf16.mxu0 %v10719_v2  ;;  %v3036_v54 = vrot.slane %v3034_v33, 6 }
 0x172   : > { %2861 = vrot.lane.b32.xlu1 %v2758_v26, %s10835_s28  ;;  %2859 = vrot.lane.b32.xlu0 %v2748_v45, %s10835_s28  ;;  %v3573_v26 = vrot.slane %v3495_v37, 6  ;;  %v3828_v45 = vld [vmem:[%s10963_s23 + $0x20] sm:$0xf]  ;;  %v12751_v27 = vor.u32 %v3880_v13, %v3877_v17 }
 0x173   : > { %v3895_v14 = vshrl.u32 %v3828_v45, 16  ;;  %v3898_v62 = vshll.u32 %v3828_v45, 16  ;;  %v3044_v45 = vshll.u32 %v2950_v22, 16  ;;  %v10722_v17 = vld [vmem:[%s16692_s1] sm:$0xff]  }
 0x174   : > { %v2269_v29 = vpop.permute.xlu1 %2268  ;;  %v2267_v46 = vpop.permute.xlu0 %2266  ;;  %v3575_v44 = vrot.slane %v3573_v26, 4  ;;  %v3574_v34 = vsel %vm12727_vm6, %v10235_v10, %v3573_v26  ;;  %10590 = vmatpush3.bf16.msra.mxu0 %v10719_v2  ;;  %v3041_v26 = vshrl.u32 %v2950_v22, 16  ;;  %v3054_v10 = vshll.u32 %v2951_v61, 16 }
 0x175   : > { %2366 = vst.msk [vmem:[#allocation3 + $0x2c] sm:$0xf] %vm16712_vm1, %v2269_v29  ;;  %2365 = vst.msk [vmem:[#allocation3 + $0x28] sm:$0xf] %vm16712_vm1, %v2267_v46  ;;  %v10720_v29 = vld [vmem:[%s16692_s1 + $0x10] sm:$0xff]   ;;  %v3872_v46 = vor.u32 %v3871_v7, %v3868_v18  ;;  %v3897_v16 = vrot.slane %v3895_v14, 6 }
 0x176   : > { %2865 = vrot.lane.b32.xlu1 %v2778_v5, %s10835_s28  ;;  %2863 = vrot.lane.b32.xlu0 %v2768_v31, %s10835_s28  ;;  %v3576_v31 = vrot.slane %v3496_v28, 6  ;;  %v3028_v5 = vsel %vm12508_vm0, %v3019_v39, %v12719_v53  ;;  %v3900_v49 = vrot.slane %v3898_v62, 7  ;;  %v3051_v28 = vshrl.u32 %v2951_v61, 16 }
 0x177   : > { %10591 = vmatprep.subr.bf16.mxu0 %v10720_v29  ;;  %v3873_v55 = vrot.slane %v3872_v46, 4  ;;  %v3046_v14 = vrot.slane %v3044_v45, 6  ;;  %v3499_v46 = vld [vmem:[%s10963_s23 + $0x28] sm:$0xf] }
 0x178   : > { %v2273_v47 = vpop.permute.xlu1 %2272  ;;  %v2271_v25 = vpop.permute.xlu0 %2270  ;;  %v3577_v19 = vsel %vm12727_vm6, %v3575_v44, %v3576_v31  ;;  %v3578_v9 = vrot.slane %v3576_v31, 4  ;;  %10592 = vmatpush3.bf16.msra.mxu0 %v10720_v29  ;;  %v3901_v43 = vor.u32 %v3900_v49, %v3897_v16  ;;  %v3053_v62 = vrot.slane %v3051_v28, 5 }
 0x179   : > { %2368 = vst.msk [vmem:[#allocation3 + $0x34] sm:$0xf] %vm16712_vm1, %v2273_v47  ;;  %2367 = vst.msk [vmem:[#allocation3 + $0x30] sm:$0xf] %vm16712_vm1, %v2271_v25  ;;  %v3883_v47 = vrot.slane %v12751_v27, 4  ;;  %v3891_v25 = vor.u32 %v3890_v42, %v3887_v30  ;;  %10593 = vmatprep.subr.bf16.mxu0 %v10721_v23  ;;  %v3882_v18 = vsel %vm12775_vm10, %v3873_v55, %v12751_v27  ;;  %v3056_v31 = vrot.slane %v3054_v10, 6 }
 0x17a   : > { %2869 = vrot.lane.b32.xlu1 %v2798_v6, %s10835_s28  ;;  %2867 = vrot.lane.b32.xlu0 %v2788_v4, %s10835_s28  ;;  %v3908_v6 = vshll.u32 %v3829_v24, 16  ;;  %v3581_v4 = vrot.slane %v3579_v56, 4  ;;  %v3580_v39 = vsel %vm12727_vm6, %v3578_v9, %v3579_v56  ;;  %v3903_v3 = vrot.slane %v3901_v43, 4  ;;  %v3830_v27 = vld [vmem:[%s10963_s23 + $0x28] sm:$0xf] }
 0x17b   : > { %v3892_v13 = vsel %vm12775_vm10, %v3883_v47, %v3891_v25  ;;  %v3893_v2 = vrot.slane %v3891_v25, 4  ;;  %v3043_v24 = vrot.slane %v3041_v26, 5  ;;  %v3057_v42 = vor.u32 %v3056_v31, %v3053_v62  ;;  %v3832_v47 = vld [vmem:[%s10963_s23 + $0x30] sm:$0xf] }
 0x17c   : > { %v2277_v48 = vpop.permute.xlu1 %2276  ;;  %v2275_v36 = vpop.permute.xlu0 %2274  ;;  %v3910_v8 = vrot.slane %v3908_v6, 7  ;;  %10594 = vmatpush3.bf16.msra.mxu0 %v10721_v23  ;;  %v3831_v6 = vld [vmem:[%s10963_s23 + $0x2c] sm:$0xf]  ;;  %v3918_v22 = vshll.u32 %v3830_v27, 16  ;;  %v3501_v23 = vld [vmem:[%s10963_s23 + $0x30] sm:$0xf] }
 0x17d   : > { %2370 = vst.msk [vmem:[#allocation3 + $0x3c] sm:$0xf] %vm16712_vm1, %v2277_v48  ;;  %2369 = vst.msk [vmem:[#allocation3 + $0x38] sm:$0xf] %vm16712_vm1, %v2275_v36  ;;  %v2952_v36 = vld [vmem:[%s10963_s23 + $0x34] sm:$0xf]  ;;  %10595 = vmatprep.subr.bf16.mxu0 %v10722_v17  ;;  %v3902_v59 = vsel %vm12775_vm10, %v3893_v2, %v3901_v43  ;;  %v3047_v30 = vor.u32 %v3046_v14, %v3043_v24 }
 0x17e   : > { %3351 = vrot.lane.b32.xlu1 %v3008_v11, %s10836_s14  ;;  %3349 = vrot.lane.b32.xlu0 %v2998_v15, %s10836_s14  ;;  %v3033_v11 = vrot.slane %v3031_v32, 5  ;;  %v3583_v15 = vsel %vm12727_vm6, %v3581_v4, %v3582_v58  ;;  %v12793_v60 = vor.u32 %v3910_v8, %v3907_v21  ;;  %v3061_v56 = vshrl.u32 %v2952_v36, 16 }
 0x17f   : > { %v3915_v4 = vshrl.u32 %v3830_v27, 16  ;;  %v3585_v32 = vrot.slane %v3499_v46, 6  ;;  %v3925_v55 = vshrl.u32 %v3831_v6, 16  ;;  %v3928_v43 = vshll.u32 %v3831_v6, 16 }
 0x180   : > { %v2281_v57 = vpop.permute.xlu1 %2280  ;;  %v2279_v20 = vpop.permute.xlu0 %2278  ;;  %v3037_v7 = vor.u32 %v3036_v54, %v3033_v11  ;;  %10596 = vmatpush3.bf16.msra.mxu0 %v10722_v17  ;;  %v3063_v63 = vrot.slane %v3061_v56, 5  ;;  %v3920_v8 = vrot.slane %v3918_v22, 7  ;;  %v3833_v11 = vld [vmem:[%s10963_s23 + $0x34] sm:$0xf]  ;;  %v3935_v45 = vshrl.u32 %v3832_v47, 16 }
 0x181   : > { %2372 = vst.msk [vmem:[#allocation3 + $0x44] sm:$0xf] %vm16712_vm1, %v2281_v57  ;;  %2371 = vst.msk [vmem:[#allocation3 + $0x40] sm:$0xf] %vm16712_vm1, %v2279_v20  ;;  %v3029_v20 = vrot.slane %v12719_v53, 4  ;;  %v3917_v21 = vrot.slane %v3915_v4, 6 }
 0x182   : > { %3355 = vrot.lane.b32.xlu1 %v3028_v5, %s10836_s14  ;;  %3353 = vrot.lane.b32.xlu0 %v3018_v50, %s10836_s14  ;;  %v3064_v5 = vshll.u32 %v2952_v36, 16  ;;  %v3039_v57 = vrot.slane %v3037_v7, 4  ;;  %v3587_v54 = vrot.slane %v3585_v32, 4  ;;  %v3591_v36 = vrot.slane %v3501_v23, 6 }
 0x183   : > { %v3038_v53 = vsel %vm12508_vm0, %v3029_v20, %v3037_v7  ;;  %v3930_v2 = vrot.slane %v3928_v43, 7  ;;  %v3945_v7 = vshrl.u32 %v3833_v11, 16  ;;  %v3948_v24 = vshll.u32 %v3833_v11, 16 }
 0x184   : > { %v2285_v35 = vpop.permute.xlu1 %2284  ;;  %v2283_v37 = vpop.permute.xlu0 %2282  ;;  %v3066_v29 = vrot.slane %v3064_v5, 6  ;;  %v3048_v33 = vsel %vm12508_vm0, %v3039_v57, %v3047_v30  ;;  %v3913_v27 = vrot.slane %v12793_v60, 4 }
 0x185   : > { %2374 = vst.msk [vmem:[#allocation3 + $0x4c] sm:$0xf] %vm16712_vm1, %v2285_v35  ;;  %2373 = vst.msk [vmem:[#allocation3 + $0x48] sm:$0xf] %vm16712_vm1, %v2283_v37  ;;  %v3049_v35 = vrot.slane %v3047_v30, 4 }
 0x186   : > { %3682 = vrot.lane.b32.xlu1 %v3577_v19, %s10837_s21  ;;  %3680 = vrot.lane.b32.xlu0 %v3574_v34, %s10837_s21  ;;  %v3912_v34 = vsel %vm12775_vm10, %v3903_v3, %v12793_v60  ;;  %v3059_v19 = vrot.slane %v3057_v42, 4  ;;  %v12821_v9 = vor.u32 %v3066_v29, %v3063_v63  ;;  %v3500_v37 = vld [vmem:[%s10963_s23 + $0x2c] sm:$0xf]  ;;  %v3927_v3 = vrot.slane %v3925_v55, 6  ;;  %v2955_v30 = vld [vmem:[%s10963_s23 + $0x40] sm:$0xf] }
 0x187   : > { %v3588_v26 = vrot.slane %v3500_v37, 6  ;;  %v3058_v10 = vsel %vm12508_vm0, %v3049_v35, %v3057_v42  ;;  %v3947_v63 = vrot.slane %v3945_v7, 6  ;;  %v3950_v29 = vrot.slane %v3948_v24, 7  ;;  %v2956_v35 = vld [vmem:[%s10963_s23 + $0x44] sm:$0xf] }
 0x188   : > { %v2289_v41 = vpop.permute.xlu1 %2288  ;;  %v2287_v48 = vpop.permute.xlu0 %2286  ;;  %v3068_v28 = vsel %vm12508_vm0, %v3059_v19, %v12821_v9  ;;  %v3931_v20 = vor.u32 %v3930_v2, %v3927_v3 }
 0x189   : > { %2376 = vst.msk [vmem:[#allocation3 + $0x54] sm:$0xf] %vm16712_vm1, %v2289_v41  ;;  %2375 = vst.msk [vmem:[#allocation3 + $0x50] sm:$0xf] %vm16712_vm1, %v2287_v48  ;;  %v3584_v41 = vrot.slane %v3582_v58, 4  ;;  %v3937_v58 = vrot.slane %v3935_v45, 6  ;;  %v3589_v56 = vsel %vm12727_vm6, %v3587_v54, %v3588_v26 }
 0x18a   : > { %3686 = vrot.lane.b32.xlu1 %v3583_v15, %s10837_s21  ;;  %3684 = vrot.lane.b32.xlu0 %v3580_v39, %s10837_s21  ;;  %v3938_v15 = vshll.u32 %v3832_v47, 16  ;;  %v2953_v39 = vld [vmem:[%s10963_s23 + $0x38] sm:$0xf]  ;;  %v12840_v48 = vld [vmem:[%s10963_s23 + $0x34] sm:$0xf]  ;;  %v3101_v54 = vshrl.u32 %v2956_v35, 16 }
 0x18b   : > { %v3071_v14 = vshrl.u32 %v2953_v39, 16  ;;  %v3594_v0 = vrot.slane %v12840_v48, 6  ;;  %v3074_v31 = vshll.u32 %v2953_v39, 16  ;;  %v3586_v5 = vsel %vm12727_vm6, %v3584_v41, %v3585_v32 }
 0x18c   : > { %v2293_v50 = vpop.permute.xlu1 %2292  ;;  %v2291_v44 = vpop.permute.xlu0 %2290  ;;  %v3940_v62 = vrot.slane %v3938_v15, 7  ;;  %v3094_v32 = vshll.u32 %v2955_v30, 16  ;;  %v3069_v41 = vrot.slane %v12821_v9, 4  ;;  %v3103_v3 = vrot.slane %v3101_v54, 5 }
 0x18d   : > { %2378 = vst.msk [vmem:[#allocation3 + $0x5c] sm:$0xf] %vm16712_vm1, %v2293_v50  ;;  %2377 = vst.msk [vmem:[#allocation3 + $0x58] sm:$0xf] %vm16712_vm1, %v2291_v44  ;;  %v3593_v50 = vrot.slane %v3591_v36, 4  ;;  %v3590_v44 = vrot.slane %v3588_v26, 4 }
 0x18e   : > { %4235 = vrot.lane.b32.xlu1 %v3892_v13, %s10838_s25  ;;  %4233 = vrot.lane.b32.xlu0 %v3882_v18, %s10838_s25  ;;  %v3921_v18 = vor.u32 %v3920_v8, %v3917_v21  ;;  %v3073_v46 = vrot.slane %v3071_v14, 5  ;;  %v3096_v11 = vrot.slane %v3094_v32, 6  ;;  %v3104_v26 = vshll.u32 %v2956_v35, 16  ;;  %v3835_v14 = vld [vmem:[%s10963_s23 + $0x3c] sm:$0xf] }
 0x18f   : > { %v3595_v60 = vsel %vm12727_vm6, %v3593_v50, %v3594_v0  ;;  %v3592_v22 = vsel %vm12727_vm6, %v3590_v44, %v3591_v36  ;;  %v3834_v36 = vld [vmem:[%s10963_s23 + $0x38] sm:$0xf] }
 0x190   : > { %v2297_v16 = vpop.permute.xlu1 %2296  ;;  %v2295_v49 = vpop.permute.xlu0 %2294  ;;  %v3923_v42 = vrot.slane %v3921_v18, 4  ;;  %v3922_v47 = vsel %vm12775_vm10, %v3913_v27, %v3921_v18  ;;  %v3106_v2 = vrot.slane %v3104_v26, 6  ;;  %v3503_v18 = vld [vmem:[%s10963_s23 + $0x38] sm:$0xf]  ;;  %v3505_v27 = vld [vmem:[%s10963_s23 + $0x40] sm:$0xf] }
 0x191   : > { %2380 = vst.msk [vmem:[#allocation3 + $0x64] sm:$0xf] %vm16712_vm1, %v2297_v16  ;;  %2379 = vst.msk [vmem:[#allocation3 + $0x60] sm:$0xf] %vm16712_vm1, %v2295_v49  ;;  %v3941_v16 = vor.u32 %v3940_v62, %v3937_v58  ;;  %v3076_v49 = vrot.slane %v3074_v31, 6  ;;  %v3955_v58 = vshrl.u32 %v3834_v36, 16 }
 0x192   : > { %4239 = vrot.lane.b32.xlu1 %v3912_v34, %s10838_s25  ;;  %4237 = vrot.lane.b32.xlu0 %v3902_v59, %s10838_s25  ;;  %v2954_v34 = vld [vmem:[%s10963_s23 + $0x3c] sm:$0xf]  ;;  %v3932_v37 = vsel %vm12775_vm10, %v3923_v42, %v3931_v20  ;;  %v3958_v62 = vshll.u32 %v3834_v36, 16  ;;  %v3597_v31 = vrot.slane %v3503_v18, 6  ;;  %v12896_v50 = vor.u32 %v3106_v2, %v3103_v3 }
 0x193   : > { %v3081_v6 = vshrl.u32 %v2954_v34, 16  ;;  %v3084_v4 = vshll.u32 %v2954_v34, 16  ;;  %v3943_v23 = vrot.slane %v3941_v16, 4  ;;  %v3077_v55 = vor.u32 %v3076_v49, %v3073_v46  ;;  %v3504_v34 = vld [vmem:[%s10963_s23 + $0x3c] sm:$0xf] }
 0x194   : > { %v2301_v25 = vpop.permute.xlu1 %2300  ;;  %v2299_v61 = vpop.permute.xlu0 %2298  ;;  %v3968_v42 = vshll.u32 %v3835_v14, 16  ;;  %v3837_v46 = vld [vmem:[%s10963_s23 + $0x44] sm:$0xf]  ;;  %v3596_v49 = vrot.slane %v3594_v0, 4  ;;  %v3599_v32 = vrot.slane %v3597_v31, 4 }
 0x195   : > { %2382 = vst.msk [vmem:[#allocation3 + $0x6c] sm:$0xf] %vm16712_vm1, %v2301_v25  ;;  %2381 = vst.msk [vmem:[#allocation3 + $0x68] sm:$0xf] %vm16712_vm1, %v2299_v61  ;;  %v12871_v25 = vor.u32 %v3950_v29, %v3947_v63  ;;  %v3933_v61 = vrot.slane %v3931_v20, 4  ;;  %v3083_v43 = vrot.slane %v3081_v6, 5  ;;  %v3078_v9 = vsel %vm12508_vm0, %v3069_v41, %v3077_v55 }
 0x196   : > { %3359 = vrot.lane.b32.xlu1 %v3048_v33, %s10836_s14  ;;  %3357 = vrot.lane.b32.xlu0 %v3038_v53, %s10836_s14  ;;  %v3091_v53 = vshrl.u32 %v2955_v30, 16  ;;  %v3086_v21 = vrot.slane %v3084_v4, 6  ;;  %v3965_v30 = vshrl.u32 %v3835_v14, 16  ;;  %v3957_v63 = vrot.slane %v3955_v58, 6 }
 0x197   : > { %v3952_v39 = vsel %vm12775_vm10, %v3943_v23, %v12871_v25  ;;  %v3960_v29 = vrot.slane %v3958_v62, 7  ;;  %v3985_v0 = vshrl.u32 %v3837_v46, 16  ;;  %v3988_v23 = vshll.u32 %v3837_v46, 16 }
 0x198   : > { %v2305_v17 = vpop.permute.xlu1 %2304  ;;  %v2303_v13 = vpop.permute.xlu0 %2302  ;;  %v3093_v8 = vrot.slane %v3091_v53, 5  ;;  %v3953_v36 = vrot.slane %v12871_v25, 4 }
 0x199   : > { %2384 = vst.msk [vmem:[#allocation3 + $0x74] sm:$0xf] %vm16712_vm1, %v2305_v17  ;;  %2383 = vst.msk [vmem:[#allocation3 + $0x70] sm:$0xf] %vm16712_vm1, %v2303_v13  ;;  %v3087_v17 = vor.u32 %v3086_v21, %v3083_v43  ;;  %v3961_v48 = vor.u32 %v3960_v29, %v3957_v63  ;;  %v3598_v43 = vsel %vm12727_vm6, %v3596_v49, %v3597_v31  ;;  %v3987_v3 = vrot.slane %v3985_v0, 6 }
 0x19a   : > { %3363 = vrot.lane.b32.xlu1 %v3068_v28, %s10836_s14  ;;  %3361 = vrot.lane.b32.xlu0 %v3058_v10, %s10836_s14  ;;  %v3942_v28 = vsel %vm12775_vm10, %v3933_v61, %v3941_v16  ;;  %v3079_v10 = vrot.slane %v3077_v55, 4  ;;  %v3097_v13 = vor.u32 %v3096_v11, %v3093_v8  ;;  %v3600_v16 = vrot.slane %v3504_v34, 6 }
 0x19b   : > { %v3089_v44 = vrot.slane %v3087_v17, 4  ;;  %v3970_v61 = vrot.slane %v3968_v42, 7  ;;  %v3990_v2 = vrot.slane %v3988_v23, 7 }
 0x19c   : > { %v2309_v59 = vpop.permute.xlu1 %2308  ;;  %v2307_v57 = vpop.permute.xlu0 %2306  ;;  %v3601_v54 = vsel %vm12727_vm6, %v3599_v32, %v3600_v16  ;;  %v3109_v32 = vrot.slane %v12896_v50, 4 }
 0x19d   : > { %2386 = vst.msk [vmem:[#allocation3 + $0x7c] sm:$0xf] %vm16712_vm1, %v2309_v59  ;;  %2385 = vst.msk [vmem:[#allocation3 + $0x78] sm:$0xf] %vm16712_vm1, %v2307_v57  ;;  %v3836_v59 = vld [vmem:[%s10963_s23 + $0x40] sm:$0xf]  ;;  %v3098_v53 = vsel %vm12508_vm0, %v3089_v44, %v3097_v13 }
 0x19e   : > { %3690 = vrot.lane.b32.xlu1 %v3589_v56, %s10837_s21  ;;  %3688 = vrot.lane.b32.xlu0 %v3586_v5, %s10837_s21  ;;  %v3088_v56 = vsel %vm12508_vm0, %v3079_v10, %v3087_v17  ;;  %v3099_v5 = vrot.slane %v3097_v13, 4  ;;  %v3975_v6 = vshrl.u32 %v3836_v59, 16  ;;  %v3978_v4 = vshll.u32 %v3836_v59, 16  ;;  %v2959_v17 = vld [vmem:[%s10963_s23 + $0x50] sm:$0xf] }
 0x19f   : > { %v3963_v13 = vrot.slane %v3961_v48, 4  ;;  %v3134_v31 = vshll.u32 %v2959_v17, 16  ;;  %v2960_v44 = vld [vmem:[%s10963_s23 + $0x54] sm:$0xf]  ;;  %v3962_v59 = vsel %vm12775_vm10, %v3953_v36, %v3961_v48  ;;  %v3507_v48 = vld [vmem:[%s10963_s23 + $0x48] sm:$0xf] }
 0x1a0   : > { %v2313_v33 = vpop.permute.xlu1 %2312  ;;  %v2311_v19 = vpop.permute.xlu0 %2310  ;;  %v3977_v21 = vrot.slane %v3975_v6, 6  ;;  %v3980_v8 = vrot.slane %v3978_v4, 7  ;;  %v3144_v49 = vshll.u32 %v2960_v44, 16  ;;  %v3509_v36 = vld [vmem:[%s10963_s23 + $0x50] sm:$0xf] }
 0x1a1   : > { %2388 = vst.msk [vmem:[#allocation3 + $0x84] sm:$0xf] %vm16712_vm1, %v2313_v33  ;;  %2387 = vst.msk [vmem:[#allocation3 + $0x80] sm:$0xf] %vm16712_vm1, %v2311_v19  ;;  %v3603_v33 = vrot.slane %v3505_v27, 6  ;;  %v3136_v46 = vrot.slane %v3134_v31, 6 }
 0x1a2   : > { %3694 = vrot.lane.b32.xlu1 %v3595_v60, %s10837_s21  ;;  %3692 = vrot.lane.b32.xlu0 %v3592_v22, %s10837_s21  ;;  %v2957_v60 = vld [vmem:[%s10963_s23 + $0x48] sm:$0xf]  ;;  %v3108_v22 = vsel %vm12508_vm0, %v3099_v5, %v12896_v50 }
 0x1a3   : > { %v3111_v55 = vshrl.u32 %v2957_v60, 16  ;;  %v3114_v11 = vshll.u32 %v2957_v60, 16  ;;  %v3605_v26 = vrot.slane %v3603_v33, 4 }
 0x1a4   : > { %v2317_v45 = vpop.permute.xlu1 %2316  ;;  %v2315_v15 = vpop.permute.xlu0 %2314 }
 0x1a5   : > { %2390 = vst.msk [vmem:[#allocation3 + $0x8c] sm:$0xf] %vm16712_vm1, %v2317_v45  ;;  %2389 = vst.msk [vmem:[#allocation3 + $0x88] sm:$0xf] %vm16712_vm1, %v2315_v15  ;;  %v3602_v15 = vrot.slane %v3600_v16, 4  ;;  %v3113_v18 = vrot.slane %v3111_v55, 5 }
 0x1a6   : > { %4243 = vrot.lane.b32.xlu1 %v3932_v37, %s10838_s25  ;;  %4241 = vrot.lane.b32.xlu0 %v3922_v47, %s10838_s25  ;;  %v12915_v37 = vld [vmem:[%s10963_s23 + $0x44] sm:$0xf]  ;;  %v3967_v47 = vrot.slane %v3965_v30, 6  ;;  %v3141_v16 = vshrl.u32 %v2960_v44, 16  ;;  %v3839_v55 = vld [vmem:[%s10963_s23 + $0x4c] sm:$0xf] }
 0x1a7   : > { %v3606_v45 = vrot.slane %v12915_v37, 6  ;;  %v3604_v62 = vsel %vm12727_vm6, %v3602_v15, %v3603_v33  ;;  %v3838_v33 = vld [vmem:[%s10963_s23 + $0x48] sm:$0xf] }
 0x1a8   : > { %v2802_v7 = vpop.permute.xlu1 %2801  ;;  %v2800_v24 = vpop.permute.xlu0 %2799  ;;  %v3971_v41 = vor.u32 %v3970_v61, %v3967_v47  ;;  %v3143_v47 = vrot.slane %v3141_v16, 5  ;;  %v3146_v61 = vrot.slane %v3144_v49, 6 }
 0x1a9   : > { %2909 = vst.msk [vmem:[#allocation3 + $0x4] sm:$0xf] %vm2907_vm11, %v2802_v7  ;;  %2908 = vst.msk [vmem:[#allocation3] sm:$0xf] %vm2907_vm11, %v2800_v24  ;;  %v3981_v7 = vor.u32 %v3980_v8, %v3977_v21  ;;  %v3116_v24 = vrot.slane %v3114_v11, 6  ;;  %v3607_v25 = vsel %vm12727_vm6, %v3605_v26, %v3606_v45  ;;  %v3998_v21 = vshll.u32 %v3838_v33, 16 }
 0x1aa   : > { %4247 = vrot.lane.b32.xlu1 %v3952_v39, %s10838_s25  ;;  %4245 = vrot.lane.b32.xlu0 %v3942_v28, %s10838_s25  ;;  %v2958_v39 = vld [vmem:[%s10963_s23 + $0x4c] sm:$0xf]  ;;  %v3972_v34 = vsel %vm12775_vm10, %v3963_v13, %v3971_v41  ;;  %v3609_v8 = vrot.slane %v3507_v48, 6  ;;  %v12971_v26 = vor.u32 %v3146_v61, %v3143_v47  ;;  %v4008_v13 = vshll.u32 %v3839_v55, 16 }
 0x1ab   : > { %v3121_v14 = vshrl.u32 %v2958_v39, 16  ;;  %v3124_v58 = vshll.u32 %v2958_v39, 16  ;;  %v3983_v27 = vrot.slane %v3981_v7, 4  ;;  %v3117_v30 = vor.u32 %v3116_v24, %v3113_v18  ;;  %v3508_v39 = vld [vmem:[%s10963_s23 + $0x4c] sm:$0xf] }
 0x1ac   : > { %v2806_v57 = vpop.permute.xlu1 %2805  ;;  %v2804_v20 = vpop.permute.xlu0 %2803  ;;  %v3841_v18 = vld [vmem:[%s10963_s23 + $0x54] sm:$0xf]  ;;  %v3608_v24 = vrot.slane %v3606_v45, 4  ;;  %v3611_v31 = vrot.slane %v3609_v8, 4 }
 0x1ad   : > { %2911 = vst.msk [vmem:[#allocation3 + $0xc] sm:$0xf] %vm2907_vm11, %v2806_v57  ;;  %2910 = vst.msk [vmem:[#allocation3 + $0x8] sm:$0xf] %vm2907_vm11, %v2804_v20  ;;  %v12946_v57 = vor.u32 %v3990_v2, %v3987_v3  ;;  %v3973_v20 = vrot.slane %v3971_v41, 4  ;;  %v3123_v42 = vrot.slane %v3121_v14, 5  ;;  %v3118_v50 = vsel %vm12508_vm0, %v3109_v32, %v3117_v30 }
 0x1ae   : > { %3367 = vrot.lane.b32.xlu1 %v3088_v56, %s10836_s14  ;;  %3365 = vrot.lane.b32.xlu0 %v3078_v9, %s10836_s14  ;;  %v3131_v9 = vshrl.u32 %v2959_v17, 16  ;;  %v3126_v63 = vrot.slane %v3124_v58, 6  ;;  %v4005_v17 = vshrl.u32 %v3839_v55, 16  ;;  %v4000_v2 = vrot.slane %v3998_v21, 7 }
 0x1af   : > { %v3992_v60 = vsel %vm12775_vm10, %v3983_v27, %v12946_v57  ;;  %v4025_v45 = vshrl.u32 %v3841_v18, 16  ;;  %v4028_v27 = vshll.u32 %v3841_v18, 16 }
 0x1b0   : > { %v2810_v19 = vpop.permute.xlu1 %2809  ;;  %v2808_v35 = vpop.permute.xlu0 %2807  ;;  %v3133_v29 = vrot.slane %v3131_v9, 5 }
 0x1b1   : > { %2913 = vst.msk [vmem:[#allocation3 + $0x14] sm:$0xf] %vm2907_vm11, %v2810_v19  ;;  %2912 = vst.msk [vmem:[#allocation3 + $0x10] sm:$0xf] %vm2907_vm11, %v2808_v35  ;;  %v3127_v19 = vor.u32 %v3126_v63, %v3123_v42  ;;  %v3610_v42 = vsel %vm12727_vm6, %v3608_v24, %v3609_v8  ;;  %v4027_v47 = vrot.slane %v4025_v45, 6  ;;  %v4030_v61 = vrot.slane %v4028_v27, 7 }
 0x1b2   : > { %3371 = vrot.lane.b32.xlu1 %v3108_v22, %s10836_s14  ;;  %3369 = vrot.lane.b32.xlu0 %v3098_v53, %s10836_s14  ;;  %v3982_v22 = vsel %vm12775_vm10, %v3973_v20, %v3981_v7  ;;  %v3119_v53 = vrot.slane %v3117_v30, 4  ;;  %v3137_v35 = vor.u32 %v3136_v46, %v3133_v29  ;;  %v3612_v7 = vrot.slane %v3508_v39, 6 }
 0x1b3   : > { %v3129_v15 = vrot.slane %v3127_v19, 4  ;;  %v4010_v20 = vrot.slane %v4008_v13, 7 }
 0x1b4   : > { %v2814_v28 = vpop.permute.xlu1 %2813  ;;  %v2812_v10 = vpop.permute.xlu0 %2811  ;;  %v3128_v11 = vsel %vm12508_vm0, %v3119_v53, %v3127_v19  ;;  %v3613_v16 = vsel %vm12727_vm6, %v3611_v31, %v3612_v7  ;;  %v2963_v19 = vld [vmem:[%s10963_s23 + $0x60] sm:$0xf]  ;;  %v3149_v31 = vrot.slane %v12971_v26, 4 }
 0x1b5   : > { %2915 = vst.msk [vmem:[#allocation3 + $0x1c] sm:$0xf] %vm2907_vm11, %v2814_v28  ;;  %2914 = vst.msk [vmem:[#allocation3 + $0x18] sm:$0xf] %vm2907_vm11, %v2812_v10  ;;  %v3840_v28 = vld [vmem:[%s10963_s23 + $0x50] sm:$0xf]  ;;  %v3138_v9 = vsel %vm12508_vm0, %v3129_v15, %v3137_v35 }
 0x1b6   : > { %3698 = vrot.lane.b32.xlu1 %v3601_v54, %s10837_s21  ;;  %3696 = vrot.lane.b32.xlu0 %v3598_v43, %s10837_s21  ;;  %v3995_v43 = vshrl.u32 %v3838_v33, 16  ;;  %v3139_v54 = vrot.slane %v3137_v35, 4  ;;  %v4015_v14 = vshrl.u32 %v3840_v28, 16  ;;  %v4018_v58 = vshll.u32 %v3840_v28, 16  ;;  %v2964_v15 = vld [vmem:[%s10963_s23 + $0x64] sm:$0xf] }
 0x1b7   : > { %v3993_v33 = vrot.slane %v12946_v57, 4  ;;  %v3174_v8 = vshll.u32 %v2963_v19, 16  ;;  %v3184_v24 = vshll.u32 %v2964_v15, 16 }
 0x1b8   : > { %v2818_v56 = vpop.permute.xlu1 %2817  ;;  %v2816_v5 = vpop.permute.xlu0 %2815  ;;  %v3997_v3 = vrot.slane %v3995_v43, 6  ;;  %v4017_v63 = vrot.slane %v4015_v14, 6  ;;  %v4020_v29 = vrot.slane %v4018_v58, 7 }
 0x1b9   : > { %2917 = vst.msk [vmem:[#allocation3 + $0x24] sm:$0xf] %vm2907_vm11, %v2818_v56  ;;  %2916 = vst.msk [vmem:[#allocation3 + $0x20] sm:$0xf] %vm2907_vm11, %v2816_v5  ;;  %v3615_v56 = vrot.slane %v3509_v36, 6  ;;  %v3176_v18 = vrot.slane %v3174_v8, 6 }
 0x1ba   : > { %3702 = vrot.lane.b32.xlu1 %v3607_v25, %s10837_s21  ;;  %3700 = vrot.lane.b32.xlu0 %v3604_v62, %s10837_s21  ;;  %v2961_v25 = vld [vmem:[%s10963_s23 + $0x58] sm:$0xf]  ;;  %v3148_v62 = vsel %vm12508_vm0, %v3139_v54, %v12971_v26  ;;  %v4001_v37 = vor.u32 %v4000_v2, %v3997_v3 }
 0x1bb   : > { %v3151_v30 = vshrl.u32 %v2961_v25, 16  ;;  %v3154_v46 = vshll.u32 %v2961_v25, 16  ;;  %v3617_v49 = vrot.slane %v3615_v56, 4 }
 0x1bc   : > { %v2822_v6 = vpop.permute.xlu1 %2821  ;;  %v2820_v4 = vpop.permute.xlu0 %2819  ;;  %v4003_v35 = vrot.slane %v4001_v37, 4  ;;  %v4002_v28 = vsel %vm12775_vm10, %v3993_v33, %v4001_v37  ;;  %v3511_v37 = vld [vmem:[%s10963_s23 + $0x58] sm:$0xf]  ;;  %v3513_v33 = vld [vmem:[%s10963_s23 + $0x60] sm:$0xf] }
 0x1bd   : > { %2919 = vst.msk [vmem:[#allocation3 + $0x2c] sm:$0xf] %vm2907_vm11, %v2822_v6  ;;  %2918 = vst.msk [vmem:[#allocation3 + $0x28] sm:$0xf] %vm2907_vm11, %v2820_v4  ;;  %v3614_v4 = vrot.slane %v3612_v7, 4  ;;  %v3153_v48 = vrot.slane %v3151_v30, 5 }
 0x1be   : > { %4251 = vrot.lane.b32.xlu1 %v3972_v34, %s10838_s25  ;;  %4249 = vrot.lane.b32.xlu0 %v3962_v59, %s10838_s25  ;;  %v12990_v34 = vld [vmem:[%s10963_s23 + $0x54] sm:$0xf]  ;;  %v4007_v59 = vrot.slane %v4005_v17, 6  ;;  %v3181_v7 = vshrl.u32 %v2964_v15, 16  ;;  %v3843_v30 = vld [vmem:[%s10963_s23 + $0x5c] sm:$0xf] }
 0x1bf   : > { %v3618_v6 = vrot.slane %v12990_v34, 6  ;;  %v3616_v21 = vsel %vm12727_vm6, %v3614_v4, %v3615_v56  ;;  %v3842_v56 = vld [vmem:[%s10963_s23 + $0x58] sm:$0xf] }
 0x1c0   : > { %v2826_v0 = vpop.permute.xlu1 %2825  ;;  %v2824_v23 = vpop.permute.xlu0 %2823  ;;  %v4011_v32 = vor.u32 %v4010_v20, %v4007_v59  ;;  %v3183_v59 = vrot.slane %v3181_v7, 5  ;;  %v3186_v20 = vrot.slane %v3184_v24, 6 }
 0x1c1   : > { %2921 = vst.msk [vmem:[#allocation3 + $0x34] sm:$0xf] %vm2907_vm11, %v2826_v0  ;;  %2920 = vst.msk [vmem:[#allocation3 + $0x30] sm:$0xf] %vm2907_vm11, %v2824_v23  ;;  %v4021_v0 = vor.u32 %v4020_v29, %v4017_v63  ;;  %v3156_v23 = vrot.slane %v3154_v46, 6  ;;  %v3619_v57 = vsel %vm12727_vm6, %v3617_v49, %v3618_v6  ;;  %v4038_v63 = vshll.u32 %v3842_v56, 16 }
 0x1c2   : > { %4255 = vrot.lane.b32.xlu1 %v3992_v60, %s10838_s25  ;;  %4253 = vrot.lane.b32.xlu0 %v3982_v22, %s10838_s25  ;;  %v2962_v60 = vld [vmem:[%s10963_s23 + $0x5c] sm:$0xf]  ;;  %v4012_v39 = vsel %vm12775_vm10, %v4003_v35, %v4011_v32  ;;  %v3621_v29 = vrot.slane %v3511_v37, 6  ;;  %v13046_v49 = vor.u32 %v3186_v20, %v3183_v59  ;;  %v4048_v35 = vshll.u32 %v3843_v30, 16 }
 0x1c3   : > { %v3161_v55 = vshrl.u32 %v2962_v60, 16  ;;  %v3164_v43 = vshll.u32 %v2962_v60, 16  ;;  %v4023_v36 = vrot.slane %v4021_v0, 4  ;;  %v3157_v17 = vor.u32 %v3156_v23, %v3153_v48  ;;  %v3512_v60 = vld [vmem:[%s10963_s23 + $0x5c] sm:$0xf] }
 0x1c4   : > { %v2830_v10 = vpop.permute.xlu1 %2829  ;;  %v2828_v41 = vpop.permute.xlu0 %2827  ;;  %v3845_v48 = vld [vmem:[%s10963_s23 + $0x64] sm:$0xf]  ;;  %v3620_v23 = vrot.slane %v3618_v6, 4  ;;  %v3623_v8 = vrot.slane %v3621_v29, 4 }
 0x1c5   : > { %2923 = vst.msk [vmem:[#allocation3 + $0x3c] sm:$0xf] %vm2907_vm11, %v2830_v10  ;;  %2922 = vst.msk [vmem:[#allocation3 + $0x38] sm:$0xf] %vm2907_vm11, %v2828_v41  ;;  %v13021_v10 = vor.u32 %v4030_v61, %v4027_v47  ;;  %v4013_v41 = vrot.slane %v4011_v32, 4  ;;  %v3163_v13 = vrot.slane %v3161_v55, 5  ;;  %v3158_v26 = vsel %vm12508_vm0, %v3149_v31, %v3157_v17 }
 0x1c6   : > { %3375 = vrot.lane.b32.xlu1 %v3128_v11, %s10836_s14  ;;  %3373 = vrot.lane.b32.xlu0 %v3118_v50, %s10836_s14  ;;  %v3171_v50 = vshrl.u32 %v2963_v19, 16  ;;  %v3166_v3 = vrot.slane %v3164_v43, 6  ;;  %v4045_v19 = vshrl.u32 %v3843_v30, 16  ;;  %v4040_v61 = vrot.slane %v4038_v63, 7 }
 0x1c7   : > { %v4032_v25 = vsel %vm12775_vm10, %v4023_v36, %v13021_v10  ;;  %v4065_v6 = vshrl.u32 %v3845_v48, 16  ;;  %v4068_v36 = vshll.u32 %v3845_v48, 16 }
 0x1c8   : > { %v2834_v5 = vpop.permute.xlu1 %2833  ;;  %v2832_v44 = vpop.permute.xlu0 %2831  ;;  %v3173_v2 = vrot.slane %v3171_v50, 5 }
 0x1c9   : > { %2925 = vst.msk [vmem:[#allocation3 + $0x44] sm:$0xf] %vm2907_vm11, %v2834_v5  ;;  %2924 = vst.msk [vmem:[#allocation3 + $0x40] sm:$0xf] %vm2907_vm11, %v2832_v44  ;;  %v3167_v5 = vor.u32 %v3166_v3, %v3163_v13  ;;  %v3622_v13 = vsel %vm12727_vm6, %v3620_v23, %v3621_v29  ;;  %v4067_v59 = vrot.slane %v4065_v6, 6  ;;  %v4070_v20 = vrot.slane %v4068_v36, 7 }
 0x1ca   : > { %3379 = vrot.lane.b32.xlu1 %v3148_v62, %s10836_s14  ;;  %3377 = vrot.lane.b32.xlu0 %v3138_v9, %s10836_s14  ;;  %v4022_v62 = vsel %vm12775_vm10, %v4013_v41, %v4021_v0  ;;  %v3159_v9 = vrot.slane %v3157_v17, 4  ;;  %v3177_v44 = vor.u32 %v3176_v18, %v3173_v2  ;;  %v3624_v0 = vrot.slane %v3512_v60, 6 }
 0x1cb   : > { %v3169_v4 = vrot.slane %v3167_v5, 4  ;;  %v4050_v41 = vrot.slane %v4048_v35, 7 }
 0x1cc   : > { %v2838_v22 = vpop.permute.xlu1 %2837  ;;  %v2836_v53 = vpop.permute.xlu0 %2835  ;;  %v3168_v46 = vsel %vm12508_vm0, %v3159_v9, %v3167_v5  ;;  %v3625_v7 = vsel %vm12727_vm6, %v3623_v8, %v3624_v0  ;;  %v2967_v5 = vld [vmem:[%s10963_s23 + $0x70] sm:$0xf] }
 0x1cd   : > { %2927 = vst.msk [vmem:[#allocation3 + $0x4c] sm:$0xf] %vm2907_vm11, %v2838_v22  ;;  %2926 = vst.msk [vmem:[#allocation3 + $0x48] sm:$0xf] %vm2907_vm11, %v2836_v53  ;;  %v3844_v22 = vld [vmem:[%s10963_s23 + $0x60] sm:$0xf]  ;;  %v3178_v50 = vsel %vm12508_vm0, %v3169_v4, %v3177_v44 }
 0x1ce   : > { %3706 = vrot.lane.b32.xlu1 %v3613_v16, %s10837_s21  ;;  %3704 = vrot.lane.b32.xlu0 %v3610_v42, %s10837_s21  ;;  %v4035_v42 = vshrl.u32 %v3842_v56, 16  ;;  %v3179_v16 = vrot.slane %v3177_v44, 4  ;;  %v4055_v55 = vshrl.u32 %v3844_v22, 16  ;;  %v4058_v43 = vshll.u32 %v3844_v22, 16  ;;  %v2968_v4 = vld [vmem:[%s10963_s23 + $0x74] sm:$0xf] }
 0x1cf   : > { %v4033_v56 = vrot.slane %v13021_v10, 4  ;;  %v3214_v29 = vshll.u32 %v2967_v5, 16  ;;  %v3224_v23 = vshll.u32 %v2968_v4, 16 }
 0x1d0   : > { %v2842_v11 = vpop.permute.xlu1 %2841  ;;  %v2840_v54 = vpop.permute.xlu0 %2839  ;;  %v4037_v47 = vrot.slane %v4035_v42, 6  ;;  %v4057_v3 = vrot.slane %v4055_v55, 6  ;;  %v4060_v2 = vrot.slane %v4058_v43, 7 }
 0x1d1   : > { %2929 = vst.msk [vmem:[#allocation3 + $0x54] sm:$0xf] %vm2907_vm11, %v2842_v11  ;;  %2928 = vst.msk [vmem:[#allocation3 + $0x50] sm:$0xf] %vm2907_vm11, %v2840_v54  ;;  %v3627_v11 = vrot.slane %v3513_v33, 6  ;;  %v3216_v48 = vrot.slane %v3214_v29, 6 }
 0x1d2   : > { %3710 = vrot.lane.b32.xlu1 %v3619_v57, %s10837_s21  ;;  %3708 = vrot.lane.b32.xlu0 %v3616_v21, %s10837_s21  ;;  %v2965_v57 = vld [vmem:[%s10963_s23 + $0x68] sm:$0xf]  ;;  %v3188_v21 = vsel %vm12508_vm0, %v3179_v16, %v13046_v49  ;;  %v4041_v34 = vor.u32 %v4040_v61, %v4037_v47 }
 0x1d3   : > { %v3191_v17 = vshrl.u32 %v2965_v57, 16  ;;  %v3194_v18 = vshll.u32 %v2965_v57, 16  ;;  %v3629_v24 = vrot.slane %v3627_v11, 4  ;;  %v3846_v57 = vld [vmem:[%s10963_s23 + $0x68] sm:$0xf] }
 0x1d4   : > { %v2846_v14 = vpop.permute.xlu1 %2845  ;;  %v2844_v58 = vpop.permute.xlu0 %2843  ;;  %v4043_v44 = vrot.slane %v4041_v34, 4  ;;  %v4042_v22 = vsel %vm12775_vm10, %v4033_v56, %v4041_v34  ;;  %v3515_v34 = vld [vmem:[%s10963_s23 + $0x68] sm:$0xf]  ;;  %v13126_v56 = vld [vmem:[%s10963_s23 + $0x70] sm:$0xf] }
 0x1d5   : > { %2931 = vst.msk [vmem:[#allocation3 + $0x5c] sm:$0xf] %vm2907_vm11, %v2846_v14  ;;  %2930 = vst.msk [vmem:[#allocation3 + $0x58] sm:$0xf] %vm2907_vm11, %v2844_v58  ;;  %v3626_v58 = vrot.slane %v3624_v0, 4  ;;  %v3193_v37 = vrot.slane %v3191_v17, 5 }
 0x1d6   : > { %4259 = vrot.lane.b32.xlu1 %v4012_v39, %s10838_s25  ;;  %4257 = vrot.lane.b32.xlu0 %v4002_v28, %s10838_s25  ;;  %v13065_v39 = vld [vmem:[%s10963_s23 + $0x64] sm:$0xf]  ;;  %v4047_v28 = vrot.slane %v4045_v19, 6  ;;  %v3221_v0 = vshrl.u32 %v2968_v4, 16  ;;  %v4075_v17 = vshrl.u32 %v3846_v57, 16  ;;  %v3639_v29 = vrot.slane %v13126_v56, 6 }
 0x1d7   : > { %v3630_v14 = vrot.slane %v13065_v39, 6  ;;  %v3628_v63 = vsel %vm12727_vm6, %v3626_v58, %v3627_v11  ;;  %v3189_v11 = vrot.slane %v13046_v49, 4 }
 0x1d8   : > { %v2850_v45 = vpop.permute.xlu1 %2849  ;;  %v2848_v27 = vpop.permute.xlu0 %2847  ;;  %v4051_v31 = vor.u32 %v4050_v41, %v4047_v28  ;;  %v3223_v28 = vrot.slane %v3221_v0, 5  ;;  %v3226_v41 = vrot.slane %v3224_v23, 6  ;;  %v3641_v23 = vrot.slane %v3639_v29, 4 }
 0x1d9   : > { %2933 = vst.msk [vmem:[#allocation3 + $0x64] sm:$0xf] %vm2907_vm11, %v2850_v45  ;;  %2932 = vst.msk [vmem:[#allocation3 + $0x60] sm:$0xf] %vm2907_vm11, %v2848_v27  ;;  %v4061_v45 = vor.u32 %v4060_v2, %v4057_v3  ;;  %v3196_v27 = vrot.slane %v3194_v18, 6  ;;  %v3631_v10 = vsel %vm12727_vm6, %v3629_v24, %v3630_v14  ;;  %v3633_v2 = vrot.slane %v3515_v34, 6 }
 0x1da   : > { %4263 = vrot.lane.b32.xlu1 %v4032_v25, %s10838_s25  ;;  %4261 = vrot.lane.b32.xlu0 %v4022_v62, %s10838_s25  ;;  %v2966_v25 = vld [vmem:[%s10963_s23 + $0x6c] sm:$0xf]  ;;  %v4052_v60 = vsel %vm12775_vm10, %v4043_v44, %v4051_v31  ;;  %v3848_v18 = vld [vmem:[%s10963_s23 + $0x70] sm:$0xf]  ;;  %v13122_v58 = vor.u32 %v3226_v41, %v3223_v28 }
 0x1db   : > { %v3201_v30 = vshrl.u32 %v2966_v25, 16  ;;  %v3204_v42 = vshll.u32 %v2966_v25, 16  ;;  %v4063_v33 = vrot.slane %v4061_v45, 4  ;;  %v3197_v19 = vor.u32 %v3196_v27, %v3193_v37  ;;  %v3847_v3 = vld [vmem:[%s10963_s23 + $0x6c] sm:$0xf] }
 0x1dc   : > { %v2854_v53 = vpop.permute.xlu1 %2853  ;;  %v2852_v32 = vpop.permute.xlu0 %2851  ;;  %v4095_v37 = vshrl.u32 %v3848_v18, 16 }
 0x1dd   : > { %2935 = vst.msk [vmem:[#allocation3 + $0x6c] sm:$0xf] %vm2907_vm11, %v2854_v53  ;;  %2934 = vst.msk [vmem:[#allocation3 + $0x68] sm:$0xf] %vm2907_vm11, %v2852_v32  ;;  %v13096_v53 = vor.u32 %v4070_v20, %v4067_v59  ;;  %v4053_v32 = vrot.slane %v4051_v31, 4  ;;  %v3203_v35 = vrot.slane %v3201_v30, 5  ;;  %v3198_v49 = vsel %vm12508_vm0, %v3189_v11, %v3197_v19 }
 0x1de   : > { %3383 = vrot.lane.b32.xlu1 %v3168_v46, %s10836_s14  ;;  %3381 = vrot.lane.b32.xlu0 %v3158_v26, %s10836_s14  ;;  %v3211_v26 = vshrl.u32 %v2967_v5, 16  ;;  %v3206_v47 = vrot.slane %v3204_v42, 6  ;;  %v3199_v8 = vrot.slane %v3197_v19, 4  ;;  %v4077_v5 = vrot.slane %v4075_v17, 6  ;;  %v3849_v42 = vld [vmem:[%s10963_s23 + $0x74] sm:$0xf] }
 0x1df   : > { %v4085_v59 = vshrl.u32 %v3847_v3, 16  ;;  %v4088_v20 = vshll.u32 %v3847_v3, 16  ;;  %v3632_v30 = vrot.slane %v3630_v14, 4  ;;  %v4097_v14 = vrot.slane %v4095_v37, 6 }
 0x1e0   : > { %v2858_v54 = vpop.permute.xlu1 %2857  ;;  %v2856_v15 = vpop.permute.xlu0 %2855  ;;  %v3213_v61 = vrot.slane %v3211_v26, 5  ;;  %v3635_v26 = vrot.slane %v3633_v2, 4  ;;  %v4105_v19 = vshrl.u32 %v3849_v42, 16  ;;  %v4073_v11 = vrot.slane %v13096_v53, 4 }
 0x1e1   : > { %2937 = vst.msk [vmem:[#allocation3 + $0x74] sm:$0xf] %vm2907_vm11, %v2858_v54  ;;  %2936 = vst.msk [vmem:[#allocation3 + $0x70] sm:$0xf] %vm2907_vm11, %v2856_v15  ;;  %v3207_v54 = vor.u32 %v3206_v47, %v3203_v35  ;;  %v4090_v39 = vrot.slane %v4088_v20, 7  ;;  %v4108_v35 = vshll.u32 %v3849_v42, 16  ;;  %v3634_v47 = vsel %vm12727_vm6, %v3632_v30, %v3633_v2 }
 0x1e2   : > { %3387 = vrot.lane.b32.xlu1 %v3188_v21, %s10836_s14  ;;  %3385 = vrot.lane.b32.xlu0 %v3178_v50, %s10836_s14  ;;  %v4072_v21 = vsel %vm12775_vm10, %v4063_v33, %v13096_v53  ;;  %v4062_v50 = vsel %vm12775_vm10, %v4053_v32, %v4061_v45  ;;  %v3217_v15 = vor.u32 %v3216_v48, %v3213_v61  ;;  %v4098_v45 = vshll.u32 %v3848_v18, 16 }
 0x1e3   : > { %v3209_v25 = vrot.slane %v3207_v54, 4  ;;  %v4087_v32 = vrot.slane %v4085_v59, 6  ;;  %v4107_v41 = vrot.slane %v4105_v19, 6  ;;  %v4110_v34 = vrot.slane %v4108_v35, 7  ;;  %v3851_v35 = vld [vmem:[%s10963_s23 + $0x7c] sm:$0xf] }
 0x1e4   : > { %v2862_v62 = vpop.permute.xlu1 %2861  ;;  %v2860_v9 = vpop.permute.xlu0 %2859  ;;  %v3219_v24 = vrot.slane %v3217_v15, 4  ;;  %v4100_v33 = vrot.slane %v4098_v45, 7 }
 0x1e5   : > { %2939 = vst.msk [vmem:[#allocation3 + $0x7c] sm:$0xf] %vm2907_vm11, %v2862_v62  ;;  %2938 = vst.msk [vmem:[#allocation3 + $0x78] sm:$0xf] %vm2907_vm11, %v2860_v9  ;;  %v3516_v62 = vld [vmem:[%s10963_s23 + $0x6c] sm:$0xf] }
 0x1e6   : > { %3714 = vrot.lane.b32.xlu1 %v3625_v7, %s10837_s21  ;;  %3712 = vrot.lane.b32.xlu0 %v3622_v13, %s10837_s21  ;;  %v4078_v13 = vshll.u32 %v3846_v57, 16  ;;  %v3208_v7 = vsel %vm12508_vm0, %v3199_v8, %v3207_v54  ;;  %v3636_v27 = vrot.slane %v3516_v62, 6  ;;  %v2970_v57 = vld [vmem:[%s10963_s23 + $0x7c] sm:$0xf]  ;;  %v4091_v8 = vor.u32 %v4090_v39, %v4087_v32  ;;  %v2971_v54 = vld [vmem:[%s10963_s23 + $0x80] sm:$0xf] }
 0x1e7   : > { %v4101_v28 = vor.u32 %v4100_v33, %v4097_v14  ;;  %v3241_v17 = vshrl.u32 %v2970_v57, 16  ;;  %v3254_v2 = vshll.u32 %v2971_v54, 16  ;;  %v3519_v39 = vld [vmem:[%s10963_s23 + $0x78] sm:$0xf] }
 0x1e8   : > { %v2866_v46 = vpop.permute.xlu1 %2865  ;;  %v2864_v16 = vpop.permute.xlu0 %2863  ;;  %v4080_v44 = vrot.slane %v4078_v13, 7  ;;  %v3637_v0 = vsel %vm12727_vm6, %v3635_v26, %v3636_v27  ;;  %v3244_v13 = vshll.u32 %v2970_v57, 16 }
 0x1e9   : > { %2941 = vst.msk [vmem:[#allocation3 + $0x84] sm:$0xf] %vm2907_vm11, %v2866_v46  ;;  %2940 = vst.msk [vmem:[#allocation3 + $0x80] sm:$0xf] %vm2907_vm11, %v2864_v16  ;;  %v2969_v46 = vld [vmem:[%s10963_s23 + $0x78] sm:$0xf] }
 0x1ea   : > { %3718 = vrot.lane.b32.xlu1 %v3631_v10, %s10837_s21  ;;  %3716 = vrot.lane.b32.xlu0 %v3628_v63, %s10837_s21  ;;  %v3228_v10 = vsel %vm12508_vm0, %v3219_v24, %v13122_v58  ;;  %v3218_v63 = vsel %vm12508_vm0, %v3209_v25, %v3217_v15  ;;  %v3231_v61 = vshrl.u32 %v2969_v46, 16  ;;  %v3234_v48 = vshll.u32 %v2969_v46, 16  ;;  %v2972_v24 = vld [vmem:[%s10963_s23 + $0x84] sm:$0xf]  ;;  %v3850_v46 = vld [vmem:[%s10963_s23 + $0x78] sm:$0xf] }
 0x1eb   : > { %v4103_v56 = vrot.slane %v4101_v28, 4  ;;  %v3246_v59 = vrot.slane %v3244_v13, 6  ;;  %v3256_v37 = vrot.slane %v3254_v2, 6  ;;  %v3261_v45 = vshrl.u32 %v2972_v24, 16 }
 0x1ec   : > { %v2870_v55 = vpop.permute.xlu1 %2869  ;;  %v2868_v43 = vpop.permute.xlu0 %2867 }
 0x1ed   : > { %2943 = vst.msk [vmem:[#allocation3 + $0x8c] sm:$0xf] %vm2907_vm11, %v2870_v55  ;;  %2942 = vst.msk [vmem:[#allocation3 + $0x88] sm:$0xf] %vm2907_vm11, %v2868_v43  ;;  %v3638_v43 = vrot.slane %v3636_v27, 4  ;;  %v3264_v27 = vshll.u32 %v2972_v24, 16 }
 0x1ee   : > { %4267 = vrot.lane.b32.xlu1 %v4052_v60, %s10838_s25  ;;  %4265 = vrot.lane.b32.xlu0 %v4042_v22, %s10838_s25  ;;  %v13143_v60 = vld [vmem:[%s10963_s23 + $0x74] sm:$0xf]  ;;  %v4081_v22 = vor.u32 %v4080_v44, %v4077_v5  ;;  %v3243_v44 = vrot.slane %v3241_v17, 5  ;;  %vm4992_vm11 = vcmask 1040384  }
 0x1ef   : > { %v3642_v55 = vrot.slane %v13143_v60, 6  ;;  %v3640_v3 = vsel %vm12727_vm6, %v3638_v43, %v3639_v29  ;;  %v3229_v29 = vrot.slane %v13122_v58, 4  ;;  %v3266_v32 = vrot.slane %v3264_v27, 6 }
 0x1f0   : > { %v3352_v6 = vpop.permute.xlu1 %3351  ;;  %v3350_v36 = vpop.permute.xlu0 %3349  ;;  %v4083_v15 = vrot.slane %v4081_v22, 4  ;;  %v4082_v62 = vsel %vm12775_vm10, %v4073_v11, %v4081_v22  ;;  %v3263_v22 = vrot.slane %v3261_v45, 5 }
 0x1f1   : > { %3459 = vst.msk [vmem:[#allocation3 + $0x4] sm:$0xf] %vm3457_vm13, %v3352_v6  ;;  %3458 = vst.msk [vmem:[#allocation3] sm:$0xf] %vm3457_vm13, %v3350_v36  ;;  %v3233_v6 = vrot.slane %v3231_v61, 5  ;;  %v3236_v36 = vrot.slane %v3234_v48, 6  ;;  %v3643_v53 = vsel %vm12727_vm6, %v3641_v23, %v3642_v55 }
 0x1f2   : > { %4271 = vrot.lane.b32.xlu1 %v4072_v21, %s10838_s25  ;;  %4269 = vrot.lane.b32.xlu0 %v4062_v50, %s10838_s25  ;;  %v4092_v25 = vsel %vm12775_vm10, %v4083_v15, %v4091_v8  ;;  %v4118_v61 = vshll.u32 %v3850_v46, 16  ;;  %v3520_v48 = vld [vmem:[%s10963_s23 + $0x7c] sm:$0xf]  ;;  %v13200_v57 = vor.u32 %v3266_v32, %v3263_v22  ;;  %v3644_v13 = vrot.slane %v3642_v55, 4  ;;  %v3853_v55 = vld [vmem:[%s10963_s23 + $0x84] sm:$0xf] }
 0x1f3   : > { %v3237_v5 = vor.u32 %v3236_v36, %v3233_v6  ;;  %v4128_v6 = vshll.u32 %v3851_v35, 16  ;;  %v3648_v17 = vrot.slane %v3520_v48, 6 }
 0x1f4   : > { %v3356_v9 = vpop.permute.xlu1 %3355  ;;  %v3354_v31 = vpop.permute.xlu0 %3353 }
 0x1f5   : > { %3461 = vst.msk [vmem:[#allocation3 + $0xc] sm:$0xf] %vm3457_vm13, %v3356_v9  ;;  %3460 = vst.msk [vmem:[#allocation3 + $0x8] sm:$0xf] %vm3457_vm13, %v3354_v31  ;;  %v13174_v9 = vor.u32 %v4110_v34, %v4107_v41  ;;  %v4093_v31 = vrot.slane %v4091_v8, 4  ;;  %v3239_v26 = vrot.slane %v3237_v5, 4  ;;  %v3238_v58 = vsel %vm12508_vm0, %v3229_v29, %v3237_v5 }
 0x1f6   : > { %3391 = vrot.lane.b32.xlu1 %v3208_v7, %s10836_s14  ;;  %3389 = vrot.lane.b32.xlu0 %v3198_v49, %s10836_s14  ;;  %v3251_v49 = vshrl.u32 %v2971_v54, 16  ;;  %v3852_v8 = vld [vmem:[%s10963_s23 + $0x80] sm:$0xf]  ;;  %v4120_v34 = vrot.slane %v4118_v61, 7  ;;  %v4130_v5 = vrot.slane %v4128_v6, 7 }
 0x1f7   : > { %v4138_v24 = vshll.u32 %v3852_v8, 16  ;;  %v2975_v29 = vld [vmem:[%s10963_s23 + $0x90] sm:$0xf]  ;;  %v4113_v22 = vrot.slane %v13174_v9, 4 }
 0x1f8   : > { %v3683_v16 = vpop.permute.xlu1 %3682  ;;  %v3681_v4 = vpop.permute.xlu0 %3680  ;;  %v3253_v20 = vrot.slane %v3251_v49, 5  ;;  %v3294_v61 = vshll.u32 %v2975_v29, 16 }
 0x1f9   : > { %3790 = vst.msk [vmem:[#allocation3 + $0x4] sm:$0xf] %vm3788_vm14, %v3683_v16  ;;  %3789 = vst.msk [vmem:[#allocation3] sm:$0xf] %vm3788_vm14, %v3681_v4  ;;  %v3247_v16 = vor.u32 %v3246_v59, %v3243_v44 }
 0x1fa   : > { %3395 = vrot.lane.b32.xlu1 %v3228_v10, %s10836_s14  ;;  %3393 = vrot.lane.b32.xlu0 %v3218_v63, %s10836_s14  ;;  %v4112_v10 = vsel %vm12775_vm10, %v4103_v56, %v13174_v9  ;;  %v4102_v63 = vsel %vm12775_vm10, %v4093_v31, %v4101_v28  ;;  %v3257_v4 = vor.u32 %v3256_v37, %v3253_v20  ;;  %v4125_v28 = vshrl.u32 %v3851_v35, 16 }
 0x1fb   : > { %v3248_v23 = vsel %vm12508_vm0, %v3239_v26, %v3247_v16  ;;  %v3650_v31 = vrot.slane %v3648_v17, 4  ;;  %v4148_v26 = vshll.u32 %v3853_v55, 16 }
 0x1fc   : > { %v3687_v21 = vpop.permute.xlu1 %3686  ;;  %v3685_v50 = vpop.permute.xlu0 %3684  ;;  %v3259_v43 = vrot.slane %v3257_v4, 4  ;;  %v4127_v60 = vrot.slane %v4125_v28, 6 }
 0x1fd   : > { %3792 = vst.msk [vmem:[#allocation3 + $0xc] sm:$0xf] %vm3788_vm14, %v3687_v21  ;;  %3791 = vst.msk [vmem:[#allocation3 + $0x8] sm:$0xf] %vm3788_vm14, %v3685_v50  ;;  %v3249_v21 = vrot.slane %v3247_v16, 4 }
 0x1fe   : > { %3722 = vrot.lane.b32.xlu1 %v3637_v0, %s10837_s21  ;;  %3720 = vrot.lane.b32.xlu0 %v3634_v47, %s10837_s21  ;;  %v4115_v47 = vshrl.u32 %v3850_v46, 16  ;;  %v3645_v0 = vrot.slane %v3519_v39, 6  ;;  %v3521_v50 = vld [vmem:[%s10963_s23 + $0x80] sm:$0xf]  ;;  %v3268_v49 = vsel %vm12508_vm0, %v3259_v43, %v13200_v57  ;;  %v4131_v39 = vor.u32 %v4130_v5, %v4127_v60  ;;  %v3855_v5 = vld [vmem:[%s10963_s23 + $0x8c] sm:$0xf] }
 0x1ff   : > { %v3258_v2 = vsel %vm12508_vm0, %v3249_v21, %v3257_v4  ;;  %v2976_v21 = vld [vmem:[%s10963_s23 + $0x94] sm:$0xf] }
 0x200   : > { %v4236_v18 = vpop.permute.xlu1 %4235  ;;  %v4234_v7 = vpop.permute.xlu0 %4233  ;;  %v4117_v41 = vrot.slane %v4115_v47, 6  ;;  %v3647_v36 = vrot.slane %v3645_v0, 4  ;;  %v3646_v37 = vsel %vm12727_vm6, %v3644_v13, %v3645_v0  ;;  %v3291_v47 = vshrl.u32 %v2975_v29, 16  ;;  %v3856_v29 = vld [vmem:[%s10963_s23 + $0x90] sm:$0xf] }
 0x201   : > { %4343 = vst.msk [vmem:[#allocation3 + $0x4] sm:$0xf] %vm4341_vm15, %v4236_v18  ;;  %4342 = vst.msk [vmem:[#allocation3] sm:$0xf] %vm4341_vm15, %v4234_v7  ;;  %v13217_v18 = vld [vmem:[%s10963_s23 + $0x84] sm:$0xf] }
 0x202   : > { %3726 = vrot.lane.b32.xlu1 %v3643_v53, %s10837_s21  ;;  %3724 = vrot.lane.b32.xlu0 %v3640_v3, %s10837_s21  ;;  %v3651_v53 = vrot.slane %v3521_v50, 6  ;;  %v2973_v3 = vld [vmem:[%s10963_s23 + $0x88] sm:$0xf]  ;;  %v4135_v7 = vshrl.u32 %v3852_v8, 16  ;;  %v4121_v56 = vor.u32 %v4120_v34, %v4117_v41  ;;  %v3649_v20 = vsel %vm12727_vm6, %v3647_v36, %v3648_v17 }
 0x203   : > { %v3271_v44 = vshrl.u32 %v2973_v3, 16  ;;  %v3274_v59 = vshll.u32 %v2973_v3, 16  ;;  %v3654_v27 = vrot.slane %v13217_v18, 6  ;;  %v4150_v0 = vrot.slane %v4148_v26, 7 }
 0x204   : > { %v4240_v30 = vpop.permute.xlu1 %4239  ;;  %v4238_v42 = vpop.permute.xlu0 %4237  ;;  %v3653_v45 = vrot.slane %v3651_v53, 4  ;;  %v3652_v4 = vsel %vm12727_vm6, %v3650_v31, %v3651_v53  ;;  %v4123_v32 = vrot.slane %v4121_v56, 4  ;;  %v4122_v8 = vsel %vm12775_vm10, %v4113_v22, %v4121_v56  ;;  %v3523_v31 = vld [vmem:[%s10963_s23 + $0x88] sm:$0xf] }
 0x205   : > { %4345 = vst.msk [vmem:[#allocation3 + $0xc] sm:$0xf] %vm4341_vm15, %v4240_v30  ;;  %4344 = vst.msk [vmem:[#allocation3 + $0x8] sm:$0xf] %vm4341_vm15, %v4238_v42  ;;  %v2974_v30 = vld [vmem:[%s10963_s23 + $0x8c] sm:$0xf] }
 0x206   : > { %4275 = vrot.lane.b32.xlu1 %v4092_v25, %s10838_s25  ;;  %4273 = vrot.lane.b32.xlu0 %v4082_v62, %s10838_s25  ;;  %v4137_v42 = vrot.slane %v4135_v7, 6  ;;  %v3284_v35 = vshll.u32 %v2974_v30, 16  ;;  %v3655_v9 = vsel %vm12727_vm6, %v3653_v45, %v3654_v27  ;;  %v4132_v50 = vsel %vm12775_vm10, %v4123_v32, %v4131_v39 }
 0x207   : > { %v3293_v41 = vrot.slane %v3291_v47, 5  ;;  %v3296_v34 = vrot.slane %v3294_v61, 6  ;;  %v3301_v17 = vshrl.u32 %v2976_v21, 16  ;;  %v3304_v13 = vshll.u32 %v2976_v21, 16  ;;  %v2977_v21 = vld [vmem:[%s10963_s23 + $0x98] sm:$0xf] }
 0x208   : > { %v3360_v14 = vpop.permute.xlu1 %3359  ;;  %v3358_v33 = vpop.permute.xlu0 %3357  ;;  %v10723_v19 = vld [vmem:[#allocation3] sm:$0xff]   ;;  %v3286_v28 = vrot.slane %v3284_v35, 6  ;;  %v3657_v26 = vrot.slane %v3523_v31, 6  ;;  %v4165_v22 = vshrl.u32 %v3855_v5, 16  ;;  %v4168_v32 = vshll.u32 %v3855_v5, 16 }
 0x209   : > { %3463 = vst.msk [vmem:[#allocation3 + $0x14] sm:$0xf] %vm3457_vm13, %v3360_v14  ;;  %3462 = vst.msk [vmem:[#allocation3 + $0x10] sm:$0xf] %vm3457_vm13, %v3358_v33  ;;  %10597 = vmatprep.mubr.bf16.mxu0 %v10723_v19  ;;  %v3273_v14 = vrot.slane %v3271_v44, 5  ;;  %v3276_v33 = vrot.slane %v3274_v59, 6 }
 0x20a   : > { %4279 = vrot.lane.b32.xlu1 %v4112_v10, %s10838_s25  ;;  %4277 = vrot.lane.b32.xlu0 %v4102_v63, %s10838_s25  ;;  %v4140_v10 = vrot.slane %v4138_v24, 7  ;;  %v4145_v63 = vshrl.u32 %v3853_v55, 16  ;;  %v3281_v19 = vshrl.u32 %v2974_v30, 16  ;;  %v3303_v55 = vrot.slane %v3301_v17, 5  ;;  %v3524_v30 = vld [vmem:[%s10963_s23 + $0x8c] sm:$0xf] }
 0x20b   : > { %v3306_v56 = vrot.slane %v3304_v13, 6  ;;  %v4175_v35 = vshrl.u32 %v3856_v29, 16  ;;  %v4178_v47 = vshll.u32 %v3856_v29, 16  ;;  %v3660_v61 = vrot.slane %v3524_v30, 6 }
 0x20c   : > { %v3364_v11 = vpop.permute.xlu1 %3363  ;;  %v3362_v54 = vpop.permute.xlu0 %3361  ;;  %v10724_v15 = vld [vmem:[#allocation3 + $0x8] sm:$0xff]   ;;  %v4147_v48 = vrot.slane %v4145_v63, 6  ;;  %v4167_v18 = vrot.slane %v4165_v22, 6  ;;  %v3311_v17 = vshrl.u32 %v2977_v21, 16  ;;  %v3314_v13 = vshll.u32 %v2977_v21, 16 }
 0x20d   : > { %3465 = vst.msk [vmem:[#allocation3 + $0x1c] sm:$0xf] %vm3457_vm13, %v3364_v11  ;;  %3464 = vst.msk [vmem:[#allocation3 + $0x18] sm:$0xf] %vm3457_vm13, %v3362_v54  ;;  %10598 = vmatmul.mubr.bf16.vlgmr.msra.gmra.mxu0 %v10724_v15  ;;  %v4133_v11 = vrot.slane %v4131_v39, 4  ;;  %v3277_v54 = vor.u32 %v3276_v33, %v3273_v14  ;;  %v3283_v15 = vrot.slane %v3281_v19, 5 }
 0x20e   : > { %3399 = vrot.lane.b32.xlu1 %v3248_v23, %s10836_s14  ;;  %3397 = vrot.lane.b32.xlu0 %v3238_v58, %s10836_s14  ;;  %v4141_v58 = vor.u32 %v4140_v10, %v4137_v42  ;;  %v13251_v36 = vor.u32 %v4150_v0, %v4147_v48  ;;  %v3527_v21 = vld [vmem:[%s10963_s23 + $0x98] sm:$0xf] }
 0x20f   : > { %v3279_v24 = vrot.slane %v3277_v54, 4 }
 0x210   : > { %v3691_v25 = vpop.permute.xlu1 %3690  ;;  %v3689_v62 = vpop.permute.xlu0 %3688  ;;  %v4143_v6 = vrot.slane %v4141_v58, 4  ;;  %v4142_v7 = vsel %vm12775_vm10, %v4133_v11, %v4141_v58  ;;  %v3857_v58 = vld [vmem:[%s10963_s23 + $0x94] sm:$0xf]  ;;  %v4153_v31 = vrot.slane %v13251_v36, 4 }
 0x211   : > { %3794 = vst.msk [vmem:[#allocation3 + $0x14] sm:$0xf] %vm3788_vm14, %v3691_v25  ;;  %3793 = vst.msk [vmem:[#allocation3 + $0x10] sm:$0xf] %vm3788_vm14, %v3689_v62  ;;  %v3287_v25 = vor.u32 %v3286_v28, %v3283_v15  ;;  %v3297_v62 = vor.u32 %v3296_v34, %v3293_v41  ;;  %v13296_v11 = vld [vmem:[%s10963_s23 + $0x94] sm:$0xf] }
 0x212   : > { %3403 = vrot.lane.b32.xlu1 %v3268_v49, %s10836_s14  ;;  %3401 = vrot.lane.b32.xlu0 %v3258_v2, %s10836_s14  ;;  %v3854_v49 = vld [vmem:[%s10963_s23 + $0x88] sm:$0xf]  ;;  %v3269_v2 = vrot.slane %v13200_v57, 4  ;;  %v4152_v60 = vsel %vm12775_vm10, %v4143_v6, %v13251_v36  ;;  %v4177_v15 = vrot.slane %v4175_v35, 6  ;;  %v4180_v28 = vrot.slane %v4178_v47, 7 }
 0x213   : > { %v4155_v57 = vshrl.u32 %v3854_v49, 16  ;;  %v3288_v42 = vsel %vm12508_vm0, %v3279_v24, %v3287_v25  ;;  %v3299_v10 = vrot.slane %v3297_v62, 4  ;;  %v3289_v63 = vrot.slane %v3287_v25, 4 }
 0x214   : > { %v3695_v46 = vpop.permute.xlu1 %3694  ;;  %v3693_v16 = vpop.permute.xlu0 %3692  ;;  %v3278_v45 = vsel %vm12508_vm0, %v3269_v2, %v3277_v54  ;;  %v4185_v41 = vshrl.u32 %v3857_v58, 16  ;;  %v4188_v34 = vshll.u32 %v3857_v58, 16  ;;  %v3662_v2 = vrot.slane %v3660_v61, 4 }
 0x215   : > { %3796 = vst.msk [vmem:[#allocation3 + $0x1c] sm:$0xf] %vm3788_vm14, %v3695_v46  ;;  %3795 = vst.msk [vmem:[#allocation3 + $0x18] sm:$0xf] %vm3788_vm14, %v3693_v16  ;;  %v13276_v46 = vor.u32 %v3306_v56, %v3303_v55  ;;  %v13279_v16 = vld [vmem:[%s10963_s23 + $0x90] sm:$0xf]  ;;  %v3298_v0 = vsel %vm12508_vm0, %v3289_v63, %v3297_v62  ;;  %v4181_v56 = vor.u32 %v4180_v28, %v4177_v15 }
 0x216   : > { %3730 = vrot.lane.b32.xlu1 %v3649_v20, %s10837_s21  ;;  %3728 = vrot.lane.b32.xlu0 %v3646_v37, %s10837_s21  ;;  %v4158_v37 = vshll.u32 %v3854_v49, 16  ;;  %v3666_v49 = vrot.slane %v13296_v11, 6  ;;  %v4187_v5 = vrot.slane %v4185_v41, 6 }
 0x217   : > { %v3308_v48 = vsel %vm12508_vm0, %v3299_v10, %v13276_v46 }
 0x218   : > { %v4244_v23 = vpop.permute.xlu1 %4243  ;;  %v4242_v43 = vpop.permute.xlu0 %4241  ;;  %v4160_v19 = vrot.slane %v4158_v37, 7 }
 0x219   : > { %4347 = vst.msk [vmem:[#allocation3 + $0x14] sm:$0xf] %vm4341_vm15, %v4244_v23  ;;  %4346 = vst.msk [vmem:[#allocation3 + $0x10] sm:$0xf] %vm4341_vm15, %v4242_v43  ;;  %v3659_v23 = vrot.slane %v3657_v26, 4  ;;  %v3663_v43 = vrot.slane %v13279_v16, 6 }
 0x21a   : > { %3734 = vrot.lane.b32.xlu1 %v3655_v9, %s10837_s21  ;;  %3732 = vrot.lane.b32.xlu0 %v3652_v4, %s10837_s21  ;;  %v4157_v4 = vrot.slane %v4155_v57, 6  ;;  %v3656_v9 = vrot.slane %v3654_v27, 4  ;;  %v4170_v27 = vrot.slane %v4168_v32, 7  ;;  %v4190_v57 = vrot.slane %v4188_v34, 7 }
 0x21b   : > { %v4183_v32 = vrot.slane %v4181_v56, 4  ;;  %v3669_v34 = vrot.slane %v3527_v21, 6 }
 0x21c   : > { %v4248_v53 = vpop.permute.xlu1 %4247  ;;  %v4246_v3 = vpop.permute.xlu0 %4245  ;;  %v4161_v54 = vor.u32 %v4160_v19, %v4157_v4  ;;  %v3658_v6 = vsel %vm12727_vm6, %v3656_v9, %v3657_v26  ;;  %v4171_v62 = vor.u32 %v4170_v27, %v4167_v18  ;;  %v2980_v26 = vld [vmem:[%s10963_s23 + $0xa4] sm:$0x3]  ;;  %v13327_v4 = vor.u32 %v4190_v57, %v4187_v5  ;;  %v3858_v27 = vld [vmem:[%s10963_s23 + $0x98] sm:$0xf] }
 0x21d   : > { %4349 = vst.msk [vmem:[#allocation3 + $0x1c] sm:$0xf] %vm4341_vm15, %v4248_v53  ;;  %4348 = vst.msk [vmem:[#allocation3 + $0x18] sm:$0xf] %vm4341_vm15, %v4246_v3  ;;  %v3661_v53 = vsel %vm12727_vm6, %v3659_v23, %v3660_v61  ;;  %v3665_v3 = vrot.slane %v3663_v43, 4  ;;  %v3341_v47 = vshrl.u32 %v2980_v26, 16 }
 0x21e   : > { %4283 = vrot.lane.b32.xlu1 %v4132_v50, %s10838_s25  ;;  %4281 = vrot.lane.b32.xlu0 %v4122_v8, %s10838_s25  ;;  %v4163_v55 = vrot.slane %v4161_v54, 4  ;;  %v4162_v16 = vsel %vm12775_vm10, %v4153_v31, %v4161_v54  ;;  %v4173_v22 = vrot.slane %v4171_v62, 4  ;;  %v3344_v61 = vshll.u32 %v2980_v26, 16  ;;  %v3861_v26 = vld [vmem:[%s10963_s23 + $0xa4] sm:$0x7] }
 0x21f   : > { %v3667_v36 = vsel %vm12727_vm6, %v3665_v3, %v3666_v49  ;;  %v3343_v54 = vrot.slane %v3341_v47, 5  ;;  %v3668_v57 = vrot.slane %v3666_v49, 4  ;;  %v4193_v21 = vrot.slane %v13327_v4, 4 }
 0x220   : > { %v3368_v44 = vpop.permute.xlu1 %3367  ;;  %v3366_v59 = vpop.permute.xlu0 %3365  ;;  %v10725_v20 = vld [vmem:[#allocation3 + $0x10] sm:$0xff]   ;;  %v4172_v29 = vsel %vm12775_vm10, %v4163_v55, %v4171_v62  ;;  %v3346_v18 = vrot.slane %v3344_v61, 6  ;;  %v4225_v61 = vshrl.u32 %v3861_v26, 16 }
 0x221   : > { %3467 = vst.msk [vmem:[#allocation3 + $0x24] sm:$0xf] %vm3457_vm13, %v3368_v44  ;;  %3466 = vst.msk [vmem:[#allocation3 + $0x20] sm:$0xf] %vm3457_vm13, %v3366_v59  ;;  %10601 = vmatprep.mubr.bf16.mxu0 %v10725_v20  ;;  %v3313_v44 = vrot.slane %v3311_v17, 5  ;;  %v3316_v59 = vrot.slane %v3314_v13, 6 }
 0x222   : > { %4287 = vrot.lane.b32.xlu1 %v4152_v60, %s10838_s25  ;;  %4285 = vrot.lane.b32.xlu0 %v4142_v7, %s10838_s25  ;;  %v2978_v7 = vld [vmem:[%s10963_s23 + $0x9c] sm:$0xf]  ;;  %v2979_v60 = vld [vmem:[%s10963_s23 + $0xa0] sm:$0xf]  ;;  %v4195_v13 = vshrl.u32 %v3858_v27, 16 }
 0x223   : > { %v3321_v20 = vshrl.u32 %v2978_v7, 16  ;;  %v3324_v37 = vshll.u32 %v2978_v7, 16  ;;  %v3331_v30 = vshrl.u32 %v2979_v60, 16  ;;  %v3529_v17 = vld [vmem:[%s10963_s23 + $0xa0] sm:$0xf]  ;;  %v3347_v7 = vor.u32 %v3346_v18, %v3343_v54 }
 0x224   : > { %v3372_v39 = vpop.permute.xlu1 %3371  ;;  %v3370_v14 = vpop.permute.xlu0 %3369  ;;  %v10726_v33 = vld [vmem:[#allocation3 + $0x18] sm:$0xff]   ;;  %v3860_v62 = vld [vmem:[%s10963_s23 + $0xa0] sm:$0xf]  ;;  %v4227_v54 = vrot.slane %v4225_v61, 6 }
 0x225   : > { %3469 = vst.msk [vmem:[#allocation3 + $0x2c] sm:$0xf] %vm3457_vm13, %v3372_v39  ;;  %3468 = vst.msk [vmem:[#allocation3 + $0x28] sm:$0xf] %vm3457_vm13, %v3370_v14  ;;  %10602 = vmatmul.mubr.bf16.gmra.mxu0 %v10726_v33  ;;  %v3317_v39 = vor.u32 %v3316_v59, %v3313_v44  ;;  %v3323_v14 = vrot.slane %v3321_v20, 5  ;;  %v3326_v33 = vrot.slane %v3324_v37, 6 }
 0x226   : > { %3407 = vrot.lane.b32.xlu1 %v3288_v42, %s10836_s14  ;;  %3405 = vrot.lane.b32.xlu0 %v3278_v45, %s10836_s14  ;;  %v3664_v45 = vsel %vm12727_vm6, %v3662_v2, %v3663_v43  ;;  %v3334_v42 = vshll.u32 %v2979_v60, 16  ;;  %v3333_v19 = vrot.slane %v3331_v30, 5  ;;  %v3309_v43 = vrot.slane %v13276_v46, 4  ;;  %v3530_v59 = vld [vmem:[%s10963_s23 + $0xa4] sm:$0x3] }
 0x227   : > { %v3319_v23 = vrot.slane %v3317_v39, 4  ;;  %v3675_v44 = vrot.slane %v3529_v17, 6  ;;  %v4197_v20 = vrot.slane %v4195_v13, 6  ;;  %v4215_v11 = vshrl.u32 %v3860_v62, 16 }
 0x228   : > { %v3699_v50 = vpop.permute.xlu1 %3698  ;;  %v3697_v8 = vpop.permute.xlu0 %3696  ;;  %v3336_v35 = vrot.slane %v3334_v42, 6  ;;  %v3318_v46 = vsel %vm12508_vm0, %v3309_v43, %v3317_v39  ;;  %v4218_v49 = vshll.u32 %v3860_v62, 16 }
 0x229   : > { %3798 = vst.msk [vmem:[#allocation3 + $0x24] sm:$0xf] %vm3788_vm14, %v3699_v50  ;;  %3797 = vst.msk [vmem:[#allocation3 + $0x20] sm:$0xf] %vm3788_vm14, %v3697_v8  ;;  %v3327_v50 = vor.u32 %v3326_v33, %v3323_v14  ;;  %v3677_v39 = vrot.slane %v3675_v44, 4 }
 0x22a   : > { %3411 = vrot.lane.b32.xlu1 %v3308_v48, %s10836_s14  ;;  %3409 = vrot.lane.b32.xlu0 %v3298_v0, %s10836_s14  ;;  %v4192_v48 = vsel %vm12775_vm10, %v4183_v32, %v13327_v4  ;;  %v4182_v0 = vsel %vm12775_vm10, %v4173_v22, %v4181_v56  ;;  %v3337_v8 = vor.u32 %v3336_v35, %v3333_v19  ;;  %v3671_v56 = vrot.slane %v3669_v34, 4 }
 0x22b   : > { %v3328_v3 = vsel %vm12508_vm0, %v3319_v23, %v3327_v50  ;;  %v3678_v22 = vrot.slane %v3530_v59, 6  ;;  %v4217_v35 = vrot.slane %v4215_v11, 6  ;;  %v4220_v47 = vrot.slane %v4218_v49, 7 }
 0x22c   : > { %v3703_v24 = vpop.permute.xlu1 %3702  ;;  %v3701_v25 = vpop.permute.xlu0 %3700  ;;  %v3339_v2 = vrot.slane %v3337_v8, 4 }
 0x22d   : > { %3800 = vst.msk [vmem:[#allocation3 + $0x2c] sm:$0xf] %vm3788_vm14, %v3703_v24  ;;  %3799 = vst.msk [vmem:[#allocation3 + $0x28] sm:$0xf] %vm3788_vm14, %v3701_v25  ;;  %v3329_v24 = vrot.slane %v3327_v50, 4 }
 0x22e   : > { %3738 = vrot.lane.b32.xlu1 %v3661_v53, %s10837_s21  ;;  %3736 = vrot.lane.b32.xlu0 %v3658_v6, %s10837_s21  ;;  %v3528_v6 = vld [vmem:[%s10963_s23 + $0x9c] sm:$0xf]  ;;  %v4198_v53 = vshll.u32 %v3858_v27, 16  ;;  %v3348_v30 = vsel %vm12508_vm0, %v3339_v2, %v3347_v7 }
 0x22f   : > { %v3859_v25 = vld [vmem:[%s10963_s23 + $0x9c] sm:$0xf]  ;;  %v3672_v5 = vrot.slane %v3528_v6, 6  ;;  %v3338_v42 = vsel %vm12508_vm0, %v3329_v24, %v3337_v8  ;;  %v4221_v8 = vor.u32 %v4220_v47, %v4217_v35 }
 0x230   : > { %v4252_v10 = vpop.permute.xlu1 %4251  ;;  %v4250_v63 = vpop.permute.xlu0 %4249  ;;  %v4200_v37 = vrot.slane %v4198_v53, 7 }
 0x231   : > { %4351 = vst.msk [vmem:[#allocation3 + $0x24] sm:$0xf] %vm4341_vm15, %v4252_v10  ;;  %4350 = vst.msk [vmem:[#allocation3 + $0x20] sm:$0xf] %vm4341_vm15, %v4250_v63  ;;  %v3674_v32 = vrot.slane %v3672_v5, 4 }
 0x232   : > { %3742 = vrot.lane.b32.xlu1 %v3667_v36, %s10837_s21  ;;  %3740 = vrot.lane.b32.xlu0 %v3664_v45, %s10837_s21  ;;  %v4205_v36 = vshrl.u32 %v3859_v25, 16  ;;  %v4208_v45 = vshll.u32 %v3859_v25, 16  ;;  %v4201_v14 = vor.u32 %v4200_v37, %v4197_v20 }
 0x233   : > { %v3676_v23 = vsel %vm12727_vm6, %v3674_v32, %v3675_v44 }
 0x234   : > { %v4256_v9 = vpop.permute.xlu1 %4255  ;;  %v4254_v58 = vpop.permute.xlu0 %4253  ;;  %v4207_v33 = vrot.slane %v4205_v36, 6  ;;  %v4210_v19 = vrot.slane %v4208_v45, 7  ;;  %v4203_v50 = vrot.slane %v4201_v14, 4  ;;  %v4202_v40 = vsel %vm12775_vm10, %v4193_v21, %v4201_v14  ;;  %v5544_v36 = vld [vmem:[#allocation2 + $0x8] sm:$0xf] }
 0x235   : > { %4353 = vst.msk [vmem:[#allocation3 + $0x2c] sm:$0xf] %vm4341_vm15, %v4256_v9  ;;  %4352 = vst.msk [vmem:[#allocation3 + $0x28] sm:$0xf] %vm4341_vm15, %v4254_v58  ;;  %v4228_v9 = vshll.u32 %v3861_v26, 16  ;;  %v5621_v45 = vrot.slane %v5544_v36, 7 }
 0x236   : > { %4291 = vrot.lane.b32.xlu1 %v4172_v29, %s10838_s25  ;;  %4289 = vrot.lane.b32.xlu0 %v4162_v16, %s10838_s25  ;;  %v3673_v29 = vsel %vm12727_vm6, %v3671_v56, %v3672_v5  ;;  %v3670_v16 = vsel %vm12727_vm6, %v3668_v57, %v3669_v34  ;;  %v4211_v43 = vor.u32 %v4210_v19, %v4207_v33  ;;  %v4989_v5 = vld [vmem:[#allocation2 + $0xc] sm:$0x8] }
 0x237   : > { %v4230_v18 = vrot.slane %v4228_v9, 7  ;;  %v5623_v26 = vrot.slane %v5621_v45, 4 }
 0x238   : > { %v3376_v15 = vpop.permute.xlu1 %3375  ;;  %v3374_v28 = vpop.permute.xlu0 %3373  ;;  %v10727_v41 = vld [vmem:[#allocation3 + $0x20] sm:$0xff]   ;;  %v4212_v4 = vsel %vm12775_vm10, %v4203_v50, %v4211_v43  ;;  %v4213_v34 = vrot.slane %v4211_v43, 4 }
 0x239   : > { %3471 = vst.msk [vmem:[#allocation3 + $0x34] sm:$0xf] %vm3457_vm13, %v3376_v15  ;;  %3470 = vst.msk [vmem:[#allocation3 + $0x30] sm:$0xf] %vm3457_vm13, %v3374_v28  ;;  %10605 = vmatprep.mubr.bf16.mxu0 %v10727_v41  ;;  %v4223_v28 = vrot.slane %v4221_v8, 4  ;;  %v4231_v41 = vor.u32 %v4230_v18, %v4227_v54 }
 0x23a   : > { %4295 = vrot.lane.b32.xlu1 %v4192_v48, %s10838_s25  ;;  %4293 = vrot.lane.b32.xlu0 %v4182_v0, %s10838_s25  ;;  %v3679_v0 = vsel %vm12727_vm6, %v3677_v39, %v3678_v22  ;;  %v4222_v13 = vsel %vm12775_vm10, %v4213_v34, %v4221_v8  ;;  %vm4987_vm6 = vsmask.f32 7950 }
 0x23b   : > { %v4232_v17 = vsel %vm12775_vm10, %v4223_v28, %v4231_v41  ;;  %vm13410_vm8 = vmand %vm4986_vm5, %vm4987_vm6  ;;  %vm5009_vm6 = vsmask.f32 3338 }
 0x23c   : > { %v3380_v31 = vpop.permute.xlu1 %3379  ;;  %v3378_v60 = vpop.permute.xlu0 %3377  ;;  %v10728_v55 = vld [vmem:[#allocation3 + $0x28] sm:$0xff]   ;;  %v4990_v59 = vsel %vm13410_vm8, 0, %v4989_v5  ;;  %vm13423_vm5 = vmor %vm4992_vm11, %vm5617_vm9  ;;  %vm5002_vm9 = vcmask 1042433  }
 0x23d   : > { %3473 = vst.msk [vmem:[#allocation3 + $0x3c] sm:$0xf] %vm3457_vm13, %v3380_v31  ;;  %3472 = vst.msk [vmem:[#allocation3 + $0x38] sm:$0xf] %vm3457_vm13, %v3378_v60  ;;  %10606 = vmatmul.mubr.bf16.gmra.mxu0 %v10728_v55 }
 0x23e   : > { %3415 = vrot.lane.b32.xlu1 %v3328_v3, %s10836_s14  ;;  %3413 = vrot.lane.b32.xlu0 %v3318_v46, %s10836_s14  ;;  %4991 = vst [vmem:[#allocation2 + $0xc] sm:$0x8] %v4990_v59 }
 0x240   : > { %v3707_v10 = vpop.permute.xlu1 %3706  ;;  %v3705_v63 = vpop.permute.xlu0 %3704 }
 0x241   : > { %3802 = vst.msk [vmem:[#allocation3 + $0x34] sm:$0xf] %vm3788_vm14, %v3707_v10  ;;  %3801 = vst.msk [vmem:[#allocation3 + $0x30] sm:$0xf] %vm3788_vm14, %v3705_v63  ;;  %v5543_v10 = vld [vmem:[#allocation2 + $0x4] sm:$0x8] }
 0x242   : > { %3419 = vrot.lane.b32.xlu1 %v3348_v30, %s10836_s14  ;;  %3417 = vrot.lane.b32.xlu0 %v3338_v42, %s10836_s14  ;;  %s10839_s14 = smov 96  }
 0x244   : > { %v3711_v58 = vpop.permute.xlu1 %3710  ;;  %v3709_v48 = vpop.permute.xlu0 %3708 }
 0x245   : > { %3804 = vst.msk [vmem:[#allocation3 + $0x3c] sm:$0xf] %vm3788_vm14, %v3711_v58  ;;  %3803 = vst.msk [vmem:[#allocation3 + $0x38] sm:$0xf] %vm3788_vm14, %v3709_v48  ;;  %v13427_v63 = vld [vmem:[#allocation2 + $0xc] sm:$0xf] }
 0x246   : > { %3746 = vrot.lane.b32.xlu1 %v3673_v29, %s10837_s21  ;;  %3744 = vrot.lane.b32.xlu0 %v3670_v16, %s10837_s21  ;;  %v10299_v29 = vrot.slane %v5543_v10, 11  ;;  %v5624_v16 = vrot.slane %v13427_v63, 7 }
 0x248   : > { %v4260_v27 = vpop.permute.xlu1 %4259  ;;  %v4258_v15 = vpop.permute.xlu0 %4257  ;;  %v5622_v14 = vsel %vm13423_vm5, %v10299_v29, %v5621_v45  ;;  %v5625_v33 = vsel %vm13423_vm5, %v5623_v26, %v5624_v16 }
 0x249   : > { %4355 = vst.msk [vmem:[#allocation3 + $0x34] sm:$0xf] %vm4341_vm15, %v4260_v27  ;;  %4354 = vst.msk [vmem:[#allocation3 + $0x30] sm:$0xf] %vm4341_vm15, %v4258_v15  ;;  %v10705_v19 = vpack.i.bf16 %v5625_v33, %v5622_v14  ;;  %v13486_v33 = vld [vmem:[%s16693_s2] ss:$0 sm:$0xff] }
 0x24a   : > { %3750 = vrot.lane.b32.xlu1 %v3679_v0, %s10837_s21  ;;  %3748 = vrot.lane.b32.xlu0 %v3676_v23, %s10837_s21 }
 0x24c   : > { %v4264_v46 = vpop.permute.xlu1 %4263  ;;  %v4262_v6 = vpop.permute.xlu0 %4261 }
 0x24d   : > { %4357 = vst.msk [vmem:[#allocation3 + $0x3c] sm:$0xf] %vm4341_vm15, %v4264_v46  ;;  %4356 = vst.msk [vmem:[#allocation3 + $0x38] sm:$0xf] %vm4341_vm15, %v4262_v6 }
 0x24e   : > { %4299 = vrot.lane.b32.xlu1 %v4212_v4, %s10838_s25  ;;  %4297 = vrot.lane.b32.xlu0 %v4202_v40, %s10838_s25 }
 0x250   : > { %v3384_v53 = vpop.permute.xlu1 %3383  ;;  %v3382_v3 = vpop.permute.xlu0 %3381  ;;  %v10729_v2 = vld [vmem:[#allocation3 + $0x30] sm:$0xff]  }
 0x251   : > { %3475 = vst.msk [vmem:[#allocation3 + $0x44] sm:$0xf] %vm3457_vm13, %v3384_v53  ;;  %3474 = vst.msk [vmem:[#allocation3 + $0x40] sm:$0xf] %vm3457_vm13, %v3382_v3  ;;  %10609 = vmatprep.mubr.bf16.mxu0 %v10729_v2 }
 0x252   : > { %4303 = vrot.lane.b32.xlu1 %v4232_v17, %s10838_s25  ;;  %4301 = vrot.lane.b32.xlu0 %v4222_v13, %s10838_s25 }
 0x254   : > { %v3388_v7 = vpop.permute.xlu1 %3387  ;;  %v3386_v24 = vpop.permute.xlu0 %3385  ;;  %v10730_v25 = vld [vmem:[#allocation3 + $0x38] sm:$0xff]  }
 0x255   : > { %3477 = vst.msk [vmem:[#allocation3 + $0x4c] sm:$0xf] %vm3457_vm13, %v3388_v7  ;;  %3476 = vst.msk [vmem:[#allocation3 + $0x48] sm:$0xf] %vm3457_vm13, %v3386_v24  ;;  %10610 = vmatmul.mubr.bf16.gmra.mxu0 %v10730_v25 }
 0x256   : > { %10706 = vrot.lane.b32.xlu0 %v10705_v19, %s10834_s27 }
 0x258   : > { %v3715_v62 = vpop.permute.xlu1 %3714  ;;  %v3713_v31 = vpop.permute.xlu0 %3712 }
 0x259   : > { %3806 = vst.msk [vmem:[#allocation3 + $0x44] sm:$0xf] %vm3788_vm14, %v3715_v62  ;;  %3805 = vst.msk [vmem:[#allocation3 + $0x40] sm:$0xf] %vm3788_vm14, %v3713_v31 }
 0x25c   : > { %v3719_v60 = vpop.permute.xlu1 %3718  ;;  %v3717_v55 = vpop.permute.xlu0 %3716 }
 0x25d   : > { %3808 = vst.msk [vmem:[#allocation3 + $0x4c] sm:$0xf] %vm3788_vm14, %v3719_v60  ;;  %3807 = vst.msk [vmem:[#allocation3 + $0x48] sm:$0xf] %vm3788_vm14, %v3717_v55 }
 0x260   : > { %v4268_v57 = vpop.permute.xlu1 %4267  ;;  %v4266_v44 = vpop.permute.xlu0 %4265 }
 0x261   : > { %4359 = vst.msk [vmem:[#allocation3 + $0x44] sm:$0xf] %vm4341_vm15, %v4268_v57  ;;  %4358 = vst.msk [vmem:[#allocation3 + $0x40] sm:$0xf] %vm4341_vm15, %v4266_v44 }
 0x264   : > { %v4272_v20 = vpop.permute.xlu1 %4271  ;;  %v4270_v37 = vpop.permute.xlu0 %4269 }
 0x265   : > { %4361 = vst.msk [vmem:[#allocation3 + $0x4c] sm:$0xf] %vm4341_vm15, %v4272_v20  ;;  %4360 = vst.msk [vmem:[#allocation3 + $0x48] sm:$0xf] %vm4341_vm15, %v4270_v37 }
 0x268   : > { %v3392_v30 = vpop.permute.xlu1 %3391  ;;  %v3390_v42 = vpop.permute.xlu0 %3389  ;;  %v10731_v11 = vld [vmem:[#allocation3 + $0x40] sm:$0xff]  }
 0x269   : > { %3479 = vst.msk [vmem:[#allocation3 + $0x54] sm:$0xf] %vm3457_vm13, %v3392_v30  ;;  %3478 = vst.msk [vmem:[#allocation3 + $0x50] sm:$0xf] %vm3457_vm13, %v3390_v42  ;;  %10613 = vmatprep.mubr.bf16.mxu0 %v10731_v11 }
 0x26c   : > { %v3396_v22 = vpop.permute.xlu1 %3395  ;;  %v3394_v32 = vpop.permute.xlu0 %3393  ;;  %v10732_v39 = vld [vmem:[#allocation3 + $0x48] sm:$0xff]  }
 0x26d   : > { %3481 = vst.msk [vmem:[#allocation3 + $0x5c] sm:$0xf] %vm3457_vm13, %v3396_v22  ;;  %3480 = vst.msk [vmem:[#allocation3 + $0x58] sm:$0xf] %vm3457_vm13, %v3394_v32  ;;  %10614 = vmatmul.mubr.bf16.gmra.mxu0 %v10732_v39 }
 0x270   : > { %v3723_v35 = vpop.permute.xlu1 %3722  ;;  %v3721_v47 = vpop.permute.xlu0 %3720 }
 0x271   : > { %3810 = vst.msk [vmem:[#allocation3 + $0x54] sm:$0xf] %vm3788_vm14, %v3723_v35  ;;  %3809 = vst.msk [vmem:[#allocation3 + $0x50] sm:$0xf] %vm3788_vm14, %v3721_v47 }
 0x274   : > { %v3727_v61 = vpop.permute.xlu1 %3726  ;;  %v3725_v9 = vpop.permute.xlu0 %3724 }
 0x275   : > { %3812 = vst.msk [vmem:[#allocation3 + $0x5c] sm:$0xf] %vm3788_vm14, %v3727_v61  ;;  %3811 = vst.msk [vmem:[#allocation3 + $0x58] sm:$0xf] %vm3788_vm14, %v3725_v9 }
 0x278   : > { %v4276_v58 = vpop.permute.xlu1 %4275  ;;  %v4274_v48 = vpop.permute.xlu0 %4273 }
 0x279   : > { %4363 = vst.msk [vmem:[#allocation3 + $0x54] sm:$0xf] %vm4341_vm15, %v4276_v58  ;;  %4362 = vst.msk [vmem:[#allocation3 + $0x50] sm:$0xf] %vm4341_vm15, %v4274_v48 }
 0x27c   : > { %v4280_v0 = vpop.permute.xlu1 %4279  ;;  %v4278_v23 = vpop.permute.xlu0 %4277 }
 0x27d   : > { %4365 = vst.msk [vmem:[#allocation3 + $0x5c] sm:$0xf] %vm4341_vm15, %v4280_v0  ;;  %4364 = vst.msk [vmem:[#allocation3 + $0x58] sm:$0xf] %vm4341_vm15, %v4278_v23 }
 0x280   : > { %v3400_v43 = vpop.permute.xlu1 %3399  ;;  %v3398_v21 = vpop.permute.xlu0 %3397  ;;  %v10733_v50 = vld [vmem:[#allocation3 + $0x50] sm:$0xff]  }
 0x281   : > { %3483 = vst.msk [vmem:[#allocation3 + $0x64] sm:$0xf] %vm3457_vm13, %v3400_v43  ;;  %3482 = vst.msk [vmem:[#allocation3 + $0x60] sm:$0xf] %vm3457_vm13, %v3398_v21  ;;  %10617 = vmatprep.mubr.bf16.mxu0 %v10733_v50 }
 0x284   : > { %v3404_v8 = vpop.permute.xlu1 %3403  ;;  %v3402_v54 = vpop.permute.xlu0 %3401  ;;  %v10734_v18 = vld [vmem:[#allocation3 + $0x58] sm:$0xff]  }
 0x285   : > { %3485 = vst.msk [vmem:[#allocation3 + $0x6c] sm:$0xf] %vm3457_vm13, %v3404_v8  ;;  %3484 = vst.msk [vmem:[#allocation3 + $0x68] sm:$0xf] %vm3457_vm13, %v3402_v54  ;;  %10618 = vmatmul.mubr.bf16.gmra.mxu0 %v10734_v18  ;;  %v5067_v54 = vld [vmem:[#allocation2 + $0xc] sm:$0xf] }
 0x286   : > { %v5122_v18 = vshrl.u32 %v5067_v54, 16 }
 0x288   : > { %v3731_v27 = vpop.permute.xlu1 %3730  ;;  %v3729_v15 = vpop.permute.xlu0 %3728 }
 0x289   : > { %3814 = vst.msk [vmem:[#allocation3 + $0x64] sm:$0xf] %vm3788_vm14, %v3731_v27  ;;  %3813 = vst.msk [vmem:[#allocation3 + $0x60] sm:$0xf] %vm3788_vm14, %v3729_v15  ;;  %v5125_v27 = vshll.u32 %v5067_v54, 16  ;;  %v10741_v15 = vld [vmem:[%s16694_s3 + $0x38] sm:$0xff]  }
 0x28a   : > { %9746 = vmatpush1.bf16.msra.mxu1 %v10741_v15 }
 0x28c   : > { %v3735_v40 = vpop.permute.xlu1 %3734  ;;  %v3733_v4 = vpop.permute.xlu0 %3732 }
 0x28d   : > { %3816 = vst.msk [vmem:[#allocation3 + $0x6c] sm:$0xf] %vm3788_vm14, %v3735_v40  ;;  %3815 = vst.msk [vmem:[#allocation3 + $0x68] sm:$0xf] %vm3788_vm14, %v3733_v4 }
 0x290   : > { %v4284_v28 = vpop.permute.xlu1 %4283  ;;  %v4282_v41 = vpop.permute.xlu0 %4281 }
 0x291   : > { %4367 = vst.msk [vmem:[#allocation3 + $0x64] sm:$0xf] %vm4341_vm15, %v4284_v28  ;;  %4366 = vst.msk [vmem:[#allocation3 + $0x60] sm:$0xf] %vm4341_vm15, %v4282_v41  ;;  %v5124_v41 = vrot.slane %v5122_v18, 6 }
 0x294   : > { %v4288_v34 = vpop.permute.xlu1 %4287  ;;  %v4286_v46 = vpop.permute.xlu0 %4285 }
 0x295   : > { %4369 = vst.msk [vmem:[#allocation3 + $0x6c] sm:$0xf] %vm4341_vm15, %v4288_v34  ;;  %4368 = vst.msk [vmem:[#allocation3 + $0x68] sm:$0xf] %vm4341_vm15, %v4286_v46  ;;  %v5127_v34 = vrot.slane %v5125_v27, 7 }
 0x298   : > { %v3408_v6 = vpop.permute.xlu1 %3407  ;;  %v3406_v17 = vpop.permute.xlu0 %3405  ;;  %v10735_v13 = vld [vmem:[#allocation3 + $0x60] sm:$0xff]  }
 0x299   : > { %3487 = vst.msk [vmem:[#allocation3 + $0x74] sm:$0xf] %vm3457_vm13, %v3408_v6  ;;  %3486 = vst.msk [vmem:[#allocation3 + $0x70] sm:$0xf] %vm3457_vm13, %v3406_v17  ;;  %10621 = vmatprep.mubr.bf16.mxu0 %v10735_v13 }
 0x29c   : > { %v3412_v53 = vpop.permute.xlu1 %3411  ;;  %v3410_v3 = vpop.permute.xlu0 %3409  ;;  %v10736_v2 = vld [vmem:[#allocation3 + $0x68] sm:$0xff]  }
 0x29d   : > { %3489 = vst.msk [vmem:[#allocation3 + $0x7c] sm:$0xf] %vm3457_vm13, %v3412_v53  ;;  %3488 = vst.msk [vmem:[#allocation3 + $0x78] sm:$0xf] %vm3457_vm13, %v3410_v3  ;;  %10622 = vmatmul.mubr.bf16.gmra.mxu0 %v10736_v2  ;;  %v13507_v2 = vor.u32 %v5127_v34, %v5124_v41 }
 0x2a0   : > { %v3739_v7 = vpop.permute.xlu1 %3738  ;;  %v3737_v24 = vpop.permute.xlu0 %3736 }
 0x2a1   : > { %3818 = vst.msk [vmem:[#allocation3 + $0x74] sm:$0xf] %vm3788_vm14, %v3739_v7  ;;  %3817 = vst.msk [vmem:[#allocation3 + $0x70] sm:$0xf] %vm3788_vm14, %v3737_v24 }
 0x2a4   : > { %v3743_v25 = vpop.permute.xlu1 %3742  ;;  %v3741_v62 = vpop.permute.xlu0 %3740 }
 0x2a5   : > { %3820 = vst.msk [vmem:[#allocation3 + $0x7c] sm:$0xf] %vm3788_vm14, %v3743_v25  ;;  %3819 = vst.msk [vmem:[#allocation3 + $0x78] sm:$0xf] %vm3788_vm14, %v3741_v62 }
 0x2a8   : > { %v4292_v31 = vpop.permute.xlu1 %4291  ;;  %v4290_v60 = vpop.permute.xlu0 %4289 }
 0x2a9   : > { %4371 = vst.msk [vmem:[#allocation3 + $0x74] sm:$0xf] %vm4341_vm15, %v4292_v31  ;;  %4370 = vst.msk [vmem:[#allocation3 + $0x70] sm:$0xf] %vm4341_vm15, %v4290_v60 }
 0x2ac   : > { %v4296_v55 = vpop.permute.xlu1 %4295  ;;  %v4294_v5 = vpop.permute.xlu0 %4293 }
 0x2ad   : > { %4373 = vst.msk [vmem:[#allocation3 + $0x7c] sm:$0xf] %vm4341_vm15, %v4296_v55  ;;  %4372 = vst.msk [vmem:[#allocation3 + $0x78] sm:$0xf] %vm4341_vm15, %v4294_v5 }
 0x2b0   : > { %v3416_v57 = vpop.permute.xlu1 %3415  ;;  %v3414_v44 = vpop.permute.xlu0 %3413  ;;  %v10737_v59 = vld [vmem:[#allocation3 + $0x70] sm:$0xff]  }
 0x2b1   : > { %3491 = vst.msk [vmem:[#allocation3 + $0x84] sm:$0xf] %vm3457_vm13, %v3416_v57  ;;  %3490 = vst.msk [vmem:[#allocation3 + $0x80] sm:$0xf] %vm3457_vm13, %v3414_v44  ;;  %10625 = vmatprep.mubr.bf16.mxu0 %v10737_v59  ;;  %v5626_v57 = vrot.slane %v5624_v16, 4  ;;  %v5130_v59 = vrot.slane %v13507_v2, 4 }
 0x2b4   : > { %v3420_v20 = vpop.permute.xlu1 %3419  ;;  %v3418_v37 = vpop.permute.xlu0 %3417  ;;  %v10738_v36 = vld [vmem:[#allocation3 + $0x78] sm:$0xff]  }
 0x2b5   : > { %3493 = vst.msk [vmem:[#allocation3 + $0x8c] sm:$0xf] %vm3457_vm13, %v3420_v20  ;;  %3492 = vst.msk [vmem:[#allocation3 + $0x88] sm:$0xf] %vm3457_vm13, %v3418_v37  ;;  %10626 = vmatmul.mubr.bf16.gmra.mxu0 %v10738_v36  ;;  %vm4997_vm13 = vsmask.f32 1282 }
 0x2b8   : > { %v3747_v45 = vpop.permute.xlu1 %3746  ;;  %v3745_v30 = vpop.permute.xlu0 %3744 }
 0x2b9   : > { %3822 = vst.msk [vmem:[#allocation3 + $0x84] sm:$0xf] %vm3788_vm14, %v3747_v45  ;;  %3821 = vst.msk [vmem:[#allocation3 + $0x80] sm:$0xf] %vm3788_vm14, %v3745_v30 }
 0x2bc   : > { %v3751_v42 = vpop.permute.xlu1 %3750  ;;  %v3749_v11 = vpop.permute.xlu0 %3748 }
 0x2bd   : > { %3824 = vst.msk [vmem:[#allocation3 + $0x8c] sm:$0xf] %vm3788_vm14, %v3751_v42  ;;  %3823 = vst.msk [vmem:[#allocation3 + $0x88] sm:$0xf] %vm3788_vm14, %v3749_v11 }
 0x2be   : > { %vm13493_vm14 = vmand %vm3568_vm2, %vm4997_vm13  ;;  %vm5008_vm2 = vcmask 1043458  }
 0x2bf   : > { %vm13543_vm13 = vmand %vm5008_vm2, %vm5009_vm6  ;;  %vm5836_vm2 = vcmask 519424  }
 0x2c0   : > { %v4300_v10 = vpop.permute.xlu1 %4299  ;;  %v4298_v26 = vpop.permute.xlu0 %4297 }
 0x2c1   : > { %4375 = vst.msk [vmem:[#allocation3 + $0x84] sm:$0xf] %vm4341_vm15, %v4300_v10  ;;  %4374 = vst.msk [vmem:[#allocation3 + $0x80] sm:$0xf] %vm4341_vm15, %v4298_v26 }
 0x2c4   : > { %v4304_v29 = vpop.permute.xlu1 %4303  ;;  %v4302_v22 = vpop.permute.xlu0 %4301 }
 0x2c5   : > { %4377 = vst.msk [vmem:[#allocation3 + $0x8c] sm:$0xf] %vm4341_vm15, %v4304_v29  ;;  %4376 = vst.msk [vmem:[#allocation3 + $0x88] sm:$0xf] %vm4341_vm15, %v4302_v22 }
 0x2c6   : > { %vm13499_vm15 = vmand %vm4992_vm11, %vm344_vm4  ;;  %vm5506_vm4 = vcmask 257024   ;;  %vm5003_vm11 = vsmask.f32 2310 }
 0x2c7   : > { %vm13549_vm1 = vmand %vm5002_vm9, %vm5003_vm11 }
 0x2c8   : > { %v10739_v32 = vld [vmem:[#allocation3 + $0x80] sm:$0xff]  }
 0x2c9   : > { %10629 = vmatprep.mubr.bf16.mxu0 %v10739_v32 }
 0x2cc   : > { %v10740_v39 = vld [vmem:[#allocation3 + $0x88] sm:$0xff]  }
 0x2cd   : > { %10630 = vmatmul.mubr.bf16.gmra.mxu0 %v10740_v39  ;;  %v10599_v14 = vpop.f32.mrf.mxu0 }
 0x2ce   : > { %v4636_v35 = vadd.f32 %v10599_v14, %v13486_v33 }
 0x2cf   : > { %v4627_v19 = vpop.f32.mrf.mxu0 }
 0x2d0   : > { %v4628_v61 = vadd.f32 %v13486_v33, %v4627_v19  ;;  %v4772_v48 = vmax.f32 %v4636_v35, 0.0 }
 0x2d1   : > { %v10600_v47 = vpop.f32.mrf.mxu0 }
 0x2d2   : > { %v4639_v9 = vadd.f32 %v10600_v47, %v13486_v33  ;;  %v4770_v43 = vmax.f32 %v4628_v61, 0.0 }
 0x2d3   : > { %v4630_v58 = vpop.f32.mrf.mxu0 }
 0x2d4   : > { %v4773_v0 = vmax.f32 %v4639_v9, 0.0  ;;  %v4631_v23 = vadd.f32 %v13486_v33, %v4630_v58 }
 0x2d6   : > { %v10429_v21 = vpack.c.bf16 %v4773_v0, %v4772_v48  ;;  %v4771_v50 = vmax.f32 %v4631_v23, 0.0 }
 0x2d8   : > { %10512 = vst [vmem:[#allocation2 + $0x18] sm:$0xff] %v10429_v21   ;;  %v10424_v8 = vpack.c.bf16 %v4771_v50, %v4770_v43 }
 0x2da   : > { %10511 = vst [vmem:[#allocation2 + $0x10] sm:$0xff] %v10424_v8  }
 0x2df   : > { %v4999_v40 = vld [vmem:[#allocation2 + $0x18] sm:$0x3]  ;;  %v5071_v13 = vld [vmem:[#allocation2 + $0x1c] sm:$0xf] }
 0x2e0   : > { %v5000_v28 = vsel %vm13493_vm14, 0, %v4999_v40  ;;  %v5162_v24 = vshrl.u32 %v5071_v13, 16  ;;  %v5165_v60 = vshll.u32 %v5071_v13, 16  ;;  %v5549_v50 = vld [vmem:[#allocation2 + $0x1c] sm:$0xf] }
 0x2e1   : > { %5001 = vst [vmem:[#allocation2 + $0x18] sm:$0x3] %v5000_v28  ;;  %v4994_v46 = vld [vmem:[#allocation2 + $0x10] sm:$0x1]  ;;  %v5069_v17 = vld [vmem:[#allocation2 + $0x14] sm:$0xf] }
 0x2e2   : > { %v4995_v6 = vsel %vm13499_vm15, 0, %v4994_v46  ;;  %v5142_v53 = vshrl.u32 %v5069_v17, 16  ;;  %v5145_v3 = vshll.u32 %v5069_v17, 16  ;;  %v5547_v25 = vld [vmem:[#allocation2 + $0x14] sm:$0xf]  ;;  %v5164_v42 = vrot.slane %v5162_v24, 6 }
 0x2e3   : > { %4996 = vst [vmem:[#allocation2 + $0x10] sm:$0x1] %v4995_v6  ;;  %v5630_v45 = vrot.slane %v5547_v25, 7  ;;  %v5167_v32 = vrot.slane %v5165_v60, 7  ;;  %v5636_v17 = vrot.slane %v5549_v50, 7  ;;  %v10745_v60 = vld [vmem:[%s16694_s3 + $0x18] sm:$0xff]  }
 0x2e4   : > { %v5144_v62 = vrot.slane %v5142_v53, 6  ;;  %v5147_v31 = vrot.slane %v5145_v3, 7  ;;  %v13852_v15 = vld [vmem:[#allocation2 + $0x1c] sm:$0xf] }
 0x2e5   : > { %v10603_v7 = vpop.f32.mrf.mxu0  ;;  %v5632_v27 = vrot.slane %v5630_v45, 4  ;;  %v13524_v13 = vor.u32 %v5167_v32, %v5164_v42 }
 0x2e6   : > { %v4652_v55 = vadd.f32 %v10603_v7, %v13486_v33  ;;  %v5148_v29 = vor.u32 %v5147_v31, %v5144_v62 }
 0x2e7   : > { %v4643_v5 = vpop.f32.mrf.mxu0 }
 0x2e8   : > { %v5548_v44 = vld [vmem:[#allocation2 + $0x18] sm:$0xf]  ;;  %v4644_v37 = vadd.f32 %v13486_v33, %v4643_v5  ;;  %v4776_v63 = vmax.f32 %v4652_v55, 0.0  ;;  %v5150_v34 = vrot.slane %v5148_v29, 4 }
 0x2e9   : > { %v5070_v20 = vld [vmem:[#allocation2 + $0x18] sm:$0xf]  ;;  %v10604_v36 = vpop.f32.mrf.mxu0  ;;  %v5633_v14 = vrot.slane %v5548_v44, 7 }
 0x2ea   : > { %v5152_v30 = vshrl.u32 %v5070_v20, 16  ;;  %v4655_v11 = vadd.f32 %v10604_v36, %v13486_v33  ;;  %v5546_v10 = vld [vmem:[#allocation2 + $0x10] sm:$0xf]  ;;  %v5155_v22 = vshll.u32 %v5070_v20, 16  ;;  %v4774_v58 = vmax.f32 %v4644_v37, 0.0 }
 0x2eb   : > { %v5068_v26 = vld [vmem:[#allocation2 + $0x10] sm:$0xf]  ;;  %v4646_v16 = vpop.f32.mrf.mxu0  ;;  %v5627_v39 = vrot.slane %v5546_v10, 7  ;;  %v5635_v40 = vrot.slane %v5633_v14, 4  ;;  %v5634_v6 = vsel %vm13423_vm5, %v5632_v27, %v5633_v14 }
 0x2ec   : > { %v5132_v19 = vshrl.u32 %v5068_v26, 16  ;;  %v4777_v35 = vmax.f32 %v4655_v11, 0.0  ;;  %v4647_v47 = vadd.f32 %v13486_v33, %v4646_v16  ;;  %v5135_v61 = vshll.u32 %v5068_v26, 16 }
 0x2ed   : > { %v5154_v9 = vrot.slane %v5152_v30, 6  ;;  %v5628_v48 = vsel %vm13423_vm5, %v5626_v57, %v5627_v39  ;;  %v5629_v0 = vrot.slane %v5627_v39, 4  ;;  %v5157_v54 = vrot.slane %v5155_v22, 7 }
 0x2ee   : > { %v5134_v23 = vrot.slane %v5132_v19, 6  ;;  %v10439_v43 = vpack.c.bf16 %v4777_v35, %v4776_v63  ;;  %v4775_v21 = vmax.f32 %v4647_v47, 0.0  ;;  %5732 = vrot.lane.b32.xlu1 %v5628_v48, %s10834_s27  ;;  %v5137_v8 = vrot.slane %v5135_v61, 7 }
 0x2ef   : > { %v5631_v18 = vsel %vm13423_vm5, %v5629_v0, %v5630_v45  ;;  %v5158_v46 = vor.u32 %v5157_v54, %v5154_v9  ;;  %v5637_v25 = vsel %vm13423_vm5, %v5635_v40, %v5636_v17  ;;  %v5638_v63 = vrot.slane %v5636_v17, 4 }
 0x2f0   : > { %10514 = vst [vmem:[#allocation2 + $0x28] sm:$0xff] %v10439_v43   ;;  %v10434_v28 = vpack.c.bf16 %v4775_v21, %v4774_v58  ;;  %5734 = vrot.lane.b32.xlu0 %v5631_v18, %s10834_s27  ;;  %v5138_v41 = vor.u32 %v5137_v8, %v5134_v23 }
 0x2f1   : > { %v5159_v7 = vsel %vm12775_vm10, %v5150_v34, %v5158_v46  ;;  %v5160_v24 = vrot.slane %v5158_v46, 4 }
 0x2f2   : > { %10513 = vst [vmem:[#allocation2 + $0x20] sm:$0xff] %v10434_v28   ;;  %5736 = vrot.lane.b32.xlu1 %v5634_v6, %s10834_s27  ;;  %v5139_v53 = vsel %vm12775_vm10, %v5130_v59, %v5138_v41  ;;  %v5140_v3 = vrot.slane %v5138_v41, 4  ;;  %5511 = vst.msk [vmem:[#allocation4 + $0x30] sm:$0xf] %vm5506_vm4, %v5159_v7 }
 0x2f3   : > { %5509 = vst.msk [vmem:[#allocation4 + $0x18] sm:$0xf] %vm5506_vm4, %v5139_v53  ;;  %v5169_v31 = vsel %vm12775_vm10, %v5160_v24, %v13524_v13 }
 0x2f4   : > { %5738 = vrot.lane.b32.xlu0 %v5637_v25, %s10834_s27  ;;  %v5149_v62 = vsel %vm12775_vm10, %v5140_v3, %v5148_v29  ;;  %5512 = vst.msk [vmem:[#allocation4 + $0x3c] sm:$0xf] %vm5506_vm4, %v5169_v31 }
 0x2f5   : > { %5510 = vst.msk [vmem:[#allocation4 + $0x24] sm:$0xf] %vm5506_vm4, %v5149_v62 }
 0x2f7   : > { %v5011_v55 = vld [vmem:[#allocation2 + $0x28] sm:$0xc]  ;;  %v5075_v36 = vld [vmem:[#allocation2 + $0x2c] sm:$0xf] }
 0x2f8   : > { %v5012_v57 = vsel %vm13543_vm13, 0, %v5011_v55  ;;  %v5202_v42 = vshrl.u32 %v5075_v36, 16  ;;  %v5205_v29 = vshll.u32 %v5075_v36, 16  ;;  %v5553_v7 = vld [vmem:[#allocation2 + $0x2c] sm:$0xf] }
 0x2f9   : > { %5013 = vst [vmem:[#allocation2 + $0x28] sm:$0xc] %v5012_v57  ;;  %v5005_v44 = vld [vmem:[#allocation2 + $0x20] sm:$0x6]  ;;  %v5073_v59 = vld [vmem:[#allocation2 + $0x24] sm:$0xf] }
 0x2fa   : > { %v5006_v20 = vsel %vm13549_vm1, 0, %v5005_v44  ;;  %v5182_v37 = vshrl.u32 %v5073_v59, 16  ;;  %v5185_v45 = vshll.u32 %v5073_v59, 16  ;;  %v5551_v11 = vld [vmem:[#allocation2 + $0x24] sm:$0xf]  ;;  %v5204_v61 = vrot.slane %v5202_v42, 6 }
 0x2fb   : > { %5007 = vst [vmem:[#allocation2 + $0x20] sm:$0x6] %v5006_v20  ;;  %v5642_v35 = vrot.slane %v5551_v11, 7  ;;  %v5207_v43 = vrot.slane %v5205_v29, 7  ;;  %v5170_v57 = vrot.slane %v13524_v13, 4 }
 0x2fc   : > { %v5184_v10 = vrot.slane %v5182_v37, 6  ;;  %v5187_v26 = vrot.slane %v5185_v45, 7  ;;  %v5648_v45 = vrot.slane %v5553_v7, 7  ;;  %v6894_v29 = vld [vmem:[#allocation2 + $0x14] sm:$0xf] }
 0x2fd   : > { %v10607_v30 = vpop.f32.mrf.mxu0  ;;  %v5644_v31 = vrot.slane %v5642_v35, 4  ;;  %6930 = vst.msk [vmem:[#allocation4 + $0x10] sm:$0xf] %vm5506_vm4, %v6894_v29 }
 0x2fe   : > { %v4668_v22 = vadd.f32 %v10607_v30, %v13486_v33  ;;  %v5188_v0 = vor.u32 %v5187_v26, %v5184_v10  ;;  %v13570_v30 = vor.u32 %v5207_v43, %v5204_v61 }
 0x2ff   : > { %v4659_v32 = vpop.f32.mrf.mxu0 }
 0x300   : > { %v5552_v16 = vld [vmem:[#allocation2 + $0x28] sm:$0xf]  ;;  %v4660_v14 = vadd.f32 %v13486_v33, %v4659_v32  ;;  %v4780_v21 = vmax.f32 %v4668_v22, 0.0  ;;  %v5190_v20 = vrot.slane %v5188_v0, 4  ;;  %v6896_v22 = vld [vmem:[#allocation2 + $0x1c] sm:$0xf] }
 0x301   : > { %v5074_v39 = vld [vmem:[#allocation2 + $0x28] sm:$0xf]  ;;  %v10608_v19 = vpop.f32.mrf.mxu0  ;;  %v5645_v54 = vrot.slane %v5552_v16, 7  ;;  %6932 = vst.msk [vmem:[#allocation4 + $0x28] sm:$0xf] %vm5506_vm4, %v6896_v22 }
 0x302   : > { %v5192_v47 = vshrl.u32 %v5074_v39, 16  ;;  %v4671_v9 = vadd.f32 %v10608_v19, %v13486_v33  ;;  %v5550_v58 = vld [vmem:[#allocation2 + $0x20] sm:$0xf]  ;;  %v5195_v23 = vshll.u32 %v5074_v39, 16  ;;  %v4778_v34 = vmax.f32 %v4660_v14, 0.0 }
 0x303   : > { %v5072_v48 = vld [vmem:[#allocation2 + $0x20] sm:$0xf]  ;;  %v4662_v50 = vpop.f32.mrf.mxu0  ;;  %v5639_v8 = vrot.slane %v5550_v58, 7  ;;  %v5647_v55 = vrot.slane %v5645_v54, 4  ;;  %v5646_v36 = vsel %vm13423_vm5, %v5644_v31, %v5645_v54  ;;  %v6895_v16 = vld [vmem:[#allocation2 + $0x18] sm:$0xf] }
 0x304   : > { %v5172_v18 = vshrl.u32 %v5072_v48, 16  ;;  %v4781_v27 = vmax.f32 %v4671_v9, 0.0  ;;  %v4663_v40 = vadd.f32 %v13486_v33, %v4662_v50  ;;  %v5175_v28 = vshll.u32 %v5072_v48, 16  ;;  %6931 = vst.msk [vmem:[#allocation4 + $0x1c] sm:$0xf] %vm5506_vm4, %v6895_v16 }
 0x305   : > { %v5194_v41 = vrot.slane %v5192_v47, 6  ;;  %v5640_v46 = vsel %vm13423_vm5, %v5638_v63, %v5639_v8  ;;  %v5641_v6 = vrot.slane %v5639_v8, 4  ;;  %v5197_v25 = vrot.slane %v5195_v23, 7  ;;  %v6893_v23 = vld [vmem:[#allocation2 + $0x10] sm:$0xf] }
 0x306   : > { %v5174_v17 = vrot.slane %v5172_v18, 6  ;;  %v10449_v53 = vpack.c.bf16 %v4781_v27, %v4780_v21  ;;  %v4779_v3 = vmax.f32 %v4663_v40, 0.0  ;;  %5740 = vrot.lane.b32.xlu1 %v5640_v46, %s10834_s27  ;;  %v5177_v24 = vrot.slane %v5175_v28, 7  ;;  %6929 = vst.msk [vmem:[#allocation4 + $0x4] sm:$0xf] %vm5506_vm4, %v6893_v23 }
 0x307   : > { %v5643_v62 = vsel %vm13423_vm5, %v5641_v6, %v5642_v35  ;;  %v5198_v37 = vor.u32 %v5197_v25, %v5194_v41  ;;  %v5649_v26 = vsel %vm13423_vm5, %v5647_v55, %v5648_v45  ;;  %v5650_v40 = vrot.slane %v5648_v45, 4  ;;  %v6898_v23 = vld [vmem:[#allocation2 + $0x24] sm:$0xf] }
 0x308   : > { %10516 = vst [vmem:[#allocation2 + $0x38] sm:$0xff] %v10449_v53   ;;  %v10444_v44 = vpack.c.bf16 %v4779_v3, %v4778_v34  ;;  %5742 = vrot.lane.b32.xlu0 %v5643_v62, %s10834_s27  ;;  %v5178_v59 = vor.u32 %v5177_v24, %v5174_v17  ;;  %v5210_v46 = vrot.slane %v13570_v30, 4  ;;  %6934 = vst.msk [vmem:[#allocation4 + $0x40] sm:$0xf] %vm5506_vm4, %v6898_v23 }
 0x309   : > { %v5199_v11 = vsel %vm12775_vm10, %v5190_v20, %v5198_v37  ;;  %v5200_v10 = vrot.slane %v5198_v37, 4 }
 0x30a   : > { %10515 = vst [vmem:[#allocation2 + $0x30] sm:$0xff] %v10444_v44   ;;  %5744 = vrot.lane.b32.xlu1 %v5646_v36, %s10834_s27  ;;  %v5179_v42 = vsel %vm12775_vm10, %v5170_v57, %v5178_v59  ;;  %v5180_v13 = vrot.slane %v5178_v59, 4  ;;  %5515 = vst.msk [vmem:[#allocation4 + $0x60] sm:$0xf] %vm5506_vm4, %v5199_v11 }
 0x30b   : > { %5513 = vst.msk [vmem:[#allocation4 + $0x48] sm:$0xf] %vm5506_vm4, %v5179_v42  ;;  %v5209_v63 = vsel %vm12775_vm10, %v5200_v10, %v13570_v30 }
 0x30c   : > { %5746 = vrot.lane.b32.xlu0 %v5649_v26, %s10834_s27  ;;  %v5189_v32 = vsel %vm12775_vm10, %v5180_v13, %v5188_v0  ;;  %5516 = vst.msk [vmem:[#allocation4 + $0x6c] sm:$0xf] %vm5506_vm4, %v5209_v63 }
 0x30d   : > { %5514 = vst.msk [vmem:[#allocation4 + $0x54] sm:$0xf] %vm5506_vm4, %v5189_v32 }
 0x30f   : > { %v5020_v39 = vld [vmem:[#allocation2 + $0x3c] sm:$0x3]  ;;  %v5078_v14 = vld [vmem:[#allocation2 + $0x38] sm:$0xf] }
 0x310   : > { %v5021_v19 = vsel %vm13493_vm14, 0, %v5020_v39  ;;  %v5232_v58 = vshrl.u32 %v5078_v14, 16  ;;  %v5235_v48 = vshll.u32 %v5078_v14, 16  ;;  %v5556_v50 = vld [vmem:[#allocation2 + $0x38] sm:$0xf] }
 0x311   : > { %5022 = vst [vmem:[#allocation2 + $0x3c] sm:$0x3] %v5021_v19  ;;  %v5014_v35 = vld [vmem:[#allocation2 + $0x30] sm:$0x8]  ;;  %v5017_v47 = vld [vmem:[#allocation2 + $0x34] sm:$0x1] }
 0x312   : > { %v5015_v61 = vsel %vm13410_vm8, 0, %v5014_v35  ;;  %v5018_v9 = vsel %vm13499_vm15, 0, %v5017_v47  ;;  %v5234_v8 = vrot.slane %v5232_v58, 6  ;;  %v5237_v54 = vrot.slane %v5235_v48, 7 }
 0x313   : > { %5016 = vst [vmem:[#allocation2 + $0x30] sm:$0x8] %v5015_v61  ;;  %5019 = vst [vmem:[#allocation2 + $0x34] sm:$0x1] %v5018_v9  ;;  %v5657_v34 = vrot.slane %v5556_v50, 7 }
 0x314   : > { %v5238_v24 = vor.u32 %v5237_v54, %v5234_v8  ;;  %v6900_v50 = vld [vmem:[#allocation2 + $0x2c] sm:$0xf] }
 0x315   : > { %v10611_v0 = vpop.f32.mrf.mxu0  ;;  %v5659_v61 = vrot.slane %v5657_v34, 4  ;;  %6936 = vst.msk [vmem:[#allocation4 + $0x58] sm:$0xf] %vm5506_vm4, %v6900_v50 }
 0x316   : > { %v4684_v43 = vadd.f32 %v10611_v0, %v13486_v33  ;;  %v5240_v8 = vrot.slane %v5238_v24, 4 }
 0x317   : > { %v4675_v21 = vpop.f32.mrf.mxu0 }
 0x318   : > { %v4676_v18 = vadd.f32 %v13486_v33, %v4675_v21  ;;  %v4784_v28 = vmax.f32 %v4684_v43, 0.0  ;;  %v5079_v6 = vld [vmem:[#allocation2 + $0x3c] sm:$0xf] }
 0x319   : > { %v10612_v27 = vpop.f32.mrf.mxu0  ;;  %v5557_v59 = vld [vmem:[#allocation2 + $0x3c] sm:$0xf]  ;;  %v5242_v36 = vshrl.u32 %v5079_v6, 16  ;;  %v5245_v35 = vshll.u32 %v5079_v6, 16 }
 0x31a   : > { %v4687_v41 = vadd.f32 %v10612_v27, %v13486_v33  ;;  %v5554_v53 = vld [vmem:[#allocation2 + $0x30] sm:$0xf]  ;;  %v5555_v3 = vld [vmem:[#allocation2 + $0x34] sm:$0xf]  ;;  %v4782_v44 = vmax.f32 %v4676_v18, 0.0  ;;  %v5660_v63 = vrot.slane %v5557_v59, 7 }
 0x31b   : > { %v4678_v17 = vpop.f32.mrf.mxu0  ;;  %v5076_v7 = vld [vmem:[#allocation2 + $0x30] sm:$0xf]  ;;  %v5651_v31 = vrot.slane %v5554_v53, 7  ;;  %v5654_v55 = vrot.slane %v5555_v3, 7  ;;  %v5077_v57 = vld [vmem:[#allocation2 + $0x34] sm:$0xf] }
 0x31c   : > { %v4785_v25 = vmax.f32 %v4687_v41, 0.0  ;;  %v4679_v62 = vadd.f32 %v13486_v33, %v4678_v17  ;;  %v5212_v20 = vshrl.u32 %v5076_v7, 16  ;;  %v5215_v37 = vshll.u32 %v5076_v7, 16 }
 0x31d   : > { %v5652_v30 = vsel %vm13423_vm5, %v5650_v40, %v5651_v31  ;;  %v5653_v13 = vrot.slane %v5651_v31, 4  ;;  %v5656_v11 = vrot.slane %v5654_v55, 4  ;;  %v5222_v29 = vshrl.u32 %v5077_v57, 16 }
 0x31e   : > { %v10459_v45 = vpack.c.bf16 %v4785_v25, %v4784_v28  ;;  %v4783_v42 = vmax.f32 %v4679_v62, 0.0  ;;  %5748 = vrot.lane.b32.xlu1 %v5652_v30, %s10834_s27  ;;  %v5214_v10 = vrot.slane %v5212_v20, 6  ;;  %v5217_v26 = vrot.slane %v5215_v37, 7 }
 0x31f   : > { %v5655_v32 = vsel %vm13423_vm5, %v5653_v13, %v5654_v55  ;;  %v5225_v16 = vshll.u32 %v5077_v57, 16  ;;  %v5224_v14 = vrot.slane %v5222_v29, 6  ;;  %v5244_v19 = vrot.slane %v5242_v36, 6 }
 0x320   : > { %10518 = vst [vmem:[#allocation2 + $0x48] sm:$0xff] %v10459_v45   ;;  %v10454_v22 = vpack.c.bf16 %v4783_v42, %v4782_v44  ;;  %5750 = vrot.lane.b32.xlu0 %v5655_v32, %s10834_s27  ;;  %v5218_v39 = vor.u32 %v5217_v26, %v5214_v10  ;;  %v5658_v47 = vsel %vm13423_vm5, %v5656_v11, %v5657_v34  ;;  %v5247_v0 = vrot.slane %v5245_v35, 7 }
 0x321   : > { %v5227_v9 = vrot.slane %v5225_v16, 7  ;;  %v5661_v43 = vsel %vm13423_vm5, %v5659_v61, %v5660_v63  ;;  %v5662_v7 = vrot.slane %v5660_v63, 4  ;;  %v6897_v16 = vld [vmem:[#allocation2 + $0x20] sm:$0xf] }
 0x322   : > { %10517 = vst [vmem:[#allocation2 + $0x40] sm:$0xff] %v10454_v22   ;;  %5752 = vrot.lane.b32.xlu1 %v5658_v47, %s10834_s27  ;;  %v5219_v58 = vsel %vm12775_vm10, %v5210_v46, %v5218_v39  ;;  %v5220_v48 = vrot.slane %v5218_v39, 4  ;;  %v5248_v54 = vor.u32 %v5247_v0, %v5244_v19  ;;  %6933 = vst.msk [vmem:[#allocation4 + $0x34] sm:$0xf] %vm5506_vm4, %v6897_v16 }
 0x323   : > { %5517 = vst.msk [vmem:[#allocation4 + $0x78] sm:$0xf] %vm5506_vm4, %v5219_v58  ;;  %v5228_v21 = vor.u32 %v5227_v9, %v5224_v14 }
 0x324   : > { %5754 = vrot.lane.b32.xlu0 %v5661_v43, %s10834_s27  ;;  %v5249_v28 = vsel %vm12775_vm10, %v5240_v8, %v5248_v54  ;;  %v5250_v42 = vrot.slane %v5248_v54, 4  ;;  %v6899_v43 = vld [vmem:[#allocation2 + $0x28] sm:$0xf] }
 0x325   : > { %v5229_v18 = vsel %vm12775_vm10, %v5220_v48, %v5228_v21  ;;  %v5230_v27 = vrot.slane %v5228_v21, 4  ;;  %5520 = vst.msk [vmem:[#allocation4 + $0x9c] sm:$0xf] %vm5506_vm4, %v5249_v28  ;;  %6935 = vst.msk [vmem:[#allocation4 + $0x4c] sm:$0xf] %vm5506_vm4, %v6899_v43 }
 0x326   : > { %5518 = vst.msk [vmem:[#allocation4 + $0x84] sm:$0xf] %vm5506_vm4, %v5229_v18 }
 0x327   : > { %v5026_v40 = vld [vmem:[#allocation2 + $0x4c] sm:$0xc]  ;;  %v5239_v34 = vsel %vm12775_vm10, %v5230_v27, %v5238_v24  ;;  %v5082_v46 = vld [vmem:[#allocation2 + $0x48] sm:$0xf] }
 0x328   : > { %v5027_v41 = vsel %vm13543_vm13, 0, %v5026_v40  ;;  %5519 = vst.msk [vmem:[#allocation4 + $0x90] sm:$0xf] %vm5506_vm4, %v5239_v34  ;;  %v5272_v55 = vshrl.u32 %v5082_v46, 16  ;;  %v5275_v57 = vshll.u32 %v5082_v46, 16 }
 0x329   : > { %5028 = vst [vmem:[#allocation2 + $0x4c] sm:$0xc] %v5027_v41  ;;  %v5023_v6 = vld [vmem:[#allocation2 + $0x44] sm:$0x6]  ;;  %v5558_v17 = vld [vmem:[#allocation2 + $0x40] sm:$0xf] }
 0x32a   : > { %v5080_v53 = vld [vmem:[#allocation2 + $0x40] sm:$0xf]  ;;  %v5024_v3 = vsel %vm13549_vm1, 0, %v5023_v6  ;;  %v5663_v25 = vrot.slane %v5558_v17, 7  ;;  %v5560_v36 = vld [vmem:[#allocation2 + $0x48] sm:$0xf] }
 0x32b   : > { %v5252_v62 = vshrl.u32 %v5080_v53, 16  ;;  %5025 = vst [vmem:[#allocation2 + $0x44] sm:$0x6] %v5024_v3  ;;  %v5255_v31 = vshll.u32 %v5080_v53, 16  ;;  %v5274_v13 = vrot.slane %v5272_v55, 6  ;;  %v5277_v11 = vrot.slane %v5275_v57, 7 }
 0x32c   : > { %v5664_v24 = vsel %vm13423_vm5, %v5662_v7, %v5663_v25  ;;  %v5669_v22 = vrot.slane %v5560_v36, 7  ;;  %v5665_v47 = vrot.slane %v5663_v25, 4 }
 0x32d   : > { %v5254_v44 = vrot.slane %v5252_v62, 6  ;;  %v10615_v59 = vpop.f32.mrf.mxu0  ;;  %5756 = vrot.lane.b32.xlu1 %v5664_v24, %s10834_s27  ;;  %v5257_v20 = vrot.slane %v5255_v31, 7  ;;  %v5278_v23 = vor.u32 %v5277_v11, %v5274_v13 }
 0x32e   : > { %v4700_v37 = vadd.f32 %v10615_v59, %v13486_v33  ;;  %v5671_v53 = vrot.slane %v5669_v22, 4 }
 0x32f   : > { %v4691_v45 = vpop.f32.mrf.mxu0  ;;  %v5258_v30 = vor.u32 %v5257_v20, %v5254_v44  ;;  %v5280_v55 = vrot.slane %v5278_v23, 4 }
 0x330   : > { %v13638_v10 = vld [vmem:[#allocation2 + $0x4c] sm:$0xf]  ;;  %v4788_v39 = vmax.f32 %v4700_v37, 0.0  ;;  %v4692_v14 = vadd.f32 %v13486_v33, %v4691_v45 }
 0x331   : > { %v5083_v26 = vld [vmem:[#allocation2 + $0x4c] sm:$0xf]  ;;  %v10616_v29 = vpop.f32.mrf.mxu0  ;;  %v5259_v32 = vsel %vm12775_vm10, %v5250_v42, %v5258_v30  ;;  %v5672_v48 = vrot.slane %v13638_v10, 7  ;;  %v5260_v25 = vrot.slane %v5258_v30, 4 }
 0x332   : > { %v5282_v63 = vshrl.u32 %v5083_v26, 16  ;;  %v4703_v19 = vadd.f32 %v10616_v29, %v13486_v33  ;;  %v5559_v35 = vld [vmem:[#allocation2 + $0x44] sm:$0xf]  ;;  %5521 = vst.msk [vmem:[#allocation4 + $0xa8] sm:$0xf] %vm5506_vm4, %v5259_v32  ;;  %v5285_v28 = vshll.u32 %v5083_v26, 16 }
 0x333   : > { %v5081_v61 = vld [vmem:[#allocation2 + $0x44] sm:$0xf]  ;;  %v4694_v9 = vpop.f32.mrf.mxu0  ;;  %v5666_v58 = vrot.slane %v5559_v35, 7  ;;  %v4786_v41 = vmax.f32 %v4692_v14, 0.0  ;;  %v5673_v31 = vsel %vm13423_vm5, %v5671_v53, %v5672_v48  ;;  %v5674_v10 = vrot.slane %v5672_v48, 4 }
 0x334   : > { %v5262_v0 = vshrl.u32 %v5081_v61, 16  ;;  %v4789_v21 = vmax.f32 %v4703_v19, 0.0  ;;  %v4695_v50 = vadd.f32 %v13486_v33, %v4694_v9  ;;  %v5265_v8 = vshll.u32 %v5081_v61, 16  ;;  %v6904_v14 = vld [vmem:[#allocation2 + $0x3c] sm:$0xf] }
 0x335   : > { %v5284_v54 = vrot.slane %v5282_v63, 6  ;;  %v5667_v18 = vsel %vm13423_vm5, %v5665_v47, %v5666_v58  ;;  %v5668_v27 = vrot.slane %v5666_v58, 4  ;;  %v5287_v3 = vrot.slane %v5285_v28, 7  ;;  %6940 = vst.msk [vmem:[#allocation4 + $0x88] sm:$0xf] %vm5506_vm4, %v6904_v14 }
 0x336   : > { %v5264_v40 = vrot.slane %v5262_v0, 6  ;;  %v10469_v34 = vpack.c.bf16 %v4789_v21, %v4788_v39  ;;  %v4787_v46 = vmax.f32 %v4695_v50, 0.0  ;;  %5758 = vrot.lane.b32.xlu0 %v5667_v18, %s10834_s27  ;;  %v5267_v6 = vrot.slane %v5265_v8, 7  ;;  %v6902_v48 = vld [vmem:[#allocation2 + $0x34] sm:$0xf] }
 0x337   : > { %v5670_v17 = vsel %vm13423_vm5, %v5668_v27, %v5669_v22  ;;  %v5288_v57 = vor.u32 %v5287_v3, %v5284_v54  ;;  %v6901_v0 = vld [vmem:[#allocation2 + $0x30] sm:$0xf]  ;;  %6938 = vst.msk [vmem:[#allocation4 + $0x70] sm:$0xf] %vm5506_vm4, %v6902_v48 }
 0x338   : > { %10520 = vst [vmem:[#allocation2 + $0x58] sm:$0xff] %v10469_v34   ;;  %v10464_v7 = vpack.c.bf16 %v4787_v46, %v4786_v41  ;;  %5760 = vrot.lane.b32.xlu1 %v5670_v17, %s10834_s27  ;;  %v5268_v62 = vor.u32 %v5267_v6, %v5264_v40  ;;  %6937 = vst.msk [vmem:[#allocation4 + $0x64] sm:$0xf] %vm5506_vm4, %v6901_v0 }
 0x339   : > { %v5289_v59 = vsel %vm12775_vm10, %v5280_v55, %v5288_v57  ;;  %v5290_v9 = vrot.slane %v5288_v57, 4 }
 0x33a   : > { %10519 = vst [vmem:[#allocation2 + $0x50] sm:$0xff] %v10464_v7   ;;  %5762 = vrot.lane.b32.xlu0 %v5673_v31, %s10834_s27  ;;  %v5269_v24 = vsel %vm12775_vm10, %v5260_v25, %v5268_v62  ;;  %v5270_v44 = vrot.slane %v5268_v62, 4  ;;  %5524 = vst.msk [vmem:[#allocation4 + $0xcc] sm:$0xf] %vm5506_vm4, %v5289_v59 }
 0x33b   : > { %5522 = vst.msk [vmem:[#allocation4 + $0xb4] sm:$0xf] %vm5506_vm4, %v5269_v24 }
 0x33c   : > { %v5279_v20 = vsel %vm12775_vm10, %v5270_v44, %v5278_v23 }
 0x33d   : > { %5523 = vst.msk [vmem:[#allocation4 + $0xc0] sm:$0xf] %vm5506_vm4, %v5279_v20 }
 0x33f   : > { %v5032_v37 = vld [vmem:[#allocation2 + $0x58] sm:$0x1]  ;;  %v5087_v45 = vld [vmem:[#allocation2 + $0x5c] sm:$0xf] }
 0x340   : > { %v5033_v36 = vsel %vm13499_vm15, 0, %v5032_v37  ;;  %v5322_v16 = vshrl.u32 %v5087_v45, 16  ;;  %v5325_v39 = vshll.u32 %v5087_v45, 16  ;;  %v5565_v57 = vld [vmem:[#allocation2 + $0x5c] sm:$0xf] }
 0x341   : > { %5034 = vst [vmem:[#allocation2 + $0x58] sm:$0x1] %v5033_v36  ;;  %v5029_v42 = vld [vmem:[#allocation2 + $0x54] sm:$0x8]  ;;  %v5562_v30 = vld [vmem:[#allocation2 + $0x50] sm:$0xf] }
 0x342   : > { %v5084_v13 = vld [vmem:[#allocation2 + $0x50] sm:$0xf]  ;;  %v5030_v11 = vsel %vm13410_vm8, 0, %v5029_v42  ;;  %v5675_v26 = vrot.slane %v5562_v30, 7  ;;  %v5324_v50 = vrot.slane %v5322_v16, 6  ;;  %v5327_v8 = vrot.slane %v5325_v39, 7 }
 0x343   : > { %v5292_v29 = vshrl.u32 %v5084_v13, 16  ;;  %5031 = vst [vmem:[#allocation2 + $0x54] sm:$0x8] %v5030_v11  ;;  %v5295_v22 = vshll.u32 %v5084_v13, 16  ;;  %v6903_v45 = vld [vmem:[#allocation2 + $0x38] sm:$0xf] }
 0x344   : > { %v5676_v32 = vsel %vm13423_vm5, %v5674_v10, %v5675_v26  ;;  %v5677_v18 = vrot.slane %v5675_v26, 4  ;;  %6939 = vst.msk [vmem:[#allocation4 + $0x7c] sm:$0xf] %vm5506_vm4, %v6903_v45  ;;  %v5684_v26 = vrot.slane %v5565_v57, 7 }
 0x345   : > { %v5294_v63 = vrot.slane %v5292_v29, 6  ;;  %v10619_v19 = vpop.f32.mrf.mxu0  ;;  %5764 = vrot.lane.b32.xlu1 %v5676_v32, %s10834_s27  ;;  %v5297_v35 = vrot.slane %v5295_v22, 7  ;;  %v13690_v29 = vor.u32 %v5327_v8, %v5324_v50  ;;  %v13710_v8 = vpop.permute.xlu0 %10706 }
 0x346   : > { %v4716_v47 = vadd.f32 %v10619_v19, %v13486_v33 }
 0x347   : > { %v4707_v61 = vpop.f32.mrf.mxu0  ;;  %v5298_v58 = vor.u32 %v5297_v35, %v5294_v63 }
 0x348   : > { %v4708_v23 = vadd.f32 %v13486_v33, %v4707_v61  ;;  %v5564_v43 = vld [vmem:[#allocation2 + $0x58] sm:$0xf]  ;;  %v4792_v41 = vmax.f32 %v4716_v47, 0.0 }
 0x349   : > { %v5086_v21 = vld [vmem:[#allocation2 + $0x58] sm:$0xf]  ;;  %v10620_v54 = vpop.f32.mrf.mxu0  ;;  %v5681_v27 = vrot.slane %v5564_v43, 7  ;;  %v5299_v40 = vsel %vm12775_vm10, %v5290_v9, %v5298_v58  ;;  %v5300_v32 = vrot.slane %v5298_v58, 4 }
 0x34a   : > { %v5312_v28 = vshrl.u32 %v5086_v21, 16  ;;  %v4719_v34 = vadd.f32 %v10620_v54, %v13486_v33  ;;  %v5563_v46 = vld [vmem:[#allocation2 + $0x54] sm:$0xf]  ;;  %5525 = vst.msk [vmem:[#allocation4 + $0xd8] sm:$0xf] %vm5506_vm4, %v5299_v40  ;;  %v5315_v17 = vshll.u32 %v5086_v21, 16 }
 0x34b   : > { %v5085_v6 = vld [vmem:[#allocation2 + $0x54] sm:$0xf]  ;;  %v4790_v53 = vmax.f32 %v4708_v23, 0.0  ;;  %v4710_v3 = vpop.f32.mrf.mxu0  ;;  %v5678_v7 = vrot.slane %v5563_v46, 7  ;;  %v5683_v37 = vrot.slane %v5681_v27, 4  ;;  %v5686_v46 = vrot.slane %v5684_v26, 4 }
 0x34c   : > { %v5302_v25 = vshrl.u32 %v5085_v6, 16  ;;  %v5305_v62 = vshll.u32 %v5085_v6, 16  ;;  %v4793_v31 = vmax.f32 %v4719_v34, 0.0  ;;  %v4711_v55 = vadd.f32 %v13486_v33, %v4710_v3 }
 0x34d   : > { %v5314_v24 = vrot.slane %v5312_v28, 6  ;;  %v5317_v44 = vrot.slane %v5315_v17, 7  ;;  %v5679_v59 = vsel %vm13423_vm5, %v5677_v18, %v5678_v7  ;;  %v5680_v20 = vrot.slane %v5678_v7, 4 }
 0x34e   : > { %v5304_v36 = vrot.slane %v5302_v25, 6  ;;  %v10479_v42 = vpack.c.bf16 %v4793_v31, %v4792_v41  ;;  %v4791_v30 = vmax.f32 %v4711_v55, 0.0  ;;  %5766 = vrot.lane.b32.xlu0 %v5679_v59, %s10834_s27  ;;  %v5307_v13 = vrot.slane %v5305_v62, 7  ;;  %v6905_v55 = vld [vmem:[#allocation2 + $0x40] sm:$0xf] }
 0x34f   : > { %v5318_v11 = vor.u32 %v5317_v44, %v5314_v24  ;;  %v5682_v10 = vsel %vm13423_vm5, %v5680_v20, %v5681_v27  ;;  %v5685_v39 = vsel %vm13423_vm5, %v5683_v37, %v5684_v26  ;;  %6941 = vst.msk [vmem:[#allocation4 + $0x94] sm:$0xf] %vm5506_vm4, %v6905_v55 }
 0x350   : > { %10522 = vst [vmem:[#allocation2 + $0x68] sm:$0xff] %v10479_v42   ;;  %v10474_v22 = vpack.c.bf16 %v4791_v30, %v4790_v53  ;;  %5768 = vrot.lane.b32.xlu1 %v5682_v10, %s10834_s27  ;;  %v5308_v63 = vor.u32 %v5307_v13, %v5304_v36  ;;  %v6907_v10 = vld [vmem:[#allocation2 + $0x48] sm:$0xf] }
 0x351   : > { %v5320_v16 = vrot.slane %v5318_v11, 4  ;;  %6943 = vst.msk [vmem:[#allocation4 + $0xac] sm:$0xf] %vm5506_vm4, %v6907_v10 }
 0x352   : > { %10521 = vst [vmem:[#allocation2 + $0x60] sm:$0xff] %v10474_v22   ;;  %5770 = vrot.lane.b32.xlu0 %v5685_v39, %s10834_s27  ;;  %v5309_v14 = vsel %vm12775_vm10, %v5300_v32, %v5308_v63  ;;  %v5310_v19 = vrot.slane %v5308_v63, 4 }
 0x353   : > { %v5329_v35 = vsel %vm12775_vm10, %v5320_v16, %v13690_v29  ;;  %5526 = vst.msk [vmem:[#allocation4 + $0xe4] sm:$0xf] %vm5506_vm4, %v5309_v14 }
 0x354   : > { %5528 = vst.msk [vmem:[#allocation4 + $0xfc] sm:$0xf] %vm5506_vm4, %v5329_v35  ;;  %v5319_v47 = vsel %vm12775_vm10, %v5310_v19, %v5318_v11 }
 0x355   : > { %5527 = vst.msk [vmem:[#allocation4 + $0xf0] sm:$0xf] %vm5506_vm4, %v5319_v47 }
 0x357   : > { %v5038_v61 = vld [vmem:[#allocation2 + $0x68] sm:$0x6]  ;;  %v5091_v43 = vld [vmem:[#allocation2 + $0x6c] sm:$0xf] }
 0x358   : > { %v5039_v9 = vsel %vm13549_vm1, 0, %v5038_v61  ;;  %v5362_v54 = vshrl.u32 %v5091_v43, 16  ;;  %v5365_v28 = vshll.u32 %v5091_v43, 16 }
 0x359   : > { %5040 = vst [vmem:[#allocation2 + $0x68] sm:$0x6] %v5039_v9  ;;  %v5035_v58 = vld [vmem:[#allocation2 + $0x60] sm:$0x3]  ;;  %v5089_v48 = vld [vmem:[#allocation2 + $0x64] sm:$0xf] }
 0x35a   : > { %v5036_v0 = vsel %vm13493_vm14, 0, %v5035_v58  ;;  %v5342_v23 = vshrl.u32 %v5089_v48, 16  ;;  %v5345_v21 = vshll.u32 %v5089_v48, 16  ;;  %v5567_v18 = vld [vmem:[#allocation2 + $0x64] sm:$0xf]  ;;  %v5364_v31 = vrot.slane %v5362_v54, 6 }
 0x35b   : > { %5037 = vst [vmem:[#allocation2 + $0x60] sm:$0x3] %v5036_v0  ;;  %v5690_v25 = vrot.slane %v5567_v18, 7  ;;  %v5367_v37 = vrot.slane %v5365_v28, 7  ;;  %v5569_v9 = vld [vmem:[#allocation2 + $0x6c] sm:$0xf] }
 0x35c   : > { %v5344_v27 = vrot.slane %v5342_v23, 6  ;;  %v5347_v40 = vrot.slane %v5345_v21, 7  ;;  %v5330_v21 = vrot.slane %v13690_v29, 4  ;;  %v5696_v28 = vrot.slane %v5569_v9, 7 }
 0x35d   : > { %v10623_v50 = vpop.f32.mrf.mxu0  ;;  %v5692_v23 = vrot.slane %v5690_v25, 4 }
 0x35e   : > { %v4732_v41 = vadd.f32 %v10623_v50, %v13486_v33  ;;  %v5348_v59 = vor.u32 %v5347_v40, %v5344_v27 }
 0x35f   : > { %v4723_v34 = vpop.f32.mrf.mxu0 }
 0x360   : > { %v5568_v6 = vld [vmem:[#allocation2 + $0x68] sm:$0xf]  ;;  %v4724_v53 = vadd.f32 %v13486_v33, %v4723_v34  ;;  %v5733_v3 = vpop.permute.xlu1 %5732  ;;  %v4796_v36 = vmax.f32 %v4732_v41, 0.0  ;;  %v5350_v18 = vrot.slane %v5348_v59, 4  ;;  %v13731_v41 = vor.u32 %v5367_v37, %v5364_v31 }
 0x361   : > { %v5090_v17 = vld [vmem:[#allocation2 + $0x68] sm:$0xf]  ;;  %v10624_v7 = vpop.f32.mrf.mxu0  ;;  %5839 = vst.msk [vmem:[#allocation4 + $0x18] sm:$0xf] %vm5836_vm2, %v5733_v3  ;;  %v5693_v13 = vrot.slane %v5568_v6, 7 }
 0x362   : > { %v5352_v62 = vshrl.u32 %v5090_v17, 16  ;;  %v4735_v57 = vadd.f32 %v10624_v7, %v13486_v33  ;;  %v5566_v24 = vld [vmem:[#allocation2 + $0x60] sm:$0xf]  ;;  %v5355_v20 = vshll.u32 %v5090_v17, 16  ;;  %v5735_v45 = vpop.permute.xlu0 %5734  ;;  %v4794_v16 = vmax.f32 %v4724_v53, 0.0 }
 0x363   : > { %v5088_v44 = vld [vmem:[#allocation2 + $0x60] sm:$0xf]  ;;  %v4726_v42 = vpop.f32.mrf.mxu0  ;;  %v5687_v30 = vrot.slane %v5566_v24, 7  ;;  %5840 = vst.msk [vmem:[#allocation4 + $0x24] sm:$0xf] %vm5836_vm2, %v5735_v45  ;;  %v5695_v43 = vrot.slane %v5693_v13, 4  ;;  %v5694_v40 = vsel %vm13423_vm5, %v5692_v23, %v5693_v13 }
 0x364   : > { %v5332_v11 = vshrl.u32 %v5088_v44, 16  ;;  %v4797_v26 = vmax.f32 %v4735_v57, 0.0  ;;  %v4727_v22 = vadd.f32 %v13486_v33, %v4726_v42  ;;  %v5335_v32 = vshll.u32 %v5088_v44, 16  ;;  %v5737_v39 = vpop.permute.xlu1 %5736  ;;  %v13759_v45 = vld [vmem:[%s16693_s2] ss:$0 sm:$0xff] }
 0x365   : > { %v5354_v63 = vrot.slane %v5352_v62, 6  ;;  %v5688_v14 = vsel %vm13423_vm5, %v5686_v46, %v5687_v30  ;;  %v5689_v19 = vrot.slane %v5687_v30, 4  ;;  %5841 = vst.msk [vmem:[#allocation4 + $0x30] sm:$0xf] %vm5836_vm2, %v5737_v39  ;;  %v5357_v33 = vrot.slane %v5355_v20, 7 }
 0x366   : > { %v5334_v35 = vrot.slane %v5332_v11, 6  ;;  %v10489_v47 = vpack.c.bf16 %v4797_v26, %v4796_v36  ;;  %v4795_v61 = vmax.f32 %v4727_v22, 0.0  ;;  %5772 = vrot.lane.b32.xlu1 %v5688_v14, %s10834_s27  ;;  %v5337_v58 = vrot.slane %v5335_v32, 7  ;;  %v5739_v48 = vpop.permute.xlu0 %5738 }
 0x367   : > { %v5691_v0 = vsel %vm13423_vm5, %v5689_v19, %v5690_v25  ;;  %5842 = vst.msk [vmem:[#allocation4 + $0x3c] sm:$0xf] %vm5836_vm2, %v5739_v48  ;;  %v5358_v27 = vor.u32 %v5357_v33, %v5354_v63  ;;  %v5697_v17 = vsel %vm13423_vm5, %v5695_v43, %v5696_v28  ;;  %v5698_v63 = vrot.slane %v5696_v28, 4 }
 0x368   : > { %10524 = vst [vmem:[#allocation2 + $0x78] sm:$0xff] %v10489_v47   ;;  %v10484_v50 = vpack.c.bf16 %v4795_v61, %v4794_v16  ;;  %5774 = vrot.lane.b32.xlu0 %v5691_v0, %s10834_s27  ;;  %v5338_v54 = vor.u32 %v5337_v58, %v5334_v35 }
 0x369   : > { %v5359_v46 = vsel %vm12775_vm10, %v5350_v18, %v5358_v27  ;;  %v5360_v6 = vrot.slane %v5358_v27, 4 }
 0x36a   : > { %10523 = vst [vmem:[#allocation2 + $0x70] sm:$0xff] %v10484_v50   ;;  %5776 = vrot.lane.b32.xlu1 %v5694_v40, %s10834_s27  ;;  %v5339_v29 = vsel %vm12775_vm10, %v5330_v21, %v5338_v54  ;;  %v5340_v34 = vrot.slane %v5338_v54, 4  ;;  %5531 = vst.msk [vmem:[#allocation4 + $0x120] sm:$0xf] %vm5506_vm4, %v5359_v46 }
 0x36b   : > { %5529 = vst.msk [vmem:[#allocation4 + $0x108] sm:$0xf] %vm5506_vm4, %v5339_v29  ;;  %v5369_v3 = vsel %vm12775_vm10, %v5360_v6, %v13731_v41 }
 0x36c   : > { %5778 = vrot.lane.b32.xlu0 %v5697_v17, %s10834_s27  ;;  %v5349_v53 = vsel %vm12775_vm10, %v5340_v34, %v5348_v59  ;;  %5532 = vst.msk [vmem:[#allocation4 + $0x12c] sm:$0xf] %vm5506_vm4, %v5369_v3 }
 0x36d   : > { %5530 = vst.msk [vmem:[#allocation4 + $0x114] sm:$0xf] %vm5506_vm4, %v5349_v53 }
 0x36f   : > { %v5044_v7 = vld [vmem:[#allocation2 + $0x78] sm:$0x8]  ;;  %v5047_v25 = vld [vmem:[#allocation2 + $0x7c] sm:$0x1] }
 0x370   : > { %v5045_v62 = vsel %vm13410_vm8, 0, %v5044_v7  ;;  %v5048_v31 = vsel %vm13499_vm15, 0, %v5047_v25 }
 0x371   : > { %5046 = vst [vmem:[#allocation2 + $0x78] sm:$0x8] %v5045_v62  ;;  %5049 = vst [vmem:[#allocation2 + $0x7c] sm:$0x1] %v5048_v31  ;;  %v5041_v55 = vld [vmem:[#allocation2 + $0x70] sm:$0xc] }
 0x372   : > { %v5042_v57 = vsel %vm13543_vm13, 0, %v5041_v55  ;;  %v5093_v24 = vld [vmem:[#allocation2 + $0x74] sm:$0xf] }
 0x373   : > { %5043 = vst [vmem:[#allocation2 + $0x70] sm:$0xc] %v5042_v57  ;;  %v5571_v44 = vld [vmem:[#allocation2 + $0x74] sm:$0xf]  ;;  %v5382_v59 = vshrl.u32 %v5093_v24, 16  ;;  %v5385_v20 = vshll.u32 %v5093_v24, 16 }
 0x374   : > { %v5702_v36 = vrot.slane %v5571_v44, 7  ;;  %v6906_v57 = vld [vmem:[#allocation2 + $0x44] sm:$0xf] }
 0x375   : > { %v10627_v37 = vpop.f32.mrf.mxu0  ;;  %v5384_v13 = vrot.slane %v5382_v59, 6  ;;  %v5387_v11 = vrot.slane %v5385_v20, 7  ;;  %v5370_v59 = vrot.slane %v13731_v41, 4  ;;  %6942 = vst.msk [vmem:[#allocation4 + $0xa0] sm:$0xf] %vm5506_vm4, %v6906_v57 }
 0x376   : > { %v4748_v42 = vadd.f32 %v13759_v45, %v10627_v37  ;;  %v5704_v35 = vrot.slane %v5702_v36, 4  ;;  %v6908_v37 = vld [vmem:[#allocation2 + $0x4c] sm:$0xf] }
 0x377   : > { %v4739_v30 = vpop.f32.mrf.mxu0  ;;  %v5388_v23 = vor.u32 %v5387_v11, %v5384_v13  ;;  %6944 = vst.msk [vmem:[#allocation4 + $0xb8] sm:$0xf] %vm5506_vm4, %v6908_v37 }
 0x378   : > { %v4740_v10 = vadd.f32 %v13759_v45, %v4739_v30  ;;  %v5572_v26 = vld [vmem:[#allocation2 + $0x78] sm:$0xf]  ;;  %v5741_v22 = vpop.permute.xlu1 %5740  ;;  %v4800_v9 = vmax.f32 %v4748_v42, 0.0  ;;  %v5095_v18 = vld [vmem:[#allocation2 + $0x7c] sm:$0xf] }
 0x379   : > { %v10628_v32 = vpop.f32.mrf.mxu0  ;;  %v5705_v16 = vrot.slane %v5572_v26, 7  ;;  %v5094_v39 = vld [vmem:[#allocation2 + $0x78] sm:$0xf]  ;;  %5843 = vst.msk [vmem:[#allocation4 + $0x48] sm:$0xf] %vm5836_vm2, %v5741_v22  ;;  %v5402_v31 = vshrl.u32 %v5095_v18, 16 }
 0x37a   : > { %v4751_v14 = vadd.f32 %v13759_v45, %v10628_v32  ;;  %v5570_v19 = vld [vmem:[#allocation2 + $0x70] sm:$0xf]  ;;  %v5392_v61 = vshrl.u32 %v5094_v39, 16  ;;  %v4798_v58 = vmax.f32 %v4740_v10, 0.0  ;;  %v5743_v33 = vpop.permute.xlu0 %5742  ;;  %v5573_v29 = vld [vmem:[#allocation2 + $0x7c] sm:$0xf] }
 0x37b   : > { %v5092_v47 = vld [vmem:[#allocation2 + $0x70] sm:$0xf]  ;;  %v4742_v48 = vpop.f32.mrf.mxu0  ;;  %v5699_v0 = vrot.slane %v5570_v19, 7  ;;  %5844 = vst.msk [vmem:[#allocation4 + $0x54] sm:$0xf] %vm5836_vm2, %v5743_v33  ;;  %v5707_v34 = vrot.slane %v5705_v16, 4 }
 0x37c   : > { %v4801_v43 = vmax.f32 %v4751_v14, 0.0  ;;  %v4743_v21 = vadd.f32 %v13759_v45, %v4742_v48  ;;  %v5372_v50 = vshrl.u32 %v5092_v47, 16  ;;  %v5375_v54 = vshll.u32 %v5092_v47, 16  ;;  %v5745_v27 = vpop.permute.xlu1 %5744  ;;  %v6909_v42 = vld [vmem:[#allocation2 + $0x50] sm:$0xf] }
 0x37d   : > { %v5700_v40 = vsel %vm13423_vm5, %v5698_v63, %v5699_v0  ;;  %v5701_v28 = vrot.slane %v5699_v0, 4  ;;  %v5394_v46 = vrot.slane %v5392_v61, 6  ;;  %5845 = vst.msk [vmem:[#allocation4 + $0x60] sm:$0xf] %vm5836_vm2, %v5745_v27  ;;  %v5395_v62 = vshll.u32 %v5094_v39, 16 }
 0x37e   : > { %v10499_v6 = vpack.c.bf16 %v4801_v43, %v4800_v9  ;;  %v4799_v17 = vmax.f32 %v4743_v21, 0.0  ;;  %5780 = vrot.lane.b32.xlu1 %v5700_v40, %s10834_s27  ;;  %v5374_v53 = vrot.slane %v5372_v50, 6  ;;  %v5377_v3 = vrot.slane %v5375_v54, 7  ;;  %v5747_v7 = vpop.permute.xlu0 %5746  ;;  %6945 = vst.msk [vmem:[#allocation4 + $0xc4] sm:$0xf] %vm5506_vm4, %v6909_v42 }
 0x37f   : > { %v5703_v25 = vsel %vm13423_vm5, %v5701_v28, %v5702_v36  ;;  %v5405_v55 = vshll.u32 %v5095_v18, 16  ;;  %5846 = vst.msk [vmem:[#allocation4 + $0x6c] sm:$0xf] %vm5836_vm2, %v5747_v7  ;;  %v5708_v44 = vrot.slane %v5573_v29, 7  ;;  %v5706_v36 = vsel %vm13423_vm5, %v5704_v35, %v5705_v16  ;;  %v6912_v63 = vld [vmem:[#allocation2 + $0x5c] sm:$0xf] }
 0x380   : > { %10526 = vst [vmem:[#allocation2 + $0x88] sm:$0xff] %v10499_v6   ;;  %v10494_v24 = vpack.c.bf16 %v4799_v17, %v4798_v58  ;;  %5782 = vrot.lane.b32.xlu0 %v5703_v25, %s10834_s27  ;;  %v5378_v20 = vor.u32 %v5377_v3, %v5374_v53  ;;  %v5397_v30 = vrot.slane %v5395_v62, 7  ;;  %v5404_v13 = vrot.slane %v5402_v31, 6  ;;  %6948 = vst.msk [vmem:[#allocation4 + $0xe8] sm:$0xf] %vm5506_vm4, %v6912_v63 }
 0x381   : > { %v5407_v11 = vrot.slane %v5405_v55, 7  ;;  %v5709_v26 = vsel %vm13423_vm5, %v5707_v34, %v5708_v44  ;;  %v5390_v22 = vrot.slane %v5388_v23, 4  ;;  %v5710_v0 = vrot.slane %v5708_v44, 4  ;;  %v6910_v50 = vld [vmem:[#allocation2 + $0x54] sm:$0xf] }
 0x382   : > { %10525 = vst [vmem:[#allocation2 + $0x80] sm:$0xff] %v10494_v24   ;;  %5784 = vrot.lane.b32.xlu1 %v5706_v36, %s10834_s27  ;;  %v5379_v41 = vsel %vm12775_vm10, %v5370_v59, %v5378_v20  ;;  %v5380_v10 = vrot.slane %v5378_v20, 4  ;;  %v5398_v32 = vor.u32 %v5397_v30, %v5394_v46  ;;  %6946 = vst.msk [vmem:[#allocation4 + $0xd0] sm:$0xf] %vm5506_vm4, %v6910_v50  ;;  %v13806_v28 = vld [vmem:[#allocation2 + $0xc] sm:$0xf] }
 0x383   : > { %5533 = vst.msk [vmem:[#allocation4 + $0x138] sm:$0xf] %vm5506_vm4, %v5379_v41  ;;  %v5408_v19 = vor.u32 %v5407_v11, %v5404_v13  ;;  %v5925_v7 = vshrl.u32 %v13806_v28, 16  ;;  %v16794_v62 = vmov 0   ;;  %v10742_v13 = vld [vmem:[%s16694_s3 + $0x30] sm:$0xff]  }
 0x384   : > { %5786 = vrot.lane.b32.xlu0 %v5709_v26, %s10834_s27  ;;  %v5389_v16 = vsel %vm12775_vm10, %v5380_v10, %v5388_v23  ;;  %v5399_v39 = vsel %vm12775_vm10, %v5390_v22, %v5398_v32  ;;  %v5400_v14 = vrot.slane %v5398_v32, 4  ;;  %9747 = vmatprep.subr.bf16.mxu1 %v16794_v62 }
 0x385   : > { %5534 = vst.msk [vmem:[#allocation4 + $0x144] sm:$0xf] %vm5506_vm4, %v5389_v16  ;;  %5535 = vst.msk [vmem:[#allocation4 + $0x150] sm:$0xf] %vm5506_vm4, %v5399_v39  ;;  %v5410_v46 = vrot.slane %v5408_v19, 4  ;;  %9748 = vmatpush1.bf16.msra.mxu1 %v10742_v13 }
 0x386   : > { %v5409_v47 = vsel %vm12775_vm10, %v5400_v14, %v5408_v19  ;;  %9749 = vmatprep.subr.bf16.mxu1 %v16794_v62  ;;  %v13878_v13 = vld [vmem:[#allocation2 + $0x18] sm:$0xf] }
 0x387   : > { %v5053_v35 = vld [vmem:[#allocation2 + $0x8c] sm:$0x6]  ;;  %5536 = vst.msk [vmem:[#allocation4 + $0x15c] sm:$0xf] %vm5506_vm4, %v5409_v47  ;;  %v5576_v5 = vld [vmem:[#allocation2 + $0x88] sm:$0xf] }
 0x388   : > { %v5054_v61 = vsel %vm13549_vm1, 0, %v5053_v35  ;;  %v5717_v34 = vrot.slane %v5576_v5, 7  ;;  %v5098_v22 = vld [vmem:[#allocation2 + $0x88] sm:$0xf]  ;;  %vm6346_vm1 = vcmask 781824  }
 0x389   : > { %5055 = vst [vmem:[#allocation2 + $0x8c] sm:$0x6] %v5054_v61  ;;  %v5050_v9 = vld [vmem:[#allocation2 + $0x84] sm:$0x3]  ;;  %v5574_v58 = vld [vmem:[#allocation2 + $0x80] sm:$0xf] }
 0x38a   : > { %v5096_v33 = vld [vmem:[#allocation2 + $0x80] sm:$0xf]  ;;  %v5051_v48 = vsel %vm13493_vm14, 0, %v5050_v9  ;;  %v5711_v23 = vrot.slane %v5574_v58, 7  ;;  %v5719_v36 = vrot.slane %v5717_v34, 4 }
 0x38b   : > { %v5412_v43 = vshrl.u32 %v5096_v33, 16  ;;  %5052 = vst [vmem:[#allocation2 + $0x84] sm:$0x3] %v5051_v48  ;;  %v5415_v21 = vshll.u32 %v5096_v33, 16 }
 0x38c   : > { %v5712_v54 = vsel %vm13423_vm5, %v5710_v0, %v5711_v23  ;;  %v5713_v37 = vrot.slane %v5711_v23, 4  ;;  %v5432_v0 = vshrl.u32 %v5098_v22, 16  ;;  %v5435_v23 = vshll.u32 %v5098_v22, 16 }
 0x38d   : > { %v5414_v18 = vrot.slane %v5412_v43, 6  ;;  %v10631_v27 = vpop.f32.mrf.mxu0  ;;  %5788 = vrot.lane.b32.xlu1 %v5712_v54, %s10834_s27  ;;  %v5417_v40 = vrot.slane %v5415_v21, 7  ;;  %v6911_v43 = vld [vmem:[#allocation2 + $0x58] sm:$0xf] }
 0x38e   : > { %v4764_v17 = vadd.f32 %v13759_v45, %v10631_v27  ;;  %6947 = vst.msk [vmem:[#allocation4 + $0xdc] sm:$0xf] %vm5506_vm4, %v6911_v43 }
 0x38f   : > { %v4755_v29 = vpop.f32.mrf.mxu0  ;;  %v13811_v6 = vor.u32 %v5417_v40, %v5414_v18  ;;  %v10743_v18 = vld [vmem:[%s16694_s3 + $0x28] sm:$0xff]  }
 0x390   : > { %v5749_v53 = vpop.permute.xlu1 %5748  ;;  %v4756_v31 = vadd.f32 %v13759_v45, %v4755_v29  ;;  %v13822_v24 = vld [vmem:[#allocation2 + $0x8c] sm:$0xf]  ;;  %v4804_v11 = vmax.f32 %v4764_v17, 0.0  ;;  %v5434_v29 = vrot.slane %v5432_v0, 6  ;;  %9750 = vmatpush1.bf16.msra.mxu1 %v10743_v18 }
 0x391   : > { %v10632_v3 = vpop.f32.mrf.mxu0  ;;  %v5419_v25 = vsel %vm12775_vm10, %v5410_v46, %v13811_v6  ;;  %5847 = vst.msk [vmem:[#allocation4 + $0x78] sm:$0xf] %vm5836_vm2, %v5749_v53  ;;  %v5720_v39 = vrot.slane %v13822_v24, 7  ;;  %v5099_v19 = vld [vmem:[#allocation2 + $0x8c] sm:$0xf]  ;;  %v5420_v48 = vrot.slane %v13811_v6, 4  ;;  %9751 = vmatprep.subr.bf16.mxu1 %v16794_v62 }
 0x392   : > { %v4767_v55 = vadd.f32 %v13759_v45, %v10632_v3  ;;  %v5575_v57 = vld [vmem:[#allocation2 + $0x84] sm:$0xf]  ;;  %5537 = vst.msk [vmem:[#allocation4 + $0x168] sm:$0xf] %vm5506_vm4, %v5419_v25  ;;  %v5751_v59 = vpop.permute.xlu0 %5750  ;;  %v4802_v35 = vmax.f32 %v4756_v31, 0.0  ;;  %v5442_v54 = vshrl.u32 %v5099_v19, 16 }
 0x393   : > { %v5097_v44 = vld [vmem:[#allocation2 + $0x84] sm:$0xf]  ;;  %v4758_v20 = vpop.f32.mrf.mxu0  ;;  %v5714_v42 = vrot.slane %v5575_v57, 7  ;;  %5848 = vst.msk [vmem:[#allocation4 + $0x84] sm:$0xf] %vm5836_vm2, %v5751_v59  ;;  %v5445_v5 = vshll.u32 %v5099_v19, 16  ;;  %v5721_v27 = vsel %vm13423_vm5, %v5719_v36, %v5720_v39 }
 0x394   : > { %v5422_v30 = vshrl.u32 %v5097_v44, 16  ;;  %v4805_v41 = vmax.f32 %v4767_v55, 0.0  ;;  %v4759_v10 = vadd.f32 %v13759_v45, %v4758_v20  ;;  %v5425_v26 = vshll.u32 %v5097_v44, 16  ;;  %v5753_v32 = vpop.permute.xlu1 %5752  ;;  %v13835_v45 = vld [vmem:[#allocation2 + $0x8] sm:$0xf]  ;;  %v10744_v20 = vld [vmem:[%s16694_s3 + $0x20] sm:$0xff]  }
 0x395   : > { %v5715_v63 = vsel %vm13423_vm5, %v5713_v37, %v5714_v42  ;;  %v5716_v16 = vrot.slane %v5714_v42, 4  ;;  %5849 = vst.msk [vmem:[#allocation4 + $0x90] sm:$0xf] %vm5836_vm2, %v5753_v32  ;;  %v5916_v40 = vshrl.u32 %v13835_v45, 16  ;;  %v5873_v46 = vld [vmem:[#allocation2 + $0x4] sm:$0x8]  ;;  %9752 = vmatpush1.bf16.msra.mxu1 %v10744_v20 }
 0x396   : > { %v5424_v14 = vrot.slane %v5422_v30, 6  ;;  %v10509_v47 = vpack.c.bf16 %v4805_v41, %v4804_v11  ;;  %v4803_v61 = vmax.f32 %v4759_v10, 0.0  ;;  %5790 = vrot.lane.b32.xlu0 %v5715_v63, %s10834_s27  ;;  %v5427_v9 = vrot.slane %v5425_v26, 7  ;;  %v5755_v58 = vpop.permute.xlu0 %5754  ;;  %v13863_v55 = vld [vmem:[#allocation2 + $0x10] sm:$0xf]  ;;  %9753 = vmatprep.subr.bf16.mxu1 %v16794_v62 }
 0x397   : > { %v5718_v33 = vsel %vm13423_vm5, %v5716_v16, %v5717_v34  ;;  %5850 = vst.msk [vmem:[#allocation4 + $0x9c] sm:$0xf] %vm5836_vm2, %v5755_v58  ;;  %v5437_v34 = vrot.slane %v5435_v23, 7  ;;  %v5444_v53 = vrot.slane %v5442_v54, 6  ;;  %v5447_v3 = vrot.slane %v5445_v5, 7 }
 0x398   : > { %10528 = vst [vmem:[#allocation2 + $0x98] sm:$0xff] %v10509_v47   ;;  %v10504_v21 = vpack.c.bf16 %v4803_v61, %v4802_v35  ;;  %5792 = vrot.lane.b32.xlu1 %v5718_v33, %s10834_s27  ;;  %v5428_v50 = vor.u32 %v5427_v9, %v5424_v14  ;;  %v13859_v25 = vrot.slane %v5925_v7, 7  ;;  %v13865_v57 = vld [vmem:[#allocation2 + $0x14] sm:$0xf]  ;;  %v5961_v44 = vshrl.u32 %v13852_v15, 16 }
 0x399   : > { %v5438_v31 = vor.u32 %v5437_v34, %v5434_v29  ;;  %v13868_v59 = vor.u32 %v5447_v3, %v5444_v53  ;;  %v5911_v37 = vshrl.u32 %v5873_v46, 16  ;;  %v13875_v36 = vrot.slane %v5916_v40, 7  ;;  %v13895_v35 = vld [vmem:[#allocation2 + $0x14] sm:$0xf]  ;;  %v5066_v46 = vld [vmem:[#allocation2 + $0x8] sm:$0xf]  ;;  %9754 = vmatpush1.bf16.msra.mxu1 %v10745_v60 }
 0x39a   : > { %10527 = vst [vmem:[#allocation2 + $0x90] sm:$0xff] %v10504_v21   ;;  %5794 = vrot.lane.b32.xlu0 %v5721_v27, %s10834_s27  ;;  %v5429_v6 = vsel %vm12775_vm10, %v5420_v48, %v5428_v50  ;;  %v5430_v17 = vrot.slane %v5428_v50, 4  ;;  %v5919_v30 = vshll.u32 %v13835_v45, 16  ;;  %v5932_v10 = vrot.slane %v13859_v25, 4  ;;  %v5065_v27 = vld [vmem:[#allocation2 + $0x4] sm:$0xc]  ;;  %9755 = vmatprep.subr.bf16.mxu1 %v16794_v62 }
 0x39b   : > { %5538 = vst.msk [vmem:[#allocation4 + $0x174] sm:$0xf] %vm5506_vm4, %v5429_v6  ;;  %v5440_v42 = vrot.slane %v5438_v31, 4  ;;  %v5934_v26 = vshrl.u32 %v13863_v55, 16  ;;  %v5943_v22 = vshrl.u32 %v13865_v57, 16  ;;  %v13891_v16 = vrot.slane %v5961_v44, 7 }
 0x39c   : > { %v5439_v7 = vsel %vm12775_vm10, %v5430_v17, %v5438_v31  ;;  %v5946_v14 = vshll.u32 %v13865_v57, 16  ;;  %v5964_v19 = vshll.u32 %v13852_v15, 16  ;;  %v10300_v45 = vrot.slane %v5911_v37, 11  ;;  %v10746_v6 = vld [vmem:[%s16694_s3 + $0x10] sm:$0xff]  }
 0x39d   : > { %5539 = vst.msk [vmem:[#allocation4 + $0x180] sm:$0xf] %vm5506_vm4, %v5439_v7  ;;  %v5449_v32 = vsel %vm12775_vm10, %v5440_v42, %v13868_v59  ;;  %v5952_v9 = vshrl.u32 %v13878_v13, 16  ;;  %v5722_v58 = vrot.slane %v5720_v39, 4  ;;  %v5921_v48 = vor.u32 %v5919_v30, %v13875_v36  ;;  %v13915_v39 = vld [vmem:[#allocation2 + $0x20] sm:$0xf]  ;;  %9756 = vmatpush1.bf16.msra.mxu1 %v10746_v6 }
 0x39e   : > { %5540 = vst.msk [vmem:[#allocation4 + $0x18c] sm:$0xf] %vm5506_vm4, %v5449_v32  ;;  %v13904_v23 = vrot.slane %v5934_v26, 7  ;;  %v13906_v43 = vrot.slane %v5943_v22, 7  ;;  %v7012_v21 = vshll.u32 %v13895_v35, 16  ;;  %v10709_v54 = vunpack.i.h.bf16 %v13710_v8  ;;  %9757 = vmatprep.subr.bf16.mxu1 %v16794_v62  ;;  %v10748_v6 = vld [vmem:[%s16694_s3] sm:$0xff]  }
 0x39f   : > { %v5059_v11 = vld [vmem:[#allocation2 + $0x9c] sm:$0x8]  ;;  %v5757_v41 = vpop.permute.xlu1 %5756  ;;  %v5968_v5 = vrot.slane %v13891_v16, 4  ;;  %v10708_v40 = vunpack.i.l.bf16 %v13710_v8  ;;  %v5937_v15 = vshll.u32 %v13863_v55, 16  ;;  %v13921_v29 = vrot.slane %v5952_v9, 7 }
 0x3a0   : > { %v5060_v63 = vsel %vm13410_vm8, 0, %v5059_v11  ;;  %5851 = vst.msk [vmem:[#allocation4 + $0xa8] sm:$0xf] %vm5836_vm2, %v5757_v41  ;;  %v5922_v17 = vsel %vm11239_vm7, %v10300_v45, %v5921_v48  ;;  %v5955_v53 = vshll.u32 %v13878_v13, 16  ;;  %v13930_v3 = vor.u32 %v5964_v19, %v13891_v16  ;;  %v13942_v26 = vld [vmem:[#allocation2 + $0x28] sm:$0xf] }
 0x3a1   : > { %5061 = vst [vmem:[#allocation2 + $0x9c] sm:$0x8] %v5060_v63  ;;  %v5056_v47 = vld [vmem:[#allocation2 + $0x94] sm:$0xc]  ;;  %v5578_v61 = vld [vmem:[#allocation2 + $0x90] sm:$0xf]  ;;  %v5939_v55 = vor.u32 %v5937_v15, %v13904_v23 }
 0x3a2   : > { %v5057_v56 = vsel %vm13543_vm13, 0, %v5056_v47  ;;  %v5723_v33 = vrot.slane %v5578_v61, 7  ;;  %v5100_v0 = vld [vmem:[#allocation2 + $0x90] sm:$0xf]  ;;  %v5928_v44 = vshll.u32 %v13806_v28, 16  ;;  %v5970_v20 = vshrl.u32 %v13915_v39, 16 }
 0x3a3   : > { %5058 = vst [vmem:[#allocation2 + $0x94] sm:$0xc] %v5057_v56  ;;  %v5452_v50 = vshrl.u32 %v5100_v0, 16  ;;  %v5455_v18 = vshll.u32 %v5100_v0, 16  ;;  %v5103_v37 = vshrl.u32 %v5065_v27, 16  ;;  %v5450_v42 = vrot.slane %v13868_v59, 4 }
 0x3a4   : > { %v5724_v24 = vsel %vm13423_vm5, %v5722_v58, %v5723_v33  ;;  %v5106_v11 = vshll.u32 %v5065_v27, 16  ;;  %v5112_v13 = vshrl.u32 %v5066_v46, 16  ;;  %v5957_v41 = vor.u32 %v5955_v53, %v13921_v29  ;;  %v10747_v59 = vld [vmem:[%s16694_s3 + $0x8] sm:$0xff]   ;;  %v13955_v0 = vld [vmem:[#allocation2 + $0x24] sm:$0xf] }
 0x3a5   : > { %5796 = vrot.lane.b32.xlu1 %v5724_v24, %s10834_s27  ;;  %v5454_v34 = vrot.slane %v5452_v50, 6  ;;  %v5457_v31 = vrot.slane %v5455_v18, 7  ;;  %v7016_v28 = vshrl.u32 %v13895_v35, 16  ;;  %v5105_v22 = vrot.slane %v5103_v37, 6  ;;  %9758 = vmatpush1.bf16.msra.mxu1 %v10747_v59  ;;  %v13993_v37 = vld [vmem:[#allocation2 + $0x1c] sm:$0xf] }
 0x3a6   : > { %v5115_v32 = vshll.u32 %v5066_v46, 16  ;;  %v5923_v47 = vrot.slane %v13875_v36, 4  ;;  %v5108_v45 = vrot.slane %v5106_v11, 7  ;;  %v5114_v9 = vrot.slane %v5112_v13, 6  ;;  %v13974_v46 = vld [vmem:[#allocation2 + $0x30] sm:$0xf]  ;;  %9759 = vmatprep.subr.bf16.mxu1 %v16794_v62 }
 0x3a7   : > { %v13937_v30 = vor.u32 %v5457_v31, %v5454_v34  ;;  %v5725_v56 = vrot.slane %v5723_v33, 4  ;;  %v5930_v48 = vor.u32 %v5928_v44, %v13859_v25  ;;  %v5940_v60 = vsel %vm11239_vm7, %v5932_v10, %v5939_v55 }
 0x3a8   : > { %v5759_v7 = vpop.permute.xlu0 %5758  ;;  %v5117_v50 = vrot.slane %v5115_v32, 7  ;;  %v13962_v24 = vrot.slane %v5970_v20, 7  ;;  %v5988_v18 = vshrl.u32 %v13942_v26, 16  ;;  %v5109_v27 = vor.u32 %v5108_v45, %v5105_v22  ;;  %v10749_v22 = vld [vmem:[%s16694_s3 + $0x78] sm:$0xff]  }
 0x3a9   : > { %5852 = vst.msk [vmem:[#allocation4 + $0xb4] sm:$0xf] %vm5836_vm2, %v5759_v7  ;;  %6238 = vrot.lane.b32.xlu1 %v5922_v17, %s10838_s25  ;;  %v5459_v61 = vsel %vm12775_vm10, %v5450_v42, %v13937_v30  ;;  %v5950_v34 = vrot.slane %v13906_v43, 4  ;;  %v5941_v25 = vrot.slane %v13904_v23, 4  ;;  %v5948_v10 = vor.u32 %v5946_v14, %v13906_v43  ;;  %v13987_v23 = vld [vmem:[#allocation2 + $0x2c] sm:$0xf]  ;;  %9760 = vmatpush1.bf16.msra.mxu1 %v10748_v6 }
 0x3aa   : > { %v5761_v63 = vpop.permute.xlu1 %5760  ;;  %v5579_v19 = vld [vmem:[#allocation2 + $0x94] sm:$0x7]  ;;  %5541 = vst.msk [vmem:[#allocation4 + $0x198] sm:$0xf] %vm5506_vm4, %v5459_v61  ;;  %v5973_v49 = vshll.u32 %v13915_v39, 16  ;;  %v5979_v17 = vshrl.u32 %v13955_v0, 16  ;;  %v5118_v31 = vor.u32 %v5117_v50, %v5114_v9  ;;  %v5931_v14 = vsel %vm11239_vm7, %v5923_v47, %v5930_v48  ;;  %9761 = vmatprep.subr.bf16.mxu1 %v16794_v62 }
 0x3ab   : > { %5853 = vst.msk [vmem:[#allocation4 + $0xc0] sm:$0xf] %vm5836_vm2, %v5761_v63  ;;  %v5726_v58 = vrot.slane %v5579_v19, 7  ;;  %v5101_v33 = vld [vmem:[#allocation2 + $0x94] sm:$0x7]  ;;  %v5110_v53 = vrot.slane %v5109_v27, 4  ;;  %v5958_v57 = vsel %vm11239_vm7, %v5950_v34, %v5957_v41  ;;  %v5949_v63 = vsel %vm11239_vm7, %v5941_v25, %v5948_v10 }
 0x3ac   : > { %v5763_v36 = vpop.permute.xlu0 %5762  ;;  %v5462_v43 = vshrl.u32 %v5101_v33, 16  ;;  %v5465_v55 = vshll.u32 %v5101_v33, 16  ;;  %v5975_v44 = vor.u32 %v5973_v49, %v13962_v24  ;;  %v13990_v20 = vrot.slane %v5988_v18, 7  ;;  %v14026_v9 = vld [vmem:[#allocation2 + $0x18] sm:$0xf] }
 0x3ad   : > { %5854 = vst.msk [vmem:[#allocation4 + $0xcc] sm:$0xf] %vm5836_vm2, %v5763_v36  ;;  %6242 = vrot.lane.b32.xlu1 %v5940_v60, %s10838_s25  ;;  %v5727_v15 = vsel %vm13423_vm5, %v5725_v56, %v5726_v58  ;;  %v6006_v39 = vshrl.u32 %v13974_v46, 16  ;;  %v5119_v7 = vsel %vm12775_vm10, %v5110_v53, %v5118_v31  ;;  %v14000_v42 = vrot.slane %v7012_v21, 5  ;;  %9762 = vmatpush2.bf16.msra.mxu1 %v10749_v22  ;;  %v7510_v18 = vld [vmem:[#allocation2 + $0x18] sm:$0xf] }
 0x3ae   : > { %5798 = vrot.lane.b32.xlu0 %v5727_v15, %s10834_s27  ;;  %v14002_v11 = vrot.slane %v7016_v28, 4  ;;  %5507 = vst.msk [vmem:[#allocation4] sm:$0xf] %vm5506_vm4, %v5119_v7  ;;  %v5464_v13 = vrot.slane %v5462_v43, 6  ;;  %v5467_v41 = vrot.slane %v5465_v55, 7  ;;  %v5981_v32 = vrot.slane %v5979_v17, 7  ;;  %9763 = vmatprep.subr.bf16.mxu1 %v16794_v62 }
 0x3af   : > { %v5991_v59 = vshll.u32 %v13942_v26, 16  ;;  %v5959_v35 = vrot.slane %v13921_v29, 4  ;;  %v5997_v21 = vshrl.u32 %v13987_v23, 16  ;;  %v6965_v28 = vld [vmem:[#allocation2 + $0x10] sm:$0xf]  ;;  %v5460_v19 = vrot.slane %v13937_v30, 4 }
 0x3b0   : > { %5837 = vst.msk [vmem:[#allocation4] sm:$0xf] %vm5836_vm2, %v10708_v40  ;;  %v5468_v47 = vor.u32 %v5467_v41, %v5464_v13  ;;  %v5120_v61 = vrot.slane %v5118_v31, 4  ;;  %v5976_v29 = vsel %vm11239_vm7, %v5968_v5, %v5975_v44  ;;  %v14024_v45 = vrot.slane %v6006_v39, 7  ;;  %v10750_v5 = vld [vmem:[%s16694_s3 + $0x70] sm:$0xff]   ;;  %v10751_v17 = vld [vmem:[%s16694_s3 + $0x68] sm:$0xff]  }
 0x3b1   : > { %6246 = vrot.lane.b32.xlu1 %v5958_v57, %s10838_s25  ;;  %v5993_v26 = vor.u32 %v5991_v59, %v13990_v20  ;;  %v7557_v40 = vshll.u32 %v13993_v37, 16  ;;  %v7003_v56 = vshrl.u32 %v6965_v28, 16  ;;  %v7006_v58 = vshll.u32 %v6965_v28, 16  ;;  %v14059_v10 = vld [vmem:[#allocation2 + $0x20] sm:$0xf]  ;;  %9764 = vmatpush2.bf16.msra.mxu1 %v10750_v5 }
 0x3b2   : > { %6240 = vrot.lane.b32.xlu0 %v5931_v14, %s10838_s25  ;;  %v5469_v30 = vsel %vm12775_vm10, %v5460_v19, %v5468_v47  ;;  %v5129_v16 = vsel %vm12775_vm10, %v5120_v61, %v13507_v2  ;;  %v5986_v48 = vrot.slane %v5981_v32, 4  ;;  %v5999_v50 = vrot.slane %v5997_v21, 7  ;;  %v6385_v57 = vld [vmem:[#allocation2 + $0x14] sm:$0xf]  ;;  %9765 = vmatprep.subr.bf16.mxu1 %v16794_v62  ;;  %v6383_v47 = vld [vmem:[#allocation2 + $0xc] sm:$0x8] }
 0x3b3   : > { %v6009_v36 = vshll.u32 %v13974_v46, 16  ;;  %v7561_v60 = vshrl.u32 %v13993_v37, 16  ;;  %5542 = vst.msk [vmem:[#allocation4 + $0x1a4] sm:$0xf] %vm5506_vm4, %v5469_v30  ;;  %5508 = vst.msk [vmem:[#allocation4 + $0xc] sm:$0xf] %vm5506_vm4, %v5129_v16  ;;  %v5967_v2 = vsel %vm11239_vm7, %v5959_v35, %v13930_v3  ;;  %v7019_v27 = vor.u32 %v14002_v11, %v14000_v42 }
 0x3b4   : > { %v7022_v33 = vshll.u32 %v14026_v9, 16  ;;  %5838 = vst.msk [vmem:[#allocation4 + $0xc] sm:$0xf] %vm5836_vm2, %v10709_v54  ;;  %v5994_v15 = vsel %vm11239_vm7, %v5986_v48, %v5993_v26  ;;  %v5977_v25 = vrot.slane %v13962_v24, 4  ;;  %v5982_v3 = vshll.u32 %v13955_v0, 16 }
 0x3b5   : > { %6250 = vrot.lane.b32.xlu1 %v5976_v29, %s10838_s25  ;;  %v6011_v34 = vor.u32 %v6009_v36, %v14024_v45  ;;  %v14061_v46 = vld [vmem:[#allocation2 + $0x10] sm:$0xf]  ;;  %v7005_v8 = vrot.slane %v7003_v56, 4  ;;  %v7008_v6 = vrot.slane %v7006_v58, 5  ;;  %v7548_v54 = vshrl.u32 %v7510_v18, 16  ;;  %9766 = vmatpush2.bf16.msra.mxu1 %v10751_v17  ;;  %v10753_v58 = vld [vmem:[%s16694_s3 + $0x58] sm:$0xff]  }
 0x3b6   : > { %6244 = vrot.lane.b32.xlu0 %v5949_v63, %s10838_s25  ;;  %v7551_v49 = vshll.u32 %v7510_v18, 16  ;;  %v6004_v24 = vrot.slane %v5999_v50, 4  ;;  %v5984_v53 = vor.u32 %v5982_v3, %v5981_v32  ;;  %v14068_v0 = vrot.slane %v7557_v40, 5  ;;  %9767 = vmatprep.subr.bf16.mxu1 %v16794_v62  ;;  %v6968_v35 = vld [vmem:[#allocation2 + $0x1c] sm:$0xf] }
 0x3b7   : > { %v5765_v52 = vpop.permute.xlu1 %5764  ;;  %v7563_v31 = vrot.slane %v7561_v60, 4  ;;  %v14071_v14 = vrot.slane %v7022_v33, 5  ;;  %v5995_v43 = vrot.slane %v13990_v20, 4  ;;  %v6000_v55 = vshll.u32 %v13987_v23, 16  ;;  %v10752_v23 = vld [vmem:[%s16694_s3 + $0x60] sm:$0xff]  }
 0x3b8   : > { %5855 = vst.msk [vmem:[#allocation4 + $0xd8] sm:$0xf] %vm5836_vm2, %v5765_v52  ;;  %v6012_v44 = vsel %vm11239_vm7, %v6004_v24, %v6011_v34  ;;  %v5985_v39 = vsel %vm11239_vm7, %v5977_v25, %v5984_v53  ;;  %v7567_v37 = vshll.u32 %v14059_v10, 16  ;;  %v6426_v7 = vshrl.u32 %v14061_v46, 16  ;;  %v14099_v56 = vld [vmem:[#allocation2 + $0x1c] sm:$0xf] }
 0x3b9   : > { %6254 = vrot.lane.b32.xlu1 %v5994_v15, %s10838_s25  ;;  %v7009_v11 = vor.u32 %v7008_v6, %v7005_v8  ;;  %v6435_v13 = vshrl.u32 %v6385_v57, 16  ;;  %v7550_v41 = vrot.slane %v7548_v54, 4  ;;  %v7553_v22 = vrot.slane %v7551_v49, 5  ;;  %9768 = vmatpush2.bf16.msra.mxu1 %v10752_v23  ;;  %v7513_v60 = vld [vmem:[#allocation2 + $0x24] sm:$0xf]  ;;  %v10754_v6 = vld [vmem:[%s16694_s3 + $0x50] sm:$0xff]  }
 0x3ba   : > { %6248 = vrot.lane.b32.xlu0 %v5967_v2, %s10838_s25  ;;  %v7020_v20 = vrot.slane %v7019_v27, 4  ;;  %v7564_v32 = vor.u32 %v7563_v31, %v14068_v0  ;;  %v6002_v59 = vor.u32 %v6000_v55, %v5999_v50  ;;  %v14091_v63 = vrot.slane %v7567_v37, 5  ;;  %9769 = vmatprep.subr.bf16.mxu1 %v16794_v62  ;;  %v14111_v33 = vld [vmem:[#allocation2 + $0x20] sm:$0xf]  ;;  %v14141_v37 = vld [vmem:[#allocation2 + $0x28] sm:$0xf] }
 0x3bb   : > { %v6428_v19 = vrot.slane %v6426_v7, 7  ;;  %v7010_v29 = vrot.slane %v7009_v11, 4  ;;  %v14097_v26 = vrot.slane %v6435_v13, 7  ;;  %v7554_v40 = vor.u32 %v7553_v22, %v7550_v41  ;;  %v14121_v8 = vld [vmem:[#allocation2 + $0x20] sm:$0xf]  ;;  %v10755_v11 = vld [vmem:[%s16694_s3 + $0x48] sm:$0xff]  }
 0x3bc   : > { %v7025_v28 = vsel %vm11028_vm3, %v7020_v20, %v14071_v14  ;;  %v6003_v61 = vsel %vm11239_vm7, %v5995_v43, %v6002_v59  ;;  %v7565_v16 = vrot.slane %v7564_v32, 4  ;;  %v7032_v5 = vshll.u32 %v6968_v35, 16  ;;  %v14134_v43 = vld [vmem:[#allocation2 + $0x18] sm:$0xf]  ;;  %v6387_v23 = vld [vmem:[#allocation2 + $0x1c] sm:$0xf] }
 0x3bd   : > { %6258 = vrot.lane.b32.xlu1 %v6012_v44, %s10838_s25  ;;  %v7036_v48 = vshrl.u32 %v6968_v35, 16  ;;  %v6438_v50 = vshll.u32 %v6385_v57, 16  ;;  %v6421_v36 = vshrl.u32 %v6383_v47, 16  ;;  %v7026_v18 = vshrl.u32 %v14026_v9, 16  ;;  %9770 = vmatpush2.bf16.msra.mxu1 %v10753_v58  ;;  %v8055_v13 = vld [vmem:[#allocation2 + $0x18] sm:$0xe] }
 0x3be   : > { %6252 = vrot.lane.b32.xlu0 %v5985_v39, %s10838_s25  ;;  %v7570_v2 = vsel %vm11028_vm3, %v7565_v16, %v14091_v63  ;;  %v6433_v27 = vrot.slane %v6428_v19, 4  ;;  %v8131_v15 = vrot.slane %v14099_v56, 5  ;;  %v7015_v34 = vsel %vm11028_vm3, %v7010_v29, %v14000_v42  ;;  %9771 = vmatprep.subr.bf16.mxu1 %v16794_v62  ;;  %v6970_v56 = vld [vmem:[#allocation2 + $0x24] sm:$0xf] }
 0x3bf   : > { %v6440_v9 = vor.u32 %v6438_v50, %v14097_v26  ;;  %v7555_v25 = vrot.slane %v7554_v40, 4  ;;  %v6429_v3 = vshll.u32 %v14061_v46, 16  ;;  %v14127_v54 = vrot.slane %v7032_v5, 5 }
 0x3c0   : > { %v5767_v21 = vpop.permute.xlu0 %5766  ;;  %v7038_v49 = vrot.slane %v7036_v48, 4  ;;  %v7577_v17 = vshll.u32 %v7513_v60, 16  ;;  %v7581_v24 = vshrl.u32 %v7513_v60, 16  ;;  %v8134_v42 = vrot.slane %v14111_v33, 5 }
 0x3c1   : > { %5856 = vst.msk [vmem:[#allocation4 + $0xe4] sm:$0xf] %vm5836_vm2, %v5767_v21  ;;  %7368 = vrot.lane.b32.xlu1 %v7025_v28, %s10834_s27  ;;  %v6441_v46 = vsel %vm11239_vm7, %v6433_v27, %v6440_v9  ;;  %v10301_v53 = vrot.slane %v6421_v36, 11  ;;  %v6431_v31 = vor.u32 %v6429_v3, %v6428_v19  ;;  %v7042_v57 = vshll.u32 %v14121_v8, 16  ;;  %9772 = vmatpush2.bf16.msra.mxu1 %v10754_v6  ;;  %v14180_v36 = vld [vmem:[#allocation2 + $0x24] sm:$0xf] }
 0x3c2   : > { %6256 = vrot.lane.b32.xlu0 %v6003_v61, %s10838_s25  ;;  %v5769_v30 = vpop.permute.xlu1 %5768  ;;  %v7571_v55 = vshrl.u32 %v14059_v10, 16  ;;  %v7560_v44 = vsel %vm11028_vm3, %v7555_v25, %v14068_v0  ;;  %v8133_v39 = vrot.slane %v8131_v15, 4  ;;  %v7028_v7 = vrot.slane %v7026_v18, 4  ;;  %9773 = vmatprep.subr.bf16.mxu1 %v16794_v62  ;;  %v10756_v61 = vld [vmem:[%s16694_s3 + $0x40] sm:$0xff]   ;;  %v7515_v27 = vld [vmem:[#allocation2 + $0x2c] sm:$0xf] }
 0x3c3   : > { %5857 = vst.msk [vmem:[#allocation4 + $0xf0] sm:$0xf] %vm5836_vm2, %v5769_v30  ;;  %v7039_v10 = vor.u32 %v7038_v49, %v14127_v54  ;;  %v14148_v41 = vrot.slane %v7577_v17, 5  ;;  %v7583_v22 = vrot.slane %v7581_v24, 4  ;;  %v6432_v20 = vsel %vm11239_vm7, %v10301_v53, %v6431_v31  ;;  %v14193_v49 = vld [vmem:[#allocation2 + $0x28] sm:$0xf] }
 0x3c4   : > { %v5771_v52 = vpop.permute.xlu0 %5770  ;;  %v8135_v0 = vsel %vm12306_vm12, %v8133_v39, %v8134_v42  ;;  %v14157_v32 = vrot.slane %v7042_v57, 5  ;;  %v7587_v59 = vshll.u32 %v14141_v37, 16  ;;  %v6444_v35 = vshrl.u32 %v14134_v43, 16  ;;  %v14196_v17 = vld [vmem:[#allocation2 + $0x28] sm:$0xf] }
 0x3c5   : > { %5858 = vst.msk [vmem:[#allocation4 + $0xfc] sm:$0xf] %vm5836_vm2, %v5771_v52  ;;  %7913 = vrot.lane.b32.xlu1 %v7570_v2, %s10838_s25  ;;  %v10302_v21 = vrot.slane %v8055_v13, 9  ;;  %v7029_v28 = vor.u32 %v7028_v7, %v14071_v14  ;;  %v6453_v19 = vshrl.u32 %v6387_v23, 16  ;;  %v7573_v47 = vrot.slane %v7571_v55, 4  ;;  %9774 = vmatpush2.bf16.msra.mxu1 %v10755_v11 }
 0x3c6   : > { %7366 = vrot.lane.b32.xlu0 %v7015_v34, %s10834_s27  ;;  %v7040_v29 = vrot.slane %v7039_v10, 4  ;;  %v7584_v40 = vor.u32 %v7583_v22, %v14148_v41  ;;  %9775 = vmatprep.subr.bf16.mxu1 %v16794_v62  ;;  %v14172_v14 = vrot.slane %v7587_v59, 5  ;;  %v6446_v30 = vrot.slane %v6444_v35, 7  ;;  %v14205_v7 = vld [vmem:[#allocation2 + $0x20] sm:$0xf] }
 0x3c7   : > { %v8132_v16 = vsel %vm12306_vm12, %v10302_v21, %v8131_v15  ;;  %v7030_v5 = vrot.slane %v7029_v28, 4  ;;  %v14177_v48 = vrot.slane %v6453_v19, 7  ;;  %v7574_v50 = vor.u32 %v7573_v47, %v14091_v63  ;;  %v14213_v13 = vld [vmem:[#allocation2 + $0x30] sm:$0xf]  ;;  %v6389_v35 = vld [vmem:[#allocation2 + $0x24] sm:$0xf] }
 0x3c8   : > { %v7045_v58 = vsel %vm11028_vm3, %v7040_v29, %v14157_v32  ;;  %v7585_v60 = vrot.slane %v7584_v40, 4  ;;  %v7052_v18 = vshll.u32 %v6970_v56, 16  ;;  %v7056_v52 = vshrl.u32 %v6970_v56, 16 }
 0x3c9   : > { %6750 = vrot.lane.b32.xlu1 %v6441_v46, %s10839_s14  ;;  %9776 = vmatpush2.bf16.msra.mxu1 %v10756_v61  ;;  %v6456_v2 = vshll.u32 %v6387_v23, 16  ;;  %v7046_v34 = vshrl.u32 %v14121_v8, 16  ;;  %v6451_v9 = vrot.slane %v6446_v30, 4  ;;  %v8137_v25 = vrot.slane %v14180_v36, 5 }
 0x3ca   : > { %7911 = vrot.lane.b32.xlu0 %v7560_v44, %s10838_s25  ;;  %v7590_v15 = vsel %vm11028_vm3, %v7585_v60, %v14172_v14  ;;  %v7035_v63 = vsel %vm11028_vm3, %v7030_v5, %v14127_v54  ;;  %v7575_v6 = vrot.slane %v7574_v50, 4  ;;  %v6447_v8 = vshll.u32 %v14134_v43, 16  ;;  %v6972_v50 = vld [vmem:[#allocation2 + $0x2c] sm:$0xf] }
 0x3cb   : > { %v6458_v3 = vor.u32 %v6456_v2, %v14177_v48  ;;  %v14199_v24 = vrot.slane %v7052_v18, 5  ;;  %v7058_v46 = vrot.slane %v7056_v52, 4  ;;  %v7597_v53 = vshll.u32 %v7515_v27, 16  ;;  %v7517_v52 = vld [vmem:[#allocation2 + $0x34] sm:$0xf] }
 0x3cc   : > { %v7601_v31 = vshrl.u32 %v7515_v27, 16  ;;  %v8140_v55 = vrot.slane %v14193_v49, 5  ;;  %v6449_v44 = vor.u32 %v6447_v8, %v6446_v30  ;;  %v7062_v39 = vshll.u32 %v14196_v17, 16  ;;  %v14251_v27 = vld [vmem:[#allocation2 + $0x2c] sm:$0xf] }
 0x3cd   : > { %8240 = vrot.lane.b32.xlu1 %v8135_v0, %s10839_s14  ;;  %v6459_v54 = vsel %vm11239_vm7, %v6451_v9, %v6458_v3  ;;  %v7591_v43 = vshrl.u32 %v14141_v37, 16  ;;  %v7580_v11 = vsel %vm11028_vm3, %v7575_v6, %v14148_v41  ;;  %v8139_v10 = vrot.slane %v8137_v25, 4  ;;  %v14257_v6 = vld [vmem:[#allocation2 + $0x30] sm:$0xf] }
 0x3ce   : > { %6748 = vrot.lane.b32.xlu0 %v6432_v20, %s10839_s14  ;;  %v7048_v22 = vrot.slane %v7046_v34, 4  ;;  %v6442_v0 = vrot.slane %v14097_v26, 4  ;;  %v7059_v20 = vor.u32 %v7058_v46, %v14199_v24  ;;  %v14218_v37 = vrot.slane %v7597_v53, 5 }
 0x3cf   : > { %v7603_v59 = vrot.slane %v7601_v31, 4  ;;  %v6462_v21 = vshrl.u32 %v14205_v7, 16  ;;  %v8141_v28 = vsel %vm12306_vm12, %v8139_v10, %v8140_v55  ;;  %v14228_v26 = vrot.slane %v7062_v39, 5 }
 0x3d0   : > { %v6450_v19 = vsel %vm11239_vm7, %v6442_v0, %v6449_v44  ;;  %v7607_v47 = vshll.u32 %v14213_v13, 16  ;;  %v8136_v61 = vrot.slane %v8134_v42, 4  ;;  %v7049_v29 = vor.u32 %v7048_v22, %v14157_v32 }
 0x3d1   : > { %7372 = vrot.lane.b32.xlu1 %v7045_v58, %s10834_s27  ;;  %v6471_v40 = vshrl.u32 %v6389_v35, 16  ;;  %v7593_v56 = vrot.slane %v7591_v43, 4  ;;  %v7060_v30 = vrot.slane %v7059_v20, 4  ;;  %v6464_v5 = vrot.slane %v6462_v21, 7 }
 0x3d2   : > { %8238 = vrot.lane.b32.xlu0 %v8132_v16, %s10839_s14  ;;  %v7604_v16 = vor.u32 %v7603_v59, %v14218_v37  ;;  %v14242_v33 = vrot.slane %v7607_v47, 5  ;;  %v8138_v42 = vsel %vm12306_vm12, %v8136_v61, %v8137_v25  ;;  %v7050_v32 = vrot.slane %v7049_v29, 4 }
 0x3d3   : > { %v7065_v36 = vsel %vm11028_vm3, %v7060_v30, %v14228_v26  ;;  %v14247_v60 = vrot.slane %v6471_v40, 7  ;;  %v7594_v18 = vor.u32 %v7593_v56, %v14172_v14  ;;  %v7072_v34 = vshll.u32 %v6972_v50, 16 }
 0x3d4   : > { %v7605_v2 = vrot.slane %v7604_v16, 4  ;;  %v6469_v9 = vrot.slane %v6464_v5, 4  ;;  %v7066_v3 = vshrl.u32 %v14196_v17, 16  ;;  %v7617_v8 = vshll.u32 %v7517_v52, 16  ;;  %v14265_v17 = vld [vmem:[#allocation2 + $0x30] sm:$0xf] }
 0x3d5   : > { %7917 = vrot.lane.b32.xlu1 %v7590_v15, %s10838_s25  ;;  %v7076_v15 = vshrl.u32 %v6972_v50, 16  ;;  %v7621_v14 = vshrl.u32 %v7517_v52, 16  ;;  %v7055_v46 = vsel %vm11028_vm3, %v7050_v32, %v14199_v24  ;;  %v7595_v31 = vrot.slane %v7594_v18, 4  ;;  %v14305_v50 = vld [vmem:[#allocation2 + $0x34] sm:$0xf] }
 0x3d6   : > { %7370 = vrot.lane.b32.xlu0 %v7035_v63, %s10834_s27  ;;  %v6474_v63 = vshll.u32 %v6389_v35, 16  ;;  %v7610_v25 = vsel %vm11028_vm3, %v7605_v2, %v14242_v33  ;;  %v14269_v44 = vrot.slane %v7072_v34, 5  ;;  %v7082_v10 = vshll.u32 %v14265_v17, 16  ;;  %v14282_v35 = vld [vmem:[#allocation2 + $0x28] sm:$0xf] }
 0x3d7   : > { %v7078_v39 = vrot.slane %v7076_v15, 4  ;;  %v14275_v22 = vrot.slane %v7617_v8, 5  ;;  %v7611_v0 = vshrl.u32 %v14213_v13, 16  ;;  %v7068_v59 = vrot.slane %v7066_v3, 4  ;;  %v7519_v32 = vld [vmem:[#allocation2 + $0x3c] sm:$0xf] }
 0x3d8   : > { %v5773_v57 = vpop.permute.xlu1 %5772  ;;  %v6476_v53 = vor.u32 %v6474_v63, %v14247_v60  ;;  %v6460_v21 = vrot.slane %v14177_v48, 4  ;;  %v14295_v47 = vrot.slane %v7082_v10, 5  ;;  %v6480_v29 = vshrl.u32 %v14282_v35, 16  ;;  %v6974_v48 = vld [vmem:[#allocation2 + $0x34] sm:$0xf] }
 0x3d9   : > { %5859 = vst.msk [vmem:[#allocation4 + $0x108] sm:$0xf] %vm5836_vm2, %v5773_v57  ;;  %6754 = vrot.lane.b32.xlu1 %v6459_v54, %s10839_s14  ;;  %v8143_v57 = vrot.slane %v14251_v27, 5  ;;  %v6465_v54 = vshll.u32 %v14205_v7, 16  ;;  %v7600_v7 = vsel %vm11028_vm3, %v7595_v31, %v14218_v37  ;;  %v8142_v40 = vrot.slane %v8140_v55, 4 }
 0x3da   : > { %7915 = vrot.lane.b32.xlu0 %v7580_v11, %s10838_s25  ;;  %v5775_v23 = vpop.permute.xlu0 %5774  ;;  %v6477_v43 = vsel %vm11239_vm7, %v6469_v9, %v6476_v53  ;;  %v8146_v11 = vrot.slane %v14257_v6, 5  ;;  %v7069_v56 = vor.u32 %v7068_v59, %v14228_v26  ;;  %v7613_v30 = vrot.slane %v7611_v0, 4  ;;  %v6393_v0 = vld [vmem:[#allocation2 + $0x34] sm:$0xf]  ;;  %v6975_v59 = vld [vmem:[#allocation2 + $0x38] sm:$0xf] }
 0x3db   : > { %5860 = vst.msk [vmem:[#allocation4 + $0x114] sm:$0xf] %vm5836_vm2, %v5775_v23  ;;  %v6467_v24 = vor.u32 %v6465_v54, %v6464_v5  ;;  %v7623_v23 = vrot.slane %v7621_v14, 4  ;;  %v8145_v20 = vrot.slane %v8143_v57, 4  ;;  %v7086_v55 = vshrl.u32 %v14265_v17, 16 }
 0x3dc   : > { %v5777_v41 = vpop.permute.xlu1 %5776  ;;  %v6482_v52 = vrot.slane %v6480_v29, 7  ;;  %v8144_v2 = vsel %vm12306_vm12, %v8142_v40, %v8143_v57  ;;  %v7070_v27 = vrot.slane %v7069_v56, 4  ;;  %v7614_v15 = vor.u32 %v7613_v30, %v14242_v33  ;;  %v14328_v17 = vld [vmem:[#allocation2 + $0x38] sm:$0xf]  ;;  %v14330_v54 = vld [vmem:[#allocation2 + $0x30] sm:$0xf] }
 0x3dd   : > { %5861 = vst.msk [vmem:[#allocation4 + $0x120] sm:$0xf] %vm5836_vm2, %v5777_v41  ;;  %8244 = vrot.lane.b32.xlu1 %v8141_v28, %s10839_s14  ;;  %v7079_v41 = vor.u32 %v7078_v39, %v14269_v44  ;;  %v6391_v28 = vld [vmem:[#allocation2 + $0x2c] sm:$0xf]  ;;  %v8147_v13 = vsel %vm12306_vm12, %v8145_v20, %v8146_v11  ;;  %v6468_v37 = vsel %vm11239_vm7, %v6460_v21, %v6467_v24  ;;  %v8149_v3 = vrot.slane %v14305_v50, 5 }
 0x3de   : > { %6752 = vrot.lane.b32.xlu0 %v6450_v19, %s10839_s14  ;;  %v5779_v58 = vpop.permute.xlu0 %5778  ;;  %v14291_v19 = vld [vmem:[#allocation2 + $0x38] sm:$0xf]  ;;  %v7624_v61 = vor.u32 %v7623_v23, %v14275_v22  ;;  %v7641_v8 = vshrl.u32 %v7519_v32, 16  ;;  %v6492_v14 = vshll.u32 %v6391_v28, 16  ;;  %v6487_v57 = vrot.slane %v6482_v52, 4 }
 0x3df   : > { %5862 = vst.msk [vmem:[#allocation4 + $0x12c] sm:$0xf] %vm5836_vm2, %v5779_v58  ;;  %v6489_v58 = vshrl.u32 %v6391_v28, 16  ;;  %v7080_v16 = vrot.slane %v7079_v41, 4  ;;  %v7627_v5 = vshll.u32 %v14291_v19, 16  ;;  %v7075_v39 = vsel %vm11028_vm3, %v7070_v27, %v14269_v44 }
 0x3e0   : > { %v7625_v26 = vrot.slane %v7624_v61, 4  ;;  %v7615_v24 = vrot.slane %v7614_v15, 4  ;;  %v6483_v10 = vshll.u32 %v14282_v35, 16  ;;  %v7520_v23 = vld [vmem:[#allocation2 + $0x40] sm:$0xf]  ;;  %v8151_v20 = vrot.slane %v8149_v3, 4 }
 0x3e1   : > { %7376 = vrot.lane.b32.xlu1 %v7065_v36, %s10834_s27  ;;  %v7092_v36 = vshll.u32 %v6974_v48, 16  ;;  %v7085_v49 = vsel %vm11028_vm3, %v7080_v16, %v14295_v47  ;;  %v14315_v34 = vrot.slane %v6489_v58, 7  ;;  %v14319_v63 = vrot.slane %v7627_v5, 5  ;;  %v7521_v50 = vld [vmem:[#allocation2 + $0x44] sm:$0xf] }
 0x3e2   : > { %8242 = vrot.lane.b32.xlu0 %v8138_v42, %s10839_s14  ;;  %v7096_v42 = vshrl.u32 %v6974_v48, 16  ;;  %v7643_v41 = vrot.slane %v7641_v8, 4  ;;  %v7088_v28 = vrot.slane %v7086_v55, 4  ;;  %v7631_v44 = vshrl.u32 %v14291_v19, 16 }
 0x3e3   : > { %v7630_v33 = vsel %vm11028_vm3, %v7625_v26, %v14319_v63  ;;  %v6485_v35 = vor.u32 %v6483_v10, %v6482_v52  ;;  %v7647_v29 = vshll.u32 %v7520_v23, 16  ;;  %v6498_v48 = vshrl.u32 %v14330_v54, 16  ;;  %v6977_v10 = vld [vmem:[#allocation2 + $0x40] sm:$0xf] }
 0x3e4   : > { %v7098_v53 = vrot.slane %v7096_v42, 4  ;;  %v6507_v40 = vshrl.u32 %v6393_v0, 16  ;;  %v7620_v19 = vsel %vm11028_vm3, %v7615_v24, %v14275_v22  ;;  %v6478_v56 = vrot.slane %v14247_v60, 4 }
 0x3e5   : > { %7921 = vrot.lane.b32.xlu1 %v7610_v25, %s10838_s25  ;;  %v7637_v25 = vshll.u32 %v7519_v32, 16  ;;  %v7102_v58 = vshll.u32 %v6975_v59, 16  ;;  %v7089_v5 = vor.u32 %v7088_v28, %v14295_v47  ;;  %v8148_v60 = vrot.slane %v8146_v11, 4 }
 0x3e6   : > { %7374 = vrot.lane.b32.xlu0 %v7055_v46, %s10834_s27  ;;  %v14323_v46 = vrot.slane %v7092_v36, 5  ;;  %v6976_v36 = vld [vmem:[#allocation2 + $0x3c] sm:$0xf]  ;;  %v6486_v42 = vsel %vm11239_vm7, %v6478_v56, %v6485_v35  ;;  %v7633_v22 = vrot.slane %v7631_v44, 4  ;;  %v6500_v55 = vrot.slane %v6498_v48, 7 }
 0x3e7   : > { %v14342_v21 = vrot.slane %v7637_v25, 5  ;;  %v14369_v26 = vrot.slane %v6507_v40, 7  ;;  %v14372_v52 = vrot.slane %v7102_v58, 5  ;;  %v7651_v47 = vshrl.u32 %v7520_v23, 16 }
 0x3e8   : > { %v7112_v27 = vshll.u32 %v6976_v36, 16  ;;  %v7116_v15 = vshrl.u32 %v6976_v36, 16  ;;  %v7090_v6 = vrot.slane %v7089_v5, 4  ;;  %v6510_v11 = vshll.u32 %v6393_v0, 16 }
 0x3e9   : > { %6758 = vrot.lane.b32.xlu1 %v6477_v43, %s10839_s14  ;;  %v6494_v43 = vor.u32 %v6492_v14, %v14315_v34  ;;  %v7644_v16 = vor.u32 %v7643_v41, %v14342_v21  ;;  %v8150_v14 = vsel %vm12306_vm12, %v8148_v60, %v8149_v3  ;;  %v7653_v23 = vrot.slane %v7651_v47, 4 }
 0x3ea   : > { %7919 = vrot.lane.b32.xlu0 %v7600_v7, %s10838_s25  ;;  %v14391_v3 = vrot.slane %v7112_v27, 5  ;;  %v6501_v41 = vshll.u32 %v14330_v54, 16  ;;  %v7122_v35 = vshll.u32 %v6977_v10, 16  ;;  %vm263_vm10 = vcmask 1043776  }
 0x3eb   : > { %v6495_v61 = vsel %vm11239_vm7, %v6487_v57, %v6494_v43  ;;  %v6512_v43 = vor.u32 %v6510_v11, %v14369_v26  ;;  %264 = vst.msk [vmem:[#allocation4 + $0x8] sm:$0xf] %vm263_vm10, %v16794_v62  ;;  %265 = vst.msk [vmem:[#allocation4 + $0x14] sm:$0xf] %vm263_vm10, %v16794_v62  ;;  %vm6856_vm8 = vcmask 1044224   ;;  %vm16796_vm5 = vcmask 322816  }
 0x3ec   : > { %v6503_v40 = vor.u32 %v6501_v41, %v6500_v55  ;;  %266 = vst.msk [vmem:[#allocation4 + $0x20] sm:$0xf] %vm263_vm10, %v16794_v62  ;;  %267 = vst.msk [vmem:[#allocation4 + $0x2c] sm:$0xf] %vm263_vm10, %v16794_v62 }
 0x3ed   : > { %8248 = vrot.lane.b32.xlu1 %v8147_v13, %s10839_s14  ;;  %v8152_v13 = vrot.slane %v14328_v17, 5  ;;  %268 = vst.msk [vmem:[#allocation4 + $0x38] sm:$0xf] %vm263_vm10, %v16794_v62  ;;  %269 = vst.msk [vmem:[#allocation4 + $0x44] sm:$0xf] %vm263_vm10, %v16794_v62 }
 0x3ee   : > { %6756 = vrot.lane.b32.xlu0 %v6468_v37, %s10839_s14  ;;  %v7099_v37 = vor.u32 %v7098_v53, %v14323_v46  ;;  %v7634_v53 = vor.u32 %v7633_v22, %v14319_v63  ;;  %v7118_v63 = vrot.slane %v7116_v15, 4  ;;  %v14422_v22 = vld [vmem:[#allocation2 + $0x3c] sm:$0xf]  ;;  %v6514_v15 = vrot.slane %v14369_v26, 4  ;;  %270 = vst.msk [vmem:[#allocation4 + $0x50] sm:$0xf] %vm263_vm10, %v16794_v62  ;;  %vm16797_vm14 = vmmov %vm16796_vm5 }
 0x3ef   : > { %v8153_v30 = vsel %vm12306_vm12, %v8151_v20, %v8152_v13  ;;  %v7095_v20 = vsel %vm11028_vm3, %v7090_v6, %v14323_v46  ;;  %v8154_v5 = vrot.slane %v8152_v13, 4  ;;  %v8066_v13 = vld [vmem:[#allocation2 + $0x44] sm:$0xf]  ;;  %271 = vst.msk [vmem:[#allocation4 + $0x5c] sm:$0xf] %vm263_vm10, %v16794_v62  ;;  %vm16799_vm6 = vmmov %vm16796_vm5 }
 0x3f0   : > { %v5781_v18 = vpop.permute.xlu1 %5780  ;;  %v7100_v32 = vrot.slane %v7099_v37, 4  ;;  %v7635_v44 = vrot.slane %v7634_v53, 4  ;;  %v7657_v37 = vshll.u32 %v7521_v50, 16  ;;  %v7119_v56 = vor.u32 %v7118_v63, %v14391_v3  ;;  %272 = vst.msk [vmem:[#allocation4 + $0x68] sm:$0xf] %vm263_vm10, %v16794_v62  ;;  %vm16800_vm9 = vmmov %vm16796_vm5 }
 0x3f1   : > { %5863 = vst.msk [vmem:[#allocation4 + $0x138] sm:$0xf] %vm5836_vm2, %v5781_v18  ;;  %7380 = vrot.lane.b32.xlu1 %v7085_v49, %s10834_s27  ;;  %v7106_v18 = vshrl.u32 %v6975_v59, 16  ;;  %v14367_v49 = vrot.slane %v7647_v29, 5  ;;  %v8161_v53 = vrot.slane %v8066_v13, 5  ;;  %vm16801_vm11 = vmmov %vm16796_vm5 }
 0x3f2   : > { %8246 = vrot.lane.b32.xlu0 %v8144_v2, %s10839_s14  ;;  %v5783_v9 = vpop.permute.xlu0 %5782  ;;  %v8064_v2 = vld [vmem:[#allocation2 + $0x3c] sm:$0xf]  ;;  %v7105_v8 = vsel %vm11028_vm3, %v7100_v32, %v14372_v52  ;;  %v7640_v46 = vsel %vm11028_vm3, %v7635_v44, %v14342_v21  ;;  %v14418_v21 = vrot.slane %v7122_v35, 5  ;;  %v14420_v32 = vrot.slane %v7657_v37, 5  ;;  %v6396_v35 = vld [vmem:[#allocation2 + $0x40] sm:$0xf]  ;;  %vm16802_vm13 = vmmov %vm16796_vm5 }
 0x3f3   : > { %5864 = vst.msk [vmem:[#allocation4 + $0x144] sm:$0xf] %vm5836_vm2, %v5783_v9  ;;  %v7645_v9 = vrot.slane %v7644_v16, 4  ;;  %v8155_v24 = vrot.slane %v8064_v2, 5  ;;  %v7108_v0 = vrot.slane %v7106_v18, 4  ;;  %v7654_v54 = vor.u32 %v7653_v23, %v14367_v49 }
 0x3f4   : > { %v5785_v31 = vpop.permute.xlu1 %5784  ;;  %v6496_v16 = vrot.slane %v14315_v34, 4  ;;  %v7120_v47 = vrot.slane %v7119_v56, 4  ;;  %273 = vst.msk [vmem:[#allocation4 + $0x74] sm:$0xf] %vm263_vm10, %v16794_v62  ;;  %274 = vst.msk [vmem:[#allocation4 + $0x80] sm:$0xf] %vm263_vm10, %v16794_v62 }
 0x3f5   : > { %5865 = vst.msk [vmem:[#allocation4 + $0x150] sm:$0xf] %vm5836_vm2, %v5785_v31  ;;  %7925 = vrot.lane.b32.xlu1 %v7630_v33, %s10838_s25  ;;  %v14383_v31 = vld [vmem:[#allocation2 + $0x40] sm:$0xf]  ;;  %v5885_v33 = vld [vmem:[#allocation2 + $0x34] sm:$0xf]  ;;  %v7650_v57 = vsel %vm11028_vm3, %v7645_v9, %v14367_v49  ;;  %v7109_v58 = vor.u32 %v7108_v0, %v14372_v52  ;;  %v8156_v34 = vsel %vm12306_vm12, %v8154_v5, %v8155_v24 }
 0x3f6   : > { %7378 = vrot.lane.b32.xlu0 %v7075_v39, %s10834_s27  ;;  %v5787_v7 = vpop.permute.xlu0 %5786  ;;  %v6505_v39 = vrot.slane %v6500_v55, 4  ;;  %v8158_v59 = vrot.slane %v14383_v31, 5  ;;  %v6015_v28 = vshrl.u32 %v5885_v33, 16  ;;  %v8157_v48 = vrot.slane %v8155_v24, 4  ;;  %v7522_v52 = vld [vmem:[#allocation2 + $0x48] sm:$0xf] }
 0x3f7   : > { %5866 = vst.msk [vmem:[#allocation4 + $0x15c] sm:$0xf] %vm5836_vm2, %v5787_v7  ;;  %v6394_v7 = vld [vmem:[#allocation2 + $0x38] sm:$0xf]  ;;  %v6504_v49 = vsel %vm11239_vm7, %v6496_v16, %v6503_v40  ;;  %v6018_v17 = vshll.u32 %v5885_v33, 16  ;;  %v14432_v2 = vrot.slane %v7654_v54, 4 }
 0x3f8   : > { %v6513_v29 = vsel %vm11239_vm7, %v6505_v39, %v6512_v43  ;;  %v14416_v36 = vrot.slane %v6015_v28, 7  ;;  %v14434_v27 = vrot.slane %v7109_v58, 4  ;;  %v6978_v9 = vld [vmem:[#allocation2 + $0x44] sm:$0xf]  ;;  %v6519_v11 = vshll.u32 %v6394_v7, 16 }
 0x3f9   : > { %6762 = vrot.lane.b32.xlu1 %v6495_v61, %s10839_s14  ;;  %v7661_v61 = vshrl.u32 %v7521_v50, 16  ;;  %v5886_v43 = vld [vmem:[#allocation2 + $0x38] sm:$0xf]  ;;  %v7132_v50 = vshll.u32 %v6978_v9, 16  ;;  %v7136_v63 = vshrl.u32 %v6978_v9, 16  ;;  %v7660_v23 = vsel %vm11028_vm3, %v14432_v2, %v14420_v32 }
 0x3fa   : > { %7923 = vrot.lane.b32.xlu0 %v7620_v19, %s10838_s25  ;;  %v6516_v19 = vshrl.u32 %v6394_v7, 16  ;;  %v7115_v0 = vsel %vm11028_vm3, %v14434_v27, %v14391_v3  ;;  %v8160_v7 = vrot.slane %v8158_v59, 4  ;;  %v6024_v44 = vshrl.u32 %v5886_v43, 16  ;;  %v5887_v5 = vld [vmem:[#allocation2 + $0x3c] sm:$0xf] }
 0x3fb   : > { %v7663_v60 = vrot.slane %v7661_v61, 4  ;;  %v14477_v61 = vld [vmem:[#allocation2 + $0x48] sm:$0xf]  ;;  %v6528_v40 = vshll.u32 %v14422_v22, 16  ;;  %v7138_v56 = vrot.slane %v7136_v63, 4  ;;  %v6022_v58 = vrot.slane %v14416_v36, 4 }
 0x3fc   : > { %v14428_v55 = vrot.slane %v6516_v19, 7  ;;  %v14470_v37 = vsel %vm12306_vm12, %v8160_v7, %v8161_v53  ;;  %v6534_v16 = vshrl.u32 %v6396_v35, 16  ;;  %275 = vst.msk [vmem:[#allocation4 + $0x8c] sm:$0xf] %vm263_vm10, %v16794_v62  ;;  %276 = vst.msk [vmem:[#allocation4 + $0x98] sm:$0xf] %vm263_vm10, %v16794_v62 }
 0x3fd   : > { %8252 = vrot.lane.b32.xlu1 %v8153_v30, %s10839_s14  ;;  %v8159_v30 = vsel %vm12306_vm12, %v8157_v48, %v8158_v59  ;;  %v7664_v33 = vor.u32 %v7663_v60, %v14420_v32  ;;  %v14479_v48 = vrot.slane %v7132_v50, 5  ;;  %277 = vst.msk [vmem:[#allocation4 + $0xa4] sm:$0xf] %vm263_vm10, %v16794_v62  ;;  %278 = vst.msk [vmem:[#allocation4 + $0xb0] sm:$0xf] %vm263_vm10, %v16794_v62 }
 0x3fe   : > { %6760 = vrot.lane.b32.xlu0 %v6486_v42, %s10839_s14  ;;  %v7126_v42 = vshrl.u32 %v6977_v10, 16  ;;  %v6521_v24 = vor.u32 %v6519_v11, %v14428_v55  ;;  %v7671_v10 = vshrl.u32 %v7522_v52, 16  ;;  %v6523_v54 = vrot.slane %v14428_v55, 4  ;;  %279 = vst.msk [vmem:[#allocation4 + $0xbc] sm:$0xf] %vm263_vm10, %v16794_v62 }
 0x3ff   : > { %v5789_v25 = vpop.permute.xlu1 %5788  ;;  %v14472_v3 = vrot.slane %v7664_v33, 4  ;;  %v6027_v55 = vshll.u32 %v5886_v43, 16  ;;  %v7139_v13 = vor.u32 %v7138_v56, %v14479_v48  ;;  %v14507_v27 = vrot.slane %v6534_v16, 7  ;;  %280 = vst.msk [vmem:[#allocation4 + $0xc8] sm:$0xf] %vm263_vm10, %v16794_v62 }
 0x400   : > { %5867 = vst.msk [vmem:[#allocation4 + $0x168] sm:$0xf] %vm5836_vm2, %v5789_v25  ;;  %v6013_v25 = vrot.slane %v14024_v45, 4  ;;  %v7128_v39 = vrot.slane %v7126_v42, 4  ;;  %v7125_v45 = vsel %vm11028_vm3, %v7120_v47, %v14418_v21  ;;  %v7673_v19 = vrot.slane %v7671_v10, 4 }
 0x401   : > { %7384 = vrot.lane.b32.xlu1 %v7105_v8, %s10834_s27  ;;  %v6020_v8 = vor.u32 %v6018_v17, %v14416_v36  ;;  %v14487_v42 = vrot.slane %v6024_v44, 7  ;;  %v14527_v50 = vrot.slane %v7139_v13, 4  ;;  %281 = vst.msk [vmem:[#allocation4 + $0xd4] sm:$0xf] %vm263_vm10, %v16794_v62  ;;  %282 = vst.msk [vmem:[#allocation4 + $0xe0] sm:$0xf] %vm263_vm10, %v16794_v62 }
 0x402   : > { %8250 = vrot.lane.b32.xlu0 %v8150_v14, %s10839_s14  ;;  %v6525_v14 = vshrl.u32 %v14422_v22, 16  ;;  %v7129_v59 = vor.u32 %v7128_v39, %v14418_v21  ;;  %v6537_v39 = vshll.u32 %v6396_v35, 16  ;;  %v6036_v35 = vshll.u32 %v5887_v5, 16  ;;  %283 = vst.msk [vmem:[#allocation4 + $0xec] sm:$0xf] %vm263_vm10, %v16794_v62 }
 0x403   : > { %v14464_v41 = vsel %vm11239_vm7, %v6013_v25, %v6020_v8  ;;  %v7524_v25 = vld [vmem:[#allocation2 + $0x50] sm:$0xf]  ;;  %v6031_v44 = vrot.slane %v14487_v42, 4  ;;  %284 = vst.msk [vmem:[#allocation4 + $0xf8] sm:$0xf] %vm263_vm10, %v16794_v62 }
 0x404   : > { %v14466_v28 = vrot.slane %v6525_v14, 7  ;;  %v14489_v22 = vrot.slane %v7129_v59, 4  ;;  %v6397_v14 = vld [vmem:[#allocation2 + $0x44] sm:$0xf]  ;;  %v7687_v7 = vshll.u32 %v7524_v25, 16  ;;  %v7691_v56 = vshrl.u32 %v7524_v25, 16 }
 0x405   : > { %7929 = vrot.lane.b32.xlu1 %v7650_v57, %s10838_s25  ;;  %v7667_v57 = vshll.u32 %v7522_v52, 16  ;;  %v6033_v52 = vshrl.u32 %v5887_v5, 16  ;;  %v6546_v13 = vshll.u32 %v6397_v14, 16  ;;  %285 = vst.msk [vmem:[#allocation4 + $0x104] sm:$0xf] %vm263_vm10, %v16794_v62 }
 0x406   : > { %7382 = vrot.lane.b32.xlu0 %v7095_v20, %s10834_s27  ;;  %v6522_v20 = vsel %vm11239_vm7, %v6514_v15, %v6521_v24  ;;  %v6530_v21 = vor.u32 %v6528_v40, %v14466_v28  ;;  %v7135_v47 = vsel %vm11028_vm3, %v14489_v22, %v14479_v48  ;;  %v8068_v15 = vld [vmem:[#allocation2 + $0x4c] sm:$0xf]  ;;  %v14558_v16 = vrot.slane %v7687_v7, 5  ;;  %286 = vst.msk [vmem:[#allocation4 + $0x110] sm:$0xf] %vm263_vm10, %v16794_v62 }
 0x407   : > { %v14474_v31 = vrot.slane %v7667_v57, 5  ;;  %v6532_v57 = vrot.slane %v14466_v28, 4  ;;  %v14529_v63 = vrot.slane %v6033_v52, 7  ;;  %v6543_v28 = vshrl.u32 %v6397_v14, 16  ;;  %287 = vst.msk [vmem:[#allocation4 + $0x11c] sm:$0xf] %vm263_vm10, %v16794_v62 }
 0x408   : > { %v5791_v18 = vpop.permute.xlu0 %5790  ;;  %v14512_v9 = vsel %vm11239_vm7, %v6523_v54, %v6530_v21  ;;  %v14562_v21 = vld [vmem:[#allocation2 + $0x50] sm:$0xf]  ;;  %288 = vst.msk [vmem:[#allocation4 + $0x128] sm:$0xf] %vm263_vm10, %v16794_v62  ;;  %289 = vst.msk [vmem:[#allocation4 + $0x134] sm:$0xf] %vm263_vm10, %v16794_v62 }
 0x409   : > { %5868 = vst.msk [vmem:[#allocation4 + $0x174] sm:$0xf] %vm5836_vm2, %v5791_v18  ;;  %6766 = vrot.lane.b32.xlu1 %v6513_v29, %s10839_s14  ;;  %v7523_v29 = vld [vmem:[#allocation2 + $0x4c] sm:$0xf]  ;;  %v8164_v18 = vrot.slane %v14477_v61, 5  ;;  %v7674_v36 = vor.u32 %v7673_v19, %v14474_v31  ;;  %v14560_v5 = vrot.slane %v6543_v28, 7 }
 0x40a   : > { %7927 = vrot.lane.b32.xlu0 %v7640_v46, %s10838_s25  ;;  %v5793_v6 = vpop.permute.xlu1 %5792  ;;  %v6979_v46 = vld [vmem:[#allocation2 + $0x48] sm:$0xf]  ;;  %v7677_v32 = vshll.u32 %v7523_v29, 16  ;;  %v7681_v60 = vshrl.u32 %v7523_v29, 16  ;;  %v7525_v19 = vld [vmem:[#allocation2 + $0x54] sm:$0xf] }
 0x40b   : > { %5869 = vst.msk [vmem:[#allocation4 + $0x180] sm:$0xf] %vm5836_vm2, %v5793_v6  ;;  %v7146_v17 = vshrl.u32 %v6979_v46, 16  ;;  %v6029_v6 = vor.u32 %v6027_v55, %v14487_v42  ;;  %v14525_v10 = vrot.slane %v7674_v36, 4  ;;  %v8166_v61 = vrot.slane %v8164_v18, 4 }
 0x40c   : > { %v5795_v26 = vpop.permute.xlu0 %5794  ;;  %v14515_v11 = vrot.slane %v7677_v32, 5  ;;  %v7683_v8 = vrot.slane %v7681_v60, 4  ;;  %v14564_v42 = vld [vmem:[#allocation2 + $0x44] sm:$0xf]  ;;  %v7697_v60 = vshll.u32 %v7525_v19, 16  ;;  %v8170_v25 = vrot.slane %v14562_v21, 5 }
 0x40d   : > { %5870 = vst.msk [vmem:[#allocation4 + $0x18c] sm:$0xf] %vm5836_vm2, %v5795_v26  ;;  %8256 = vrot.lane.b32.xlu1 %v8159_v30, %s10839_s14  ;;  %v8163_v30 = vrot.slane %v8161_v53, 4  ;;  %v7148_v43 = vrot.slane %v7146_v17, 4  ;;  %v5888_v26 = vld [vmem:[#allocation2 + $0x40] sm:$0xf]  ;;  %v14523_v24 = vsel %vm11239_vm7, %v6022_v58, %v6029_v6  ;;  %v6548_v14 = vor.u32 %v6546_v13, %v14560_v5 }
 0x40e   : > { %6764 = vrot.lane.b32.xlu0 %v6504_v49, %s10839_s14  ;;  %v7142_v49 = vshll.u32 %v6979_v46, 16  ;;  %v6038_v46 = vor.u32 %v6036_v35, %v14529_v63  ;;  %v6045_v52 = vshll.u32 %v5888_v26, 16  ;;  %v14642_v21 = vld [vmem:[#allocation2 + $0x4c] sm:$0xf]  ;;  %290 = vst.msk [vmem:[#allocation4 + $0x140] sm:$0xf] %vm263_vm10, %v16794_v62 }
 0x40f   : > { %v14505_v2 = vsel %vm12306_vm12, %v8163_v30, %v8164_v18  ;;  %v7701_v18 = vshrl.u32 %v7525_v19, 16  ;;  %v6916_v13 = vld [vmem:[#allocation2 + $0x6c] sm:$0xf]  ;;  %291 = vst.msk [vmem:[#allocation4 + $0x14c] sm:$0xf] %vm263_vm10, %v16794_v62 }
 0x410   : > { %v14517_v33 = vrot.slane %v7142_v49, 5  ;;  %v6981_v49 = vld [vmem:[#allocation2 + $0x50] sm:$0xf]  ;;  %v14596_v48 = vsel %vm11239_vm7, %v6031_v44, %v6038_v46  ;;  %6952 = vst.msk [vmem:[#allocation4 + $0x118] sm:$0xf] %vm5506_vm4, %v6916_v13 }
 0x411   : > { %7388 = vrot.lane.b32.xlu1 %v7125_v45, %s10834_s27  ;;  %v6980_v45 = vld [vmem:[#allocation2 + $0x4c] sm:$0xf]  ;;  %292 = vst.msk [vmem:[#allocation4 + $0x158] sm:$0xf] %vm263_vm10, %v16794_v62  ;;  %293 = vst.msk [vmem:[#allocation4 + $0x164] sm:$0xf] %vm263_vm10, %v16794_v62 }
 0x412   : > { %8254 = vrot.lane.b32.xlu0 %v8156_v34, %s10839_s14  ;;  %v7670_v34 = vsel %vm11028_vm3, %v14472_v3, %v14474_v31  ;;  %v7684_v3 = vor.u32 %v7683_v8, %v14515_v11  ;;  %v6042_v31 = vshrl.u32 %v5888_v26, 16  ;;  %v7149_v29 = vor.u32 %v7148_v43, %v14517_v33  ;;  %294 = vst.msk [vmem:[#allocation4 + $0x170] sm:$0xf] %vm263_vm10, %v16794_v62 }
 0x413   : > { %v7152_v40 = vshll.u32 %v6980_v45, 16  ;;  %v7156_v54 = vshrl.u32 %v6980_v45, 16  ;;  %v7693_v8 = vrot.slane %v7691_v56, 4  ;;  %v6051_v43 = vshrl.u32 %v14564_v42, 16  ;;  %295 = vst.msk [vmem:[#allocation4 + $0x17c] sm:$0xf] %vm263_vm10, %v16794_v62 }
 0x414   : > { %v14567_v32 = vrot.slane %v7684_v3, 4  ;;  %v14571_v55 = vrot.slane %v7149_v29, 4  ;;  %v14591_v45 = vrot.slane %v7697_v60, 5  ;;  %v6550_v56 = vrot.slane %v14560_v5, 4  ;;  %296 = vst.msk [vmem:[#allocation4 + $0x188] sm:$0xf] %vm263_vm10, %v16794_v62 }
 0x415   : > { %7931 = vrot.lane.b32.xlu1 %v7660_v23, %s10838_s25  ;;  %v6539_v23 = vor.u32 %v6537_v39, %v14507_v27  ;;  %v14573_v36 = vrot.slane %v7152_v40, 5  ;;  %v7166_v39 = vshrl.u32 %v6981_v49, 16  ;;  %v7694_v3 = vor.u32 %v7693_v8, %v14558_v16  ;;  %297 = vst.msk [vmem:[#allocation4 + $0x194] sm:$0xf] %vm263_vm10, %v16794_v62  ;;  %298 = vst.msk [vmem:[#allocation4 + $0x1a0] sm:$0xf] %vm263_vm10, %v16794_v62 }
 0x416   : > { %7386 = vrot.lane.b32.xlu0 %v7115_v0, %s10834_s27  ;;  %v8167_v0 = vrot.slane %v8068_v15, 5  ;;  %v14575_v15 = vld [vmem:[#allocation2 + $0x48] sm:$0xf]  ;;  %v7690_v22 = vsel %vm11028_vm3, %v14567_v32, %v14558_v16  ;;  %v14630_v40 = vrot.slane %v6051_v43, 7  ;;  %299 = vst.msk [vmem:[#allocation4 + $0x1ac] sm:$0xf] %vm263_vm10, %v16794_v62  ;;  %vm16803_vm10 = vmmov %vm16796_vm5 }
 0x417   : > { %v5797_v53 = vpop.permute.xlu1 %5796  ;;  %v14552_v58 = vsel %vm11239_vm7, %v6532_v57, %v6539_v23  ;;  %v7162_v57 = vshll.u32 %v6981_v49, 16  ;;  %v6552_v23 = vshrl.u32 %v14575_v15, 16  ;;  %v7155_v35 = vsel %vm11028_vm3, %v14571_v55, %v14573_v36  ;;  %v14848_v32 = vld [vmem:[#allocation2 + $0x58] sm:$0xf]  ;;  %v8388_v55 = vld [vmem:[#allocation2 + $0x30] sm:$0xf] }
 0x418   : > { %5871 = vst.msk [vmem:[#allocation4 + $0x198] sm:$0xf] %vm5836_vm2, %v5797_v53  ;;  %v14556_v30 = vsel %vm12306_vm12, %v8166_v61, %v8167_v0  ;;  %v7158_v53 = vrot.slane %v7156_v54, 4  ;;  %v7168_v19 = vrot.slane %v7166_v39, 4  ;;  %v14649_v5 = vrot.slane %v7694_v3, 4 }
 0x419   : > { %6768 = vrot.lane.b32.xlu1 %v6522_v20, %s10839_s14  ;;  %v7680_v20 = vsel %vm11028_vm3, %v14525_v10, %v14515_v11  ;;  %v14628_v29 = vrot.slane %v7162_v57, 5  ;;  %v14639_v54 = vrot.slane %v6552_v23, 7  ;;  %v14666_v57 = vld [vmem:[#allocation2 + $0x48] sm:$0xf] }
 0x41a   : > { %6260 = vrot.lane.b32.xlu0 %v14464_v41, %s10838_s25  ;;  %v7145_v41 = vsel %vm11028_vm3, %v14527_v50, %v14517_v33  ;;  %v7700_v11 = vsel %vm11028_vm3, %v14649_v5, %v14591_v45 }
 0x41b   : > { %v6239_v59 = vpop.permute.xlu1 %6238 }
 0x41c   : > { %6347 = vst.msk [vmem:[#allocation4] sm:$0xf] %vm6346_vm1, %v6239_v59  ;;  %v14615_v59 = vld [vmem:[#allocation2 + $0x54] sm:$0xf] }
 0x41d   : > { %8258 = vrot.lane.b32.xlu1 %v14470_v37, %s10839_s14  ;;  %v14569_v37 = vrot.slane %v6042_v31, 7  ;;  %v7159_v31 = vor.u32 %v7158_v53, %v14573_v36  ;;  %v8173_v49 = vrot.slane %v14615_v59, 5  ;;  %v8172_v53 = vrot.slane %v8170_v25, 4 }
 0x41e   : > { %7933 = vrot.lane.b32.xlu0 %v7670_v34, %s10838_s25  ;;  %v8169_v34 = vrot.slane %v8167_v0, 4  ;;  %v7703_v0 = vrot.slane %v7701_v18, 4  ;;  %v6054_v18 = vshll.u32 %v14564_v42, 16 }
 0x41f   : > { %v6243_v17 = vpop.permute.xlu1 %6242  ;;  %v6047_v26 = vor.u32 %v6045_v52, %v14569_v37  ;;  %v6049_v8 = vrot.slane %v14569_v37, 4  ;;  %v14687_v33 = vsel %vm12306_vm12, %v8172_v53, %v8173_v49 }
 0x420   : > { %6349 = vst.msk [vmem:[#allocation4 + $0x18] sm:$0xf] %vm6346_vm1, %v6243_v17  ;;  %v5799_v6 = vpop.permute.xlu0 %5798  ;;  %v14611_v44 = vsel %vm12306_vm12, %v8169_v34, %v8170_v25  ;;  %v6555_v34 = vshll.u32 %v14575_v15, 16  ;;  %v6056_v42 = vor.u32 %v6054_v18, %v14630_v40  ;;  %v6561_v15 = vshrl.u32 %v14642_v21, 16  ;;  %v6914_v25 = vld [vmem:[#allocation2 + $0x64] sm:$0xf] }
 0x421   : > { %5872 = vst.msk [vmem:[#allocation4 + $0x1a4] sm:$0xf] %vm5836_vm2, %v5799_v6  ;;  %7390 = vrot.lane.b32.xlu1 %v7135_v47, %s10834_s27  ;;  %v6541_v47 = vrot.slane %v14507_v27, 4  ;;  %v14617_v27 = vld [vmem:[#allocation2 + $0x58] sm:$0xf]  ;;  %v14651_v6 = vrot.slane %v7159_v31, 4 }
 0x422   : > { %6770 = vrot.lane.b32.xlu0 %v14512_v9, %s10839_s14  ;;  %v6040_v9 = vrot.slane %v14529_v63, 4  ;;  %v14619_v63 = vld [vmem:[#allocation2 + $0x54] sm:$0xf]  ;;  %v7707_v17 = vshll.u32 %v14617_v27, 16  ;;  %6950 = vst.msk [vmem:[#allocation4 + $0x100] sm:$0xf] %vm5506_vm4, %v6914_v25  ;;  %v14712_v3 = vsel %vm11239_vm7, %v6049_v8, %v6056_v42 }
 0x423   : > { %v6247_v7 = vpop.permute.xlu1 %6246  ;;  %v14626_v61 = vsel %vm11239_vm7, %v6541_v47, %v6548_v14  ;;  %v7169_v14 = vor.u32 %v7168_v19, %v14628_v29  ;;  %v7165_v10 = vsel %vm11028_vm3, %v14651_v6, %v14628_v29  ;;  %v6559_v47 = vrot.slane %v14639_v54, 4 }
 0x424   : > { %6351 = vst.msk [vmem:[#allocation4 + $0x30] sm:$0xf] %vm6346_vm1, %v6247_v7  ;;  %v6241_v28 = vpop.permute.xlu0 %6240  ;;  %v14636_v46 = vsel %vm11239_vm7, %v6040_v9, %v6047_v26  ;;  %v14689_v50 = vrot.slane %v7707_v17, 5  ;;  %v14694_v26 = vld [vmem:[#allocation2 + $0x58] sm:$0xf]  ;;  %v7176_v7 = vshrl.u32 %v14619_v63, 16 }
 0x425   : > { %6348 = vst.msk [vmem:[#allocation4 + $0xc] sm:$0xf] %vm6346_vm1, %v6241_v28  ;;  %6262 = vrot.lane.b32.xlu1 %v14523_v24, %s10838_s25  ;;  %v7704_v24 = vor.u32 %v7703_v0, %v14591_v45  ;;  %v6060_v9 = vshrl.u32 %v14666_v57, 16  ;;  %v14705_v28 = vld [vmem:[#allocation2 + $0x18] sm:$0xe]  ;;  %v14714_v31 = vrot.slane %v7169_v14, 4 }
 0x426   : > { %8260 = vrot.lane.b32.xlu0 %v14505_v2, %s10839_s14  ;;  %v7172_v2 = vshll.u32 %v14619_v63, 16  ;;  %v14716_v59 = vrot.slane %v6561_v15, 7  ;;  %v6564_v19 = vshll.u32 %v14642_v21, 16  ;;  %v14729_v18 = vrot.slane %v8173_v49, 4  ;;  %v14731_v17 = vld [vmem:[#allocation2 + $0x5c] sm:$0xf] }
 0x427   : > { %v6251_v60 = vpop.permute.xlu1 %6250  ;;  %v14683_v37 = vrot.slane %v7704_v24, 4  ;;  %v6058_v24 = vrot.slane %v14630_v40, 4  ;;  %v8423_v13 = vshll.u32 %v14705_v28, 16  ;;  %v14744_v8 = vrot.slane %v6060_v9, 7  ;;  %v6915_v15 = vld [vmem:[#allocation2 + $0x68] sm:$0xf] }
 0x428   : > { %6353 = vst.msk [vmem:[#allocation4 + $0x48] sm:$0xf] %vm6346_vm1, %v6251_v60  ;;  %v6245_v52 = vpop.permute.xlu0 %6244  ;;  %v14692_v43 = vrot.slane %v7172_v2, 5  ;;  %v6063_v60 = vshll.u32 %v14666_v57, 16  ;;  %v8176_v42 = vrot.slane %v14694_v26, 5  ;;  %v7717_v62 = vshll.u32 %v14731_v17, 16 }
 0x429   : > { %6350 = vst.msk [vmem:[#allocation4 + $0x24] sm:$0xf] %vm6346_vm1, %v6245_v52  ;;  %7935 = vrot.lane.b32.xlu1 %v7680_v20, %s10838_s25  ;;  %v6557_v20 = vor.u32 %v6555_v34, %v14639_v54  ;;  %v14739_v52 = vld [vmem:[#allocation2 + $0x20] sm:$0xf]  ;;  %v14741_v34 = vld [vmem:[#allocation2 + $0x24] sm:$0xf] }
 0x42a   : > { %7392 = vrot.lane.b32.xlu0 %v7145_v41, %s10834_s27  ;;  %v7711_v41 = vshrl.u32 %v14617_v27, 16  ;;  %v7175_v21 = vsel %vm11028_vm3, %v14714_v31, %v14692_v43  ;;  %v8386_v9 = vld [vmem:[#allocation2 + $0x28] sm:$0xf]  ;;  %6951 = vst.msk [vmem:[#allocation4 + $0x10c] sm:$0xf] %vm5506_vm4, %v6915_v15  ;;  %v8439_v27 = vshrl.u32 %v14739_v52, 16  ;;  %v14862_v63 = vor.u32 %v6063_v60, %v14744_v8 }
 0x42b   : > { %v6255_v39 = vpop.permute.xlu1 %6254  ;;  %v14700_v0 = vsel %vm11239_vm7, %v6550_v56, %v6557_v20  ;;  %v14719_v56 = vld [vmem:[#allocation2 + $0x1c] sm:$0xf]  ;;  %v14825_v20 = vor.u32 %v6564_v19, %v14716_v59  ;;  %v8459_v15 = vshrl.u32 %v8386_v9, 16  ;;  %v6067_v31 = vrot.slane %v14744_v8, 4 }
 0x42c   : > { %6355 = vst.msk [vmem:[#allocation4 + $0x60] sm:$0xf] %vm6346_vm1, %v6255_v39  ;;  %v6249_v23 = vpop.permute.xlu0 %6248  ;;  %v8429_v53 = vshrl.u32 %v14719_v56, 16  ;;  %v8432_v14 = vshll.u32 %v14719_v56, 16  ;;  %v14829_v25 = vrot.slane %v7711_v41, 4  ;;  %v7721_v56 = vshrl.u32 %v14731_v17, 16 }
 0x42d   : > { %6352 = vst.msk [vmem:[#allocation4 + $0x3c] sm:$0xf] %vm6346_vm1, %v6249_v23  ;;  %6772 = vrot.lane.b32.xlu1 %v14552_v58, %s10839_s14  ;;  %v7710_v58 = vsel %vm11028_vm3, %v14683_v37, %v14689_v50  ;;  %v8425_v23 = vrot.slane %v8423_v13, 6  ;;  %v6913_v41 = vld [vmem:[#allocation2 + $0x60] sm:$0xf]  ;;  %v8442_v13 = vshll.u32 %v14739_v52, 16 }
 0x42e   : > { %6264 = vrot.lane.b32.xlu0 %v14596_v48, %s10838_s25  ;;  %v8420_v48 = vshrl.u32 %v14705_v28, 16  ;;  %v8434_v28 = vrot.slane %v8432_v14, 6  ;;  %6949 = vst.msk [vmem:[#allocation4 + $0xf4] sm:$0xf] %vm5506_vm4, %v6913_v41  ;;  %v8452_v14 = vshll.u32 %v14741_v34, 16  ;;  %v8461_v60 = vrot.slane %v8459_v15, 5 }
 0x42f   : > { %v6259_v2 = vpop.permute.xlu1 %6258  ;;  %v8444_v52 = vrot.slane %v8442_v13, 6 }
 0x430   : > { %6357 = vst.msk [vmem:[#allocation4 + $0x78] sm:$0xf] %vm6346_vm1, %v6259_v2  ;;  %v6253_v49 = vpop.permute.xlu0 %6252  ;;  %v8422_v39 = vrot.slane %v8420_v48, 5  ;;  %v14843_v2 = vrot.slane %v7176_v7, 4 }
 0x431   : > { %6354 = vst.msk [vmem:[#allocation4 + $0x54] sm:$0xf] %vm6346_vm1, %v6253_v49  ;;  %8262 = vrot.lane.b32.xlu1 %v14556_v30, %s10839_s14  ;;  %v8431_v30 = vrot.slane %v8429_v53, 5  ;;  %v8441_v49 = vrot.slane %v8439_v27, 5  ;;  %v8449_v53 = vshrl.u32 %v14741_v34, 16  ;;  %v7714_v34 = vor.u32 %v14829_v25, %v14689_v50 }
 0x432   : > { %7937 = vrot.lane.b32.xlu0 %v7690_v22, %s10838_s25  ;;  %v8426_v48 = vor.u32 %v8425_v23, %v8422_v39  ;;  %v8387_v39 = vld [vmem:[#allocation2 + $0x2c] sm:$0xf]  ;;  %v8462_v27 = vshll.u32 %v8386_v9, 16 }
 0x433   : > { %v7369_v19 = vpop.permute.xlu1 %7368  ;;  %v8435_v22 = vor.u32 %v8434_v28, %v8431_v30  ;;  %v8451_v23 = vrot.slane %v8449_v53, 5  ;;  %v8454_v30 = vrot.slane %v8452_v14, 6  ;;  %v8445_v57 = vor.u32 %v8444_v52, %v8441_v49  ;;  %v8390_v14 = vld [vmem:[#allocation2 + $0x38] sm:$0xf] }
 0x434   : > { %7475 = vst.msk [vmem:[#allocation4 + $0x10] sm:$0xf] %vm5836_vm2, %v7369_v19  ;;  %v6257_v16 = vpop.permute.xlu0 %6256  ;;  %v8427_v7 = vrot.slane %v8426_v48, 4  ;;  %v7182_v19 = vshll.u32 %v14848_v32, 16  ;;  %v8469_v48 = vshrl.u32 %v8387_v39, 16  ;;  %v8472_v13 = vshll.u32 %v8387_v39, 16 }
 0x435   : > { %6356 = vst.msk [vmem:[#allocation4 + $0x6c] sm:$0xf] %vm6346_vm1, %v6257_v16  ;;  %7394 = vrot.lane.b32.xlu1 %v7155_v35, %s10834_s27  ;;  %v8437_v28 = vrot.slane %v8435_v22, 4  ;;  %v8389_v16 = vld [vmem:[#allocation2 + $0x34] sm:$0xf]  ;;  %v8464_v49 = vrot.slane %v8462_v27, 6 }
 0x436   : > { %6774 = vrot.lane.b32.xlu0 %v14626_v61, %s10839_s14  ;;  %v8436_v35 = vsel %vm12508_vm0, %v8427_v7, %v8435_v22  ;;  %v8455_v61 = vor.u32 %v8454_v30, %v8451_v23  ;;  %v8447_v22 = vrot.slane %v8445_v57, 4  ;;  %v8479_v53 = vshrl.u32 %v8388_v55, 16 }
 0x437   : > { %v7914_v36 = vpop.permute.xlu1 %7913  ;;  %8823 = vst.msk [vmem:[#allocation4 + $0x8] sm:$0xf] %vm5506_vm4, %v8436_v35  ;;  %v8446_v9 = vsel %vm12508_vm0, %v8437_v28, %v8445_v57  ;;  %v8471_v52 = vrot.slane %v8469_v48, 5  ;;  %v8474_v15 = vrot.slane %v8472_v13, 6  ;;  %v8482_v39 = vshll.u32 %v8388_v55, 16 }
 0x438   : > { %8020 = vst.msk [vmem:[#allocation4 + $0x10] sm:$0xf] %vm6346_vm1, %v7914_v36  ;;  %v7367_v41 = vpop.permute.xlu0 %7366  ;;  %v8457_v7 = vrot.slane %v8455_v61, 4  ;;  %v8465_v30 = vor.u32 %v8464_v49, %v8461_v60  ;;  %v8481_v36 = vrot.slane %v8479_v53, 5  ;;  %v8489_v35 = vshrl.u32 %v8389_v16, 16 }
 0x439   : > { %7474 = vst.msk [vmem:[#allocation4 + $0x4] sm:$0xf] %vm5836_vm2, %v7367_v41  ;;  %6266 = vrot.lane.b32.xlu1 %v14636_v46, %s10838_s25  ;;  %v8456_v46 = vsel %vm12508_vm0, %v8447_v22, %v8455_v61  ;;  %v8475_v57 = vor.u32 %v8474_v15, %v8471_v52  ;;  %v8492_v27 = vshll.u32 %v8389_v16, 16  ;;  %v8499_v41 = vshrl.u32 %v8390_v14, 16  ;;  %v8392_v13 = vld [vmem:[#allocation2 + $0x40] sm:$0xf] }
 0x43a   : > { %8264 = vrot.lane.b32.xlu0 %v14611_v44, %s10839_s14  ;;  %8824 = vst.msk [vmem:[#allocation4 + $0x14] sm:$0xf] %vm5506_vm4, %v8446_v9  ;;  %8825 = vst.msk [vmem:[#allocation4 + $0x20] sm:$0xf] %vm5506_vm4, %v8456_v46  ;;  %v8484_v44 = vrot.slane %v8482_v39, 6  ;;  %v8466_v55 = vsel %vm12508_vm0, %v8457_v7, %v8465_v30  ;;  %v8467_v60 = vrot.slane %v8465_v30, 4 }
 0x43b   : > { %v6751_v23 = vpop.permute.xlu1 %6750  ;;  %v8391_v9 = vld [vmem:[#allocation2 + $0x3c] sm:$0xf]  ;;  %v8491_v61 = vrot.slane %v8489_v35, 5  ;;  %v8502_v48 = vshll.u32 %v8390_v14, 16  ;;  %8826 = vst.msk [vmem:[#allocation4 + $0x2c] sm:$0xf] %vm5506_vm4, %v8466_v55 }
 0x43c   : > { %6858 = vst.msk [vmem:[#allocation4 + $0xc] sm:$0xf] %vm6856_vm8, %v6751_v23  ;;  %v7912_v28 = vpop.permute.xlu0 %7911  ;;  %v8485_v16 = vor.u32 %v8484_v44, %v8481_v36  ;;  %v8494_v22 = vrot.slane %v8492_v27, 6  ;;  %v8477_v45 = vrot.slane %v8475_v57, 4  ;;  %v8501_v5 = vrot.slane %v8499_v41, 5 }
 0x43d   : > { %8019 = vst.msk [vmem:[#allocation4 + $0x4] sm:$0xf] %vm6346_vm1, %v7912_v28  ;;  %7939 = vrot.lane.b32.xlu1 %v7700_v11, %s10838_s25  ;;  %v8476_v49 = vsel %vm12508_vm0, %v8467_v60, %v8475_v57  ;;  %v8504_v53 = vrot.slane %v8502_v48, 6  ;;  %v8509_v14 = vshrl.u32 %v8391_v9, 16  ;;  %v8512_v7 = vshll.u32 %v8391_v9, 16 }
 0x43e   : > { %7396 = vrot.lane.b32.xlu0 %v7165_v10, %s10834_s27  ;;  %v8393_v52 = vld [vmem:[#allocation2 + $0x44] sm:$0xf]  ;;  %8827 = vst.msk [vmem:[#allocation4 + $0x38] sm:$0xf] %vm5506_vm4, %v8476_v49  ;;  %v8487_v29 = vrot.slane %v8485_v16, 4  ;;  %v8495_v6 = vor.u32 %v8494_v22, %v8491_v61  ;;  %v8486_v10 = vsel %vm12508_vm0, %v8477_v45, %v8485_v16  ;;  %v8519_v39 = vshrl.u32 %v8392_v13, 16 }
 0x43f   : > { %v8241_v11 = vpop.permute.xlu1 %8240  ;;  %v8394_v23 = vld [vmem:[#allocation2 + $0x48] sm:$0xf]  ;;  %8828 = vst.msk [vmem:[#allocation4 + $0x44] sm:$0xf] %vm5506_vm4, %v8486_v10  ;;  %v8505_v46 = vor.u32 %v8504_v53, %v8501_v5  ;;  %v8511_v30 = vrot.slane %v8509_v14, 5  ;;  %v8514_v36 = vrot.slane %v8512_v7, 6 }
 0x440   : > { %8347 = vst.msk [vmem:[#allocation4 + $0x10] sm:$0xf] %vm6856_vm8, %v8241_v11  ;;  %v6749_v15 = vpop.permute.xlu0 %6748  ;;  %v8522_v35 = vshll.u32 %v8392_v13, 16  ;;  %v6918_v28 = vld [vmem:[#allocation2 + $0x74] sm:$0xf]  ;;  %v8496_v57 = vsel %vm12508_vm0, %v8487_v29, %v8495_v6  ;;  %v8497_v44 = vrot.slane %v8495_v6, 4  ;;  %v7179_v11 = vor.u32 %v14843_v2, %v14692_v43 }
 0x441   : > { %6857 = vst.msk [vmem:[#allocation4] sm:$0xf] %vm6856_vm8, %v6749_v15  ;;  %6776 = vrot.lane.b32.xlu1 %v14700_v0, %s10839_s14  ;;  %v8521_v27 = vrot.slane %v8519_v39, 5  ;;  %v8529_v41 = vshrl.u32 %v8393_v52, 16  ;;  %v14916_v0 = vld [vmem:[#allocation2 + $0x4c] sm:$0xf]  ;;  %v8515_v60 = vor.u32 %v8514_v36, %v8511_v30 }
 0x442   : > { %6268 = vrot.lane.b32.xlu0 %v14712_v3, %s10838_s25  ;;  %6954 = vst.msk [vmem:[#allocation4 + $0x130] sm:$0xf] %vm5506_vm4, %v6918_v28  ;;  %8829 = vst.msk [vmem:[#allocation4 + $0x50] sm:$0xf] %vm5506_vm4, %v8496_v57  ;;  %v8507_v55 = vrot.slane %v8505_v46, 4  ;;  %v8524_v61 = vrot.slane %v8522_v35, 6  ;;  %v8506_v16 = vsel %vm12508_vm0, %v8497_v44, %v8505_v46 }
 0x443   : > { %v7373_v9 = vpop.permute.xlu1 %7372  ;;  %v8532_v48 = vshll.u32 %v8393_v52, 16  ;;  %v14920_v13 = vld [vmem:[#allocation2 + $0x50] sm:$0xf]  ;;  %v8531_v22 = vrot.slane %v8529_v41, 5  ;;  %v8539_v45 = vshrl.u32 %v8394_v23, 16  ;;  %v8542_v5 = vshll.u32 %v8394_v23, 16 }
 0x444   : > { %7477 = vst.msk [vmem:[#allocation4 + $0x28] sm:$0xf] %vm5836_vm2, %v7373_v9  ;;  %v8239_v3 = vpop.permute.xlu0 %8238  ;;  %v8516_v49 = vsel %vm12508_vm0, %v8507_v55, %v8515_v60  ;;  %v8525_v53 = vor.u32 %v8524_v61, %v8521_v27  ;;  %v14932_v7 = vld [vmem:[#allocation2 + $0x4c] sm:$0xf]  ;;  %v14947_v2 = vrot.slane %v7717_v62, 5  ;;  %v7186_v52 = vshrl.u32 %v14848_v32, 16 }
 0x445   : > { %8346 = vst.msk [vmem:[#allocation4 + $0x4] sm:$0xf] %vm6856_vm8, %v8239_v3  ;;  %8266 = vrot.lane.b32.xlu1 %v14687_v33, %s10839_s14  ;;  %v8534_v14 = vrot.slane %v8532_v48, 6  ;;  %v6567_v33 = vsel %vm11239_vm7, %v6559_v47, %v14825_v20  ;;  %v8517_v15 = vrot.slane %v8515_v60, 4  ;;  %v6570_v6 = vshrl.u32 %v14920_v13, 16 }
 0x446   : > { %8830 = vst.msk [vmem:[#allocation4 + $0x5c] sm:$0xf] %vm5506_vm4, %v8506_v16  ;;  %7941 = vrot.lane.b32.xlu0 %v7710_v58, %s10838_s25  ;;  %8831 = vst.msk [vmem:[#allocation4 + $0x68] sm:$0xf] %vm5506_vm4, %v8516_v49  ;;  %v6069_v37 = vshrl.u32 %v14916_v0, 16  ;;  %v8527_v58 = vrot.slane %v8525_v53, 4  ;;  %v6066_v55 = vsel %vm11239_vm7, %v6058_v24, %v14862_v63  ;;  %v8177_v60 = vsel %vm12306_vm12, %v14729_v18, %v8176_v42 }
 0x447   : > { %v7918_v29 = vpop.permute.xlu1 %7917  ;;  %v8535_v10 = vor.u32 %v8534_v14, %v8531_v22  ;;  %v8526_v47 = vsel %vm12508_vm0, %v8517_v15, %v8525_v53  ;;  %v8541_v20 = vrot.slane %v8539_v45, 5  ;;  %v8544_v62 = vrot.slane %v8542_v5, 6  ;;  %v14957_v23 = vld [vmem:[#allocation2 + $0x50] sm:$0xf]  ;;  %v14975_v35 = vld [vmem:[#allocation2 + $0x60] sm:$0xf] }
 0x448   : > { %8022 = vst.msk [vmem:[#allocation4 + $0x28] sm:$0xf] %vm6346_vm1, %v7918_v29  ;;  %v7371_v54 = vpop.permute.xlu0 %7370  ;;  %v8549_v39 = vshrl.u32 %v14932_v7, 16  ;;  %v7715_v46 = vrot.slane %v7714_v34, 4  ;;  %v14969_v30 = vrot.slane %v7179_v11, 4  ;;  %v14973_v36 = vrot.slane %v7182_v19, 5 }
 0x449   : > { %7476 = vst.msk [vmem:[#allocation4 + $0x1c] sm:$0xf] %vm5836_vm2, %v7371_v54  ;;  %7398 = vrot.lane.b32.xlu1 %v7175_v21, %s10834_s27  ;;  %v8536_v28 = vsel %vm12508_vm0, %v8527_v58, %v8535_v10  ;;  %v6568_v43 = vrot.slane %v14716_v59, 4  ;;  %v6573_v50 = vshll.u32 %v14920_v13, 16  ;;  %v6917_v21 = vld [vmem:[#allocation2 + $0x70] sm:$0xf]  ;;  %v8545_v3 = vor.u32 %v8544_v62, %v8541_v20 }
 0x44a   : > { %8832 = vst.msk [vmem:[#allocation4 + $0x74] sm:$0xf] %vm5506_vm4, %v8526_v47  ;;  %6778 = vrot.lane.b32.xlu0 %v6567_v33, %s10839_s14  ;;  %8833 = vst.msk [vmem:[#allocation4 + $0x80] sm:$0xf] %vm5506_vm4, %v8536_v28  ;;  %v8552_v25 = vshll.u32 %v14932_v7, 16  ;;  %v14986_v19 = vrot.slane %v6570_v6, 7  ;;  %v7720_v40 = vsel %vm11028_vm3, %v7715_v46, %v14947_v2  ;;  %v7185_v24 = vsel %vm11028_vm3, %v14969_v30, %v14973_v36 }
 0x44b   : > { %v6755_v34 = vpop.permute.xlu1 %6754  ;;  %v14988_v57 = vrot.slane %v6069_v37, 7  ;;  %6953 = vst.msk [vmem:[#allocation4 + $0x124] sm:$0xf] %vm5506_vm4, %v6917_v21  ;;  %v8537_v44 = vrot.slane %v8535_v10, 4  ;;  %v8559_v27 = vshrl.u32 %v14957_v23, 16  ;;  %v8551_v13 = vrot.slane %v8549_v39, 5 }
 0x44c   : > { %v6919_v41 = vld [vmem:[#allocation2 + $0x78] sm:$0xf]  ;;  %6860 = vst.msk [vmem:[#allocation4 + $0x24] sm:$0xf] %vm6856_vm8, %v6755_v34  ;;  %v7916_v9 = vpop.permute.xlu0 %7915  ;;  %v10757_v61 = vld [vmem:[#allocation4] ss:$12 sps:$4 sm:$0xff]  }
 0x44d   : > { %v10759_v48 = vld [vmem:[#allocation4 + $0x4] ss:$12 sps:$4 sm:$0xff]   ;;  %6955 = vst.msk [vmem:[#allocation4 + $0x13c] sm:$0xf] %vm5506_vm4, %v6919_v41  ;;  %6270 = vrot.lane.b32.xlu1 %v6066_v55, %s10838_s25  ;;  %v6072_v18 = vshll.u32 %v14916_v0, 16  ;;  %v15016_v63 = vrot.slane %v8176_v42, 4  ;;  %v8546_v49 = vsel %vm12508_vm0, %v8537_v44, %v8545_v3  ;;  %v6575_v42 = vor.u32 %v6573_v50, %v14986_v19 }
 0x44e   : > { %8021 = vst.msk [vmem:[#allocation4 + $0x1c] sm:$0xf] %vm6346_vm1, %v7916_v9  ;;  %v8397_v16 = vld [vmem:[#allocation2 + $0x54] sm:$0xf]  ;;  %v6920_v22 = vld [vmem:[#allocation2 + $0x7c] sm:$0xf]  ;;  %8268 = vrot.lane.b32.xlu0 %v8177_v60, %s10839_s14  ;;  %9777 = vmatprep.mubr.bf16.mxu1 %v10759_v48 }
 0x44f   : > { %v7723_v45 = vrot.slane %v7721_v56, 4  ;;  %v7727_v5 = vshll.u32 %v14975_v35, 16  ;;  %v15022_v11 = vld [vmem:[#allocation2 + $0x54] sm:$0xf]  ;;  %v8554_v0 = vrot.slane %v8552_v25, 6  ;;  %v8245_v26 = vpop.permute.xlu1 %8244  ;;  %9778 = vmatmul.mubr.bf16.vlgmr.msra.gmra.mxu1 %v10757_v61  ;;  %v7188_v17 = vrot.slane %v7186_v52, 4 }
 0x450   : > { %6956 = vst.msk [vmem:[#allocation4 + $0x148] sm:$0xf] %vm5506_vm4, %v6920_v22  ;;  %v15028_v53 = vld [vmem:[#allocation2 + $0x5c] sm:$0xf]  ;;  %8834 = vst.msk [vmem:[#allocation4 + $0x8c] sm:$0xf] %vm5506_vm4, %v8546_v49  ;;  %v6753_v7 = vpop.permute.xlu0 %6752  ;;  %v6074_v33 = vor.u32 %v6072_v18, %v14988_v57  ;;  %v6576_v21 = vsel %vm11239_vm7, %v6568_v43, %v6575_v42 }
 0x451   : > { %v8561_v56 = vrot.slane %v8559_v27, 5  ;;  %v8562_v14 = vshll.u32 %v14957_v23, 16  ;;  %8349 = vst.msk [vmem:[#allocation4 + $0x28] sm:$0xf] %vm6856_vm8, %v8245_v26  ;;  %v8547_v15 = vrot.slane %v8545_v3, 4  ;;  %v8555_v29 = vor.u32 %v8554_v0, %v8551_v13  ;;  %7943 = vrot.lane.b32.xlu1 %v7720_v40, %s10838_s25  ;;  %v10774_v42 = vld [vmem:[%s16694_s3 + $0xb8] sm:$0xff]  }
 0x452   : > { %v8569_v6 = vshrl.u32 %v8397_v16, 16  ;;  %6859 = vst.msk [vmem:[#allocation4 + $0x18] sm:$0xf] %vm6856_vm8, %v6753_v7  ;;  %v7731_v32 = vshrl.u32 %v14975_v35, 16  ;;  %v6579_v52 = vshrl.u32 %v15022_v11, 16  ;;  %v8572_v10 = vshll.u32 %v8397_v16, 16  ;;  %7400 = vrot.lane.b32.xlu0 %v7185_v24, %s10834_s27  ;;  %10633 = vmatprep.subr.bf16.mxu0 %v10774_v42 }
 0x453   : > { %v15040_v37 = vld [vmem:[#allocation2 + $0x50] sm:$0xf]  ;;  %v8564_v58 = vrot.slane %v8562_v14, 6  ;;  %v7724_v54 = vor.u32 %v7723_v45, %v14947_v2  ;;  %v7192_v47 = vshll.u32 %v15028_v53, 16  ;;  %v8556_v20 = vsel %vm12508_vm0, %v8547_v15, %v8555_v29  ;;  %v7377_v39 = vpop.permute.xlu1 %7376  ;;  %v15047_v23 = vld [vmem:[#allocation2 + $0x5c] sm:$0xf]  ;;  %10634 = vmatpush3.bf16.msra.mxu0 %v10774_v42 }
 0x454   : > { %v8571_v62 = vrot.slane %v8569_v6, 5  ;;  %v7189_v46 = vor.u32 %v7188_v17, %v14973_v36  ;;  %8835 = vst.msk [vmem:[#allocation4 + $0x98] sm:$0xf] %vm5506_vm4, %v8556_v20  ;;  %v8574_v35 = vrot.slane %v8572_v10, 6  ;;  %v8557_v28 = vrot.slane %v8555_v29, 4  ;;  %v8243_v2 = vpop.permute.xlu0 %8242 }
 0x455   : > { %v8565_v30 = vor.u32 %v8564_v58, %v8561_v56  ;;  %v8398_v50 = vld [vmem:[#allocation2 + $0x58] sm:$0xf]  ;;  %7479 = vst.msk [vmem:[#allocation4 + $0x40] sm:$0xf] %vm5836_vm2, %v7377_v39  ;;  %v6075_v25 = vsel %vm11239_vm7, %v6067_v31, %v6074_v33  ;;  %v15060_v36 = vrot.slane %v7727_v5, 5  ;;  %v6078_v34 = vshrl.u32 %v15040_v37, 16  ;;  %6780 = vrot.lane.b32.xlu1 %v6576_v21, %s10839_s14 }
 0x456   : > { %8348 = vst.msk [vmem:[#allocation4 + $0x1c] sm:$0xf] %vm6856_vm8, %v8243_v2  ;;  %v15065_v44 = vrot.slane %v6579_v52, 7  ;;  %v15067_v59 = vor.u32 %v8574_v35, %v8571_v62  ;;  %6272 = vrot.lane.b32.xlu0 %v6075_v25, %s10838_s25  ;;  %v8179_v8 = vrot.slane %v15047_v23, 5  ;;  %v7196_v31 = vshrl.u32 %v15028_v53, 16 }
 0x457   : > { %v8567_v27 = vrot.slane %v8565_v30, 4  ;;  %v8566_v43 = vsel %vm12508_vm0, %v8557_v28, %v8565_v30  ;;  %v8579_v41 = vshrl.u32 %v8398_v50, 16  ;;  %v8582_v9 = vshll.u32 %v8398_v50, 16  ;;  %v7922_v55 = vpop.permute.xlu1 %7921  ;;  %v15085_v18 = vld [vmem:[#allocation2 + $0x60] sm:$0xf]  ;;  %v10775_v50 = vld [vmem:[%s16694_s3 + $0xb0] sm:$0xff]  }
 0x458   : > { %8836 = vst.msk [vmem:[#allocation4 + $0xa4] sm:$0xf] %vm5506_vm4, %v8566_v43  ;;  %v7725_v60 = vrot.slane %v7724_v54, 4  ;;  %v7190_v61 = vrot.slane %v7189_v46, 4  ;;  %v6582_v48 = vshll.u32 %v15022_v11, 16  ;;  %v7375_v13 = vpop.permute.xlu0 %7374  ;;  %v8180_v40 = vsel %vm12306_vm12, %v15016_v63, %v8179_v8  ;;  %10635 = vmatprep.subr.bf16.mxu0 %v10775_v50 }
 0x459   : > { %v8576_v3 = vsel %vm12508_vm0, %v8567_v27, %v15067_v59  ;;  %8024 = vst.msk [vmem:[#allocation4 + $0x40] sm:$0xf] %vm6346_vm1, %v7922_v55  ;;  %v15083_v24 = vrot.slane %v6078_v34, 7  ;;  %v15087_v16 = vld [vmem:[#allocation2 + $0x64] sm:$0xf]  ;;  %v7733_v22 = vrot.slane %v7731_v32, 4  ;;  %8270 = vrot.lane.b32.xlu1 %v8180_v40, %s10839_s14  ;;  %10636 = vmatpush3.bf16.msra.mxu0 %v10775_v50 }
 0x45a   : > { %8837 = vst.msk [vmem:[#allocation4 + $0xb0] sm:$0xf] %vm5506_vm4, %v8576_v3  ;;  %v7730_v45 = vsel %vm11028_vm3, %v7725_v60, %v15060_v36  ;;  %v15095_v5 = vrot.slane %v7192_v47, 5  ;;  %v6584_v63 = vor.u32 %v6582_v48, %v15065_v44  ;;  %v15098_v11 = vld [vmem:[#allocation2 + $0x60] sm:$0xf]  ;;  %v6577_v0 = vrot.slane %v14986_v19, 4 }
 0x45b   : > { %7478 = vst.msk [vmem:[#allocation4 + $0x34] sm:$0xf] %vm5836_vm2, %v7375_v13  ;;  %v15100_v49 = vld [vmem:[#allocation2 + $0x54] sm:$0xf]  ;;  %7945 = vrot.lane.b32.xlu0 %v7730_v45, %s10838_s25  ;;  %v6081_v26 = vshll.u32 %v15040_v37, 16  ;;  %v8581_v53 = vrot.slane %v8579_v41, 5  ;;  %v6759_v56 = vpop.permute.xlu1 %6758  ;;  %v7734_v58 = vor.u32 %v7733_v22, %v15060_v36 }
 0x45c   : > { %v8584_v17 = vrot.slane %v8582_v9, 6  ;;  %v7195_v14 = vsel %vm11028_vm3, %v7190_v61, %v15095_v5  ;;  %v8182_v7 = vrot.slane %v15085_v18, 5  ;;  %v7737_v33 = vshll.u32 %v15087_v16, 16  ;;  %v15113_v29 = vld [vmem:[#allocation2 + $0x58] sm:$0xf]  ;;  %v7920_v19 = vpop.permute.xlu0 %7919  ;;  %v9192_v32 = vld [vmem:[#allocation4 + $0x24] sm:$0xff] }
 0x45d   : > { %v7198_v15 = vrot.slane %v7196_v31, 4  ;;  %6862 = vst.msk [vmem:[#allocation4 + $0x3c] sm:$0xf] %vm6856_vm8, %v6759_v56  ;;  %v9190_v6 = vld [vmem:[#allocation4 + $0x18] sm:$0xff]  ;;  %v6083_v37 = vor.u32 %v6081_v26, %v15083_v24  ;;  %v7741_v10 = vshrl.u32 %v15087_v16, 16  ;;  %v8577_v54 = vrot.slane %v15067_v59, 4  ;;  %7402 = vrot.lane.b32.xlu1 %v7195_v14, %s10834_s27 }
 0x45e   : > { %v10760_v52 = vld [vmem:[#allocation4 + $0x1c] ss:$12 sps:$4 sm:$0xff]   ;;  %8023 = vst.msk [vmem:[#allocation4 + $0x34] sm:$0xf] %vm6346_vm1, %v7920_v19  ;;  %v6585_v47 = vsel %vm11239_vm7, %v6577_v0, %v6584_v63  ;;  %v10308_v20 = vcombine.low %v9190_v6, %v9192_v32  ;;  %v7202_v62 = vshll.u32 %v15098_v11, 16  ;;  %v6087_v39 = vshrl.u32 %v15100_v49, 16 }
 0x45f   : > { %v6921_v23 = vld [vmem:[#allocation2 + $0x80] sm:$0xf]  ;;  %v6923_v46 = vld [vmem:[#allocation2 + $0x88] sm:$0xf]  ;;  %6782 = vrot.lane.b32.xlu0 %v6585_v47, %s10839_s14  ;;  %9785 = vmatprep.mubr.bf16.mxu1 %v10760_v52  ;;  %v6076_v30 = vrot.slane %v14988_v57, 4  ;;  %v8181_v35 = vrot.slane %v8179_v8, 4  ;;  %v15132_v2 = vor.u32 %v8584_v17, %v8581_v53  ;;  %v8249_v21 = vpop.permute.xlu1 %8248  ;;  %v7199_v25 = vor.u32 %v7198_v15, %v15095_v5 }
 0x460   : > { %v6588_v28 = vshrl.u32 %v15113_v29, 16  ;;  %6957 = vst.msk [vmem:[#allocation4 + $0x154] sm:$0xf] %vm5506_vm4, %v6921_v23  ;;  %6959 = vst.msk [vmem:[#allocation4 + $0x16c] sm:$0xf] %vm5506_vm4, %v6923_v46  ;;  %9786 = vmatmul.mubr.bf16.gmra.mxu1 %v10308_v20  ;;  %v6757_v57 = vpop.permute.xlu0 %6756  ;;  %v7735_v59 = vrot.slane %v7734_v58, 4 }
 0x461   : > { %v15137_v36 = vld [vmem:[#allocation2 + $0x68] sm:$0xf]  ;;  %8351 = vst.msk [vmem:[#allocation4 + $0x40] sm:$0xf] %vm6856_vm8, %v8249_v21  ;;  %v6084_v34 = vsel %vm11239_vm7, %v6076_v30, %v6083_v37  ;;  %v8183_v27 = vsel %vm12306_vm12, %v8181_v35, %v8182_v7  ;;  %v15144_v43 = vld [vmem:[#allocation2 + $0x5c] sm:$0xf]  ;;  %v8586_v8 = vsel %vm12508_vm0, %v8577_v54, %v15132_v2 }
 0x462   : > { %6861 = vst.msk [vmem:[#allocation4 + $0x30] sm:$0xf] %vm6856_vm8, %v6757_v57  ;;  %6274 = vrot.lane.b32.xlu1 %v6084_v34, %s10838_s25  ;;  %v7739_v31 = vrot.slane %v7737_v33, 5  ;;  %v15151_v41 = vrot.slane %v7202_v62, 5  ;;  %v15153_v9 = vrot.slane %v6087_v39, 7  ;;  %v7743_v60 = vrot.slane %v7741_v10, 4 }
 0x463   : > { %v15155_v55 = vld [vmem:[#allocation2 + $0x64] sm:$0xf]  ;;  %8838 = vst.msk [vmem:[#allocation4 + $0xbc] sm:$0xf] %vm5506_vm4, %v8586_v8  ;;  %8272 = vrot.lane.b32.xlu0 %v8183_v27, %s10839_s14  ;;  %v7206_v61 = vshrl.u32 %v15098_v11, 16  ;;  %v6586_v48 = vrot.slane %v15065_v44, 4  ;;  %v7381_v18 = vpop.permute.xlu1 %7380 }
 0x464   : > { %v15161_v3 = vrot.slane %v6588_v28, 7  ;;  %v7747_v13 = vshll.u32 %v15137_v36, 16  ;;  %v10778_v40 = vld [vmem:[%s16694_s3 + $0xa8] sm:$0xff]   ;;  %v7200_v16 = vrot.slane %v7199_v25, 4  ;;  %v6591_v22 = vshll.u32 %v15113_v29, 16  ;;  %v8247_v63 = vpop.permute.xlu0 %8246  ;;  %v10779_v19 = vld [vmem:[%s16694_s3 + $0xa0] sm:$0xff]  }
 0x465   : > { %v6090_v45 = vshll.u32 %v15100_v49, 16  ;;  %v8184_v5 = vrot.slane %v8182_v7, 4  ;;  %7481 = vst.msk [vmem:[#allocation4 + $0x58] sm:$0xf] %vm5836_vm2, %v7381_v18  ;;  %v7740_v44 = vsel %vm11028_vm3, %v7735_v59, %v7739_v31  ;;  %v6085_v11 = vrot.slane %v15083_v24, 4  ;;  %10637 = vmatprep.subr.bf16.mxu0 %v10778_v40  ;;  %v10780_v27 = vld [vmem:[%s16694_s3 + $0x98] sm:$0xff]  }
 0x466   : > { %v7751_v0 = vshrl.u32 %v15137_v36, 16  ;;  %v6597_v26 = vshrl.u32 %v15144_v43, 16  ;;  %8350 = vst.msk [vmem:[#allocation4 + $0x34] sm:$0xf] %vm6856_vm8, %v8247_v63  ;;  %7947 = vrot.lane.b32.xlu1 %v7740_v44, %s10838_s25  ;;  %v7205_v49 = vsel %vm11028_vm3, %v7200_v16, %v15151_v41  ;;  %v8185_v53 = vrot.slane %v15155_v55, 5  ;;  %10638 = vmatpush3.bf16.msra.mxu0 %v10778_v40 }
 0x467   : > { %v6092_v42 = vor.u32 %v6090_v45, %v15153_v9  ;;  %v7744_v24 = vor.u32 %v7743_v60, %v7739_v31  ;;  %v6986_v17 = vld [vmem:[#allocation2 + $0x64] sm:$0xf]  ;;  %v15182_v56 = vld [vmem:[#allocation2 + $0x58] sm:$0xf]  ;;  %7404 = vrot.lane.b32.xlu0 %v7205_v49, %s10834_s27  ;;  %v6593_v14 = vor.u32 %v6591_v22, %v15161_v3  ;;  %v15186_v7 = vrot.slane %v7747_v13, 5  ;;  %v7926_v6 = vpop.permute.xlu1 %7925  ;;  %10639 = vmatprep.subr.bf16.mxu0 %v10779_v19 }
 0x468   : > { %v6595_v33 = vrot.slane %v15161_v3, 4  ;;  %v15189_v15 = vld [vmem:[#allocation2 + $0x68] sm:$0xf]  ;;  %v15191_v29 = vrot.slane %v7206_v61, 4  ;;  %v8186_v32 = vsel %vm12306_vm12, %v8184_v5, %v8185_v53  ;;  %v8859_v52 = vld [vmem:[%s10963_s23 + $0xc] sm:$0xe]  ;;  %v7379_v54 = vpop.permute.xlu0 %7378 }
 0x469   : > { %v15200_v37 = vld [vmem:[%s10963_s23 + $0x10] sm:$0xf]  ;;  %v15203_v58 = vld [vmem:[%s10963_s23 + $0x14] sm:$0xf]  ;;  %v15205_v10 = vld [vmem:[#allocation2 + $0x6c] sm:$0xf]  ;;  %v6594_v47 = vsel %vm11239_vm7, %v6586_v48, %v6593_v14  ;;  %v6093_v30 = vsel %vm11239_vm7, %v6085_v11, %v6092_v42 }
 0x46a   : > { %8026 = vst.msk [vmem:[#allocation4 + $0x58] sm:$0xf] %vm6346_vm1, %v7926_v6  ;;  %v15210_v20 = vrot.slane %v6597_v26, 7  ;;  %v7212_v62 = vshll.u32 %v6986_v17, 16  ;;  %v7753_v39 = vrot.slane %v7751_v0, 4  ;;  %6784 = vrot.lane.b32.xlu1 %v6594_v47, %s10839_s14  ;;  %v7745_v35 = vrot.slane %v7744_v24, 4  ;;  %10640 = vmatpush3.bf16.msra.mxu0 %v10779_v19 }
 0x46b   : > { %v15212_v23 = vld [vmem:[#allocation2 + $0x60] sm:$0xf]  ;;  %v6922_v46 = vld [vmem:[#allocation2 + $0x84] sm:$0xf]  ;;  %7480 = vst.msk [vmem:[#allocation4 + $0x4c] sm:$0xf] %vm5836_vm2, %v7379_v54  ;;  %6276 = vrot.lane.b32.xlu0 %v6093_v30, %s10838_s25  ;;  %v6763_v59 = vpop.permute.xlu1 %6762  ;;  %10641 = vmatprep.subr.bf16.mxu0 %v10780_v27 }
 0x46c   : > { %v7216_v28 = vshrl.u32 %v6986_v17, 16  ;;  %v6096_v50 = vshrl.u32 %v15182_v56, 16  ;;  %6958 = vst.msk [vmem:[#allocation4 + $0x160] sm:$0xf] %vm5506_vm4, %v6922_v46  ;;  %v6924_v21 = vld [vmem:[#allocation2 + $0x8c] sm:$0xf]  ;;  %v7750_v8 = vsel %vm11028_vm3, %v7745_v35, %v15186_v7  ;;  %v7924_v61 = vpop.permute.xlu0 %7923  ;;  %v7754_v22 = vor.u32 %v7753_v39, %v15186_v7 }
 0x46d   : > { %v10303_v25 = vrot.slane %v8859_v52, 9  ;;  %v8935_v36 = vrot.slane %v15200_v37, 5  ;;  %v6600_v57 = vshll.u32 %v15144_v43, 16  ;;  %v8938_v34 = vrot.slane %v15203_v58, 5  ;;  %6960 = vst.msk [vmem:[#allocation4 + $0x178] sm:$0xf] %vm5506_vm4, %v6924_v21 }
 0x46e   : > { %v15232_v31 = vld [vmem:[%s10963_s23 + $0x18] sm:$0xf]  ;;  %v8187_v55 = vrot.slane %v8185_v53, 4  ;;  %v8188_v60 = vrot.slane %v15189_v15, 5  ;;  %v7209_v43 = vor.u32 %v15191_v29, %v15151_v41  ;;  %6864 = vst.msk [vmem:[#allocation4 + $0x54] sm:$0xf] %vm6856_vm8, %v6763_v59  ;;  %8274 = vrot.lane.b32.xlu1 %v8186_v32, %s10839_s14  ;;  %10642 = vmatpush3.bf16.msra.mxu0 %v10780_v27 }
 0x46f   : > { %v9194_v48 = vld [vmem:[#allocation4 + $0x30] sm:$0xff]  ;;  %v9196_v13 = vld [vmem:[#allocation4 + $0x3c] sm:$0xff]  ;;  %v6602_v18 = vor.u32 %v6600_v57, %v15210_v20  ;;  %v15239_v16 = vrot.slane %v7212_v62, 5  ;;  %v7757_v45 = vshll.u32 %v15205_v10, 16  ;;  %8025 = vst.msk [vmem:[#allocation4 + $0x4c] sm:$0xf] %vm6346_vm1, %v7924_v61  ;;  %7949 = vrot.lane.b32.xlu0 %v7750_v8, %s10838_s25  ;;  %v8936_v11 = vsel %vm12306_vm12, %v10303_v25, %v8935_v36  ;;  %v8253_v24 = vpop.permute.xlu1 %8252 }
 0x470   : > { %v10762_v40 = vld [vmem:[#allocation4 + $0x34] ss:$12 sps:$4 sm:$0xff]   ;;  %v10311_v41 = vcombine.low %v9194_v48, %v9196_v13  ;;  %v15245_v5 = vrot.slane %v6096_v50, 7  ;;  %v7218_v63 = vrot.slane %v7216_v28, 4  ;;  %v6606_v44 = vshrl.u32 %v15212_v23, 16  ;;  %v6761_v19 = vpop.permute.xlu0 %6760  ;;  %v10782_v46 = vld [vmem:[%s16694_s3 + $0x88] sm:$0xff]  }
 0x471   : > { %9793 = vmatprep.mubr.bf16.mxu1 %v10762_v40  ;;  %v8940_v0 = vrot.slane %v8938_v34, 4  ;;  %v8941_v26 = vrot.slane %v15232_v31, 5  ;;  %v7761_v49 = vshrl.u32 %v15205_v10, 16  ;;  %v15255_v42 = vld [vmem:[#allocation2 + $0x68] sm:$0xf]  ;;  %v10781_v53 = vld [vmem:[%s16694_s3 + $0x90] sm:$0xff]   ;;  %v6603_v6 = vsel %vm11239_vm7, %v6595_v33, %v6602_v18 }
 0x472   : > { %9794 = vmatmul.mubr.bf16.gmra.mxu1 %v10311_v41  ;;  %v15260_v17 = vrot.slane %v7209_v43, 4  ;;  %v6094_v14 = vrot.slane %v15153_v9, 4  ;;  %v6099_v7 = vshll.u32 %v15182_v56, 16  ;;  %v15264_v29 = vld [vmem:[#allocation2 + $0x5c] sm:$0xf]  ;;  %v8189_v32 = vsel %vm12306_vm12, %v8187_v55, %v8188_v60  ;;  %10643 = vmatprep.subr.bf16.mxu0 %v10781_v53  ;;  %v10785_v15 = vld [vmem:[%s16694_s3 + $0x80] sm:$0xff]  }
 0x473   : > { %8353 = vst.msk [vmem:[#allocation4 + $0x58] sm:$0xf] %vm6856_vm8, %v8253_v24  ;;  %v15275_v52 = vrot.slane %v7754_v22, 4  ;;  %v15277_v9 = vrot.slane %v7757_v45, 5  ;;  %6863 = vst.msk [vmem:[#allocation4 + $0x48] sm:$0xf] %vm6856_vm8, %v6761_v19  ;;  %9042 = vrot.lane.b32.xlu1 %v8936_v11, %s10834_s27  ;;  %v7219_v3 = vor.u32 %v7218_v63, %v15239_v16  ;;  %10644 = vmatpush3.bf16.msra.mxu0 %v10781_v53  ;;  %v7385_v30 = vpop.permute.xlu1 %7384 }
 0x474   : > { %v6101_v56 = vor.u32 %v6099_v7, %v15245_v5  ;;  %v7222_v33 = vshll.u32 %v15255_v42, 16  ;;  %v15284_v37 = vrot.slane %v6606_v44, 7  ;;  %v7532_v10 = vld [vmem:[#allocation2 + $0x70] sm:$0xf]  ;;  %6786 = vrot.lane.b32.xlu0 %v6603_v6, %s10839_s14  ;;  %v8942_v54 = vsel %vm12306_vm12, %v8940_v0, %v8941_v26  ;;  %v15305_v25 = vld [vmem:[#allocation2 + $0x6c] sm:$0xf]  ;;  %v8251_v57 = vpop.permute.xlu0 %8250  ;;  %10645 = vmatprep.subr.bf16.mxu0 %v10782_v46 }
 0x475   : > { %v8937_v47 = vrot.slane %v8935_v36, 4  ;;  %v6105_v62 = vshrl.u32 %v15264_v29, 16  ;;  %v15290_v39 = vrot.slane %v7761_v49, 4  ;;  %v7215_v35 = vsel %vm11028_vm3, %v15260_v17, %v15239_v16  ;;  %v15307_v36 = vld [vmem:[#allocation2 + $0x60] sm:$0xf] }
 0x476   : > { %v15301_v28 = vsel %vm11239_vm7, %v6094_v14, %v6101_v56  ;;  %v7226_v50 = vshrl.u32 %v15255_v42, 16  ;;  %v6609_v21 = vshll.u32 %v15212_v23, 16  ;;  %7483 = vst.msk [vmem:[#allocation4 + $0x70] sm:$0xf] %vm5836_vm2, %v7385_v30  ;;  %v15311_v27 = vld [vmem:[%s10963_s23 + $0x1c] sm:$0xf]  ;;  %v7760_v59 = vsel %vm11028_vm3, %v15275_v52, %v15277_v9 }
 0x477   : > { %v6604_v8 = vrot.slane %v15210_v20, 4  ;;  %v7767_v31 = vshll.u32 %v7532_v10, 16  ;;  %v7771_v55 = vshrl.u32 %v7532_v10, 16  ;;  %v15318_v43 = vld [vmem:[#allocation2 + $0x64] sm:$0xf]  ;;  %9046 = vrot.lane.b32.xlu1 %v8942_v54, %s10834_s27  ;;  %v15322_v23 = vrot.slane %v7219_v3, 4  ;;  %10646 = vmatpush3.bf16.msra.mxu0 %v10782_v46  ;;  %v7930_v45 = vpop.permute.xlu1 %7929 }
 0x478   : > { %8352 = vst.msk [vmem:[#allocation4 + $0x4c] sm:$0xf] %vm6856_vm8, %v8251_v57  ;;  %v15324_v61 = vrot.slane %v7222_v33, 5  ;;  %v6611_v48 = vor.u32 %v6609_v21, %v15284_v37  ;;  %v8190_v13 = vrot.slane %v8188_v60, 4  ;;  %v6988_v40 = vld [vmem:[#allocation2 + $0x6c] sm:$0xf]  ;;  %8276 = vrot.lane.b32.xlu0 %v8189_v32, %s10839_s14  ;;  %v8939_v20 = vsel %vm12306_vm12, %v8937_v47, %v8938_v34  ;;  %v7383_v11 = vpop.permute.xlu0 %7382  ;;  %10647 = vmatprep.subr.bf16.mxu0 %v10785_v15 }
 0x479   : > { %v15334_v18 = vrot.slane %v6105_v62, 7  ;;  %v8191_v16 = vrot.slane %v15305_v25, 5  ;;  %v7764_v22 = vor.u32 %v15290_v39, %v15277_v9  ;;  %v6925_v60 = vld [vmem:[#allocation2 + $0x90] sm:$0xf]  ;;  %v8943_v41 = vrot.slane %v8941_v26, 4 }
 0x47a   : > { %v8944_v63 = vrot.slane %v15311_v27, 5  ;;  %v7228_v58 = vrot.slane %v7226_v50, 4  ;;  %v6114_v44 = vshrl.u32 %v15307_v36, 16  ;;  %6961 = vst.msk [vmem:[#allocation4 + $0x184] sm:$0xf] %vm5506_vm4, %v6925_v60  ;;  %v15346_v0 = vrot.slane %v7767_v31, 5 }
 0x47b   : > { %v6927_v34 = vld [vmem:[#allocation2 + $0x98] sm:$0xf]  ;;  %8028 = vst.msk [vmem:[#allocation4 + $0x70] sm:$0xf] %vm6346_vm1, %v7930_v45  ;;  %v7232_v49 = vshll.u32 %v6988_v40, 16  ;;  %v7236_v42 = vshrl.u32 %v6988_v40, 16  ;;  %7406 = vrot.lane.b32.xlu1 %v7215_v35, %s10834_s27  ;;  %v7225_v26 = vsel %vm11028_vm3, %v15322_v23, %v15324_v61  ;;  %10648 = vmatpush3.bf16.msra.mxu0 %v10785_v15  ;;  %v15361_v7 = vsel %vm11239_vm7, %v6604_v8, %v6611_v48  ;;  %v6767_v56 = vpop.permute.xlu1 %6766 }
 0x47c   : > { %v7773_v53 = vrot.slane %v7771_v55, 4  ;;  %6963 = vst.msk [vmem:[#allocation4 + $0x19c] sm:$0xf] %vm5506_vm4, %v6927_v34  ;;  %v6103_v24 = vrot.slane %v15245_v5, 4  ;;  %v6108_v17 = vshll.u32 %v15264_v29, 16  ;;  %v6615_v14 = vshrl.u32 %v15318_v43, 16  ;;  %9044 = vrot.lane.b32.xlu0 %v8939_v20, %s10834_s27  ;;  %v7928_v62 = vpop.permute.xlu0 %7927 }
 0x47d   : > { %7482 = vst.msk [vmem:[#allocation4 + $0x64] sm:$0xf] %vm5836_vm2, %v7383_v11  ;;  %v15365_v19 = vsel %vm12306_vm12, %v8190_v13, %v8191_v16  ;;  %v6613_v6 = vrot.slane %v15284_v37, 4  ;;  %v6618_v32 = vshll.u32 %v15318_v43, 16  ;;  %v7533_v5 = vld [vmem:[#allocation2 + $0x74] sm:$0xf]  ;;  %v8945_v29 = vsel %vm12306_vm12, %v8943_v41, %v8944_v63 }
 0x47e   : > { %v15373_v3 = vrot.slane %v7764_v22, 4  ;;  %v15375_v33 = vld [vmem:[#allocation2 + $0x70] sm:$0xf]  ;;  %v7229_v10 = vor.u32 %v7228_v58, %v15324_v61  ;;  %v15378_v54 = vrot.slane %v6114_v44, 7  ;;  %6866 = vst.msk [vmem:[#allocation4 + $0x6c] sm:$0xf] %vm6856_vm8, %v6767_v56  ;;  %v6110_v35 = vor.u32 %v6108_v17, %v15334_v18 }
 0x47f   : > { %v15380_v47 = vld [vmem:[#allocation2 + $0x70] sm:$0xf]  ;;  %v9198_v39 = vld [vmem:[#allocation4 + $0x48] sm:$0xff]  ;;  %v15384_v50 = vrot.slane %v7232_v49, 5  ;;  %v7774_v21 = vor.u32 %v7773_v53, %v15346_v0  ;;  %v7238_v25 = vrot.slane %v7236_v42, 4  ;;  %6278 = vrot.lane.b32.xlu1 %v15301_v28, %s10838_s25  ;;  %v15390_v8 = vrot.slane %v6615_v14, 7  ;;  %v8257_v28 = vpop.permute.xlu1 %8256 }
 0x480   : > { %v9200_v46 = vld [vmem:[#allocation4 + $0x54] sm:$0xff]  ;;  %8027 = vst.msk [vmem:[#allocation4 + $0x64] sm:$0xf] %vm6346_vm1, %v7928_v62  ;;  %v6117_v31 = vshll.u32 %v15307_v36, 16  ;;  %v7777_v55 = vshll.u32 %v7533_v5, 16  ;;  %9048 = vrot.lane.b32.xlu0 %v8945_v29, %s10834_s27  ;;  %v6111_v48 = vsel %vm11239_vm7, %v6103_v24, %v6110_v35  ;;  %v8193_v13 = vrot.slane %v8191_v16, 4  ;;  %v6765_v16 = vpop.permute.xlu0 %6764 }
 0x481   : > { %v10764_v30 = vld [vmem:[#allocation4 + $0x4c] ss:$12 sps:$4 sm:$0xff]   ;;  %v10314_v57 = vcombine.low %v9198_v39, %v9200_v46  ;;  %v7781_v40 = vshrl.u32 %v7533_v5, 16  ;;  %v7242_v20 = vshll.u32 %v15380_v47, 16  ;;  %v15399_v22 = vld [vmem:[#allocation2 + $0x64] sm:$0xf]  ;;  %v7770_v36 = vsel %vm11028_vm3, %v15373_v3, %v15346_v0 }
 0x482   : > { %v15393_v43 = vld [vmem:[#allocation2 + $0x68] sm:$0xf]  ;;  %9801 = vmatprep.mubr.bf16.mxu1 %v10764_v30  ;;  %v8194_v15 = vrot.slane %v15375_v33, 5  ;;  %v15406_v60 = vrot.slane %v7229_v10, 4  ;;  %v6119_v45 = vor.u32 %v6117_v31, %v15378_v54  ;;  %v6926_v41 = vld [vmem:[#allocation2 + $0x94] sm:$0xf]  ;;  %v7239_v34 = vor.u32 %v7238_v25, %v15384_v50 }
 0x483   : > { %9802 = vmatmul.mubr.bf16.gmra.mxu1 %v10314_v57  ;;  %8355 = vst.msk [vmem:[#allocation4 + $0x70] sm:$0xf] %vm6856_vm8, %v8257_v28  ;;  %v6112_v58 = vrot.slane %v15334_v18, 4  ;;  %v15411_v44 = vrot.slane %v7774_v21, 4  ;;  %v6624_v11 = vshrl.u32 %v15393_v43, 16  ;;  %7951 = vrot.lane.b32.xlu1 %v7760_v59, %s10838_s25  ;;  %v6620_v18 = vor.u32 %v6618_v32, %v15390_v8  ;;  %v7389_v5 = vpop.permute.xlu1 %7388 }
 0x484   : > { %6962 = vst.msk [vmem:[#allocation4 + $0x190] sm:$0xf] %vm5506_vm4, %v6926_v41  ;;  %v6928_v49 = vld [vmem:[#allocation2 + $0x9c] sm:$0xf]  ;;  %v15424_v42 = vrot.slane %v7777_v55, 5  ;;  %v7246_v53 = vshrl.u32 %v15380_v47, 16  ;;  %7408 = vrot.lane.b32.xlu0 %v7225_v26, %s10834_s27  ;;  %v15457_v61 = vsel %vm12306_vm12, %v8193_v13, %v8194_v15  ;;  %v7235_v26 = vsel %vm11028_vm3, %v15406_v60, %v15384_v50 }
 0x485   : > { %6865 = vst.msk [vmem:[#allocation4 + $0x60] sm:$0xf] %vm6856_vm8, %v6765_v16  ;;  %v6123_v24 = vshrl.u32 %v15399_v22, 16  ;;  %v15428_v17 = vld [vmem:[#allocation2 + $0x6c] sm:$0xf]  ;;  %v15437_v52 = vrot.slane %v7242_v20, 5  ;;  %v15450_v29 = vsel %vm11239_vm7, %v6613_v6, %v6620_v18  ;;  %v15465_v33 = vsel %vm11239_vm7, %v6112_v58, %v6119_v45  ;;  %v8255_v6 = vpop.permute.xlu0 %8254 }
 0x486   : > { %6964 = vst.msk [vmem:[#allocation4 + $0x1a8] sm:$0xf] %vm5506_vm4, %v6928_v49  ;;  %v6622_v9 = vrot.slane %v15390_v8, 4  ;;  %v6627_v59 = vshll.u32 %v15393_v43, 16  ;;  %v15441_v14 = vld [vmem:[#allocation2 + $0x78] sm:$0xf]  ;;  %v7780_v10 = vsel %vm11028_vm3, %v15411_v44, %v15424_v42 }
 0x487   : > { %v7783_v32 = vrot.slane %v7781_v40, 4  ;;  %v15444_v56 = vld [vmem:[%s10963_s23 + $0x20] sm:$0xf]  ;;  %v15453_v23 = vld [vmem:[%s10963_s23 + $0x24] sm:$0xf]  ;;  %v15472_v47 = vrot.slane %v7239_v34, 4  ;;  %6788 = vrot.lane.b32.xlu1 %v15361_v7, %s10839_s14  ;;  %v7932_v7 = vpop.permute.xlu1 %7931 }
 0x488   : > { %v5062_v37 = vld [vmem:[#allocation2 + $0xa0] sm:$0x1]  ;;  %7485 = vst.msk [vmem:[#allocation4 + $0x88] sm:$0xf] %vm5836_vm2, %v7389_v5  ;;  %v15474_v62 = vrot.slane %v6624_v11, 7  ;;  %v6121_v39 = vrot.slane %v15378_v54, 4  ;;  %6280 = vrot.lane.b32.xlu0 %v6111_v48, %s10838_s25 }
 0x489   : > { %v8078_v46 = vld [vmem:[#allocation2 + $0x74] sm:$0xf]  ;;  %8354 = vst.msk [vmem:[#allocation4 + $0x64] sm:$0xf] %vm6856_vm8, %v8255_v6  ;;  %v15480_v30 = vrot.slane %v6123_v24, 7  ;;  %v8196_v35 = vrot.slane %v8194_v15, 4  ;;  %v7245_v13 = vsel %vm11028_vm3, %v15472_v47, %v15437_v52  ;;  %v7784_v27 = vor.u32 %v7783_v32, %v15424_v42  ;;  %v7387_v20 = vpop.permute.xlu0 %7386 }
 0x48a   : > { %v7787_v21 = vshll.u32 %v15441_v14, 16  ;;  %v6633_v25 = vshrl.u32 %v15428_v17, 16  ;;  %v8946_v57 = vrot.slane %v8944_v63, 4  ;;  %v8947_v54 = vrot.slane %v15444_v56, 5  ;;  %v15492_v43 = vld [vmem:[%s10963_s23 + $0x28] sm:$0xf] }
 0x48b   : > { %v8950_v31 = vrot.slane %v15453_v23, 5  ;;  %v5063_v55 = vsel %vm13499_vm15, 0, %v5062_v37  ;;  %v6126_v48 = vshll.u32 %v15399_v22, 16  ;;  %v8197_v40 = vrot.slane %v8078_v46, 5  ;;  %v15500_v63 = vld [vmem:[#allocation2 + $0x78] sm:$0xf]  ;;  %8278 = vrot.lane.b32.xlu1 %v15365_v19, %s10839_s14  ;;  %vm16798_vm15 = vmmov %vm16796_vm5 }
 0x48c   : > { %5064 = vst [vmem:[#allocation2 + $0xa0] sm:$0x1] %v5063_v55  ;;  %v6629_v4 = vor.u32 %v6627_v59, %v15474_v62  ;;  %v7791_v28 = vshrl.u32 %v15441_v14, 16  ;;  %v6631_v15 = vrot.slane %v15474_v62, 4  ;;  %v7248_v45 = vrot.slane %v7246_v53, 4  ;;  %7953 = vrot.lane.b32.xlu0 %v7770_v36, %s10838_s25  ;;  %v9204_v36 = vld [vmem:[#allocation4 + $0x6c] sm:$0xff] }
 0x48d   : > { %v8399_v41 = vld [vmem:[#allocation2 + $0x5c] sm:$0xf]  ;;  %7484 = vst.msk [vmem:[#allocation4 + $0x7c] sm:$0xf] %vm5836_vm2, %v7387_v20  ;;  %v6128_v22 = vor.u32 %v6126_v48, %v15480_v30  ;;  %v15511_v16 = vsel %vm12306_vm12, %v8196_v35, %v8197_v40  ;;  %v15513_v58 = vrot.slane %v7787_v21, 5  ;;  %v6636_v34 = vshll.u32 %v15428_v17, 16  ;;  %v6769_v17 = vpop.permute.xlu1 %6768  ;;  %v6261_v0 = vpop.permute.xlu0 %6260 }
 0x48e   : > { %v6990_v11 = vld [vmem:[#allocation2 + $0x74] sm:$0xf]  ;;  %v15516_v49 = vld [vmem:[#allocation2 + $0x68] sm:$0xf]  ;;  %8029 = vst.msk [vmem:[#allocation4 + $0x7c] sm:$0xf] %vm6346_vm1, %v7932_v7  ;;  %v8948_v19 = vsel %vm12306_vm12, %v8946_v57, %v8947_v54  ;;  %v15540_v37 = vsel %vm11239_vm7, %v6622_v9, %v6629_v4  ;;  %v7249_v6 = vor.u32 %v7248_v45, %v15437_v52 }
 0x48f   : > { %v8952_v18 = vrot.slane %v8950_v31, 4  ;;  %v8953_v53 = vrot.slane %v15492_v43, 5  ;;  %v15530_v24 = vrot.slane %v6633_v25, 7  ;;  %v15532_v59 = vrot.slane %v7784_v27, 4  ;;  %6867 = vst.msk [vmem:[#allocation4 + $0x78] sm:$0xf] %vm6856_vm8, %v6769_v17  ;;  %9050 = vrot.lane.b32.xlu1 %v8948_v19, %s10834_s27 }
 0x490   : > { %v16713_v14 = vrot.slane %v15500_v63, 5  ;;  %v8589_v32 = vshrl.u32 %v8399_v41, 16  ;;  %v8592_v5 = vshll.u32 %v8399_v41, 16  ;;  %v9202_v3 = vld [vmem:[#allocation4 + $0x60] sm:$0xff]  ;;  %v7252_v62 = vshll.u32 %v6990_v11, 16  ;;  %6790 = vrot.lane.b32.xlu0 %v15450_v29, %s10839_s14 }
 0x491   : > { %v10766_v56 = vld [vmem:[#allocation4 + $0x64] ss:$12 sps:$4 sm:$0xff]   ;;  %v6132_v46 = vshrl.u32 %v15516_v49, 16  ;;  %6358 = vst.msk [vmem:[#allocation4 + $0x84] sm:$0xf] %vm6346_vm1, %v6261_v0  ;;  %v10317_v35 = vcombine.low %v9202_v3, %v9204_v36  ;;  %v15548_v21 = vsel %vm11239_vm7, %v6121_v39, %v6128_v22  ;;  %v7790_v8 = vsel %vm11028_vm3, %v15532_v59, %v15513_v58  ;;  %v8259_v48 = vpop.permute.xlu1 %8258  ;;  %v7934_v45 = vpop.permute.xlu0 %7933 }
 0x492   : > { %v8199_v9 = vrot.slane %v8197_v40, 4  ;;  %9809 = vmatprep.mubr.bf16.mxu1 %v10766_v56  ;;  %v8954_v25 = vsel %vm12306_vm12, %v8952_v18, %v8953_v53  ;;  %v6638_v57 = vor.u32 %v6636_v34, %v15530_v24  ;;  %v7256_v55 = vshrl.u32 %v6990_v11, 16  ;;  %v15560_v39 = vld [vmem:[#allocation2 + $0x7c] sm:$0xf]  ;;  %v8400_v43 = vld [vmem:[#allocation2 + $0x60] sm:$0xf] }
 0x493   : > { %v6130_v7 = vrot.slane %v15480_v30, 4  ;;  %9810 = vmatmul.mubr.bf16.gmra.mxu1 %v10317_v35  ;;  %v8949_v27 = vrot.slane %v8947_v54, 4  ;;  %v15563_v20 = vld [vmem:[%s10963_s23 + $0x2c] sm:$0xf]  ;;  %v8591_v40 = vrot.slane %v8589_v32, 5  ;;  %v8594_v4 = vrot.slane %v8592_v5, 6  ;;  %9054 = vrot.lane.b32.xlu1 %v8954_v25, %s10834_s27 }
 0x494   : > { %v15569_v29 = vsel %vm12306_vm12, %v8199_v9, %v16713_v14  ;;  %8356 = vst.msk [vmem:[#allocation4 + $0x7c] sm:$0xf] %vm6856_vm8, %v8259_v48  ;;  %v15572_v41 = vrot.slane %v7249_v6, 4  ;;  %v15574_v22 = vrot.slane %v7252_v62, 5  ;;  %v15576_v34 = vrot.slane %v6132_v46, 7  ;;  %8280 = vrot.lane.b32.xlu0 %v15457_v61, %s10839_s14 }
 0x495   : > { %v7793_v54 = vrot.slane %v7791_v28, 4  ;;  %8030 = vst.msk [vmem:[#allocation4 + $0x88] sm:$0xf] %vm6346_vm1, %v7934_v45  ;;  %v15582_v11 = vsel %vm11239_vm7, %v6631_v15, %v6638_v57  ;;  %v6135_v19 = vshll.u32 %v15516_v49, 16  ;;  %v15585_v18 = vld [vmem:[#allocation2 + $0x78] sm:$0xf]  ;;  %v7391_v56 = vpop.permute.xlu1 %7390  ;;  %v8951_v15 = vsel %vm12306_vm12, %v8949_v27, %v8950_v31  ;;  %v6771_v61 = vpop.permute.xlu0 %6770 }
 0x496   : > { %v8599_v17 = vshrl.u32 %v8400_v43, 16  ;;  %v8602_v32 = vshll.u32 %v8400_v43, 16  ;;  %v8955_v5 = vrot.slane %v8953_v53, 4  ;;  %v8956_v28 = vrot.slane %v15563_v20, 5  ;;  %v8401_v36 = vld [vmem:[#allocation2 + $0x64] sm:$0xf] }
 0x497   : > { %v7797_v0 = vshll.u32 %v15560_v39, 16  ;;  %v15591_v3 = vrot.slane %v7256_v55, 4  ;;  %v7801_v49 = vshrl.u32 %v15560_v39, 16  ;;  %v8587_v6 = vrot.slane %v15132_v2, 4  ;;  %7486 = vst.msk [vmem:[#allocation4 + $0x94] sm:$0xf] %vm5836_vm2, %v7391_v56  ;;  %7410 = vrot.lane.b32.xlu1 %v7235_v26, %s10834_s27 }
 0x498   : > { %v8595_v62 = vor.u32 %v8594_v4, %v8591_v40  ;;  %v7255_v53 = vsel %vm11028_vm3, %v15572_v41, %v15574_v22  ;;  %v15605_v46 = vor.u32 %v6135_v19, %v15576_v34  ;;  %v7794_v23 = vor.u32 %v7793_v54, %v15513_v58  ;;  %v8402_v35 = vld [vmem:[#allocation2 + $0x68] sm:$0xf]  ;;  %6868 = vst.msk [vmem:[#allocation4 + $0x84] sm:$0xf] %vm6856_vm8, %v6771_v61  ;;  %v15627_v60 = vld [vmem:[#allocation2 + $0x70] sm:$0xf] }
 0x499   : > { %v7262_v31 = vshll.u32 %v15585_v18, 16  ;;  %v8601_v9 = vrot.slane %v8599_v17, 5  ;;  %v8604_v25 = vrot.slane %v8602_v32, 6  ;;  %v8609_v57 = vshrl.u32 %v8401_v36, 16  ;;  %9052 = vrot.lane.b32.xlu0 %v8951_v15, %s10834_s27  ;;  %v15629_v26 = vld [vmem:[#allocation2 + $0x6c] sm:$0xf]  ;;  %v6263_v40 = vpop.permute.xlu1 %6262  ;;  %v8261_v32 = vpop.permute.xlu0 %8260 }
 0x49a   : > { %v8596_v2 = vsel %vm12508_vm0, %v8587_v6, %v8595_v62  ;;  %v8957_v55 = vsel %vm12306_vm12, %v8955_v5, %v8956_v28  ;;  %v15623_v43 = vrot.slane %v7797_v0, 5  ;;  %v7259_v50 = vor.u32 %v15591_v3, %v15574_v22  ;;  %v8403_v27 = vld [vmem:[#allocation2 + $0x6c] sm:$0xf]  ;;  %v15633_v4 = vld [vmem:[%s10963_s23 + $0x34] sm:$0xf] }
 0x49b   : > { %8839 = vst.msk [vmem:[#allocation4 + $0xc8] sm:$0xf] %vm5506_vm4, %v8596_v2  ;;  %v8612_v48 = vshll.u32 %v8401_v36, 16  ;;  %v8605_v45 = vor.u32 %v8604_v25, %v8601_v9  ;;  %v8611_v54 = vrot.slane %v8609_v57, 5  ;;  %v8597_v19 = vrot.slane %v8595_v62, 4  ;;  %6282 = vrot.lane.b32.xlu1 %v15465_v33, %s10838_s25 }
 0x49c   : > { %v8619_v17 = vshrl.u32 %v8402_v35, 16  ;;  %6359 = vst.msk [vmem:[#allocation4 + $0x90] sm:$0xf] %vm6346_vm1, %v6263_v40  ;;  %v15636_v5 = vrot.slane %v7794_v23, 4  ;;  %v15638_v0 = vrot.slane %v7262_v31, 5  ;;  %v8622_v15 = vshll.u32 %v8402_v35, 16 }
 0x49d   : > { %v8614_v56 = vrot.slane %v8612_v48, 6  ;;  %v8404_v6 = vld [vmem:[#allocation2 + $0x70] sm:$0xf]  ;;  %8357 = vst.msk [vmem:[#allocation4 + $0x88] sm:$0xf] %vm6856_vm8, %v8261_v32  ;;  %v6642_v36 = vshrl.u32 %v15627_v60, 16  ;;  %v8606_v61 = vsel %vm12508_vm0, %v8597_v19, %v8605_v45  ;;  %9056 = vrot.lane.b32.xlu0 %v8957_v55, %s10834_s27  ;;  %v7936_v48 = vpop.permute.xlu1 %7935  ;;  %v7393_v19 = vpop.permute.xlu0 %7392 }
 0x49e   : > { %v8607_v62 = vrot.slane %v8605_v45, 4  ;;  %v8621_v2 = vrot.slane %v8619_v17, 5  ;;  %v8405_v23 = vld [vmem:[#allocation2 + $0x74] sm:$0xf]  ;;  %v8868_v31 = vld [vmem:[%s10963_s23 + $0x30] sm:$0xf] }
 0x49f   : > { %v8962_v35 = vrot.slane %v15633_v4, 5  ;;  %v8615_v9 = vor.u32 %v8614_v56, %v8611_v54  ;;  %8840 = vst.msk [vmem:[#allocation4 + $0xd4] sm:$0xf] %vm5506_vm4, %v8606_v61  ;;  %v8624_v25 = vrot.slane %v8622_v15, 6  ;;  %v8629_v57 = vshrl.u32 %v8403_v27, 16  ;;  %7955 = vrot.lane.b32.xlu1 %v7780_v10, %s10838_s25 }
 0x4a0   : > { %v15651_v33 = vld [vmem:[%s10963_s23 + $0x38] sm:$0xf]  ;;  %v6141_v40 = vshrl.u32 %v15629_v26, 16  ;;  %v8632_v32 = vshll.u32 %v8403_v27, 16  ;;  %v8639_v14 = vshrl.u32 %v8404_v6, 16  ;;  %v8642_v45 = vshll.u32 %v8404_v6, 16 }
 0x4a1   : > { %8031 = vst.msk [vmem:[#allocation4 + $0x94] sm:$0xf] %vm6346_vm1, %v7936_v48  ;;  %v8616_v55 = vsel %vm12508_vm0, %v8607_v62, %v8615_v9  ;;  %v8617_v17 = vrot.slane %v8615_v9, 4  ;;  %v8625_v54 = vor.u32 %v8624_v25, %v8621_v2  ;;  %v8649_v56 = vshrl.u32 %v8405_v23, 16  ;;  %v8406_v61 = vld [vmem:[#allocation2 + $0x78] sm:$0xf]  ;;  %7412 = vrot.lane.b32.xlu0 %v7245_v13, %s10834_s27  ;;  %v6265_v47 = vpop.permute.xlu0 %6264 }
 0x4a2   : > { %7487 = vst.msk [vmem:[#allocation4 + $0xa0] sm:$0xf] %vm5836_vm2, %v7393_v19  ;;  %v8958_v27 = vrot.slane %v8956_v28, 4  ;;  %v8959_v15 = vrot.slane %v8868_v31, 5  ;;  %v8631_v6 = vrot.slane %v8629_v57, 5  ;;  %v8634_v62 = vrot.slane %v8632_v32, 6  ;;  %v6773_v28 = vpop.permute.xlu1 %6772 }
 0x4a3   : > { %8841 = vst.msk [vmem:[#allocation4 + $0xe0] sm:$0xf] %vm5506_vm4, %v8616_v55  ;;  %v8964_v44 = vrot.slane %v8962_v35, 4  ;;  %v8965_v42 = vrot.slane %v15651_v33, 5  ;;  %v8626_v10 = vsel %vm12508_vm0, %v8617_v17, %v8625_v54  ;;  %v8627_v20 = vrot.slane %v8625_v54, 4  ;;  %v9206_v2 = vld [vmem:[#allocation4 + $0x78] sm:$0xff]  ;;  %6792 = vrot.lane.b32.xlu1 %v15540_v37, %s10839_s14 }
 0x4a4   : > { %v15678_v31 = vrot.slane %v6642_v36, 7  ;;  %8842 = vst.msk [vmem:[#allocation4 + $0xec] sm:$0xf] %vm5506_vm4, %v8626_v10  ;;  %v8635_v9 = vor.u32 %v8634_v62, %v8631_v6  ;;  %v8641_v25 = vrot.slane %v8639_v14, 5  ;;  %v8644_v57 = vrot.slane %v8642_v45, 6  ;;  %v9208_v13 = vld [vmem:[#allocation4 + $0x84] sm:$0xff] }
 0x4a5   : > { %v8407_v52 = vld [vmem:[#allocation2 + $0x7c] sm:$0xf]  ;;  %6869 = vst.msk [vmem:[#allocation4 + $0x90] sm:$0xf] %vm6856_vm8, %v6773_v28  ;;  %v10768_v48 = vld [vmem:[#allocation4 + $0x7c] ss:$12 sps:$4 sm:$0xff]   ;;  %v15687_v33 = vsel %vm11239_vm7, %v6130_v7, %v15605_v46  ;;  %v10320_v14 = vcombine.low %v9206_v2, %v9208_v13  ;;  %6284 = vrot.lane.b32.xlu0 %v15548_v21, %s10838_s25  ;;  %v8960_v30 = vsel %vm12306_vm12, %v8958_v27, %v8959_v15  ;;  %v7938_v21 = vpop.permute.xlu0 %7937 }
 0x4a6   : > { %v8651_v36 = vrot.slane %v8649_v56, 5  ;;  %v8652_v32 = vshll.u32 %v8405_v23, 16  ;;  %v8659_v19 = vshrl.u32 %v8406_v61, 16  ;;  %6360 = vst.msk [vmem:[#allocation4 + $0x9c] sm:$0xf] %vm6346_vm1, %v6265_v47  ;;  %v8961_v45 = vrot.slane %v8959_v15, 4  ;;  %9817 = vmatprep.mubr.bf16.mxu1 %v10768_v48  ;;  %v8263_v23 = vpop.permute.xlu1 %8262 }
 0x4a7   : > { %v8636_v55 = vsel %vm12508_vm0, %v8627_v20, %v8635_v9  ;;  %v8645_v17 = vor.u32 %v8644_v57, %v8641_v25  ;;  %v8408_v54 = vld [vmem:[#allocation2 + $0x80] sm:$0xf]  ;;  %v15700_v7 = vsel %vm12306_vm12, %v8964_v44, %v8965_v42  ;;  %v8637_v46 = vrot.slane %v8635_v9, 4  ;;  %9818 = vmatmul.mubr.bf16.gmra.mxu1 %v10320_v14  ;;  %8358 = vst.msk [vmem:[#allocation4 + $0x94] sm:$0xf] %vm6856_vm8, %v8263_v23 }
 0x4a8   : > { %8843 = vst.msk [vmem:[#allocation4 + $0xf8] sm:$0xf] %vm5506_vm4, %v8636_v55  ;;  %v8654_v37 = vrot.slane %v8652_v32, 6  ;;  %v8661_v6 = vrot.slane %v8659_v19, 5  ;;  %v8662_v62 = vshll.u32 %v8406_v61, 16  ;;  %v8669_v10 = vshrl.u32 %v8407_v52, 16  ;;  %8282 = vrot.lane.b32.xlu1 %v15511_v16, %s10839_s14 }
 0x4a9   : > { %v8647_v56 = vrot.slane %v8645_v17, 4  ;;  %v15705_v20 = vld [vmem:[%s10963_s23 + $0x3c] sm:$0xf]  ;;  %v8646_v15 = vsel %vm12508_vm0, %v8637_v46, %v8645_v17  ;;  %v8672_v44 = vshll.u32 %v8407_v52, 16  ;;  %v8409_v28 = vld [vmem:[#allocation2 + $0x84] sm:$0xf]  ;;  %v15716_v61 = vsel %vm12306_vm12, %v8961_v45, %v8962_v35  ;;  %7957 = vrot.lane.b32.xlu0 %v7790_v8, %s10838_s25  ;;  %v6775_v14 = vpop.permute.xlu0 %6774 }
 0x4aa   : > { %v8655_v27 = vor.u32 %v8654_v37, %v8651_v36  ;;  %v8679_v2 = vshrl.u32 %v8408_v54, 16  ;;  %8032 = vst.msk [vmem:[#allocation4 + $0xa0] sm:$0xf] %vm6346_vm1, %v7938_v21  ;;  %v8664_v9 = vrot.slane %v8662_v62, 6  ;;  %v8671_v25 = vrot.slane %v8669_v10, 5  ;;  %v7395_v13 = vpop.permute.xlu1 %7394 }
 0x4ab   : > { %8844 = vst.msk [vmem:[#allocation4 + $0x104] sm:$0xf] %vm5506_vm4, %v8646_v15  ;;  %v8682_v57 = vshll.u32 %v8408_v54, 16  ;;  %v8410_v47 = vld [vmem:[#allocation2 + $0x88] sm:$0xf]  ;;  %v15725_v16 = vrot.slane %v8965_v42, 4 }
 0x4ac   : > { %v8656_v4 = vsel %vm12508_vm0, %v8647_v56, %v8655_v27  ;;  %v8657_v35 = vrot.slane %v8655_v27, 4  ;;  %v8674_v52 = vrot.slane %v8672_v44, 6  ;;  %v8665_v48 = vor.u32 %v8664_v9, %v8661_v6  ;;  %7488 = vst.msk [vmem:[#allocation4 + $0xac] sm:$0xf] %vm5836_vm2, %v7395_v13  ;;  %v8411_v45 = vld [vmem:[#allocation2 + $0x8c] sm:$0xf]  ;;  %9058 = vrot.lane.b32.xlu1 %v8960_v30, %s10834_s27 }
 0x4ad   : > { %8845 = vst.msk [vmem:[#allocation4 + $0x110] sm:$0xf] %vm5506_vm4, %v8656_v4  ;;  %v8681_v36 = vrot.slane %v8679_v2, 5  ;;  %v8684_v32 = vrot.slane %v8682_v57, 6  ;;  %v8689_v19 = vshrl.u32 %v8409_v28, 16  ;;  %v8968_v58 = vrot.slane %v15705_v20, 5  ;;  %6794 = vrot.lane.b32.xlu0 %v15582_v11, %s10839_s14 }
 0x4ae   : > { %v8675_v59 = vor.u32 %v8674_v52, %v8671_v25  ;;  %v8692_v8 = vshll.u32 %v8409_v28, 16  ;;  %v8699_v42 = vshrl.u32 %v8410_v47, 16  ;;  %6870 = vst.msk [vmem:[#allocation4 + $0x9c] sm:$0xf] %vm6856_vm8, %v6775_v14  ;;  %v8666_v55 = vsel %vm12508_vm0, %v8657_v35, %v8665_v48  ;;  %v8412_v46 = vld [vmem:[#allocation2 + $0x90] sm:$0xf]  ;;  %v6267_v21 = vpop.permute.xlu1 %6266  ;;  %v8265_v28 = vpop.permute.xlu0 %8264 }
 0x4af   : > { %v8667_v17 = vrot.slane %v8665_v48, 4  ;;  %v8685_v54 = vor.u32 %v8684_v32, %v8681_v36  ;;  %v8691_v37 = vrot.slane %v8689_v19, 5  ;;  %8846 = vst.msk [vmem:[#allocation4 + $0x11c] sm:$0xf] %vm5506_vm4, %v8666_v55  ;;  %v8702_v62 = vshll.u32 %v8410_v47, 16 }
 0x4b0   : > { %v8694_v23 = vrot.slane %v8692_v8, 6  ;;  %v8677_v56 = vrot.slane %v8675_v59, 4  ;;  %v8701_v6 = vrot.slane %v8699_v42, 5  ;;  %v8413_v10 = vld [vmem:[#allocation2 + $0x94] sm:$0xf]  ;;  %v8709_v15 = vshrl.u32 %v8411_v45, 16  ;;  %9062 = vrot.lane.b32.xlu1 %v15700_v7, %s10834_s27 }
 0x4b1   : > { %v8676_v30 = vsel %vm12508_vm0, %v8667_v17, %v8675_v59  ;;  %v8687_v27 = vrot.slane %v8685_v54, 4  ;;  %v8712_v44 = vshll.u32 %v8411_v45, 16  ;;  %6361 = vst.msk [vmem:[#allocation4 + $0xa8] sm:$0xf] %vm6346_vm1, %v6267_v21  ;;  %v8704_v9 = vrot.slane %v8702_v62, 6  ;;  %8284 = vrot.lane.b32.xlu0 %v15569_v29, %s10839_s14 }
 0x4b2   : > { %8847 = vst.msk [vmem:[#allocation4 + $0x128] sm:$0xf] %vm5506_vm4, %v8676_v30  ;;  %v8695_v11 = vor.u32 %v8694_v23, %v8691_v37  ;;  %v8686_v2 = vsel %vm12508_vm0, %v8677_v56, %v8685_v54  ;;  %v8719_v25 = vshrl.u32 %v8412_v46, 16  ;;  %v8711_v57 = vrot.slane %v8709_v15, 5  ;;  %v8414_v52 = vld [vmem:[#allocation2 + $0x98] sm:$0xf]  ;;  %v7940_v19 = vpop.permute.xlu1 %7939  ;;  %v7397_v45 = vpop.permute.xlu0 %7396 }
 0x4b3   : > { %8359 = vst.msk [vmem:[#allocation4 + $0xa0] sm:$0xf] %vm6856_vm8, %v8265_v28  ;;  %v8714_v47 = vrot.slane %v8712_v44, 6  ;;  %v8722_v4 = vshll.u32 %v8412_v46, 16  ;;  %v8729_v35 = vshrl.u32 %v8413_v10, 16  ;;  %v8705_v36 = vor.u32 %v8704_v9, %v8701_v6  ;;  %v9210_v30 = vld [vmem:[#allocation4 + $0x90] sm:$0xff] }
 0x4b4   : > { %8848 = vst.msk [vmem:[#allocation4 + $0x134] sm:$0xf] %vm5506_vm4, %v8686_v2  ;;  %v8696_v13 = vsel %vm12508_vm0, %v8687_v27, %v8695_v11  ;;  %v8697_v48 = vrot.slane %v8695_v11, 4  ;;  %v8721_v32 = vrot.slane %v8719_v25, 5  ;;  %v8732_v8 = vshll.u32 %v8413_v10, 16  ;;  %7414 = vrot.lane.b32.xlu1 %v7255_v53, %s10834_s27 }
 0x4b5   : > { %8849 = vst.msk [vmem:[#allocation4 + $0x140] sm:$0xf] %vm5506_vm4, %v8696_v13  ;;  %v8715_v7 = vor.u32 %v8714_v47, %v8711_v57  ;;  %v8724_v14 = vrot.slane %v8722_v4, 6  ;;  %v8731_v59 = vrot.slane %v8729_v35, 5  ;;  %v8415_v42 = vld [vmem:[#allocation2 + $0x9c] sm:$0xf]  ;;  %v8969_v37 = vsel %vm12306_vm12, %v15725_v16, %v8968_v58  ;;  %9060 = vrot.lane.b32.xlu0 %v15716_v61, %s10834_s27 }
 0x4b6   : > { %8033 = vst.msk [vmem:[#allocation4 + $0xac] sm:$0xf] %vm6346_vm1, %v7940_v19  ;;  %v8706_v29 = vsel %vm12508_vm0, %v8697_v48, %v8705_v36  ;;  %v8707_v55 = vrot.slane %v8705_v36, 4  ;;  %v8739_v17 = vshrl.u32 %v8414_v52, 16  ;;  %v8742_v54 = vshll.u32 %v8414_v52, 16  ;;  %v6777_v21 = vpop.permute.xlu1 %6776  ;;  %v6269_v28 = vpop.permute.xlu0 %6268 }
 0x4b7   : > { %7489 = vst.msk [vmem:[#allocation4 + $0xb8] sm:$0xf] %vm5836_vm2, %v7397_v45  ;;  %v8725_v46 = vor.u32 %v8724_v14, %v8721_v32  ;;  %v8734_v23 = vrot.slane %v8732_v8, 6  ;;  %v8717_v56 = vrot.slane %v8715_v7, 4  ;;  %v8416_v6 = vld [vmem:[#allocation2 + $0xa0] sm:$0xf]  ;;  %v7800_v13 = vsel %vm11028_vm3, %v15636_v5, %v15623_v43 }
 0x4b8   : > { %8850 = vst.msk [vmem:[#allocation4 + $0x14c] sm:$0xf] %vm5506_vm4, %v8706_v29  ;;  %v8716_v62 = vsel %vm12508_vm0, %v8707_v55, %v8715_v7  ;;  %v8741_v41 = vrot.slane %v8739_v17, 5  ;;  %v8744_v53 = vrot.slane %v8742_v54, 6  ;;  %v8749_v10 = vshrl.u32 %v8415_v42, 16  ;;  %6286 = vrot.lane.b32.xlu1 %v15687_v33, %s10838_s25 }
 0x4b9   : > { %8851 = vst.msk [vmem:[#allocation4 + $0x158] sm:$0xf] %vm5506_vm4, %v8716_v62  ;;  %v8727_v16 = vrot.slane %v8725_v46, 4  ;;  %v8735_v27 = vor.u32 %v8734_v23, %v8731_v59  ;;  %v8726_v15 = vsel %vm12508_vm0, %v8717_v56, %v8725_v46  ;;  %v8752_v44 = vshll.u32 %v8415_v42, 16  ;;  %9064 = vrot.lane.b32.xlu0 %v8969_v37, %s10834_s27  ;;  %v15793_v33 = vld [vmem:[#allocation2 + $0x80] sm:$0xf] }
 0x4ba   : > { %6871 = vst.msk [vmem:[#allocation4 + $0xa8] sm:$0xf] %vm6856_vm8, %v6777_v21  ;;  %v9212_v61 = vld [vmem:[#allocation4 + $0x9c] sm:$0xff]  ;;  %v8745_v2 = vor.u32 %v8744_v53, %v8741_v41  ;;  %v8751_v9 = vrot.slane %v8749_v10, 5  ;;  %v8759_v25 = vshrl.u32 %v8416_v6, 16  ;;  %v8762_v57 = vshll.u32 %v8416_v6, 16 }
 0x4bb   : > { %v10770_v11 = vld [vmem:[#allocation4 + $0x94] ss:$12 sps:$4 sm:$0xff]   ;;  %8852 = vst.msk [vmem:[#allocation4 + $0x164] sm:$0xf] %vm5506_vm4, %v8726_v15  ;;  %v10323_v47 = vcombine.low %v9210_v30, %v9212_v61  ;;  %v7260_v4 = vrot.slane %v7259_v50, 4  ;;  %v8736_v35 = vsel %vm12508_vm0, %v8727_v16, %v8735_v27  ;;  %v8737_v52 = vrot.slane %v8735_v27, 4  ;;  %v8267_v50 = vpop.permute.xlu1 %8266 }
 0x4bc   : > { %6362 = vst.msk [vmem:[#allocation4 + $0xb4] sm:$0xf] %vm6346_vm1, %v6269_v28  ;;  %9825 = vmatprep.mubr.bf16.mxu1 %v10770_v11  ;;  %v6645_v48 = vshll.u32 %v15627_v60, 16  ;;  %v8754_v22 = vrot.slane %v8752_v44, 6  ;;  %v8761_v3 = vrot.slane %v8759_v25, 5  ;;  %v15798_v36 = vrot.slane %v6141_v40, 7  ;;  %v7942_v60 = vpop.permute.xlu0 %7941  ;;  %7959 = vrot.lane.b32.xlu1 %v7800_v13, %s10838_s25 }
 0x4bd   : > { %8853 = vst.msk [vmem:[#allocation4 + $0x170] sm:$0xf] %vm5506_vm4, %v8736_v35  ;;  %9826 = vmatmul.mubr.bf16.gmra.mxu1 %v10323_v47  ;;  %v7803_v32 = vrot.slane %v7801_v49, 4  ;;  %v8746_v5 = vsel %vm12508_vm0, %v8737_v52, %v8745_v2  ;;  %v8764_v19 = vrot.slane %v8762_v57, 6  ;;  %v6139_v14 = vrot.slane %v15576_v34, 4 }
 0x4be   : > { %8360 = vst.msk [vmem:[#allocation4 + $0xac] sm:$0xf] %vm6856_vm8, %v8267_v50  ;;  %v6647_v7 = vor.u32 %v6645_v48, %v15678_v31  ;;  %v6409_v59 = vld [vmem:[#allocation2 + $0x74] sm:$0xf]  ;;  %v8747_v8 = vrot.slane %v8745_v2, 4  ;;  %v8755_v40 = vor.u32 %v8754_v22, %v8751_v9  ;;  %v7265_v39 = vsel %vm11028_vm3, %v7260_v4, %v15638_v0 }
 0x4bf   : > { %8854 = vst.msk [vmem:[#allocation4 + $0x17c] sm:$0xf] %vm5506_vm4, %v8746_v5  ;;  %v6144_v49 = vshll.u32 %v15629_v26, 16  ;;  %v7807_v42 = vshll.u32 %v15793_v33, 16  ;;  %v15815_v34 = vor.u32 %v8764_v19, %v8761_v3  ;;  %7416 = vrot.lane.b32.xlu0 %v7265_v39, %s10834_s27  ;;  %v6640_v45 = vrot.slane %v15530_v24, 4  ;;  %v7399_v54 = vpop.permute.xlu1 %7398 }
 0x4c0   : > { %8034 = vst.msk [vmem:[#allocation4 + $0xb8] sm:$0xf] %vm6346_vm1, %v7942_v60  ;;  %v8080_v29 = vld [vmem:[#allocation2 + $0x7c] sm:$0xf]  ;;  %v8756_v55 = vsel %vm12508_vm0, %v8747_v8, %v8755_v40  ;;  %v8757_v17 = vrot.slane %v8755_v40, 4  ;;  %v7804_v46 = vor.u32 %v7803_v32, %v15623_v43  ;;  %v6651_v26 = vshrl.u32 %v6409_v59, 16  ;;  %v6779_v24 = vpop.permute.xlu0 %6778 }
 0x4c1   : > { %v6146_v37 = vor.u32 %v6144_v49, %v15798_v36  ;;  %v8872_v23 = vld [vmem:[%s10963_s23 + $0x40] sm:$0xf]  ;;  %v15825_v56 = vld [vmem:[%s10963_s23 + $0x44] sm:$0xf]  ;;  %8855 = vst.msk [vmem:[#allocation4 + $0x188] sm:$0xf] %vm5506_vm4, %v8756_v55  ;;  %v6648_v62 = vsel %vm11239_vm7, %v6640_v45, %v6647_v7 }
 0x4c2   : > { %v7266_v6 = vshrl.u32 %v15585_v18, 16  ;;  %7490 = vst.msk [vmem:[#allocation4 + $0xc4] sm:$0xf] %vm5836_vm2, %v7399_v54  ;;  %v16795_v41 = vrot.slane %v15500_v63, 5  ;;  %v8766_v43 = vsel %vm12508_vm0, %v8757_v17, %v15815_v34  ;;  %6796 = vrot.lane.b32.xlu1 %v6648_v62, %s10839_s14  ;;  %v15841_v10 = vrot.slane %v7807_v42, 5 }
 0x4c3   : > { %6872 = vst.msk [vmem:[#allocation4 + $0xb4] sm:$0xf] %vm6856_vm8, %v6779_v24  ;;  %v6147_v18 = vsel %vm11239_vm7, %v6139_v14, %v6146_v37  ;;  %v8203_v63 = vrot.slane %v8080_v29, 5  ;;  %v8970_v21 = vrot.slane %v8968_v58, 4  ;;  %v8971_v30 = vrot.slane %v8872_v23, 5  ;;  %v6271_v27 = vpop.permute.xlu1 %6270 }
 0x4c4   : > { %v8202_v53 = vrot.slane %v16795_v41, 4  ;;  %8856 = vst.msk [vmem:[#allocation4 + $0x194] sm:$0xf] %vm5506_vm4, %v8766_v43  ;;  %6288 = vrot.lane.b32.xlu0 %v6147_v18, %s10838_s25  ;;  %v8974_v16 = vrot.slane %v15825_v56, 5  ;;  %v7805_v15 = vrot.slane %v7804_v46, 4  ;;  %v15848_v44 = vrot.slane %v6651_v26, 7  ;;  %v8269_v61 = vpop.permute.xlu0 %8268 }
 0x4c5   : > { %v8874_v28 = vld [vmem:[%s10963_s23 + $0x48] sm:$0xf]  ;;  %6363 = vst.msk [vmem:[#allocation4 + $0xc0] sm:$0xf] %vm6346_vm1, %v6271_v27  ;;  %v7268_v2 = vrot.slane %v7266_v6, 4  ;;  %v6649_v58 = vrot.slane %v15678_v31, 4  ;;  %v8972_v57 = vsel %vm12306_vm12, %v8970_v21, %v8971_v30 }
 0x4c6   : > { %v8204_v11 = vsel %vm12306_vm12, %v8202_v53, %v8203_v63  ;;  %8361 = vst.msk [vmem:[#allocation4 + $0xb8] sm:$0xf] %vm6856_vm8, %v8269_v61  ;;  %v7810_v20 = vsel %vm11028_vm3, %v7805_v15, %v15841_v10  ;;  %v6654_v9 = vshll.u32 %v6409_v59, 16  ;;  %v5900_v25 = vld [vmem:[#allocation2 + $0x70] sm:$0xf]  ;;  %v8976_v47 = vrot.slane %v8974_v16, 4 }
 0x4c7   : > { %8286 = vrot.lane.b32.xlu1 %v8204_v11, %s10839_s14  ;;  %v8977_v4 = vrot.slane %v8874_v28, 5  ;;  %v15863_v35 = vld [vmem:[#allocation2 + $0x80] sm:$0xf]  ;;  %v7944_v52 = vpop.permute.xlu1 %7943  ;;  %v6992_v48 = vld [vmem:[#allocation2 + $0x7c] sm:$0xf]  ;;  %v7269_v31 = vor.u32 %v7268_v2, %v15638_v0  ;;  %v6150_v3 = vshrl.u32 %v5900_v25, 16 }
 0x4c8   : > { %7961 = vrot.lane.b32.xlu0 %v7810_v20, %s10838_s25  ;;  %v6656_v13 = vor.u32 %v6654_v9, %v15848_v44  ;;  %8035 = vst.msk [vmem:[#allocation4 + $0xc4] sm:$0xf] %vm6346_vm1, %v7944_v52  ;;  %v7401_v22 = vpop.permute.xlu0 %7400  ;;  %v8206_v32 = vrot.slane %v15863_v35, 5  ;;  %v7811_v5 = vshrl.u32 %v15793_v33, 16  ;;  %v7272_v60 = vshll.u32 %v6992_v48, 16  ;;  %v9214_v39 = vld [vmem:[#allocation4 + $0xa8] sm:$0xff] }
 0x4c9   : > { %7491 = vst.msk [vmem:[#allocation4 + $0xd0] sm:$0xf] %vm5836_vm2, %v7401_v22  ;;  %v8978_v19 = vsel %vm12306_vm12, %v8976_v47, %v8977_v4  ;;  %v8205_v0 = vrot.slane %v8203_v63, 4  ;;  %v7276_v14 = vshrl.u32 %v6992_v48, 16  ;;  %v8973_v59 = vrot.slane %v8971_v30, 4 }
 0x4ca   : > { %v6657_v50 = vsel %vm11239_vm7, %v6649_v58, %v6656_v13  ;;  %v15878_v8 = vld [vmem:[%s10963_s23 + $0x4c] sm:$0xf]  ;;  %v7270_v45 = vrot.slane %v7269_v31, 4  ;;  %v15881_v33 = vrot.slane %v6150_v3, 7  ;;  %v7537_v17 = vld [vmem:[#allocation2 + $0x84] sm:$0xf] }
 0x4cb   : > { %9066 = vrot.lane.b32.xlu1 %v8972_v57, %s10834_s27  ;;  %v6781_v7 = vpop.permute.xlu1 %6780  ;;  %v8207_v29 = vsel %vm12306_vm12, %v8205_v0, %v8206_v32  ;;  %v6410_v54 = vld [vmem:[#allocation2 + $0x78] sm:$0xf]  ;;  %v7274_v37 = vrot.slane %v7272_v60, 5  ;;  %v6153_v46 = vshll.u32 %v5900_v25, 16  ;;  %v7813_v23 = vrot.slane %v7811_v5, 4 }
 0x4cc   : > { %6798 = vrot.lane.b32.xlu0 %v6657_v50, %s10839_s14  ;;  %6873 = vst.msk [vmem:[#allocation4 + $0xc0] sm:$0xf] %vm6856_vm8, %v6781_v7  ;;  %v6273_v40 = vpop.permute.xlu0 %6272  ;;  %v15890_v26 = vld [vmem:[#allocation2 + $0x80] sm:$0xf]  ;;  %v8975_v6 = vsel %vm12306_vm12, %v8973_v59, %v8974_v16  ;;  %v8979_v24 = vrot.slane %v8977_v4, 4  ;;  %v8980_v62 = vrot.slane %v15878_v8, 5 }
 0x4cd   : > { %v9216_v49 = vld [vmem:[#allocation4 + $0xb4] sm:$0xff]  ;;  %6364 = vst.msk [vmem:[#allocation4 + $0xcc] sm:$0xf] %vm6346_vm1, %v6273_v40  ;;  %v7278_v41 = vrot.slane %v7276_v14, 4  ;;  %v7275_v43 = vsel %vm11028_vm3, %v7270_v45, %v7274_v37  ;;  %v6155_v18 = vor.u32 %v6153_v46, %v15881_v33  ;;  %v7817_v63 = vshll.u32 %v7537_v17, 16 }
 0x4ce   : > { %v10772_v42 = vld [vmem:[#allocation4 + $0xac] ss:$12 sps:$4 sm:$0xff]   ;;  %v10326_v55 = vcombine.low %v9214_v39, %v9216_v49  ;;  %v6660_v21 = vshrl.u32 %v6410_v54, 16  ;;  %v7821_v16 = vshrl.u32 %v7537_v17, 16  ;;  %v7282_v27 = vshll.u32 %v15890_v26, 16 }
 0x4cf   : > { %9070 = vrot.lane.b32.xlu1 %v8978_v19, %s10834_s27  ;;  %9833 = vmatprep.mubr.bf16.mxu1 %v10772_v42  ;;  %v8271_v56 = vpop.permute.xlu1 %8270  ;;  %v5901_v30 = vld [vmem:[#allocation2 + $0x74] sm:$0xf]  ;;  %v6148_v15 = vrot.slane %v15798_v36, 4  ;;  %v7814_v28 = vor.u32 %v7813_v23, %v15841_v10  ;;  %v8981_v11 = vsel %vm12306_vm12, %v8979_v24, %v8980_v62  ;;  %v7279_v2 = vor.u32 %v7278_v41, %v7274_v37  ;;  %v6411_v52 = vld [vmem:[#allocation2 + $0x7c] sm:$0xf] }
 0x4d0   : > { %8288 = vrot.lane.b32.xlu0 %v8207_v29, %s10839_s14  ;;  %9834 = vmatmul.mubr.bf16.gmra.mxu1 %v10326_v55  ;;  %8362 = vst.msk [vmem:[#allocation4 + $0xc4] sm:$0xf] %vm6856_vm8, %v8271_v56  ;;  %v7946_v53 = vpop.permute.xlu0 %7945  ;;  %v6159_v20 = vshrl.u32 %v5901_v30, 16  ;;  %v7819_v25 = vrot.slane %v7817_v63, 5  ;;  %v15912_v57 = vrot.slane %v6660_v21, 7  ;;  %v15916_v36 = vrot.slane %v7282_v27, 5 }
 0x4d1   : > { %8036 = vst.msk [vmem:[#allocation4 + $0xd0] sm:$0xf] %vm6346_vm1, %v7946_v53  ;;  %v6156_v9 = vsel %vm11239_vm7, %v6148_v15, %v6155_v18  ;;  %v7823_v10 = vrot.slane %v7821_v16, 4  ;;  %v7815_v47 = vrot.slane %v7814_v28, 4  ;;  %v6663_v4 = vshll.u32 %v6410_v54, 16 }
 0x4d2   : > { %v7280_v48 = vrot.slane %v7279_v2, 4  ;;  %v15919_v22 = vrot.slane %v6159_v20, 7  ;;  %v6157_v5 = vrot.slane %v15881_v33, 4  ;;  %v15926_v19 = vld [vmem:[#allocation2 + $0x88] sm:$0xf]  ;;  %v6162_v7 = vshll.u32 %v5901_v30, 16 }
 0x4d3   : > { %7418 = vrot.lane.b32.xlu1 %v7275_v43, %s10834_s27  ;;  %v7403_v61 = vpop.permute.xlu1 %7402  ;;  %v7820_v3 = vsel %vm11028_vm3, %v7815_v47, %v7819_v25  ;;  %v6665_v50 = vor.u32 %v6663_v4, %v15912_v57  ;;  %v8082_v0 = vld [vmem:[#allocation2 + $0x84] sm:$0xf]  ;;  %v7824_v14 = vor.u32 %v7823_v10, %v7819_v25  ;;  %v6669_v59 = vshrl.u32 %v6411_v52, 16  ;;  %v8876_v45 = vld [vmem:[%s10963_s23 + $0x50] sm:$0xf] }
 0x4d4   : > { %9068 = vrot.lane.b32.xlu0 %v8975_v6, %s10834_s27  ;;  %7492 = vst.msk [vmem:[#allocation4 + $0xdc] sm:$0xf] %vm5836_vm2, %v7403_v61  ;;  %v6783_v58 = vpop.permute.xlu0 %6782  ;;  %v7285_v60 = vsel %vm11028_vm3, %v7280_v48, %v15916_v36  ;;  %v6658_v40 = vrot.slane %v15848_v44, 4  ;;  %v6164_v49 = vor.u32 %v6162_v7, %v15919_v22  ;;  %v7827_v42 = vshll.u32 %v15926_v19, 16  ;;  %v15939_v33 = vld [vmem:[%s10963_s23 + $0x54] sm:$0xf] }
 0x4d5   : > { %6874 = vst.msk [vmem:[#allocation4 + $0xcc] sm:$0xf] %vm6856_vm8, %v6783_v58  ;;  %v8209_v17 = vrot.slane %v8082_v0, 5  ;;  %v7286_v54 = vshrl.u32 %v15890_v26, 16  ;;  %v7825_v37 = vrot.slane %v7824_v14, 4  ;;  %v15949_v46 = vrot.slane %v6669_v59, 7 }
 0x4d6   : > { %v6666_v55 = vsel %vm11239_vm7, %v6658_v40, %v6665_v50  ;;  %v6165_v44 = vsel %vm11239_vm7, %v6157_v5, %v6164_v49  ;;  %v8208_v23 = vrot.slane %v8206_v32, 4  ;;  %v8982_v56 = vrot.slane %v8980_v62, 4  ;;  %v8878_v43 = vld [vmem:[%s10963_s23 + $0x58] sm:$0xf]  ;;  %v6994_v27 = vld [vmem:[#allocation2 + $0x84] sm:$0xf] }
 0x4d7   : > { %6290 = vrot.lane.b32.xlu1 %v6156_v9, %s10838_s25  ;;  %v6275_v13 = vpop.permute.xlu1 %6274  ;;  %v8983_v6 = vrot.slane %v8876_v45, 5  ;;  %v8986_v26 = vrot.slane %v15939_v33, 5  ;;  %v15957_v41 = vrot.slane %v7827_v42, 5  ;;  %v6672_v53 = vshll.u32 %v6411_v52, 16  ;;  %v9218_v21 = vld [vmem:[#allocation4 + $0xc0] sm:$0xff] }
 0x4d8   : > { %9072 = vrot.lane.b32.xlu0 %v8981_v11, %s10834_s27  ;;  %6365 = vst.msk [vmem:[#allocation4 + $0xd8] sm:$0xf] %vm6346_vm1, %v6275_v13  ;;  %v8273_v31 = vpop.permute.xlu0 %8272  ;;  %v8210_v63 = vsel %vm12306_vm12, %v8208_v23, %v8209_v17  ;;  %v6667_v30 = vrot.slane %v15912_v57, 4  ;;  %v5902_v15 = vld [vmem:[#allocation2 + $0x78] sm:$0xf]  ;;  %v8989_v11 = vrot.slane %v8878_v43, 5 }
 0x4d9   : > { %8363 = vst.msk [vmem:[#allocation4 + $0xd0] sm:$0xf] %vm6856_vm8, %v8273_v31  ;;  %v7830_v8 = vsel %vm11028_vm3, %v7825_v37, %v15957_v41  ;;  %v6674_v16 = vor.u32 %v6672_v53, %v15949_v46  ;;  %v8984_v28 = vsel %vm12306_vm12, %v8982_v56, %v8983_v6  ;;  %v8988_v61 = vrot.slane %v8986_v26, 4  ;;  %v15974_v9 = vld [vmem:[#allocation2 + $0x88] sm:$0xf] }
 0x4da   : > { %v7288_v2 = vrot.slane %v7286_v54, 4  ;;  %v7292_v25 = vshll.u32 %v6994_v27, 16  ;;  %v6168_v57 = vshrl.u32 %v5902_v15, 16  ;;  %v8211_v47 = vrot.slane %v8209_v17, 4  ;;  %v15990_v0 = vld [vmem:[%s10963_s23 + $0x5c] sm:$0xf] }
 0x4db   : > { %7963 = vrot.lane.b32.xlu1 %v7820_v3, %s10838_s25  ;;  %v7948_v39 = vpop.permute.xlu1 %7947  ;;  %v6675_v10 = vsel %vm11239_vm7, %v6667_v30, %v6674_v16  ;;  %v7296_v4 = vshrl.u32 %v6994_v27, 16  ;;  %v7831_v52 = vshrl.u32 %v15926_v19, 16  ;;  %v8990_v13 = vsel %vm12306_vm12, %v8988_v61, %v8989_v11  ;;  %v5903_v19 = vld [vmem:[#allocation2 + $0x7c] sm:$0xf]  ;;  %v7539_v14 = vld [vmem:[#allocation2 + $0x8c] sm:$0xf] }
 0x4dc   : > { %7420 = vrot.lane.b32.xlu0 %v7285_v60, %s10834_s27  ;;  %8037 = vst.msk [vmem:[#allocation4 + $0xdc] sm:$0xf] %vm6346_vm1, %v7948_v39  ;;  %v7405_v29 = vpop.permute.xlu0 %7404  ;;  %v7289_v48 = vor.u32 %v7288_v2, %v15916_v36  ;;  %v8212_v3 = vrot.slane %v15974_v9, 5  ;;  %v8985_v50 = vrot.slane %v8983_v6, 4  ;;  %v7294_v60 = vrot.slane %v7292_v25, 5 }
 0x4dd   : > { %7493 = vst.msk [vmem:[#allocation4 + $0xe8] sm:$0xf] %vm5836_vm2, %v7405_v29  ;;  %v15987_v7 = vrot.slane %v6168_v57, 7  ;;  %v7298_v59 = vrot.slane %v7296_v4, 4  ;;  %v6412_v40 = vld [vmem:[#allocation2 + $0x80] sm:$0xf] }
 0x4de   : > { %v8213_v36 = vsel %vm12306_vm12, %v8211_v47, %v8212_v3  ;;  %v7290_v39 = vrot.slane %v7289_v48, 4  ;;  %v6171_v49 = vshll.u32 %v5902_v15, 16  ;;  %v7833_v42 = vrot.slane %v7831_v52, 4  ;;  %v16006_v56 = vld [vmem:[#allocation2 + $0x88] sm:$0xf] }
 0x4df   : > { %6800 = vrot.lane.b32.xlu1 %v6666_v55, %s10839_s14  ;;  %v6785_v24 = vpop.permute.xlu1 %6784  ;;  %v8987_v33 = vsel %vm12306_vm12, %v8985_v50, %v8986_v26  ;;  %v8991_v29 = vrot.slane %v8989_v11, 4  ;;  %v8992_v55 = vrot.slane %v15990_v0, 5  ;;  %v6177_v17 = vshrl.u32 %v5903_v19, 16  ;;  %v16028_v15 = vld [vmem:[#allocation2 + $0x90] sm:$0xf] }
 0x4e0   : > { %6292 = vrot.lane.b32.xlu0 %v6165_v44, %s10838_s25  ;;  %6875 = vst.msk [vmem:[#allocation4 + $0xd8] sm:$0xf] %vm6856_vm8, %v6785_v24  ;;  %v6277_v18 = vpop.permute.xlu0 %6276  ;;  %v9220_v35 = vld [vmem:[#allocation4 + $0xcc] sm:$0xff]  ;;  %v7295_v44 = vsel %vm11028_vm3, %v7290_v39, %v7294_v60  ;;  %v6173_v37 = vor.u32 %v6171_v49, %v15987_v7  ;;  %v7837_v23 = vshll.u32 %v7539_v14, 16  ;;  %v6678_v6 = vshrl.u32 %v6412_v40, 16 }
 0x4e1   : > { %v10776_v32 = vld [vmem:[#allocation4 + $0xc4] ss:$12 sps:$4 sm:$0xff]   ;;  %6366 = vst.msk [vmem:[#allocation4 + $0xe4] sm:$0xf] %vm6346_vm1, %v6277_v18  ;;  %v10329_v62 = vcombine.low %v9218_v21, %v9220_v35  ;;  %v7299_v26 = vor.u32 %v7298_v59, %v7294_v60  ;;  %v6166_v24 = vrot.slane %v15919_v22, 4  ;;  %v7834_v53 = vor.u32 %v7833_v42, %v15957_v41 }
 0x4e2   : > { %9841 = vmatprep.mubr.bf16.mxu1 %v10776_v32  ;;  %v8993_v18 = vsel %vm12306_vm12, %v8991_v29, %v8992_v55  ;;  %v7302_v21 = vshll.u32 %v16006_v56, 16  ;;  %v16023_v22 = vrot.slane %v6177_v17, 7  ;;  %v6180_v30 = vshll.u32 %v5903_v19, 16  ;;  %v6996_v0 = vld [vmem:[#allocation2 + $0x8c] sm:$0xf] }
 0x4e3   : > { %8290 = vrot.lane.b32.xlu1 %v8210_v63, %s10839_s14  ;;  %v8275_v20 = vpop.permute.xlu1 %8274  ;;  %9842 = vmatmul.mubr.bf16.gmra.mxu1 %v10329_v62  ;;  %v7841_v63 = vshrl.u32 %v7539_v14, 16  ;;  %v6174_v32 = vsel %vm11239_vm7, %v6166_v24, %v6173_v37  ;;  %v16021_v62 = vrot.slane %v6678_v6, 7  ;;  %v7300_v41 = vrot.slane %v7299_v26, 4  ;;  %v16050_v14 = vld [vmem:[%s10963_s23 + $0x64] sm:$0xf] }
 0x4e4   : > { %7965 = vrot.lane.b32.xlu0 %v7830_v8, %s10838_s25  ;;  %8364 = vst.msk [vmem:[#allocation4 + $0xdc] sm:$0xf] %vm6856_vm8, %v8275_v20  ;;  %v7950_v58 = vpop.permute.xlu0 %7949  ;;  %v7839_v8 = vrot.slane %v7837_v23, 5  ;;  %v7835_v16 = vrot.slane %v7834_v53, 4  ;;  %v6681_v27 = vshll.u32 %v6412_v40, 16  ;;  %v16030_v11 = vrot.slane %v7302_v21, 5 }
 0x4e5   : > { %8038 = vst.msk [vmem:[#allocation4 + $0xe8] sm:$0xf] %vm6346_vm1, %v7950_v58  ;;  %v7843_v2 = vrot.slane %v7841_v63, 4  ;;  %v6175_v4 = vrot.slane %v15987_v7, 4  ;;  %v6182_v52 = vor.u32 %v6180_v30, %v16023_v22  ;;  %v7847_v50 = vshll.u32 %v16028_v15, 16 }
 0x4e6   : > { %v7840_v58 = vsel %vm11028_vm3, %v7835_v16, %v7839_v8  ;;  %v6683_v47 = vor.u32 %v6681_v27, %v16021_v62  ;;  %v6676_v60 = vrot.slane %v15949_v46, 4  ;;  %v7306_v42 = vshrl.u32 %v16006_v56, 16  ;;  %v8882_v6 = vld [vmem:[%s10963_s23 + $0x68] sm:$0xf]  ;;  %v16084_v21 = vld [vmem:[#allocation2 + $0x90] sm:$0xf] }
 0x4e7   : > { %9074 = vrot.lane.b32.xlu1 %v8984_v28, %s10834_s27  ;;  %v9043_v31 = vpop.permute.xlu1 %9042  ;;  %v6413_v28 = vld [vmem:[#allocation2 + $0x84] sm:$0xf]  ;;  %v7844_v19 = vor.u32 %v7843_v2, %v7839_v8  ;;  %v6183_v46 = vsel %vm11239_vm7, %v6175_v4, %v6182_v52  ;;  %v8214_v29 = vrot.slane %v8212_v3, 4  ;;  %v8994_v17 = vrot.slane %v8992_v55, 4  ;;  %v5904_v55 = vld [vmem:[#allocation2 + $0x80] sm:$0xf] }
 0x4e8   : > { %6802 = vrot.lane.b32.xlu0 %v6675_v10, %s10839_s14  ;;  %9150 = vst.msk [vmem:[#allocation4 + $0x8] sm:$0xf] %vm16796_vm5, %v9043_v31  ;;  %v6787_v5 = vpop.permute.xlu0 %6786  ;;  %v16043_v31 = vld [vmem:[#allocation2 + $0x8c] sm:$0xf]  ;;  %v6684_v40 = vsel %vm11239_vm7, %v6676_v60, %v6683_v47  ;;  %v6690_v56 = vshll.u32 %v6413_v28, 16  ;;  %v9001_v63 = vrot.slane %v8882_v6, 5 }
 0x4e9   : > { %6876 = vst.msk [vmem:[#allocation4 + $0xe4] sm:$0xf] %vm6856_vm8, %v6787_v5  ;;  %v6687_v5 = vshrl.u32 %v6413_v28, 16  ;;  %v8215_v49 = vrot.slane %v16043_v31, 5  ;;  %v7845_v23 = vrot.slane %v7844_v19, 4  ;;  %v6685_v8 = vrot.slane %v16021_v62, 4 }
 0x4ea   : > { %v7312_v30 = vshll.u32 %v6996_v0, 16  ;;  %v6186_v16 = vshrl.u32 %v5904_v55, 16  ;;  %v8218_v28 = vrot.slane %v16084_v21, 5  ;;  %v16102_v52 = vld [vmem:[%s10963_s23 + $0x6c] sm:$0xf]  ;;  %v9003_v19 = vrot.slane %v9001_v63, 4 }
 0x4eb   : > { %9078 = vrot.lane.b32.xlu1 %v8990_v13, %s10834_s27  ;;  %v9047_v45 = vpop.permute.xlu1 %9046  ;;  %v9222_v25 = vld [vmem:[#allocation4 + $0xd8] sm:$0xff]  ;;  %v7305_v13 = vsel %vm11028_vm3, %v7300_v41, %v16030_v11  ;;  %v8216_v24 = vsel %vm12306_vm12, %v8214_v29, %v8215_v49 }
 0x4ec   : > { %8292 = vrot.lane.b32.xlu0 %v8213_v36, %s10839_s14  ;;  %9152 = vst.msk [vmem:[#allocation4 + $0x20] sm:$0xf] %vm16797_vm14, %v9047_v45  ;;  %v8277_v54 = vpop.permute.xlu0 %8276  ;;  %v8880_v36 = vld [vmem:[%s10963_s23 + $0x60] sm:$0xf]  ;;  %v16061_v45 = vrot.slane %v7847_v50, 5  ;;  %v7314_v47 = vrot.slane %v7312_v30, 5  ;;  %vm16804_vm14 = vmmov %vm16796_vm5 }
 0x4ed   : > { %8365 = vst.msk [vmem:[#allocation4 + $0xe8] sm:$0xf] %vm6856_vm8, %v8277_v54  ;;  %v8995_v54 = vrot.slane %v8880_v36, 5  ;;  %v16099_v4 = vrot.slane %v6186_v16, 7  ;;  %v16111_v50 = vld [vmem:[#allocation2 + $0x90] sm:$0xf] }
 0x4ee   : > { %v7850_v9 = vsel %vm11028_vm3, %v7845_v23, %v16061_v45  ;;  %v9004_v36 = vrot.slane %v16102_v52, 5  ;;  %v7322_v29 = vshll.u32 %v16111_v50, 16 }
 0x4ef   : > { %7422 = vrot.lane.b32.xlu1 %v7295_v44, %s10834_s27  ;;  %v7407_v43 = vpop.permute.xlu1 %7406  ;;  %v8998_v44 = vrot.slane %v16050_v14, 5 }
 0x4f0   : > { %9076 = vrot.lane.b32.xlu0 %v8987_v33, %s10834_s27  ;;  %7494 = vst.msk [vmem:[#allocation4 + $0xf4] sm:$0xf] %vm5836_vm2, %v7407_v43  ;;  %v9045_v35 = vpop.permute.xlu0 %9044  ;;  %v16063_v33 = vrot.slane %v6687_v5, 7  ;;  %v8996_v43 = vsel %vm12306_vm12, %v8994_v17, %v8995_v54  ;;  %v5905_v5 = vld [vmem:[#allocation2 + $0x84] sm:$0xf] }
 0x4f1   : > { %9151 = vst.msk [vmem:[#allocation4 + $0x14] sm:$0xf] %vm16798_vm15, %v9045_v35  ;;  %v7308_v35 = vrot.slane %v7306_v42, 4  ;;  %v6195_v17 = vshrl.u32 %v5905_v5, 16  ;;  %vm16805_vm15 = vmmov %vm16796_vm5 }
 0x4f2   : > { %v6692_v3 = vor.u32 %v6690_v56, %v16063_v33  ;;  %v9005_v56 = vsel %vm12306_vm12, %v9003_v19, %v9004_v36  ;;  %v7326_v19 = vshrl.u32 %v16111_v50, 16  ;;  %v9006_v50 = vrot.slane %v9004_v36, 4 }
 0x4f3   : > { %6294 = vrot.lane.b32.xlu1 %v6174_v32, %s10838_s25  ;;  %v6279_v61 = vpop.permute.xlu1 %6278  ;;  %v7309_v2 = vor.u32 %v7308_v35, %v16030_v11  ;;  %v6189_v11 = vshll.u32 %v5904_v55, 16  ;;  %v6198_v35 = vshll.u32 %v5905_v5, 16 }
 0x4f4   : > { %9080 = vrot.lane.b32.xlu0 %v8993_v18, %s10834_s27  ;;  %6367 = vst.msk [vmem:[#allocation4 + $0xf0] sm:$0xf] %vm6346_vm1, %v6279_v61  ;;  %v9049_v20 = vpop.permute.xlu0 %9048  ;;  %v9224_v57 = vld [vmem:[#allocation4 + $0xe4] sm:$0xff]  ;;  %v9000_v18 = vrot.slane %v8998_v44, 4  ;;  %v6693_v27 = vsel %vm11239_vm7, %v6685_v8, %v6692_v3  ;;  %v7851_v61 = vshrl.u32 %v16028_v15, 16 }
 0x4f5   : > { %v10783_v10 = vld [vmem:[#allocation4 + $0xdc] ss:$12 sps:$4 sm:$0xff]   ;;  %9153 = vst.msk [vmem:[#allocation4 + $0x2c] sm:$0xf] %vm16799_vm6, %v9049_v20  ;;  %v10332_v48 = vcombine.low %v9222_v25, %v9224_v57  ;;  %v7316_v25 = vshrl.u32 %v6996_v0, 16  ;;  %v8997_v57 = vrot.slane %v8995_v54, 4  ;;  %vm16806_vm6 = vmmov %vm16796_vm5 }
 0x4f6   : > { %9849 = vmatprep.mubr.bf16.mxu1 %v10783_v10  ;;  %v9002_v62 = vsel %vm12306_vm12, %v9000_v18, %v9001_v63  ;;  %v7853_v31 = vrot.slane %v7851_v61, 4  ;;  %v6184_v54 = vrot.slane %v16023_v22, 4  ;;  %v16135_v22 = vrot.slane %v7322_v29, 5  ;;  %v16139_v3 = vld [vmem:[#allocation2 + $0x8c] sm:$0xf] }
 0x4f7   : > { %7967 = vrot.lane.b32.xlu1 %v7840_v58, %s10838_s25  ;;  %v7952_v7 = vpop.permute.xlu1 %7951  ;;  %9850 = vmatmul.mubr.bf16.gmra.mxu1 %v10332_v48  ;;  %v8217_v58 = vrot.slane %v8215_v49, 4  ;;  %v7310_v48 = vrot.slane %v7309_v2, 4  ;;  %v7318_v14 = vrot.slane %v7316_v25, 4  ;;  %v6191_v49 = vor.u32 %v6189_v11, %v16099_v4  ;;  %v16157_v25 = vld [vmem:[#allocation2 + $0x94] sm:$0xf] }
 0x4f8   : > { %7424 = vrot.lane.b32.xlu0 %v7305_v13, %s10834_s27  ;;  %8039 = vst.msk [vmem:[#allocation4 + $0xf4] sm:$0xf] %vm6346_vm1, %v7952_v7  ;;  %v7409_v59 = vpop.permute.xlu0 %7408  ;;  %v10786_v39 = vld [vmem:[#allocation4 + $0x8] ss:$12 sps:$4 sm:$0xff]   ;;  %v7541_v13 = vld [vmem:[#allocation2 + $0x94] sm:$0xf]  ;;  %v8999_v7 = vsel %vm12306_vm12, %v8997_v57, %v8998_v44  ;;  %v7854_v44 = vor.u32 %v7853_v31, %v16061_v45 }
 0x4f9   : > { %7495 = vst.msk [vmem:[#allocation4 + $0x100] sm:$0xf] %vm5836_vm2, %v7409_v59  ;;  %10649 = vmatprep.mubr.bf16.mxu0 %v10786_v39  ;;  %v8219_v15 = vsel %vm12306_vm12, %v8217_v58, %v8218_v28  ;;  %v6414_v59 = vld [vmem:[#allocation2 + $0x88] sm:$0xf]  ;;  %v7315_v39 = vsel %vm11028_vm3, %v7310_v48, %v7314_v47  ;;  %v7857_v42 = vshll.u32 %v7541_v13, 16  ;;  %v7319_v6 = vor.u32 %v7318_v14, %v7314_v47 }
 0x4fa   : > { %v16137_v45 = vrot.slane %v6195_v17, 7  ;;  %v7855_v0 = vrot.slane %v7854_v44, 4  ;;  %v6694_v61 = vrot.slane %v16063_v33, 4  ;;  %v16167_v48 = vld [vmem:[%s10963_s23 + $0x74] sm:$0xf] }
 0x4fb   : > { %6804 = vrot.lane.b32.xlu1 %v6684_v40, %s10839_s14  ;;  %v6789_v37 = vpop.permute.xlu1 %6788  ;;  %v7320_v63 = vrot.slane %v7319_v6, 4  ;;  %v8886_v44 = vld [vmem:[%s10963_s23 + $0x78] sm:$0xf] }
 0x4fc   : > { %6296 = vrot.lane.b32.xlu0 %v6183_v46, %s10838_s25  ;;  %6877 = vst.msk [vmem:[#allocation4 + $0xf0] sm:$0xf] %vm6856_vm8, %v6789_v37  ;;  %v6281_v26 = vpop.permute.xlu0 %6280  ;;  %v10787_v53 = vld [vmem:[#allocation4 + $0x20] ss:$12 sps:$4 sm:$0xff]   ;;  %v7861_v46 = vshrl.u32 %v7541_v13, 16  ;;  %v6696_v37 = vshrl.u32 %v6414_v59, 16  ;;  %v6200_v58 = vor.u32 %v6198_v35, %v16137_v45 }
 0x4fd   : > { %6368 = vst.msk [vmem:[#allocation4 + $0xfc] sm:$0xf] %vm6346_vm1, %v6281_v26  ;;  %10650 = vmatmul.mubr.bf16.vlgmr.msra.gmra.mxu0 %v10787_v53  ;;  %v7859_v53 = vrot.slane %v7857_v42, 5  ;;  %v7325_v2 = vsel %vm11028_vm3, %v7320_v63, %v16135_v22  ;;  %v8884_v13 = vld [vmem:[%s10963_s23 + $0x70] sm:$0xf]  ;;  %v9010_v42 = vrot.slane %v16167_v48, 5 }
 0x4fe   : > { %v16142_v55 = vrot.slane %v6696_v37, 7 }
 0x4ff   : > { %8294 = vrot.lane.b32.xlu1 %v8216_v24, %s10839_s14  ;;  %v8279_v32 = vpop.permute.xlu1 %8278  ;;  %v6192_v24 = vsel %vm11239_vm7, %v6184_v54, %v6191_v49  ;;  %v9007_v49 = vrot.slane %v8884_v13, 5  ;;  %v6708_v54 = vshll.u32 %v16139_v3, 16  ;;  %v6202_v13 = vrot.slane %v16137_v45, 4 }
 0x500   : > { %7969 = vrot.lane.b32.xlu0 %v7850_v9, %s10838_s25  ;;  %8366 = vst.msk [vmem:[#allocation4 + $0xf4] sm:$0xf] %vm6856_vm8, %v8279_v32  ;;  %v7954_v41 = vpop.permute.xlu0 %7953  ;;  %v7863_v9 = vrot.slane %v7861_v46, 4  ;;  %v16144_v32 = vld [vmem:[#allocation2 + $0x98] sm:$0xf] }
 0x501   : > { %8040 = vst.msk [vmem:[#allocation4 + $0x100] sm:$0xf] %vm6346_vm1, %v7954_v41  ;;  %v7860_v41 = vsel %vm11028_vm3, %v7855_v0, %v7859_v53  ;;  %v7867_v11 = vshll.u32 %v16144_v32, 16  ;;  %v9008_v6 = vsel %vm12306_vm12, %v9006_v50, %v9007_v49  ;;  %v6703_v0 = vrot.slane %v16142_v55, 4 }
 0x502   : > { %v7864_v57 = vor.u32 %v7863_v9, %v7859_v53  ;;  %v7328_v53 = vrot.slane %v7326_v19, 4  ;;  %v5906_v9 = vld [vmem:[#allocation2 + $0x88] sm:$0xf] }
 0x503   : > { %9082 = vrot.lane.b32.xlu1 %v8996_v43, %s10834_s27  ;;  %v9051_v20 = vpop.permute.xlu1 %9050  ;;  %v6699_v43 = vshll.u32 %v6414_v59, 16  ;;  %v16188_v17 = vrot.slane %v7867_v11, 5  ;;  %v6207_v48 = vshll.u32 %v5906_v9, 16 }
 0x504   : > { %6806 = vrot.lane.b32.xlu0 %v6693_v27, %s10839_s14  ;;  %9154 = vst.msk [vmem:[#allocation4 + $0x38] sm:$0xf] %vm16800_vm9, %v9051_v20  ;;  %v6791_v10 = vpop.permute.xlu0 %6790  ;;  %v7865_v59 = vrot.slane %v7864_v57, 4  ;;  %vm16807_vm9 = vmmov %vm16796_vm5 }
 0x505   : > { %6878 = vst.msk [vmem:[#allocation4 + $0xfc] sm:$0xf] %vm6856_vm8, %v6791_v10  ;;  %v6701_v33 = vor.u32 %v6699_v43, %v16142_v55 }
 0x506   : > { %v7870_v52 = vsel %vm11028_vm3, %v7865_v59, %v16188_v17 }
 0x507   : > { %9086 = vrot.lane.b32.xlu1 %v9002_v62, %s10834_s27  ;;  %v9055_v60 = vpop.permute.xlu1 %9054  ;;  %v9226_v30 = vld [vmem:[#allocation4 + $0xf0] sm:$0xff]  ;;  %v6705_v62 = vshrl.u32 %v16139_v3, 16  ;;  %v6702_v5 = vsel %vm11239_vm7, %v6694_v61, %v6701_v33 }
 0x508   : > { %8296 = vrot.lane.b32.xlu0 %v8219_v15, %s10839_s14  ;;  %9156 = vst.msk [vmem:[#allocation4 + $0x50] sm:$0xf] %vm16801_vm11, %v9055_v60  ;;  %v8281_v40 = vpop.permute.xlu0 %8280  ;;  %v6193_v15 = vrot.slane %v16099_v4, 4  ;;  %v16222_v33 = vld [vmem:[#allocation2 + $0x90] sm:$0xf]  ;;  %vm16808_vm11 = vmmov %vm16796_vm5 }
 0x509   : > { %8367 = vst.msk [vmem:[#allocation4 + $0x100] sm:$0xf] %vm6856_vm8, %v8281_v40  ;;  %v16178_v40 = vrot.slane %v6705_v62, 7  ;;  %v6714_v59 = vshrl.u32 %v16222_v33, 16 }
 0x50a   : > { %v6201_v4 = vsel %vm11239_vm7, %v6193_v15, %v6200_v58  ;;  %v5907_v15 = vld [vmem:[#allocation2 + $0x8c] sm:$0xf] }
 0x50b   : > { %7426 = vrot.lane.b32.xlu1 %v7315_v39, %s10834_s27  ;;  %v7411_v23 = vpop.permute.xlu1 %7410  ;;  %v8220_v39 = vrot.slane %v8218_v28, 4 }
 0x50c   : > { %9084 = vrot.lane.b32.xlu0 %v8999_v7, %s10834_s27  ;;  %7496 = vst.msk [vmem:[#allocation4 + $0x10c] sm:$0xf] %vm5836_vm2, %v7411_v23  ;;  %v9053_v26 = vpop.permute.xlu0 %9052  ;;  %v8221_v7 = vrot.slane %v16157_v25, 5  ;;  %v6710_v23 = vor.u32 %v6708_v54, %v16178_v40  ;;  %v16220_v25 = vld [vmem:[%s10963_s23 + $0x7c] sm:$0xf] }
 0x50d   : > { %9155 = vst.msk [vmem:[#allocation4 + $0x44] sm:$0xf] %vm16802_vm13, %v9053_v26  ;;  %v9012_v26 = vrot.slane %v9010_v42, 4  ;;  %vm16809_vm13 = vmmov %vm16796_vm5 }
 0x50e   : > { %v8222_v21 = vsel %vm12306_vm12, %v8220_v39, %v8221_v7 }
 0x50f   : > { %6298 = vrot.lane.b32.xlu1 %v6192_v24, %s10838_s25  ;;  %v6283_v18 = vpop.permute.xlu1 %6282  ;;  %v16161_v47 = vpop.f32.mrf.mxu1  ;;  %v9013_v24 = vrot.slane %v8886_v44, 5 }
 0x510   : > { %9088 = vrot.lane.b32.xlu0 %v9005_v56, %s10834_s27  ;;  %6369 = vst.msk [vmem:[#allocation4 + $0x108] sm:$0xf] %vm6346_vm1, %v6283_v18  ;;  %v9057_v8 = vpop.permute.xlu0 %9056  ;;  %v9228_v16 = vld [vmem:[#allocation4 + $0xfc] sm:$0xff]  ;;  %v6998_v56 = vld [vmem:[#allocation2 + $0x94] sm:$0xf] }
 0x511   : > { %v10788_v27 = vld [vmem:[#allocation4 + $0xf4] ss:$12 sps:$4 sm:$0xff]   ;;  %9157 = vst.msk [vmem:[#allocation4 + $0x5c] sm:$0xf] %vm16803_vm10, %v9057_v8  ;;  %v10335_v20 = vcombine.low %v9226_v30, %v9228_v16  ;;  %v9781_v14 = vpop.f32.mrf.mxu1  ;;  %v16206_v18 = vld [vmem:[#allocation2 + $0x98] sm:$0xf]  ;;  %v6711_v8 = vsel %vm11239_vm7, %v6703_v0, %v6710_v23  ;;  %v9014_v55 = vsel %vm12306_vm12, %v9012_v26, %v9013_v24  ;;  %vm16810_vm10 = vmmov %vm16796_vm5 }
 0x512   : > { %9857 = vmatprep.mubr.bf16.mxu1 %v10788_v27  ;;  %v7332_v63 = vshll.u32 %v6998_v56, 16  ;;  %v7336_v35 = vshrl.u32 %v6998_v56, 16  ;;  %v6204_v30 = vshrl.u32 %v5906_v9, 16  ;;  %v7871_v16 = vshrl.u32 %v16144_v32, 16  ;;  %v16239_v14 = vld [vmem:[#allocation2 + $0x98] sm:$0xf] }
 0x513   : > { %7971 = vrot.lane.b32.xlu1 %v7860_v41, %s10838_s25  ;;  %v7956_v10 = vpop.permute.xlu1 %7955  ;;  %9858 = vmatmul.mubr.bf16.gmra.mxu1 %v10335_v20  ;;  %v16186_v29 = vpop.f32.mrf.mxu1  ;;  %v8223_v41 = vrot.slane %v8221_v7, 4  ;;  %v7329_v27 = vor.u32 %v7328_v53, %v16135_v22  ;;  %v8224_v62 = vrot.slane %v16206_v18, 5  ;;  %v9015_v19 = vrot.slane %v9013_v24, 4 }
 0x514   : > { %7428 = vrot.lane.b32.xlu0 %v7325_v2, %s10834_s27  ;;  %8041 = vst.msk [vmem:[#allocation4 + $0x10c] sm:$0xf] %vm6346_vm1, %v7956_v10  ;;  %v7413_v31 = vpop.permute.xlu0 %7412  ;;  %v10790_v60 = vld [vmem:[#allocation4 + $0x38] ss:$12 sps:$4 sm:$0xff]   ;;  %v9009_v2 = vrot.slane %v9007_v49, 4  ;;  %v7334_v58 = vrot.slane %v7332_v63, 5 }
 0x515   : > { %7497 = vst.msk [vmem:[#allocation4 + $0x118] sm:$0xf] %vm5836_vm2, %v7413_v31  ;;  %10653 = vmatprep.mubr.bf16.mxu0 %v10790_v60  ;;  %v9784_v36 = vpop.f32.mrf.mxu1  ;;  %v7338_v57 = vrot.slane %v7336_v35, 4  ;;  %v8225_v22 = vsel %vm12306_vm12, %v8223_v41, %v8224_v62  ;;  %v16230_v32 = vrot.slane %v6204_v30, 7  ;;  %v7543_v10 = vld [vmem:[#allocation2 + $0x9c] sm:$0xf] }
 0x516   : > { %v7330_v11 = vrot.slane %v7329_v27, 4  ;;  %v7873_v31 = vrot.slane %v7871_v16, 4  ;;  %v9011_v7 = vsel %vm12306_vm12, %v9009_v2, %v9010_v42  ;;  %v7877_v50 = vshll.u32 %v7543_v10, 16 }
 0x517   : > { %6808 = vrot.lane.b32.xlu1 %v6702_v5, %s10839_s14  ;;  %v6793_v46 = vpop.permute.xlu1 %6792  ;;  %v7339_v49 = vor.u32 %v7338_v57, %v7334_v58  ;;  %v6209_v54 = vor.u32 %v6207_v48, %v16230_v32  ;;  %v7881_v44 = vshrl.u32 %v7543_v10, 16  ;;  %v16260_v24 = vrot.slane %v6714_v59, 7 }
 0x518   : > { %6300 = vrot.lane.b32.xlu0 %v6201_v4, %s10838_s25  ;;  %6879 = vst.msk [vmem:[#allocation4 + $0x108] sm:$0xf] %vm6856_vm8, %v6793_v46  ;;  %v6285_v37 = vpop.permute.xlu0 %6284  ;;  %v10791_v28 = vld [vmem:[#allocation4 + $0x50] ss:$12 sps:$4 sm:$0xff]   ;;  %v9016_v4 = vrot.slane %v16220_v25, 5  ;;  %v7335_v45 = vsel %vm11028_vm3, %v7330_v11, %v7334_v58  ;;  %v6213_v46 = vshrl.u32 %v5907_v15, 16 }
 0x519   : > { %6370 = vst.msk [vmem:[#allocation4 + $0x114] sm:$0xf] %vm6346_vm1, %v6285_v37  ;;  %10654 = vmatmul.mubr.bf16.gmra.mxu0 %v10791_v28  ;;  %v7874_v37 = vor.u32 %v7873_v31, %v16188_v17  ;;  %v6210_v36 = vsel %vm11239_vm7, %v6202_v13, %v6209_v54  ;;  %v7340_v26 = vrot.slane %v7339_v49, 4  ;;  %v7883_v9 = vrot.slane %v7881_v44, 4  ;;  %v8888_v31 = vld [vmem:[%s10963_s23 + $0x80] sm:$0xf] }
 0x51a   : > { %v9017_v23 = vsel %vm12306_vm12, %v9015_v19, %v9016_v4  ;;  %v16262_v17 = vrot.slane %v6213_v46, 7  ;;  %v6717_v63 = vshll.u32 %v16222_v33, 16  ;;  %v6216_v35 = vshll.u32 %v5907_v15, 16  ;;  %v16284_v33 = vld [vmem:[#allocation2 + $0x9c] sm:$0xf] }
 0x51b   : > { %8298 = vrot.lane.b32.xlu1 %v8222_v21, %s10839_s14  ;;  %v8283_v3 = vpop.permute.xlu1 %8282  ;;  %v7342_v21 = vshll.u32 %v16239_v14, 16  ;;  %v7875_v0 = vrot.slane %v7874_v37, 4  ;;  %v6712_v11 = vrot.slane %v16178_v40, 4  ;;  %v6211_v48 = vrot.slane %v16230_v32, 4 }
 0x51c   : > { %7973 = vrot.lane.b32.xlu0 %v7870_v52, %s10838_s25  ;;  %8368 = vst.msk [vmem:[#allocation4 + $0x10c] sm:$0xf] %vm6856_vm8, %v8283_v3  ;;  %v7958_v43 = vpop.permute.xlu0 %7957  ;;  %v16266_v3 = vld [vmem:[#allocation2 + $0x94] sm:$0xf]  ;;  %v6218_v58 = vor.u32 %v6216_v35, %v16262_v17  ;;  %v8226_v49 = vrot.slane %v8224_v62, 4  ;;  %v9018_v46 = vrot.slane %v9016_v4, 4 }
 0x51d   : > { %8042 = vst.msk [vmem:[#allocation4 + $0x118] sm:$0xf] %vm6346_vm1, %v7958_v43  ;;  %v16269_v43 = vrot.slane %v7342_v21, 5  ;;  %v6723_v15 = vshrl.u32 %v16266_v3, 16  ;;  %v6726_v21 = vshll.u32 %v16266_v3, 16 }
 0x51e   : > { %v6219_v40 = vsel %vm11239_vm7, %v6211_v48, %v6218_v58 }
 0x51f   : > { %9090 = vrot.lane.b32.xlu1 %v9008_v6, %s10834_s27  ;;  %v9059_v61 = vpop.permute.xlu1 %9058  ;;  %v7879_v6 = vrot.slane %v7877_v50, 5 }
 0x520   : > { %6810 = vrot.lane.b32.xlu0 %v6711_v8, %s10839_s14  ;;  %9158 = vst.msk [vmem:[#allocation4 + $0x68] sm:$0xf] %vm16796_vm5, %v9059_v61  ;;  %v6795_v20 = vpop.permute.xlu0 %6794  ;;  %v16234_v60 = vpop.f32.mrf.mxu1  ;;  %v16272_v8 = vld [vmem:[#allocation2 + $0xa0] sm:$0xf] }
 0x521   : > { %6880 = vst.msk [vmem:[#allocation4 + $0x114] sm:$0xf] %vm6856_vm8, %v6795_v20  ;;  %v7880_v16 = vsel %vm11028_vm3, %v7875_v0, %v7879_v6  ;;  %v6719_v20 = vor.u32 %v6717_v63, %v16260_v24  ;;  %v7887_v10 = vshll.u32 %v16272_v8, 16  ;;  %v16333_v63 = vld [vmem:[#allocation2 + $0xa0] sm:$0xf] }
 0x522   : > { %v9789_v42 = vpop.f32.mrf.mxu1 }
 0x523   : > { %9094 = vrot.lane.b32.xlu1 %v9014_v55, %s10834_s27  ;;  %v9063_v5 = vpop.permute.xlu1 %9062  ;;  %v7345_v55 = vsel %vm11028_vm3, %v7340_v26, %v16269_v43  ;;  %v9230_v27 = vld [vmem:[#allocation4 + $0x108] sm:$0xff]  ;;  %v6720_v59 = vsel %vm11239_vm7, %v6712_v11, %v6719_v20  ;;  %v16304_v50 = vrot.slane %v7887_v10, 5  ;;  %v9019_v42 = vrot.slane %v8888_v31, 5  ;;  %v5908_v26 = vld [vmem:[#allocation2 + $0x90] sm:$0xf] }
 0x524   : > { %8300 = vrot.lane.b32.xlu0 %v8225_v22, %s10839_s14  ;;  %9160 = vst.msk [vmem:[#allocation4 + $0x80] sm:$0xf] %vm16804_vm14, %v9063_v5  ;;  %v8285_v39 = vpop.permute.xlu0 %8284  ;;  %v16251_v52 = vpop.f32.mrf.mxu1  ;;  %v7884_v22 = vor.u32 %v7883_v9, %v7879_v6  ;;  %v16293_v5 = vld [vmem:[%s10963_s23 + $0x84] sm:$0xf]  ;;  %v8230_v20 = vrot.slane %v16333_v63, 5 }
 0x525   : > { %8369 = vst.msk [vmem:[#allocation4 + $0x118] sm:$0xf] %vm6856_vm8, %v8285_v39  ;;  %v9022_v54 = vrot.slane %v16293_v5, 5  ;;  %v9020_v9 = vsel %vm12306_vm12, %v9018_v46, %v9019_v42  ;;  %v9021_v10 = vrot.slane %v9019_v42, 4  ;;  %v16352_v31 = vld [vmem:[%s10963_s23 + $0x8c] sm:$0xf] }
 0x526   : > { %v9792_v53 = vpop.f32.mrf.mxu1  ;;  %v7885_v32 = vrot.slane %v7884_v22, 4 }
 0x527   : > { %7430 = vrot.lane.b32.xlu1 %v7335_v45, %s10834_s27  ;;  %v7415_v28 = vpop.permute.xlu1 %7414  ;;  %v8227_v45 = vrot.slane %v16284_v33, 5  ;;  %v7891_v53 = vshrl.u32 %v16272_v8, 16  ;;  %v9024_v3 = vrot.slane %v9022_v54, 4  ;;  %v9023_v42 = vsel %vm12306_vm12, %v9021_v10, %v9022_v54  ;;  %v16405_v10 = vld [vmem:[%s10963_s23 + $0x90] sm:$0xf] }
 0x528   : > { %9092 = vrot.lane.b32.xlu0 %v9011_v7, %s10834_s27  ;;  %7498 = vst.msk [vmem:[#allocation4 + $0x124] sm:$0xf] %vm5836_vm2, %v7415_v28  ;;  %v9061_v56 = vpop.permute.xlu0 %9060  ;;  %v7346_v7 = vshrl.u32 %v16239_v14, 16  ;;  %v16306_v14 = vrot.slane %v6723_v15, 7  ;;  %v8890_v28 = vld [vmem:[%s10963_s23 + $0x88] sm:$0xf]  ;;  %v7890_v62 = vsel %vm11028_vm3, %v7885_v32, %v16304_v50 }
 0x529   : > { %9159 = vst.msk [vmem:[#allocation4 + $0x74] sm:$0xf] %vm16805_vm15, %v9061_v56  ;;  %v7000_v56 = vld [vmem:[#allocation2 + $0x9c] sm:$0xf]  ;;  %v9025_v0 = vrot.slane %v8890_v28, 5  ;;  %v7893_v33 = vrot.slane %v7891_v53, 4 }
 0x52a   : > { %v6728_v4 = vor.u32 %v6726_v21, %v16306_v14  ;;  %v7348_v6 = vrot.slane %v7346_v7, 4  ;;  %v7356_v58 = vshrl.u32 %v7000_v56, 16  ;;  %v7545_v15 = vld [vmem:[#allocation2 + $0xa4] sm:$0xf]  ;;  %v9028_v21 = vrot.slane %v16352_v31, 5 }
 0x52b   : > { %6302 = vrot.lane.b32.xlu1 %v6210_v36, %s10838_s25  ;;  %v6287_v41 = vpop.permute.xlu1 %6286  ;;  %v7897_v32 = vshll.u32 %v7545_v15, 16  ;;  %v7901_v28 = vshrl.u32 %v7545_v15, 16 }
 0x52c   : > { %9096 = vrot.lane.b32.xlu0 %v9017_v23, %s10834_s27  ;;  %6371 = vst.msk [vmem:[#allocation4 + $0x120] sm:$0xf] %vm6346_vm1, %v6287_v41  ;;  %v9065_v30 = vpop.permute.xlu0 %9064  ;;  %v9232_v61 = vld [vmem:[#allocation4 + $0x114] sm:$0xff]  ;;  %v8228_v23 = vsel %vm12306_vm12, %v8226_v49, %v8227_v45  ;;  %v7358_v7 = vrot.slane %v7356_v58, 4  ;;  %v7001_v49 = vld [vmem:[#allocation2 + $0xa0] sm:$0x1] }
 0x52d   : > { %v10792_v2 = vld [vmem:[#allocation4 + $0x10c] ss:$12 sps:$4 sm:$0xff]   ;;  %9161 = vst.msk [vmem:[#allocation4 + $0x8c] sm:$0xf] %vm16806_vm6, %v9065_v30  ;;  %v10338_v57 = vcombine.low %v9230_v27, %v9232_v61  ;;  %v6721_v30 = vrot.slane %v16260_v24, 4  ;;  %v9026_v24 = vsel %vm12306_vm12, %v9024_v3, %v9025_v0  ;;  %v7362_v54 = vshll.u32 %v7001_v49, 16 }
 0x52e   : > { %9865 = vmatprep.mubr.bf16.mxu1 %v10792_v2  ;;  %v8229_v2 = vrot.slane %v8227_v45, 4  ;;  %v6225_v45 = vshll.u32 %v5908_v26, 16  ;;  %v16397_v58 = vld [vmem:[#allocation2 + $0x9c] sm:$0xf] }
 0x52f   : > { %7975 = vrot.lane.b32.xlu1 %v7880_v16, %s10838_s25  ;;  %v7960_v13 = vpop.permute.xlu1 %7959  ;;  %9866 = vmatmul.mubr.bf16.gmra.mxu1 %v10338_v57  ;;  %v7352_v16 = vshll.u32 %v7000_v56, 16  ;;  %v6729_v27 = vsel %vm11239_vm7, %v6721_v30, %v6728_v4  ;;  %v7349_v57 = vor.u32 %v7348_v6, %v16269_v43  ;;  %v6220_v4 = vrot.slane %v16262_v17, 4 }
 0x530   : > { %7432 = vrot.lane.b32.xlu0 %v7345_v55, %s10834_s27  ;;  %8043 = vst.msk [vmem:[#allocation4 + $0x124] sm:$0xf] %vm6346_vm1, %v7960_v13  ;;  %v10794_v39 = vld [vmem:[#allocation4 + $0x68] ss:$12 sps:$4 sm:$0xff]   ;;  %v6222_v55 = vshrl.u32 %v5908_v26, 16  ;;  %v8231_v43 = vsel %vm12306_vm12, %v8229_v2, %v8230_v20  ;;  %v7899_v6 = vrot.slane %v7897_v32, 5 }
 0x531   : > { %v7417_v19 = vpop.permute.xlu0 %7416  ;;  %10657 = vmatprep.mubr.bf16.mxu0 %v10794_v39  ;;  %v7354_v13 = vrot.slane %v7352_v16, 5  ;;  %v7350_v39 = vrot.slane %v7349_v57, 4  ;;  %v6741_v49 = vshrl.u32 %v16397_v58, 16 }
 0x532   : > { %7499 = vst.msk [vmem:[#allocation4 + $0x130] sm:$0xf] %vm5836_vm2, %v7417_v19  ;;  %v16314_v37 = vpop.f32.mrf.mxu1  ;;  %v16349_v48 = vrot.slane %v6222_v55, 7  ;;  %v16360_v19 = vld [vmem:[#allocation2 + $0x98] sm:$0xf] }
 0x533   : > { %6812 = vrot.lane.b32.xlu1 %v6720_v59, %s10839_s14  ;;  %v16362_v59 = vld [vmem:[#allocation2 + $0x94] sm:$0xf]  ;;  %v7359_v5 = vor.u32 %v7358_v7, %v7354_v13  ;;  %v6735_v32 = vshll.u32 %v16360_v19, 16 }
 0x534   : > { %6304 = vrot.lane.b32.xlu0 %v6219_v40, %s10838_s25  ;;  %v6797_v44 = vpop.permute.xlu1 %6796  ;;  %v10795_v18 = vld [vmem:[#allocation4 + $0x80] ss:$12 sps:$4 sm:$0xff]   ;;  %v9797_v25 = vpop.f32.mrf.mxu1  ;;  %v7894_v40 = vor.u32 %v7893_v33, %v16304_v50  ;;  %v7355_v50 = vsel %vm11028_vm3, %v7350_v39, %v7354_v13  ;;  %v6730_v13 = vrot.slane %v16306_v14, 4 }
 0x535   : > { %6881 = vst.msk [vmem:[#allocation4 + $0x120] sm:$0xf] %vm6856_vm8, %v6797_v44  ;;  %10658 = vmatmul.mubr.bf16.gmra.mxu0 %v10795_v18  ;;  %v9027_v44 = vrot.slane %v9025_v0, 4  ;;  %v6227_v18 = vor.u32 %v6225_v45, %v16349_v48  ;;  %v6231_v25 = vshrl.u32 %v16362_v59, 16  ;;  %v8091_v0 = vld [vmem:[#allocation2 + $0xa8] sm:$0x1] }
 0x536   : > { %v6289_v36 = vpop.permute.xlu0 %6288  ;;  %v16335_v41 = vpop.f32.mrf.mxu1  ;;  %v7895_v56 = vrot.slane %v7894_v40, 4  ;;  %v7360_v55 = vrot.slane %v7359_v5, 4 }
 0x537   : > { %6372 = vst.msk [vmem:[#allocation4 + $0x12c] sm:$0xf] %vm6346_vm1, %v6289_v36  ;;  %8302 = vrot.lane.b32.xlu1 %v8228_v23, %s10839_s14  ;;  %v16371_v36 = vld [vmem:[#allocation2 + $0xa4] sm:$0xf]  ;;  %v9029_v3 = vsel %vm12306_vm12, %v9027_v44, %v9028_v21  ;;  %v6228_v17 = vsel %vm11239_vm7, %v6220_v4, %v6227_v18  ;;  %v6233_v2 = vrot.slane %v6231_v25, 7  ;;  %v9031_v44 = vrot.slane %v16405_v10, 5 }
 0x538   : > { %7977 = vrot.lane.b32.xlu0 %v7890_v62, %s10838_s25  ;;  %v9800_v61 = vpop.f32.mrf.mxu1  ;;  %v6732_v62 = vshrl.u32 %v16360_v19, 16  ;;  %v8233_v26 = vrot.slane %v16371_v36, 5  ;;  %v7900_v57 = vsel %vm11028_vm3, %v7895_v56, %v7899_v6  ;;  %v6229_v18 = vrot.slane %v16349_v48, 4 }
 0x539   : > { %v8287_v35 = vpop.permute.xlu1 %8286 }
 0x53a   : > { %8370 = vst.msk [vmem:[#allocation4 + $0x124] sm:$0xf] %vm6856_vm8, %v8287_v35  ;;  %v7962_v8 = vpop.permute.xlu0 %7961  ;;  %v7903_v35 = vrot.slane %v7901_v28, 4  ;;  %v16395_v61 = vrot.slane %v6732_v62, 7  ;;  %v8235_v33 = vrot.slane %v8233_v26, 4 }
 0x53b   : > { %8044 = vst.msk [vmem:[#allocation4 + $0x130] sm:$0xf] %vm6346_vm1, %v7962_v8  ;;  %9098 = vrot.lane.b32.xlu1 %v9020_v9, %s10834_s27  ;;  %v7546_v8 = vld [vmem:[#allocation2 + $0xa8] sm:$0x1]  ;;  %v16430_v62 = vld [vmem:[%s10963_s23 + $0x98] sm:$0xf] }
 0x53c   : > { %6814 = vrot.lane.b32.xlu0 %v6729_v27, %s10839_s14  ;;  %v7364_v27 = vrot.slane %v7362_v54, 5  ;;  %v7904_v7 = vor.u32 %v7903_v35, %v7899_v6  ;;  %v7907_v39 = vshll.u32 %v7546_v8, 16  ;;  %v6737_v19 = vor.u32 %v6735_v32, %v16395_v61 }
 0x53d   : > { %v9067_v22 = vpop.permute.xlu1 %9066  ;;  %v6743_v6 = vrot.slane %v6741_v49, 7  ;;  %v9037_v35 = vrot.slane %v16430_v62, 5 }
 0x53e   : > { %9162 = vst.msk [vmem:[#allocation4 + $0x98] sm:$0xf] %vm16807_vm9, %v9067_v22  ;;  %v6799_v11 = vpop.permute.xlu0 %6798  ;;  %v8236_v22 = vrot.slane %v8091_v0, 5  ;;  %v7365_v14 = vsel %vm11028_vm3, %v7360_v55, %v7364_v27  ;;  %v7905_v5 = vrot.slane %v7904_v7, 4  ;;  %v7909_v54 = vrot.slane %v7907_v39, 5 }
 0x53f   : > { %6882 = vst.msk [vmem:[#allocation4 + $0x12c] sm:$0xf] %vm6856_vm8, %v6799_v11  ;;  %9102 = vrot.lane.b32.xlu1 %v9026_v24, %s10834_s27  ;;  %v8232_v24 = vrot.slane %v8230_v20, 4  ;;  %v6738_v4 = vsel %vm11239_vm7, %v6730_v13, %v6737_v19  ;;  %v8417_v0 = vld [vmem:[#allocation2 + $0xa4] sm:$0xf]  ;;  %v6744_v27 = vshll.u32 %v16397_v58, 16 }
 0x540   : > { %8304 = vrot.lane.b32.xlu0 %v8231_v43, %s10839_s14  ;;  %v6234_v43 = vshll.u32 %v16362_v59, 16  ;;  %v8237_v36 = vsel %vm12306_vm12, %v8235_v33, %v8236_v22  ;;  %v8772_v8 = vshll.u32 %v8417_v0, 16  ;;  %v7910_v55 = vsel %vm11028_vm3, %v7905_v5, %v7909_v54  ;;  %vm16811_vm3 = vmmov %vm16796_vm5 }
 0x541   : > { %v9071_v46 = vpop.permute.xlu1 %9070  ;;  %v9234_v20 = vld [vmem:[#allocation4 + $0x120] sm:$0xff]  ;;  %v8234_v28 = vsel %vm12306_vm12, %v8232_v24, %v8233_v26 }
 0x542   : > { %9164 = vst.msk [vmem:[#allocation4 + $0xb0] sm:$0xf] %vm16808_vm11, %v9071_v46  ;;  %v8289_v23 = vpop.permute.xlu0 %8288  ;;  %v10710_v26 = vpack.i.bf16 %v8237_v36, %v8234_v28  ;;  %v8774_v22 = vrot.slane %v8772_v8, 6 }
 0x543   : > { %8371 = vst.msk [vmem:[#allocation4 + $0x130] sm:$0xf] %vm6856_vm8, %v8289_v23  ;;  %7434 = vrot.lane.b32.xlu1 %v7355_v50, %s10834_s27  ;;  %v16384_v9 = vpop.f32.mrf.mxu1  ;;  %v16426_v23 = vld [vmem:[%s10963_s23 + $0x94] sm:$0xf] }
 0x544   : > { %9100 = vrot.lane.b32.xlu0 %v9023_v42, %s10834_s27  ;;  %v6236_v42 = vor.u32 %v6234_v43, %v6233_v2  ;;  %v8767_v2 = vrot.slane %v15815_v34, 4  ;;  %v8418_v43 = vld [vmem:[#allocation2 + $0xa8] sm:$0x3]  ;;  %v9039_v34 = vrot.slane %v9037_v35, 4 }
 0x545   : > { %v7419_v53 = vpop.permute.xlu1 %7418  ;;  %v9805_v16 = vpop.f32.mrf.mxu1  ;;  %v8779_v7 = vshrl.u32 %v8418_v43, 16  ;;  %v8782_v39 = vshll.u32 %v8418_v43, 16 }
 0x546   : > { %7500 = vst.msk [vmem:[#allocation4 + $0x13c] sm:$0xf] %vm5836_vm2, %v7419_v53  ;;  %v9069_v30 = vpop.permute.xlu0 %9068  ;;  %v6237_v48 = vsel %vm11239_vm7, %v6229_v18, %v6236_v42  ;;  %v9033_v53 = vrot.slane %v9031_v44, 4 }
 0x547   : > { %9163 = vst.msk [vmem:[#allocation4 + $0xa4] sm:$0xf] %vm16809_vm13, %v9069_v30  ;;  %6306 = vrot.lane.b32.xlu1 %v6228_v17, %s10838_s25  ;;  %v16407_v11 = vpop.f32.mrf.mxu1  ;;  %v8895_v30 = vld [vmem:[%s10963_s23 + $0x9c] sm:$0x1]  ;;  %v8769_v17 = vshrl.u32 %v8417_v0, 16  ;;  %v8784_v31 = vrot.slane %v8782_v39, 6 }
 0x548   : > { %9104 = vrot.lane.b32.xlu0 %v9029_v3, %s10834_s27  ;;  %v9034_v3 = vrot.slane %v16426_v23, 5  ;;  %v9040_v1 = vrot.slane %v8895_v30, 5 }
 0x549   : > { %v6291_v15 = vpop.permute.xlu1 %6290  ;;  %v9808_v59 = vpop.f32.mrf.mxu1  ;;  %v8771_v33 = vrot.slane %v8769_v17, 5 }
 0x54a   : > { %6373 = vst.msk [vmem:[#allocation4 + $0x138] sm:$0xf] %vm6346_vm1, %v6291_v15  ;;  %v9073_v63 = vpop.permute.xlu0 %9072  ;;  %v9236_v45 = vld [vmem:[#allocation4 + $0x12c] sm:$0xff]  ;;  %v6746_v15 = vor.u32 %v6744_v27, %v6743_v6  ;;  %v9035_v13 = vsel %vm12306_vm12, %v9033_v53, %v9034_v3  ;;  %v9036_v28 = vrot.slane %v9034_v3, 4 }
 0x54b   : > { %v10796_v40 = vld [vmem:[#allocation4 + $0x124] ss:$12 sps:$4 sm:$0xff]   ;;  %9165 = vst.msk [vmem:[#allocation4 + $0xbc] sm:$0xf] %vm16810_vm10, %v9073_v63  ;;  %7979 = vrot.lane.b32.xlu1 %v7900_v57, %s10838_s25  ;;  %v10341_v46 = vcombine.low %v9234_v20, %v9236_v45  ;;  %v8775_v58 = vor.u32 %v8774_v22, %v8771_v33  ;;  %v6739_v45 = vrot.slane %v16395_v61, 4 }
 0x54c   : > { %7436 = vrot.lane.b32.xlu0 %v7365_v14, %s10834_s27  ;;  %9873 = vmatprep.mubr.bf16.mxu1 %v10796_v40  ;;  %v9030_v40 = vrot.slane %v9028_v21, 4  ;;  %v8781_v14 = vrot.slane %v8779_v7, 5  ;;  %v9041_v21 = vsel %vm12306_vm12, %v9039_v34, %v9040_v1 }
 0x54d   : > { %v7964_v50 = vpop.permute.xlu1 %7963  ;;  %9874 = vmatmul.mubr.bf16.gmra.mxu1 %v10341_v46  ;;  %v8776_v49 = vsel %vm12508_vm0, %v8767_v2, %v8775_v58  ;;  %v6747_v59 = vsel %vm11239_vm7, %v6739_v45, %v6746_v15  ;;  %v8777_v61 = vrot.slane %v8775_v58, 4  ;;  %vm16812_vm7 = vmmov %vm16811_vm3 }
 0x54e   : > { %8045 = vst.msk [vmem:[#allocation4 + $0x13c] sm:$0xf] %vm6346_vm1, %v7964_v50  ;;  %v7421_v25 = vpop.permute.xlu0 %7420  ;;  %v10798_v56 = vld [vmem:[#allocation4 + $0x98] ss:$12 sps:$4 sm:$0xff]   ;;  %v9032_v51 = vsel %vm12306_vm12, %v9030_v40, %v9031_v44  ;;  %v8785_v36 = vor.u32 %v8784_v31, %v8781_v14  ;;  %v9038_v44 = vsel %vm12306_vm12, %v9036_v28, %v9037_v35 }
 0x54f   : > { %7501 = vst.msk [vmem:[#allocation4 + $0x148] sm:$0xf] %vm5836_vm2, %v7421_v25  ;;  %6816 = vrot.lane.b32.xlu1 %v6738_v4, %s10839_s14  ;;  %10661 = vmatprep.mubr.bf16.mxu0 %v10798_v56 }
 0x550   : > { %6308 = vrot.lane.b32.xlu0 %v6237_v48, %s10838_s25  ;;  %8857 = vst.msk [vmem:[#allocation4 + $0x1a0] sm:$0xf] %vm5506_vm4, %v8776_v49  ;;  %v8786_v18 = vsel %vm12508_vm0, %v8777_v61, %v8785_v36  ;;  %vm16813_vm0 = vmmov %vm16811_vm3 }
 0x551   : > { %v6801_v16 = vpop.permute.xlu1 %6800  ;;  %8858 = vst.msk [vmem:[#allocation4 + $0x1ac] sm:$0xf] %vm5506_vm4, %v8786_v18  ;;  %vm16814_vm12 = vmmov %vm16813_vm0 }
 0x552   : > { %6883 = vst.msk [vmem:[#allocation4 + $0x138] sm:$0xf] %vm6856_vm8, %v6801_v16  ;;  %v6293_v24 = vpop.permute.xlu0 %6292  ;;  %v10799_v57 = vld [vmem:[#allocation4 + $0xb0] ss:$12 sps:$4 sm:$0xff]   ;;  %vm16815_vm4 = vmmov %vm16813_vm0 }
 0x553   : > { %6374 = vst.msk [vmem:[#allocation4 + $0x144] sm:$0xf] %vm6346_vm1, %v6293_v24  ;;  %10711 = vrot.lane.b32.xlu1 %v10710_v26, %s10839_s14  ;;  %10662 = vmatmul.mubr.bf16.gmra.mxu0 %v10799_v57  ;;  %v16455_v20 = vpop.f32.mrf.mxu1  ;;  %vm16816_vm5 = vmmov %vm16813_vm0 }
 0x554   : > { %7981 = vrot.lane.b32.xlu0 %v7910_v55, %s10838_s25  ;;  %vm16817_vm14 = vmmov %vm16813_vm0  ;;  %s10686_s25 = smul.u32 288, %s16831_s19 }
 0x555   : > { %v8291_v63 = vpop.permute.xlu1 %8290  ;;  %v9813_v46 = vpop.f32.mrf.mxu1  ;;  %vm16818_vm15 = vmmov %vm16813_vm0 }
 0x556   : > { %8372 = vst.msk [vmem:[#allocation4 + $0x13c] sm:$0xf] %vm6856_vm8, %v8291_v63  ;;  %v7966_v32 = vpop.permute.xlu0 %7965  ;;  %vm16819_vm6 = vmmov %vm16813_vm0  ;;  %s16570_s17 = scalar_lea.vmem %s16696_s5, %s10686_s25 }
 0x557   : > { %8046 = vst.msk [vmem:[#allocation4 + $0x148] sm:$0xf] %vm6346_vm1, %v7966_v32  ;;  %9108 = vrot.lane.b32.xlu1 %v9035_v13, %s10834_s27  ;;  %v16471_v19 = vpop.f32.mrf.mxu1  ;;  %vm16820_vm9 = vmmov %vm16813_vm0 }
 0x558   : > { %6818 = vrot.lane.b32.xlu0 %v6747_v59, %s10839_s14  ;;  %vm16821_vm11 = vmmov %vm16813_vm0 }
 0x559   : > { %v9075_v42 = vpop.permute.xlu1 %9074  ;;  %v9816_v50 = vpop.f32.mrf.mxu1  ;;  %vm16822_vm13 = vmmov %vm16813_vm0 }
 0x55a   : > { %9166 = vst.msk [vmem:[#allocation4 + $0xc8] sm:$0xf] %vm16811_vm3, %v9075_v42  ;;  %v6803_v23 = vpop.permute.xlu0 %6802  ;;  %vm16823_vm10 = vmmov %vm16813_vm0 }
 0x55b   : > { %6884 = vst.msk [vmem:[#allocation4 + $0x144] sm:$0xf] %vm6856_vm8, %v6803_v23  ;;  %9112 = vrot.lane.b32.xlu1 %v9041_v21, %s10834_s27  ;;  %vm16824_vm3 = vmmov %vm16813_vm0 }
 0x55c   : > { %9106 = vrot.lane.b32.xlu0 %v9032_v51, %s10834_s27 }
 0x55d   : > { %v9079_v10 = vpop.permute.xlu1 %9078  ;;  %v9238_v4 = vld [vmem:[#allocation4 + $0x138] sm:$0xff] }
 0x55e   : > { %9168 = vst.msk [vmem:[#allocation4 + $0xe0] sm:$0xf] %vm16812_vm7, %v9079_v10  ;;  %v8293_v5 = vpop.permute.xlu0 %8292  ;;  %vm16825_vm7 = vmmov %vm16813_vm0 }
 0x55f   : > { %8373 = vst.msk [vmem:[#allocation4 + $0x148] sm:$0xf] %vm6856_vm8, %v8293_v5 }
 0x560   : > { %9110 = vrot.lane.b32.xlu0 %v9038_v44, %s10834_s27 }
 0x561   : > { %v7423_v54 = vpop.permute.xlu1 %7422 }
 0x562   : > { %7502 = vst.msk [vmem:[#allocation4 + $0x154] sm:$0xf] %vm5836_vm2, %v7423_v54  ;;  %v9077_v12 = vpop.permute.xlu0 %9076 }
 0x563   : > { %9167 = vst.msk [vmem:[#allocation4 + $0xd4] sm:$0xf] %vm16813_vm0, %v9077_v12 }
 0x565   : > { %v6295_v62 = vpop.permute.xlu1 %6294 }
 0x566   : > { %6375 = vst.msk [vmem:[#allocation4 + $0x150] sm:$0xf] %vm6346_vm1, %v6295_v62  ;;  %v9081_v25 = vpop.permute.xlu0 %9080  ;;  %v9240_v38 = vld [vmem:[#allocation4 + $0x144] sm:$0xff] }
 0x567   : > { %v10800_v56 = vld [vmem:[#allocation4 + $0x13c] ss:$12 sps:$4 sm:$0xff]   ;;  %9169 = vst.msk [vmem:[#allocation4 + $0xec] sm:$0xf] %vm16814_vm12, %v9081_v25  ;;  %v10344_v6 = vcombine.low %v9238_v4, %v9240_v38  ;;  %v16493_v26 = vpop.f32.mrf.mxu1  ;;  %vm16827_vm12 = vmmov %vm16813_vm0 }
 0x568   : > { %9881 = vmatprep.mubr.bf16.mxu1 %v10800_v56 }
 0x569   : > { %v7968_v48 = vpop.permute.xlu1 %7967  ;;  %9882 = vmatmul.mubr.bf16.gmra.mxu1 %v10344_v6  ;;  %v9821_v0 = vpop.f32.mrf.mxu1 }
 0x56a   : > { %8047 = vst.msk [vmem:[#allocation4 + $0x154] sm:$0xf] %vm6346_vm1, %v7968_v48  ;;  %v7425_v53 = vpop.permute.xlu0 %7424  ;;  %v10802_v3 = vld [vmem:[#allocation4 + $0xc8] ss:$12 sps:$4 sm:$0xff]  }
 0x56b   : > { %7503 = vst.msk [vmem:[#allocation4 + $0x160] sm:$0xf] %vm5836_vm2, %v7425_v53  ;;  %10665 = vmatprep.mubr.bf16.mxu0 %v10802_v3  ;;  %v16497_v30 = vpop.f32.mrf.mxu1 }
 0x56d   : > { %v6805_v35 = vpop.permute.xlu1 %6804  ;;  %v9824_v16 = vpop.f32.mrf.mxu1 }
 0x56e   : > { %6885 = vst.msk [vmem:[#allocation4 + $0x150] sm:$0xf] %vm6856_vm8, %v6805_v35  ;;  %v6297_v17 = vpop.permute.xlu0 %6296  ;;  %v10803_v8 = vld [vmem:[#allocation4 + $0xe0] ss:$12 sps:$4 sm:$0xff]  }
 0x56f   : > { %6376 = vst.msk [vmem:[#allocation4 + $0x15c] sm:$0xf] %vm6346_vm1, %v6297_v17  ;;  %10666 = vmatmul.mubr.bf16.gmra.mxu0 %v10803_v8 }
 0x571   : > { %v8295_v55 = vpop.permute.xlu1 %8294 }
 0x572   : > { %8374 = vst.msk [vmem:[#allocation4 + $0x154] sm:$0xf] %vm6856_vm8, %v8295_v55  ;;  %v7970_v27 = vpop.permute.xlu0 %7969 }
 0x573   : > { %8048 = vst.msk [vmem:[#allocation4 + $0x160] sm:$0xf] %vm6346_vm1, %v7970_v27 }
 0x575   : > { %v9083_v2 = vpop.permute.xlu1 %9082 }
 0x576   : > { %9170 = vst.msk [vmem:[#allocation4 + $0xf8] sm:$0xf] %vm16815_vm4, %v9083_v2  ;;  %v6807_v24 = vpop.permute.xlu0 %6806  ;;  %vm16828_vm4 = vmmov %vm16813_vm0 }
 0x577   : > { %6886 = vst.msk [vmem:[#allocation4 + $0x15c] sm:$0xf] %vm6856_vm8, %v6807_v24 }
 0x579   : > { %v9087_v57 = vpop.permute.xlu1 %9086  ;;  %v9242_v7 = vld [vmem:[#allocation4 + $0x150] sm:$0xff] }
 0x57a   : > { %9172 = vst.msk [vmem:[#allocation4 + $0x110] sm:$0xf] %vm16816_vm5, %v9087_v57  ;;  %v8297_v33 = vpop.permute.xlu0 %8296 }
 0x57b   : > { %8375 = vst.msk [vmem:[#allocation4 + $0x160] sm:$0xf] %vm6856_vm8, %v8297_v33 }
 0x57d   : > { %v7427_v22 = vpop.permute.xlu1 %7426  ;;  %v16507_v15 = vpop.f32.mrf.mxu1 }
 0x57e   : > { %7504 = vst.msk [vmem:[#allocation4 + $0x16c] sm:$0xf] %vm5836_vm2, %v7427_v22  ;;  %v9085_v13 = vpop.permute.xlu0 %9084 }
 0x57f   : > { %9171 = vst.msk [vmem:[#allocation4 + $0x104] sm:$0xf] %vm16817_vm14, %v9085_v13  ;;  %v9829_v1 = vpop.f32.mrf.mxu1 }
 0x581   : > { %v6299_v43 = vpop.permute.xlu1 %6298  ;;  %v16511_v34 = vpop.f32.mrf.mxu1 }
 0x582   : > { %6377 = vst.msk [vmem:[#allocation4 + $0x168] sm:$0xf] %vm6346_vm1, %v6299_v43  ;;  %v9089_v58 = vpop.permute.xlu0 %9088  ;;  %v9244_v39 = vld [vmem:[#allocation4 + $0x15c] sm:$0xff] }
 0x583   : > { %v10804_v63 = vld [vmem:[#allocation4 + $0x154] ss:$12 sps:$4 sm:$0xff]   ;;  %9173 = vst.msk [vmem:[#allocation4 + $0x11c] sm:$0xf] %vm16818_vm15, %v9089_v58  ;;  %v9832_v45 = vpop.f32.mrf.mxu1  ;;  %v10347_v40 = vcombine.low %v9242_v7, %v9244_v39 }
 0x584   : > { %9889 = vmatprep.mubr.bf16.mxu1 %v10804_v63 }
 0x585   : > { %v7972_v32 = vpop.permute.xlu1 %7971  ;;  %9890 = vmatmul.mubr.bf16.gmra.mxu1 %v10347_v40 }
 0x586   : > { %8049 = vst.msk [vmem:[#allocation4 + $0x16c] sm:$0xf] %vm6346_vm1, %v7972_v32  ;;  %v7429_v49 = vpop.permute.xlu0 %7428  ;;  %v10806_v14 = vld [vmem:[#allocation4 + $0xf8] ss:$12 sps:$4 sm:$0xff]  }
 0x587   : > { %7505 = vst.msk [vmem:[#allocation4 + $0x178] sm:$0xf] %vm5836_vm2, %v7429_v49  ;;  %10669 = vmatprep.mubr.bf16.mxu0 %v10806_v14  ;;  %v16556_v32 = vld [vmem:[%s16695_s4] ss:$0 sm:$0xff] }
 0x589   : > { %v6809_v59 = vpop.permute.xlu1 %6808 }
 0x58a   : > { %6887 = vst.msk [vmem:[#allocation4 + $0x168] sm:$0xf] %vm6856_vm8, %v6809_v59  ;;  %v6301_v46 = vpop.permute.xlu0 %6300  ;;  %v10807_v61 = vld [vmem:[#allocation4 + $0x110] ss:$12 sps:$4 sm:$0xff]  }
 0x58b   : > { %6378 = vst.msk [vmem:[#allocation4 + $0x174] sm:$0xf] %vm6346_vm1, %v6301_v46  ;;  %10670 = vmatmul.mubr.bf16.gmra.mxu0 %v10807_v61  ;;  %v9788_v61 = vadd.f32 %v16556_v32, %v16234_v60 }
 0x58d   : > { %v8299_v31 = vpop.permute.xlu1 %8298 }
 0x58e   : > { %8376 = vst.msk [vmem:[#allocation4 + $0x16c] sm:$0xf] %vm6856_vm8, %v8299_v31  ;;  %v7974_v21 = vpop.permute.xlu0 %7973 }
 0x58f   : > { %8050 = vst.msk [vmem:[#allocation4 + $0x178] sm:$0xf] %vm6346_vm1, %v7974_v21 }
 0x590   : > { %v16521_v51 = vpop.f32.mrf.mxu1 }
 0x591   : > { %v9091_v42 = vpop.permute.xlu1 %9090 }
 0x592   : > { %9174 = vst.msk [vmem:[#allocation4 + $0x128] sm:$0xf] %vm16819_vm6, %v9091_v42  ;;  %v6811_v28 = vpop.permute.xlu0 %6810  ;;  %v9837_v36 = vpop.f32.mrf.mxu1  ;;  %v9780_v42 = vadd.f32 %v16556_v32, %v16161_v47 }
 0x593   : > { %6888 = vst.msk [vmem:[#allocation4 + $0x174] sm:$0xf] %vm6856_vm8, %v6811_v28 }
 0x594   : > { %v16525_v50 = vpop.f32.mrf.mxu1 }
 0x595   : > { %v9095_v23 = vpop.permute.xlu1 %9094  ;;  %v9246_v62 = vld [vmem:[#allocation4 + $0x168] sm:$0xff] }
 0x596   : > { %9176 = vst.msk [vmem:[#allocation4 + $0x140] sm:$0xf] %vm16820_vm9, %v9095_v23  ;;  %v8301_v18 = vpop.permute.xlu0 %8300  ;;  %v9840_v10 = vpop.f32.mrf.mxu1 }
 0x597   : > { %8377 = vst.msk [vmem:[#allocation4 + $0x178] sm:$0xf] %vm6856_vm8, %v8301_v18  ;;  %v9791_v10 = vadd.f32 %v16556_v32, %v16251_v52 }
 0x599   : > { %v7431_v44 = vpop.permute.xlu1 %7430 }
 0x59a   : > { %7506 = vst.msk [vmem:[#allocation4 + $0x184] sm:$0xf] %vm5836_vm2, %v7431_v44  ;;  %v9093_v5 = vpop.permute.xlu0 %9092 }
 0x59b   : > { %9175 = vst.msk [vmem:[#allocation4 + $0x134] sm:$0xf] %vm16821_vm11, %v9093_v5 }
 0x59d   : > { %v6303_v54 = vpop.permute.xlu1 %6302 }
 0x59e   : > { %6379 = vst.msk [vmem:[#allocation4 + $0x180] sm:$0xf] %vm6346_vm1, %v6303_v54  ;;  %v9097_v12 = vpop.permute.xlu0 %9096  ;;  %v9248_v25 = vld [vmem:[#allocation4 + $0x174] sm:$0xff]  ;;  %v9783_v54 = vadd.f32 %v16556_v32, %v16186_v29 }
 0x59f   : > { %v10808_v4 = vld [vmem:[#allocation4 + $0x16c] ss:$12 sps:$4 sm:$0xff]   ;;  %9177 = vst.msk [vmem:[#allocation4 + $0x14c] sm:$0xf] %vm16822_vm13, %v9097_v12  ;;  %v10350_v38 = vcombine.low %v9246_v62, %v9248_v25 }
 0x5a0   : > { %9897 = vmatprep.mubr.bf16.mxu1 %v10808_v4 }
 0x5a1   : > { %v7976_v56 = vpop.permute.xlu1 %7975  ;;  %9898 = vmatmul.mubr.bf16.gmra.mxu1 %v10350_v38 }
 0x5a2   : > { %8051 = vst.msk [vmem:[#allocation4 + $0x184] sm:$0xf] %vm6346_vm1, %v7976_v56  ;;  %v7433_v6 = vpop.permute.xlu0 %7432  ;;  %v10810_v48 = vld [vmem:[#allocation4 + $0x128] ss:$12 sps:$4 sm:$0xff]  }
 0x5a3   : > { %7507 = vst.msk [vmem:[#allocation4 + $0x190] sm:$0xf] %vm5836_vm2, %v7433_v6  ;;  %10673 = vmatprep.mubr.bf16.mxu0 %v10810_v48  ;;  %v16535_v3 = vpop.f32.mrf.mxu1 }
 0x5a5   : > { %v6813_v53 = vpop.permute.xlu1 %6812  ;;  %v9845_v17 = vpop.f32.mrf.mxu1 }
 0x5a6   : > { %6889 = vst.msk [vmem:[#allocation4 + $0x180] sm:$0xf] %vm6856_vm8, %v6813_v53  ;;  %v6305_v0 = vpop.permute.xlu0 %6304  ;;  %v10811_v35 = vld [vmem:[#allocation4 + $0x140] ss:$12 sps:$4 sm:$0xff]  }
 0x5a7   : > { %6380 = vst.msk [vmem:[#allocation4 + $0x18c] sm:$0xf] %vm6346_vm1, %v6305_v0  ;;  %10674 = vmatmul.mubr.bf16.gmra.mxu0 %v10811_v35  ;;  %v16539_v16 = vpop.f32.mrf.mxu1 }
 0x5a9   : > { %v8303_v8 = vpop.permute.xlu1 %8302  ;;  %v9848_v27 = vpop.f32.mrf.mxu1 }
 0x5aa   : > { %8378 = vst.msk [vmem:[#allocation4 + $0x184] sm:$0xf] %vm6856_vm8, %v8303_v8  ;;  %v7978_v55 = vpop.permute.xlu0 %7977 }
 0x5ab   : > { %8052 = vst.msk [vmem:[#allocation4 + $0x190] sm:$0xf] %vm6346_vm1, %v7978_v55 }
 0x5ad   : > { %v9099_v2 = vpop.permute.xlu1 %9098 }
 0x5ae   : > { %9178 = vst.msk [vmem:[#allocation4 + $0x158] sm:$0xf] %vm16823_vm10, %v9099_v2  ;;  %v6815_v24 = vpop.permute.xlu0 %6814 }
 0x5af   : > { %6890 = vst.msk [vmem:[#allocation4 + $0x18c] sm:$0xf] %vm6856_vm8, %v6815_v24 }
 0x5b1   : > { %v9103_v57 = vpop.permute.xlu1 %9102  ;;  %v9250_v7 = vld [vmem:[#allocation4 + $0x180] sm:$0xff] }
 0x5b2   : > { %9180 = vst.msk [vmem:[#allocation4 + $0x170] sm:$0xf] %vm16824_vm3, %v9103_v57  ;;  %v8305_v33 = vpop.permute.xlu0 %8304 }
 0x5b3   : > { %8379 = vst.msk [vmem:[#allocation4 + $0x190] sm:$0xf] %vm6856_vm8, %v8305_v33 }
 0x5b5   : > { %v7435_v22 = vpop.permute.xlu1 %7434 }
 0x5b6   : > { %7508 = vst.msk [vmem:[#allocation4 + $0x19c] sm:$0xf] %vm5836_vm2, %v7435_v22  ;;  %v9101_v13 = vpop.permute.xlu0 %9100 }
 0x5b7   : > { %9179 = vst.msk [vmem:[#allocation4 + $0x164] sm:$0xf] %vm16825_vm7, %v9101_v13  ;;  %v16549_v43 = vpop.f32.mrf.mxu1  ;;  %v9804_v13 = vadd.f32 %v16556_v32, %v16384_v9  ;;  %v9799_v9 = vadd.f32 %v16556_v32, %v16335_v41  ;;  %v9820_v41 = vadd.f32 %v16556_v32, %v16493_v26 }
 0x5b9   : > { %v6307_v1 = vpop.permute.xlu1 %6306  ;;  %v9853_v45 = vpop.f32.mrf.mxu1 }
 0x5ba   : > { %6381 = vst.msk [vmem:[#allocation4 + $0x198] sm:$0xf] %vm6346_vm1, %v6307_v1  ;;  %v9105_v58 = vpop.permute.xlu0 %9104  ;;  %v9252_v39 = vld [vmem:[#allocation4 + $0x18c] sm:$0xff]  ;;  %v9807_v45 = vadd.f32 %v16556_v32, %v16407_v11 }
 0x5bb   : > { %v10812_v63 = vld [vmem:[#allocation4 + $0x184] ss:$12 sps:$4 sm:$0xff]   ;;  %9181 = vst.msk [vmem:[#allocation4 + $0x17c] sm:$0xf] %vm16813_vm0, %v9105_v58  ;;  %v10353_v40 = vcombine.low %v9250_v7, %v9252_v39  ;;  %v16558_v14 = vpop.f32.mrf.mxu1  ;;  %v9796_v7 = vadd.f32 %v16556_v32, %v16314_v37 }
 0x5bc   : > { %9905 = vmatprep.mubr.bf16.mxu1 %v10812_v63 }
 0x5bd   : > { %v7980_v49 = vpop.permute.xlu1 %7979  ;;  %9906 = vmatmul.mubr.bf16.gmra.mxu1 %v10353_v40  ;;  %v9856_v31 = vpop.f32.mrf.mxu1 }
 0x5be   : > { %8053 = vst.msk [vmem:[#allocation4 + $0x19c] sm:$0xf] %vm6346_vm1, %v7980_v49  ;;  %v7437_v59 = vpop.permute.xlu0 %7436  ;;  %v10814_v46 = vld [vmem:[#allocation4 + $0x158] ss:$12 sps:$4 sm:$0xff]   ;;  %v10651_v21 = vpop.f32.mrf.mxu0 }
 0x5bf   : > { %7509 = vst.msk [vmem:[#allocation4 + $0x1a8] sm:$0xf] %vm5836_vm2, %v7437_v59  ;;  %10677 = vmatprep.mubr.bf16.mxu0 %v10814_v46  ;;  %v9965_v28 = vadd.f32 %v10651_v21, %v9788_v61  ;;  %vm16826_vm2 = vmmov %vm16813_vm0 }
 0x5c0   : > { %v9956_v60 = vpop.f32.mrf.mxu0 }
 0x5c1   : > { %v6817_v36 = vpop.permute.xlu1 %6816  ;;  %v10101_v44 = vmax.f32 %v9965_v28, 0.0  ;;  %v9957_v47 = vadd.f32 %v9956_v60, %v9780_v42 }
 0x5c2   : > { %6891 = vst.msk [vmem:[#allocation4 + $0x198] sm:$0xf] %vm6856_vm8, %v6817_v36  ;;  %v6309_v23 = vpop.permute.xlu0 %6308  ;;  %v10815_v18 = vld [vmem:[#allocation4 + $0x170] ss:$12 sps:$4 sm:$0xff]   ;;  %v10652_v5 = vpop.f32.mrf.mxu0 }
 0x5c3   : > { %6382 = vst.msk [vmem:[#allocation4 + $0x1a4] sm:$0xf] %vm6346_vm1, %v6309_v23  ;;  %10678 = vmatmul.mubr.bf16.gmra.mxu0 %v10815_v18  ;;  %10137 = vst [vmem:[%s16570_s17 + $0x10] sm:$0xff] %v10101_v44  ;;  %v10099_v12 = vmax.f32 %v9957_v47, 0.0  ;;  %v9968_v62 = vadd.f32 %v10652_v5, %v9791_v10  ;;  %v9812_v18 = vadd.f32 %v16556_v32, %v16455_v20 }
 0x5c4   : > { %v9959_v6 = vpop.f32.mrf.mxu0  ;;  %v9823_v47 = vadd.f32 %v16556_v32, %v16497_v30 }
 0x5c5   : > { %v10712_v25 = vpop.permute.xlu1 %10711  ;;  %10135 = vst [vmem:[%s16570_s17] sm:$0xff] %v10099_v12  ;;  %v10102_v52 = vmax.f32 %v9968_v62, 0.0  ;;  %v9960_v48 = vadd.f32 %v9959_v6, %v9783_v54  ;;  %v9815_v62 = vadd.f32 %v16556_v32, %v16471_v19  ;;  %v9836_v19 = vadd.f32 %v16556_v32, %v16521_v51 }
 0x5c6   : > { %v10714_v4 = vunpack.i.h.bf16 %v10712_v25  ;;  %v10713_v38 = vunpack.i.l.bf16 %v10712_v25  ;;  %v7982_v56 = vpop.permute.xlu0 %7981 }
 0x5c7   : > { %8054 = vst.msk [vmem:[#allocation4 + $0x1a8] sm:$0xf] %vm6346_vm1, %v7982_v56  ;;  %10138 = vst [vmem:[%s16570_s17 + $0x18] sm:$0xff] %v10102_v52  ;;  %v10100_v29 = vmax.f32 %v9960_v48, 0.0 }
 0x5c8   : > { %8380 = vst.msk [vmem:[#allocation4 + $0x19c] sm:$0xf] %vm6856_vm8, %v10713_v38  ;;  %8381 = vst.msk [vmem:[#allocation4 + $0x1a8] sm:$0xf] %vm6856_vm8, %v10714_v4 }
 0x5c9   : > { %v9109_v53 = vpop.permute.xlu1 %9108  ;;  %10136 = vst [vmem:[%s16570_s17 + $0x8] sm:$0xff] %v10100_v29  ;;  %vm16829_vm1 = vmmov %vm16813_vm0 }
 0x5ca   : > { %v6819_v0 = vpop.permute.xlu0 %6818  ;;  %9183 = vst.msk [vmem:[#allocation4 + $0x194] sm:$0xf] %vm16826_vm2, %v9109_v53  ;;  %v9828_v53 = vadd.f32 %v16556_v32, %v16507_v15 }
 0x5cb   : > { %6892 = vst.msk [vmem:[#allocation4 + $0x1a4] sm:$0xf] %vm6856_vm8, %v6819_v0 }
 0x5cd   : > { %v9113_v35 = vpop.permute.xlu1 %9112 }
 0x5ce   : > { %v9107_v17 = vpop.permute.xlu0 %9106  ;;  %9185 = vst.msk [vmem:[#allocation4 + $0x1ac] sm:$0xf] %vm16827_vm12, %v9113_v35 }
 0x5cf   : > { %9182 = vst.msk [vmem:[#allocation4 + $0x188] sm:$0xf] %vm16828_vm4, %v9107_v17  ;;  %v10816_v55 = vld [vmem:[#allocation4 + $0x19c] ss:$12 sps:$4 sm:$0xff]   ;;  %v9839_v17 = vadd.f32 %v16556_v32, %v16525_v50 }
 0x5d0   : > { %9913 = vmatprep.mubr.bf16.mxu1 %v10816_v55 }
 0x5d2   : > { %v9111_v8 = vpop.permute.xlu0 %9110  ;;  %v10818_v27 = vld [vmem:[#allocation4 + $0x198] ss:$12 sps:$4 sm:$0xff]  }
 0x5d3   : > { %9184 = vst.msk [vmem:[#allocation4 + $0x1a0] sm:$0xf] %vm16829_vm1, %v9111_v8  ;;  %v16590_v2 = vpop.f32.mrf.mxu1  ;;  %9914 = vmatmul.mubr.bf16.gmra.mxu1 %v10818_v27 }
 0x5d5   : > { %v9861_v57 = vpop.f32.mrf.mxu1 }
 0x5d6   : > { %v10819_v24 = vld [vmem:[#allocation4 + $0x188] ss:$12 sps:$4 sm:$0xff]  }
 0x5d7   : > { %10681 = vmatprep.mubr.bf16.mxu0 %v10819_v24  ;;  %v16592_v33 = vpop.f32.mrf.mxu1  ;;  %v9831_v24 = vadd.f32 %v16556_v32, %v16511_v34 }
 0x5d9   : > { %v9864_v1 = vpop.f32.mrf.mxu1  ;;  %v10655_v58 = vpop.f32.mrf.mxu0 }
 0x5da   : > { %v10820_v22 = vld [vmem:[#allocation4 + $0x1a0] ss:$12 sps:$4 sm:$0xff]   ;;  %v9981_v39 = vadd.f32 %v10655_v58, %v9804_v13 }
 0x5db   : > { %10682 = vmatmul.mubr.bf16.gmra.mxu0 %v10820_v22  ;;  %v9972_v63 = vpop.f32.mrf.mxu0 }
 0x5dc   : > { %v10105_v40 = vmax.f32 %v9981_v39, 0.0  ;;  %v9973_v49 = vadd.f32 %v9972_v63, %v9796_v7  ;;  %v9852_v39 = vadd.f32 %v16556_v32, %v16549_v43 }
 0x5dd   : > { %v10656_v59 = vpop.f32.mrf.mxu0 }
 0x5de   : > { %10141 = vst [vmem:[%s16570_s17 + $0x30] sm:$0xff] %v10105_v40  ;;  %v10103_v46 = vmax.f32 %v9973_v49, 0.0  ;;  %v9984_v61 = vadd.f32 %v10656_v59, %v9807_v45  ;;  %v9844_v45 = vadd.f32 %v16556_v32, %v16535_v3  ;;  %v9855_v59 = vadd.f32 %v16556_v32, %v16558_v14 }
 0x5df   : > { %v9975_v31 = vpop.f32.mrf.mxu0 }
 0x5e0   : > { %10139 = vst [vmem:[%s16570_s17 + $0x20] sm:$0xff] %v10103_v46  ;;  %v10106_v21 = vmax.f32 %v9984_v61, 0.0  ;;  %v9976_v42 = vadd.f32 %v9975_v31, %v9799_v9  ;;  %v9847_v31 = vadd.f32 %v16556_v32, %v16539_v16 }
 0x5e2   : > { %10142 = vst [vmem:[%s16570_s17 + $0x38] sm:$0xff] %v10106_v21  ;;  %v10104_v37 = vmax.f32 %v9976_v42, 0.0 }
 0x5e4   : > { %10140 = vst [vmem:[%s16570_s17 + $0x28] sm:$0xff] %v10104_v37 }
 0x5ef   : > { %v16606_v28 = vpop.f32.mrf.mxu1 }
 0x5f1   : > { %v9869_v11 = vpop.f32.mrf.mxu1 }
 0x5f3   : > { %v16608_v36 = vpop.f32.mrf.mxu1 }
 0x5f5   : > { %v9872_v23 = vpop.f32.mrf.mxu1  ;;  %v10659_v60 = vpop.f32.mrf.mxu0 }
 0x5f6   : > { %v9997_v10 = vadd.f32 %v10659_v60, %v9820_v41  ;;  %v9868_v60 = vadd.f32 %v16556_v32, %v16606_v28 }
 0x5f7   : > { %v9988_v44 = vpop.f32.mrf.mxu0 }
 0x5f8   : > { %v10109_v5 = vmax.f32 %v9997_v10, 0.0  ;;  %v9989_v54 = vadd.f32 %v9988_v44, %v9812_v18  ;;  %v9860_v10 = vadd.f32 %v16556_v32, %v16590_v2 }
 0x5f9   : > { %v10660_v12 = vpop.f32.mrf.mxu0 }
 0x5fa   : > { %10145 = vst [vmem:[%s16570_s17 + $0x50] sm:$0xff] %v10109_v5  ;;  %v10107_v26 = vmax.f32 %v9989_v54, 0.0  ;;  %v10000_v25 = vadd.f32 %v10660_v12, %v9823_v47  ;;  %v9871_v5 = vadd.f32 %v16556_v32, %v16608_v36 }
 0x5fb   : > { %v9991_v4 = vpop.f32.mrf.mxu0 }
 0x5fc   : > { %10143 = vst [vmem:[%s16570_s17 + $0x40] sm:$0xff] %v10107_v26  ;;  %v10110_v38 = vmax.f32 %v10000_v25, 0.0  ;;  %v9992_v56 = vadd.f32 %v9991_v4, %v9815_v62  ;;  %v9863_v26 = vadd.f32 %v16556_v32, %v16592_v33 }
 0x5fe   : > { %10146 = vst [vmem:[%s16570_s17 + $0x58] sm:$0xff] %v10110_v38  ;;  %v10108_v20 = vmax.f32 %v9992_v56, 0.0 }
 0x600   : > { %10144 = vst [vmem:[%s16570_s17 + $0x48] sm:$0xff] %v10108_v20 }
 0x60d   : > { %v16622_v6 = vpop.f32.mrf.mxu1 }
 0x60e   : > { %v9876_v33 = vadd.f32 %v16556_v32, %v16622_v6 }
 0x60f   : > { %v9877_v30 = vpop.f32.mrf.mxu1 }
 0x611   : > { %v16624_v52 = vpop.f32.mrf.mxu1 }
 0x613   : > { %v9880_v48 = vpop.f32.mrf.mxu1  ;;  %v10663_v29 = vpop.f32.mrf.mxu0 }
 0x614   : > { %v10013_v0 = vadd.f32 %v10663_v29, %v9836_v19 }
 0x615   : > { %v10004_v35 = vpop.f32.mrf.mxu0 }
 0x616   : > { %v10113_v8 = vmax.f32 %v10013_v0, 0.0  ;;  %v10005_v55 = vadd.f32 %v10004_v35, %v9828_v53 }
 0x617   : > { %v10664_v27 = vpop.f32.mrf.mxu0 }
 0x618   : > { %10149 = vst [vmem:[%s16570_s17 + $0x70] sm:$0xff] %v10113_v8  ;;  %v10111_v51 = vmax.f32 %v10005_v55, 0.0  ;;  %v10016_v57 = vadd.f32 %v10664_v27, %v9839_v17  ;;  %v9879_v27 = vadd.f32 %v16556_v32, %v16624_v52 }
 0x619   : > { %v10007_v22 = vpop.f32.mrf.mxu0 }
 0x61a   : > { %10147 = vst [vmem:[%s16570_s17 + $0x60] sm:$0xff] %v10111_v51  ;;  %v10114_v13 = vmax.f32 %v10016_v57, 0.0  ;;  %v10008_v1 = vadd.f32 %v10007_v22, %v9831_v24 }
 0x61c   : > { %10150 = vst [vmem:[%s16570_s17 + $0x78] sm:$0xff] %v10114_v13  ;;  %v10112_v15 = vmax.f32 %v10008_v1, 0.0 }
 0x61e   : > { %10148 = vst [vmem:[%s16570_s17 + $0x68] sm:$0xff] %v10112_v15 }
 0x629   : > { %v9883_v58 = vpop.f32.mrf.mxu1 }
 0x62a   : > { %v9884_v19 = vadd.f32 %v16556_v32, %v9883_v58 }
 0x62b   : > { %v9885_v7 = vpop.f32.mrf.mxu1 }
 0x62d   : > { %v9886_v50 = vpop.f32.mrf.mxu1 }
 0x62e   : > { %v9887_v35 = vadd.f32 %v16556_v32, %v9886_v50 }
 0x62f   : > { %v9888_v63 = vpop.f32.mrf.mxu1  ;;  %v10667_v34 = vpop.f32.mrf.mxu0 }
 0x630   : > { %v10029_v40 = vadd.f32 %v10667_v34, %v9852_v39 }
 0x631   : > { %v10020_v49 = vpop.f32.mrf.mxu0 }
 0x632   : > { %v10117_v9 = vmax.f32 %v10029_v40, 0.0  ;;  %v10021_v46 = vadd.f32 %v10020_v49, %v9844_v45 }
 0x633   : > { %v10668_v61 = vpop.f32.mrf.mxu0 }
 0x634   : > { %10153 = vst [vmem:[%s16570_s17 + $0x90] sm:$0xff] %v10117_v9  ;;  %v10115_v43 = vmax.f32 %v10021_v46, 0.0  ;;  %v10032_v21 = vadd.f32 %v10668_v61, %v9855_v59 }
 0x635   : > { %v10023_v42 = vpop.f32.mrf.mxu0 }
 0x636   : > { %10151 = vst [vmem:[%s16570_s17 + $0x80] sm:$0xff] %v10115_v43  ;;  %v10118_v37 = vmax.f32 %v10032_v21, 0.0  ;;  %v10024_v11 = vadd.f32 %v10023_v42, %v9847_v31 }
 0x638   : > { %10154 = vst [vmem:[%s16570_s17 + $0x98] sm:$0xff] %v10118_v37  ;;  %v10116_v3 = vmax.f32 %v10024_v11, 0.0 }
 0x63a   : > { %10152 = vst [vmem:[%s16570_s17 + $0x88] sm:$0xff] %v10116_v3 }
 0x645   : > { %v9891_v41 = vpop.f32.mrf.mxu1 }
 0x646   : > { %v9892_v52 = vadd.f32 %v16556_v32, %v9891_v41 }
 0x647   : > { %v9893_v23 = vpop.f32.mrf.mxu1 }
 0x649   : > { %v9894_v14 = vpop.f32.mrf.mxu1 }
 0x64a   : > { %v9895_v9 = vadd.f32 %v16556_v32, %v9894_v14 }
 0x64b   : > { %v9896_v18 = vpop.f32.mrf.mxu1  ;;  %v10671_v16 = vpop.f32.mrf.mxu0 }
 0x64c   : > { %v10045_v44 = vadd.f32 %v10671_v16, %v9868_v60 }
 0x64d   : > { %v10036_v47 = vpop.f32.mrf.mxu0 }
 0x64e   : > { %v10121_v54 = vmax.f32 %v10045_v44, 0.0  ;;  %v10037_v12 = vadd.f32 %v10036_v47, %v9860_v10 }
 0x64f   : > { %v10672_v62 = vpop.f32.mrf.mxu0 }
 0x650   : > { %10157 = vst [vmem:[%s16570_s17 + $0xb0] sm:$0xff] %v10121_v54  ;;  %v10119_v28 = vmax.f32 %v10037_v12, 0.0  ;;  %v10048_v25 = vadd.f32 %v10672_v62, %v9871_v5 }
 0x651   : > { %v10039_v4 = vpop.f32.mrf.mxu0 }
 0x652   : > { %10155 = vst [vmem:[%s16570_s17 + $0xa0] sm:$0xff] %v10119_v28  ;;  %v10122_v38 = vmax.f32 %v10048_v25, 0.0  ;;  %v10040_v56 = vadd.f32 %v10039_v4, %v9863_v26 }
 0x654   : > { %10158 = vst [vmem:[%s16570_s17 + $0xb8] sm:$0xff] %v10122_v38  ;;  %v10120_v2 = vmax.f32 %v10040_v56, 0.0 }
 0x656   : > { %10156 = vst [vmem:[%s16570_s17 + $0xa8] sm:$0xff] %v10120_v2 }
 0x661   : > { %v9899_v20 = vpop.f32.mrf.mxu1 }
 0x662   : > { %v9900_v7 = vadd.f32 %v16556_v32, %v9899_v20 }
 0x663   : > { %v9901_v30 = vpop.f32.mrf.mxu1 }
 0x665   : > { %v9902_v36 = vpop.f32.mrf.mxu1 }
 0x666   : > { %v9903_v45 = vadd.f32 %v16556_v32, %v9902_v36 }
 0x667   : > { %v9904_v48 = vpop.f32.mrf.mxu1  ;;  %v10675_v29 = vpop.f32.mrf.mxu0 }
 0x668   : > { %v10061_v53 = vadd.f32 %v10675_v29, %v9884_v19 }
 0x669   : > { %v10052_v0 = vpop.f32.mrf.mxu0 }
 0x66a   : > { %v10125_v17 = vmax.f32 %v10061_v53, 0.0  ;;  %v10053_v8 = vadd.f32 %v10052_v0, %v9876_v33 }
 0x66b   : > { %v10676_v55 = vpop.f32.mrf.mxu0 }
 0x66c   : > { %10161 = vst [vmem:[%s16570_s17 + $0xd0] sm:$0xff] %v10125_v17  ;;  %v10123_v24 = vmax.f32 %v10053_v8, 0.0  ;;  %v10064_v51 = vadd.f32 %v10676_v55, %v9887_v35 }
 0x66d   : > { %v10055_v57 = vpop.f32.mrf.mxu0 }
 0x66e   : > { %10159 = vst [vmem:[%s16570_s17 + $0xc0] sm:$0xff] %v10123_v24  ;;  %v10126_v22 = vmax.f32 %v10064_v51, 0.0  ;;  %v10056_v13 = vadd.f32 %v10055_v57, %v9879_v27 }
 0x670   : > { %10162 = vst [vmem:[%s16570_s17 + $0xd8] sm:$0xff] %v10126_v22  ;;  %v10124_v6 = vmax.f32 %v10056_v13, 0.0 }
 0x672   : > { %10160 = vst [vmem:[%s16570_s17 + $0xc8] sm:$0xff] %v10124_v6 }
 0x67d   : > { %v9907_v1 = vpop.f32.mrf.mxu1 }
 0x67e   : > { %v9908_v14 = vadd.f32 %v16556_v32, %v9907_v1 }
 0x67f   : > { %v9909_v15 = vpop.f32.mrf.mxu1 }
 0x681   : > { %v9910_v58 = vpop.f32.mrf.mxu1 }
 0x682   : > { %v9911_v54 = vadd.f32 %v16556_v32, %v9910_v58 }
 0x683   : > { %v9912_v50 = vpop.f32.mrf.mxu1  ;;  %v10679_v39 = vpop.f32.mrf.mxu0 }
 0x684   : > { %v10077_v63 = vadd.f32 %v10679_v39, %v9900_v7 }
 0x685   : > { %v10068_v34 = vpop.f32.mrf.mxu0 }
 0x686   : > { %v10129_v40 = vmax.f32 %v10077_v63, 0.0  ;;  %v10069_v49 = vadd.f32 %v10068_v34, %v9892_v52 }
 0x687   : > { %v10680_v59 = vpop.f32.mrf.mxu0 }
 0x688   : > { %10165 = vst [vmem:[%s16570_s17 + $0xf0] sm:$0xff] %v10129_v40  ;;  %v10127_v46 = vmax.f32 %v10069_v49, 0.0  ;;  %v10080_v61 = vadd.f32 %v10680_v59, %v9903_v45 }
 0x689   : > { %v10071_v31 = vpop.f32.mrf.mxu0 }
 0x68a   : > { %10163 = vst [vmem:[%s16570_s17 + $0xe0] sm:$0xff] %v10127_v46  ;;  %v10130_v43 = vmax.f32 %v10080_v61, 0.0  ;;  %v10072_v21 = vadd.f32 %v10071_v31, %v9895_v9 }
 0x68c   : > { %10166 = vst [vmem:[%s16570_s17 + $0xf8] sm:$0xff] %v10130_v43  ;;  %v10128_v42 = vmax.f32 %v10072_v21, 0.0 }
 0x68e   : > { %10164 = vst [vmem:[%s16570_s17 + $0xe8] sm:$0xff] %v10128_v42 }
 0x693   : > { %v9915_v37 = vpop.f32.mrf.mxu1 }
 0x694   : > { %v9916_v41 = vadd.f32 %v16556_v32, %v9915_v37 }
 0x695   : > { %v9917_v11 = vpop.f32.mrf.mxu1 }
 0x697   : > { %v9918_v3 = vpop.f32.mrf.mxu1 }
 0x698   : > { %v9919_v10 = vadd.f32 %v16556_v32, %v9918_v3 }
 0x699   : > { %v9920_v23 = vpop.f32.mrf.mxu1 }
 0x69b   : > { %v10683_v60 = vpop.f32.mrf.mxu0 }
 0x69c   : > { %v10093_v18 = vadd.f32 %v10683_v60, %v9916_v41 }
 0x69d   : > { %v10084_v16 = vpop.f32.mrf.mxu0 }
 0x69e   : > { %v10133_v44 = vmax.f32 %v10093_v18, 0.0  ;;  %v10085_v47 = vadd.f32 %v10084_v16, %v9908_v14 }
 0x69f   : > { %v10684_v5 = vpop.f32.mrf.mxu0 }
 0x6a0   : > { %10169 = vst [vmem:[%s16570_s17 + $0x110] sm:$0xff] %v10133_v44  ;;  %v10131_v12 = vmax.f32 %v10085_v47, 0.0  ;;  %v10096_v62 = vadd.f32 %v10684_v5, %v9919_v10 }
 0x6a1   : > { %v10087_v26 = vpop.f32.mrf.mxu0 }
 0x6a2   : > { %10167 = vst [vmem:[%s16570_s17 + $0x100] sm:$0xff] %v10131_v12  ;;  %v10134_v28 = vmax.f32 %v10096_v62, 0.0  ;;  %v10088_v25 = vadd.f32 %v10087_v26, %v9911_v54 }
 0x6a4   : > { %10170 = vst [vmem:[%s16570_s17 + $0x118] sm:$0xff] %v10134_v28  ;;  %v10132_v4 = vmax.f32 %v10088_v25, 0.0 }
 0x6a6   : > { %10168 = vst [vmem:[%s16570_s17 + $0x108] sm:$0xff] %v10132_v4 }
 0x6a7 PF: > { %s15_s18 = sadd.s32 1, %s10828_s18  }
 0x6a8   : > { %p12_p4 = scmp.ge.s32.totalorder %s15_s18, 4  }
 0x6aa   :  { %14 = sbr.rel (!%p12_p4) target bundleno = 1 (0x1), region = 70 }

</bundles_post_ra>
